<compile_context>
chip_gen: v7x
topology: tpu7x:2x2x1
jax: 0.10.0
libtpu: 0.0.40
codegen_flags: <defaults>
</compile_context>

<pallas_src>
import functools
import math

import jax
import jax.numpy as jnp
from jax import lax
from jax.experimental import pallas as pl
from jax.experimental.pallas import tpu as pltpu

_BN_EPS = 1e-5
# ResNet1D-18: layers=[2,2,2,2]; first block of layer3/layer4 has stride 2.
_BLOCK_STRIDES = (1, 1, 1, 1, 2, 1, 2, 1)
# MaxPool1d(k=3, s=3, p=1) after layer2 (block idx 3) and after layer3 (block idx 5).
_MAXPOOL_AFTER = (3, 5)


def _elu(x):
    # ELU(alpha=1): x if x > 0 else exp(x) - 1
    return jnp.where(x > 0, x, jnp.exp(jnp.minimum(x, 0.0)) - 1.0)


# ------------------------- in-kernel building blocks -------------------------

def _select_rows(x, start, stride, n_rows):
    """rows[i] = x[start + stride*i]  via a tiny one-hot matmul (static indices)."""
    l = x.shape[0]
    r = lax.broadcasted_iota(jnp.int32, (n_rows, l), 0)
    c = lax.broadcasted_iota(jnp.int32, (n_rows, l), 1)
    sel = (c == start + stride * r).astype(jnp.float32)
    return jnp.dot(sel, x, preferred_element_type=jnp.float32)


def _im2col_same(x, k):
    """k-tap, stride-1, 'same' (pad=k//2) im2col: (L, C) -> (L, k*C)."""
    l, c = x.shape
    pad = k // 2
    z = jnp.zeros((pad, c), jnp.float32)
    xp = jnp.concatenate([z, x, z], axis=0)                 # (L + 2*pad, C)
    return jnp.concatenate([xp[t:t + l, :] for t in range(k)], axis=-1)


def _conv_same_s1(x, w2d, k):
    """stride-1 'same' conv: (L, Cin) x (k*Cin, Cout) -> (L, Cout)."""
    return jnp.dot(_im2col_same(x, k), w2d, preferred_element_type=jnp.float32)


def _conv_same_s2(x, w2d, k, stride):
    """strided 'same' conv: compute stride-1 conv then subsample rows 0,s,2s,..."""
    l = x.shape[0]
    pad = k // 2
    l_out = (l + 2 * pad - k) // stride + 1
    y_full = _conv_same_s1(x, w2d, k)                       # (L, Cout)
    return _select_rows(y_full, 0, stride, l_out)           # (l_out, Cout)


def _maxpool_k3_s3_p1(x):
    """MaxPool1d(kernel=3, stride=3, padding=1) on (L, C)."""
    l, c = x.shape
    l_out = (l - 1) // 3 + 1
    neg = jnp.full((1, c), -1e30, jnp.float32)              # pad value ignored by max
    xp = jnp.concatenate([neg, x, neg], axis=0)             # (L+2, C)
    m = jnp.maximum(jnp.maximum(xp[0:l, :], xp[1:l + 1, :]), xp[2:l + 2, :])
    return _select_rows(m, 0, 3, l_out)


def _basic_block(x, p, stride):
    """BasicBlock: bn0 -> elu -> conv1 -> bn1 -> elu -> conv2 (+ downsample residual)."""
    out0 = _elu(x * p['bn0_s'] + p['bn0_b'])                # bn0 + ELU (dropout no-op)
    if stride == 1:
        y = _conv_same_s1(out0, p['w1'], 3)
    else:
        y = _conv_same_s2(out0, p['w1'], 3, stride)
    y = _elu(y * p['bn1_s'] + p['bn1_b'])                   # bn1 + ELU (dropout no-op)
    out = _conv_same_s1(y, p['w2'], 3)                      # conv2 (no bn, no act)
    if 'wd' in p:                                           # downsample = BN(conv1x1)
        idn = out0 if stride == 1 else _select_rows(out0, 0, stride, y.shape[0])
        idn = jnp.dot(idn, p['wd'], preferred_element_type=jnp.float32)
        idn = idn * p['bnd_s'] + p['bnd_b']
    else:
        idn = out0
    return out + idn


# ------------------------------- fused kernel --------------------------------

def _resnet_kernel(*refs, treedef, block_strides, maxpool_after):
    x_ref = refs[0]
    out_ref = refs[-1]
    leaves = [r[...] for r in refs[1:-1]]                   # all params (VMEM resident)
    p = jax.tree_util.tree_unflatten(treedef, leaves)

    # stem conv (k=7, stride=2, pad=3) -- input arrives already im2col'd.
    h = jnp.dot(x_ref[...][0], p['stem_w'], preferred_element_type=jnp.float32)

    for bi, (bp, s) in enumerate(zip(p['blocks'], block_strides)):
        h = _basic_block(h, bp, s)
        if bi in maxpool_after:
            h = _maxpool_k3_s3_p1(h)

    # elu -> AdaptiveAvgPool1d(1) -> flatten -> fc
    h = _elu(h)
    pooled = jnp.sum(h, axis=0, keepdims=True) * (1.0 / h.shape[0])   # (1, 256)
    logits = jnp.dot(pooled, p['fc_w'], preferred_element_type=jnp.float32) + p['fc_b']
    out_ref[...] = logits.reshape(out_ref.shape).astype(out_ref.dtype)


def _stem_im2col(x, k, stride, pad):
    """Wrapper-side layout transform of the raw input: (B, L, C) -> (B, L_out, k*C)."""
    b, l_in, c = x.shape
    l_out = (l_in + 2 * pad - k) // stride + 1
    xp = jnp.pad(x, ((0, 0), (pad, pad), (0, 0)))
    taps = [xp[:, t:t + stride * (l_out - 1) + 1:stride, :] for t in range(k)]
    return jnp.concatenate(taps, axis=-1)


@jax.jit
def resnet18_pallas(kparams, x):
    # x: (B, 1, C, L) exactly like the PyTorch module.
    x = jnp.squeeze(x, axis=1)
    x = jnp.transpose(x, (0, 2, 1)).astype(jnp.float32)     # (B, L, C)
    xcol = _stem_im2col(x, 7, 2, 3)                         # (B, L0, 7*C)
    b, l0, kc = xcol.shape
    n_cls = kparams['fc_w'].shape[-1]

    leaves, treedef = jax.tree_util.tree_flatten(kparams)   # all leaves are 2-D
    kernel = functools.partial(_resnet_kernel, treedef=treedef,
                               block_strides=_BLOCK_STRIDES,
                               maxpool_after=_MAXPOOL_AFTER)

    in_specs = [pl.BlockSpec((1, l0, kc), lambda i: (i, 0, 0))]
    for leaf in leaves:
        in_specs.append(pl.BlockSpec(leaf.shape, lambda i: (0, 0)))

    out = pl.pallas_call(
        kernel,
        out_shape=jax.ShapeDtypeStruct((b, 1, n_cls), jnp.float32),
        grid=(b,),
        in_specs=in_specs,
        out_specs=pl.BlockSpec((1, 1, n_cls), lambda i: (i, 0, 0)),
        compiler_params=pltpu.CompilerParams(
            dimension_semantics=("parallel",),              # batch across TCs on v7x
            vmem_limit_bytes=32 * 1024 * 1024),             # ~4 MB weights, safe on v5e/v6e/v7x
    )(xcol, *leaves)
    return out[:, 0, :]


# --------------------------- parameters (synthetic) ---------------------------

def _fold_bn(gamma, beta, mean, var):
    scale = gamma / jnp.sqrt(var + _BN_EPS)
    return scale, beta - mean * scale


def _bn_init(key, c):
    k1, k2, k3, k4 = jax.random.split(key, 4)
    gamma = jax.random.uniform(k1, (c,), jnp.float32, 0.8, 1.2)
    beta = 0.1 * jax.random.normal(k2, (c,), jnp.float32)
    mean = 0.1 * jax.random.normal(k3, (c,), jnp.float32)
    var = jax.random.uniform(k4, (c,), jnp.float32, 0.8, 1.2)
    return _fold_bn(gamma, beta, mean, var)


def _conv_init(key, k, c_in, c_out):
    std = 1.0 / math.sqrt(c_in * k)
    return std * jax.random.normal(key, (k, c_in, c_out), jnp.float32)


def _block_init(key, c_in, c_out, k, downsample):
    ks = jax.random.split(key, 6)
    p = {}
    p['bn0_scale'], p['bn0_shift'] = _bn_init(ks[0], c_in)
    p['w1'] = _conv_init(ks[1], k, c_in, c_out)
    p['bn1_scale'], p['bn1_shift'] = _bn_init(ks[2], c_out)
    p['w2'] = _conv_init(ks[3], k, c_out, c_out)
    if downsample:
        p['wd'] = _conv_init(ks[4], 1, c_in, c_out)
        p['bnd_scale'], p['bnd_shift'] = _bn_init(ks[5], c_out)
    return p


def init_params(key, input_ch, num_classes):
    keys = jax.random.split(key, 10)
    params = {'stem_w': _conv_init(keys[0], 7, input_ch, 32)}
    cfg = [(32, 1), (64, 1), (128, 2), (256, 2)]            # (planes, stride) per layer
    blocks = []
    c_in = 32
    ki = 1
    for planes, stride in cfg:
        for bi in range(2):
            s = stride if bi == 0 else 1
            ds = (bi == 0) and (s != 1 or c_in != planes)
            blocks.append(_block_init(keys[ki], c_in, planes, 3, ds))
            ki += 1
            c_in = planes
    params['blocks'] = blocks
    kf1, kf2 = jax.random.split(keys[9], 2)
    params['fc_w'] = (1.0 / math.sqrt(256)) * jax.random.normal(
        kf1, (256, num_classes), jnp.float32)
    params['fc_b'] = 0.1 * jax.random.normal(kf2, (num_classes,), jnp.float32)
    return params


def prepare_kernel_params(params):
    """Reshape raw params to kernel-ready 2-D form (im2col weights, row scale/shift)."""
    def w2d(w):
        k, cin, cout = w.shape
        return w.reshape(k * cin, cout).astype(jnp.float32)

    def row(v):
        return v.reshape(1, -1).astype(jnp.float32)

    kp = {'stem_w': w2d(params['stem_w']), 'blocks': [],
          'fc_w': params['fc_w'].astype(jnp.float32), 'fc_b': row(params['fc_b'])}
    for p in params['blocks']:
        bp = {'bn0_s': row(p['bn0_scale']), 'bn0_b': row(p['bn0_shift']),
              'w1': w2d(p['w1']),
              'bn1_s': row(p['bn1_scale']), 'bn1_b': row(p['bn1_shift']),
              'w2': w2d(p['w2'])}
        if 'wd' in p:
            bp['wd'] = p['wd'][0].astype(jnp.float32)       # (1,Cin,Cout) -> (Cin,Cout)
            bp['bnd_s'] = row(p['bnd_scale'])
            bp['bnd_b'] = row(p['bnd_shift'])
        kp['blocks'].append(bp)
    return kp


# ----------------------------- pure-JAX reference -----------------------------

def _conv1d_ref(x, w, stride, padding):
    return lax.conv_general_dilated(
        x, w, window_strides=(stride,), padding=[(padding, padding)],
        dimension_numbers=('NWC', 'WIO', 'NWC'))


def _block_ref(x, p, stride):
    out0 = _elu(x * p['bn0_scale'] + p['bn0_shift'])
    out = _conv1d_ref(out0, p['w1'], stride, 1)
    out = _elu(out * p['bn1_scale'] + p['bn1_shift'])
    out = _conv1d_ref(out, p['w2'], 1, 1)
    if 'wd' in p:
        identity = (_conv1d_ref(out0, p['wd'], stride, 0) * p['bnd_scale']
                    + p['bnd_shift'])
    else:
        identity = out0
    return out + identity


def _maxpool_ref(x):
    return lax.reduce_window(x, -jnp.inf, lax.max, (1, 3, 1), (1, 3, 1),
                             [(0, 0), (1, 1), (0, 0)])


def resnet18_ref(params, x):
    x = jnp.squeeze(x, axis=1)
    x = jnp.transpose(x, (0, 2, 1)).astype(jnp.float32)
    x = _conv1d_ref(x, params['stem_w'], 2, 3)
    for bi, (p, s) in enumerate(zip(params['blocks'], _BLOCK_STRIDES)):
        x = _block_ref(x, p, s)
        if bi in _MAXPOOL_AFTER:
            x = _maxpool_ref(x)
    x = _elu(x)
    x = jnp.mean(x, axis=1)
    return x @ params['fc_w'] + params['fc_b']


# ------------------------------------ main ------------------------------------

if __name__ == "__main__":
    args = dict(res_layer=[], batch_size=2, aug_prob=0.0,
                n_classes=4, n_channels=4)
    B, L = args['batch_size'], 96

    key = jax.random.PRNGKey(0)
    kp, kx = jax.random.split(key)
    params = init_params(kp, args['n_channels'], args['n_classes'])
    kparams = prepare_kernel_params(params)
    x = jax.random.normal(kx, (B, 1, args['n_channels'], L), jnp.float32)

    out = jax.block_until_ready(resnet18_pallas(kparams, x))
    ref = jax.block_until_ready(resnet18_ref(params, x))

    assert out.shape == (B, args['n_classes']), out.shape
    err = float(jnp.max(jnp.abs(out - ref)))
    assert err < 2e-3, f"max abs error vs reference: {err}"
    print("KERNEL_OK")
</pallas_src>

<mosaic_0001>
module attributes {stable_mosaic.version = 11 : i64} {
  func.func @_resnet_kernel(%arg0: i32, %arg1: memref<1x48x28xf32, #tpu.memory_space<vmem>>, %arg2: memref<1x32xf32, #tpu.memory_space<vmem>>, %arg3: memref<1x32xf32, #tpu.memory_space<vmem>>, %arg4: memref<1x32xf32, #tpu.memory_space<vmem>>, %arg5: memref<1x32xf32, #tpu.memory_space<vmem>>, %arg6: memref<96x32xf32, #tpu.memory_space<vmem>>, %arg7: memref<96x32xf32, #tpu.memory_space<vmem>>, %arg8: memref<1x32xf32, #tpu.memory_space<vmem>>, %arg9: memref<1x32xf32, #tpu.memory_space<vmem>>, %arg10: memref<1x32xf32, #tpu.memory_space<vmem>>, %arg11: memref<1x32xf32, #tpu.memory_space<vmem>>, %arg12: memref<96x32xf32, #tpu.memory_space<vmem>>, %arg13: memref<96x32xf32, #tpu.memory_space<vmem>>, %arg14: memref<1x32xf32, #tpu.memory_space<vmem>>, %arg15: memref<1x32xf32, #tpu.memory_space<vmem>>, %arg16: memref<1x64xf32, #tpu.memory_space<vmem>>, %arg17: memref<1x64xf32, #tpu.memory_space<vmem>>, %arg18: memref<1x64xf32, #tpu.memory_space<vmem>>, %arg19: memref<1x64xf32, #tpu.memory_space<vmem>>, %arg20: memref<96x64xf32, #tpu.memory_space<vmem>>, %arg21: memref<192x64xf32, #tpu.memory_space<vmem>>, %arg22: memref<32x64xf32, #tpu.memory_space<vmem>>, %arg23: memref<1x64xf32, #tpu.memory_space<vmem>>, %arg24: memref<1x64xf32, #tpu.memory_space<vmem>>, %arg25: memref<1x64xf32, #tpu.memory_space<vmem>>, %arg26: memref<1x64xf32, #tpu.memory_space<vmem>>, %arg27: memref<192x64xf32, #tpu.memory_space<vmem>>, %arg28: memref<192x64xf32, #tpu.memory_space<vmem>>, %arg29: memref<1x64xf32, #tpu.memory_space<vmem>>, %arg30: memref<1x64xf32, #tpu.memory_space<vmem>>, %arg31: memref<1x128xf32, #tpu.memory_space<vmem>>, %arg32: memref<1x128xf32, #tpu.memory_space<vmem>>, %arg33: memref<1x128xf32, #tpu.memory_space<vmem>>, %arg34: memref<1x128xf32, #tpu.memory_space<vmem>>, %arg35: memref<192x128xf32, #tpu.memory_space<vmem>>, %arg36: memref<384x128xf32, #tpu.memory_space<vmem>>, %arg37: memref<64x128xf32, #tpu.memory_space<vmem>>, %arg38: memref<1x128xf32, #tpu.memory_space<vmem>>, %arg39: memref<1x128xf32, #tpu.memory_space<vmem>>, %arg40: memref<1x128xf32, #tpu.memory_space<vmem>>, %arg41: memref<1x128xf32, #tpu.memory_space<vmem>>, %arg42: memref<384x128xf32, #tpu.memory_space<vmem>>, %arg43: memref<384x128xf32, #tpu.memory_space<vmem>>, %arg44: memref<1x128xf32, #tpu.memory_space<vmem>>, %arg45: memref<1x128xf32, #tpu.memory_space<vmem>>, %arg46: memref<1x256xf32, #tpu.memory_space<vmem>>, %arg47: memref<1x256xf32, #tpu.memory_space<vmem>>, %arg48: memref<1x256xf32, #tpu.memory_space<vmem>>, %arg49: memref<1x256xf32, #tpu.memory_space<vmem>>, %arg50: memref<384x256xf32, #tpu.memory_space<vmem>>, %arg51: memref<768x256xf32, #tpu.memory_space<vmem>>, %arg52: memref<128x256xf32, #tpu.memory_space<vmem>>, %arg53: memref<1x256xf32, #tpu.memory_space<vmem>>, %arg54: memref<1x256xf32, #tpu.memory_space<vmem>>, %arg55: memref<1x256xf32, #tpu.memory_space<vmem>>, %arg56: memref<1x256xf32, #tpu.memory_space<vmem>>, %arg57: memref<768x256xf32, #tpu.memory_space<vmem>>, %arg58: memref<768x256xf32, #tpu.memory_space<vmem>>, %arg59: memref<1x4xf32, #tpu.memory_space<vmem>>, %arg60: memref<256x4xf32, #tpu.memory_space<vmem>>, %arg61: memref<28x32xf32, #tpu.memory_space<vmem>>, %arg62: memref<1x1x4xf32, #tpu.memory_space<vmem>>) attributes {dimension_semantics = [#tpu.dimension_semantics<parallel>], iteration_bounds = array<i64: 2>, scalar_prefetch = 0 : i64, scratch_operands = 0 : i64, tpu.core_type = #tpu.core_type<tc>, window_params = [{transform_indices = @transform_0, window_bounds = array<i64: 1, 48, 28>}, {pipeline_mode = #tpu.pipeline_mode<synchronous>, transform_indices = @transform_1, window_bounds = array<i64: 1, 32>}, {pipeline_mode = #tpu.pipeline_mode<synchronous>, transform_indices = @transform_2, window_bounds = array<i64: 1, 32>}, {pipeline_mode = #tpu.pipeline_mode<synchronous>, transform_indices = @transform_3, window_bounds = array<i64: 1, 32>}, {pipeline_mode = #tpu.pipeline_mode<synchronous>, transform_indices = @transform_4, window_bounds = array<i64: 1, 32>}, {pipeline_mode = #tpu.pipeline_mode<synchronous>, transform_indices = @transform_5, window_bounds = array<i64: 96, 32>}, {pipeline_mode = #tpu.pipeline_mode<synchronous>, transform_indices = @transform_6, window_bounds = array<i64: 96, 32>}, {pipeline_mode = #tpu.pipeline_mode<synchronous>, transform_indices = @transform_7, window_bounds = array<i64: 1, 32>}, {pipeline_mode = #tpu.pipeline_mode<synchronous>, transform_indices = @transform_8, window_bounds = array<i64: 1, 32>}, {pipeline_mode = #tpu.pipeline_mode<synchronous>, transform_indices = @transform_9, window_bounds = array<i64: 1, 32>}, {pipeline_mode = #tpu.pipeline_mode<synchronous>, transform_indices = @transform_10, window_bounds = array<i64: 1, 32>}, {pipeline_mode = #tpu.pipeline_mode<synchronous>, transform_indices = @transform_11, window_bounds = array<i64: 96, 32>}, {pipeline_mode = #tpu.pipeline_mode<synchronous>, transform_indices = @transform_12, window_bounds = array<i64: 96, 32>}, {pipeline_mode = #tpu.pipeline_mode<synchronous>, transform_indices = @transform_13, window_bounds = array<i64: 1, 32>}, {pipeline_mode = #tpu.pipeline_mode<synchronous>, transform_indices = @transform_14, window_bounds = array<i64: 1, 32>}, {pipeline_mode = #tpu.pipeline_mode<synchronous>, transform_indices = @transform_15, window_bounds = array<i64: 1, 64>}, {pipeline_mode = #tpu.pipeline_mode<synchronous>, transform_indices = @transform_16, window_bounds = array<i64: 1, 64>}, {pipeline_mode = #tpu.pipeline_mode<synchronous>, transform_indices = @transform_17, window_bounds = array<i64: 1, 64>}, {pipeline_mode = #tpu.pipeline_mode<synchronous>, transform_indices = @transform_18, window_bounds = array<i64: 1, 64>}, {pipeline_mode = #tpu.pipeline_mode<synchronous>, transform_indices = @transform_19, window_bounds = array<i64: 96, 64>}, {pipeline_mode = #tpu.pipeline_mode<synchronous>, transform_indices = @transform_20, window_bounds = array<i64: 192, 64>}, {pipeline_mode = #tpu.pipeline_mode<synchronous>, transform_indices = @transform_21, window_bounds = array<i64: 32, 64>}, {pipeline_mode = #tpu.pipeline_mode<synchronous>, transform_indices = @transform_22, window_bounds = array<i64: 1, 64>}, {pipeline_mode = #tpu.pipeline_mode<synchronous>, transform_indices = @transform_23, window_bounds = array<i64: 1, 64>}, {pipeline_mode = #tpu.pipeline_mode<synchronous>, transform_indices = @transform_24, window_bounds = array<i64: 1, 64>}, {pipeline_mode = #tpu.pipeline_mode<synchronous>, transform_indices = @transform_25, window_bounds = array<i64: 1, 64>}, {pipeline_mode = #tpu.pipeline_mode<synchronous>, transform_indices = @transform_26, window_bounds = array<i64: 192, 64>}, {pipeline_mode = #tpu.pipeline_mode<synchronous>, transform_indices = @transform_27, window_bounds = array<i64: 192, 64>}, {pipeline_mode = #tpu.pipeline_mode<synchronous>, transform_indices = @transform_28, window_bounds = array<i64: 1, 64>}, {pipeline_mode = #tpu.pipeline_mode<synchronous>, transform_indices = @transform_29, window_bounds = array<i64: 1, 64>}, {pipeline_mode = #tpu.pipeline_mode<synchronous>, transform_indices = @transform_30, window_bounds = array<i64: 1, 128>}, {pipeline_mode = #tpu.pipeline_mode<synchronous>, transform_indices = @transform_31, window_bounds = array<i64: 1, 128>}, {pipeline_mode = #tpu.pipeline_mode<synchronous>, transform_indices = @transform_32, window_bounds = array<i64: 1, 128>}, {pipeline_mode = #tpu.pipeline_mode<synchronous>, transform_indices = @transform_33, window_bounds = array<i64: 1, 128>}, {pipeline_mode = #tpu.pipeline_mode<synchronous>, transform_indices = @transform_34, window_bounds = array<i64: 192, 128>}, {pipeline_mode = #tpu.pipeline_mode<synchronous>, transform_indices = @transform_35, window_bounds = array<i64: 384, 128>}, {pipeline_mode = #tpu.pipeline_mode<synchronous>, transform_indices = @transform_36, window_bounds = array<i64: 64, 128>}, {pipeline_mode = #tpu.pipeline_mode<synchronous>, transform_indices = @transform_37, window_bounds = array<i64: 1, 128>}, {pipeline_mode = #tpu.pipeline_mode<synchronous>, transform_indices = @transform_38, window_bounds = array<i64: 1, 128>}, {pipeline_mode = #tpu.pipeline_mode<synchronous>, transform_indices = @transform_39, window_bounds = array<i64: 1, 128>}, {pipeline_mode = #tpu.pipeline_mode<synchronous>, transform_indices = @transform_40, window_bounds = array<i64: 1, 128>}, {pipeline_mode = #tpu.pipeline_mode<synchronous>, transform_indices = @transform_41, window_bounds = array<i64: 384, 128>}, {pipeline_mode = #tpu.pipeline_mode<synchronous>, transform_indices = @transform_42, window_bounds = array<i64: 384, 128>}, {pipeline_mode = #tpu.pipeline_mode<synchronous>, transform_indices = @transform_43, window_bounds = array<i64: 1, 128>}, {pipeline_mode = #tpu.pipeline_mode<synchronous>, transform_indices = @transform_44, window_bounds = array<i64: 1, 128>}, {pipeline_mode = #tpu.pipeline_mode<synchronous>, transform_indices = @transform_45, window_bounds = array<i64: 1, 256>}, {pipeline_mode = #tpu.pipeline_mode<synchronous>, transform_indices = @transform_46, window_bounds = array<i64: 1, 256>}, {pipeline_mode = #tpu.pipeline_mode<synchronous>, transform_indices = @transform_47, window_bounds = array<i64: 1, 256>}, {pipeline_mode = #tpu.pipeline_mode<synchronous>, transform_indices = @transform_48, window_bounds = array<i64: 1, 256>}, {pipeline_mode = #tpu.pipeline_mode<synchronous>, transform_indices = @transform_49, window_bounds = array<i64: 384, 256>}, {pipeline_mode = #tpu.pipeline_mode<synchronous>, transform_indices = @transform_50, window_bounds = array<i64: 768, 256>}, {pipeline_mode = #tpu.pipeline_mode<synchronous>, transform_indices = @transform_51, window_bounds = array<i64: 128, 256>}, {pipeline_mode = #tpu.pipeline_mode<synchronous>, transform_indices = @transform_52, window_bounds = array<i64: 1, 256>}, {pipeline_mode = #tpu.pipeline_mode<synchronous>, transform_indices = @transform_53, window_bounds = array<i64: 1, 256>}, {pipeline_mode = #tpu.pipeline_mode<synchronous>, transform_indices = @transform_54, window_bounds = array<i64: 1, 256>}, {pipeline_mode = #tpu.pipeline_mode<synchronous>, transform_indices = @transform_55, window_bounds = array<i64: 1, 256>}, {pipeline_mode = #tpu.pipeline_mode<synchronous>, transform_indices = @transform_56, window_bounds = array<i64: 768, 256>}, {pipeline_mode = #tpu.pipeline_mode<synchronous>, transform_indices = @transform_57, window_bounds = array<i64: 768, 256>}, {pipeline_mode = #tpu.pipeline_mode<synchronous>, transform_indices = @transform_58, window_bounds = array<i64: 1, 4>}, {pipeline_mode = #tpu.pipeline_mode<synchronous>, transform_indices = @transform_59, window_bounds = array<i64: 256, 4>}, {pipeline_mode = #tpu.pipeline_mode<synchronous>, transform_indices = @transform_60, window_bounds = array<i64: 28, 32>}, {transform_indices = @transform_61, window_bounds = array<i64: 1, 1, 4>}]} {
    %c0 = arith.constant 0 : index
    %c0_0 = arith.constant 0 : index
    %0 = vector.load %arg2[%c0, %c0_0] : memref<1x32xf32, #tpu.memory_space<vmem>>, vector<1x32xf32>
    %c0_1 = arith.constant 0 : index
    %c0_2 = arith.constant 0 : index
    %1 = vector.load %arg3[%c0_1, %c0_2] : memref<1x32xf32, #tpu.memory_space<vmem>>, vector<1x32xf32>
    %c0_3 = arith.constant 0 : index
    %c0_4 = arith.constant 0 : index
    %2 = vector.load %arg4[%c0_3, %c0_4] : memref<1x32xf32, #tpu.memory_space<vmem>>, vector<1x32xf32>
    %c0_5 = arith.constant 0 : index
    %c0_6 = arith.constant 0 : index
    %3 = vector.load %arg5[%c0_5, %c0_6] : memref<1x32xf32, #tpu.memory_space<vmem>>, vector<1x32xf32>
    %c0_7 = arith.constant 0 : index
    %c0_8 = arith.constant 0 : index
    %4 = vector.load %arg6[%c0_7, %c0_8] : memref<96x32xf32, #tpu.memory_space<vmem>>, vector<96x32xf32>
    %c0_9 = arith.constant 0 : index
    %c0_10 = arith.constant 0 : index
    %5 = vector.load %arg7[%c0_9, %c0_10] : memref<96x32xf32, #tpu.memory_space<vmem>>, vector<96x32xf32>
    %c0_11 = arith.constant 0 : index
    %c0_12 = arith.constant 0 : index
    %6 = vector.load %arg8[%c0_11, %c0_12] : memref<1x32xf32, #tpu.memory_space<vmem>>, vector<1x32xf32>
    %c0_13 = arith.constant 0 : index
    %c0_14 = arith.constant 0 : index
    %7 = vector.load %arg9[%c0_13, %c0_14] : memref<1x32xf32, #tpu.memory_space<vmem>>, vector<1x32xf32>
    %c0_15 = arith.constant 0 : index
    %c0_16 = arith.constant 0 : index
    %8 = vector.load %arg10[%c0_15, %c0_16] : memref<1x32xf32, #tpu.memory_space<vmem>>, vector<1x32xf32>
    %c0_17 = arith.constant 0 : index
    %c0_18 = arith.constant 0 : index
    %9 = vector.load %arg11[%c0_17, %c0_18] : memref<1x32xf32, #tpu.memory_space<vmem>>, vector<1x32xf32>
    %c0_19 = arith.constant 0 : index
    %c0_20 = arith.constant 0 : index
    %10 = vector.load %arg12[%c0_19, %c0_20] : memref<96x32xf32, #tpu.memory_space<vmem>>, vector<96x32xf32>
    %c0_21 = arith.constant 0 : index
    %c0_22 = arith.constant 0 : index
    %11 = vector.load %arg13[%c0_21, %c0_22] : memref<96x32xf32, #tpu.memory_space<vmem>>, vector<96x32xf32>
    %c0_23 = arith.constant 0 : index
    %c0_24 = arith.constant 0 : index
    %12 = vector.load %arg14[%c0_23, %c0_24] : memref<1x32xf32, #tpu.memory_space<vmem>>, vector<1x32xf32>
    %c0_25 = arith.constant 0 : index
    %c0_26 = arith.constant 0 : index
    %13 = vector.load %arg15[%c0_25, %c0_26] : memref<1x32xf32, #tpu.memory_space<vmem>>, vector<1x32xf32>
    %c0_27 = arith.constant 0 : index
    %c0_28 = arith.constant 0 : index
    %14 = vector.load %arg16[%c0_27, %c0_28] : memref<1x64xf32, #tpu.memory_space<vmem>>, vector<1x64xf32>
    %c0_29 = arith.constant 0 : index
    %c0_30 = arith.constant 0 : index
    %15 = vector.load %arg17[%c0_29, %c0_30] : memref<1x64xf32, #tpu.memory_space<vmem>>, vector<1x64xf32>
    %c0_31 = arith.constant 0 : index
    %c0_32 = arith.constant 0 : index
    %16 = vector.load %arg18[%c0_31, %c0_32] : memref<1x64xf32, #tpu.memory_space<vmem>>, vector<1x64xf32>
    %c0_33 = arith.constant 0 : index
    %c0_34 = arith.constant 0 : index
    %17 = vector.load %arg19[%c0_33, %c0_34] : memref<1x64xf32, #tpu.memory_space<vmem>>, vector<1x64xf32>
    %c0_35 = arith.constant 0 : index
    %c0_36 = arith.constant 0 : index
    %18 = vector.load %arg20[%c0_35, %c0_36] : memref<96x64xf32, #tpu.memory_space<vmem>>, vector<96x64xf32>
    %c0_37 = arith.constant 0 : index
    %c0_38 = arith.constant 0 : index
    %19 = vector.load %arg21[%c0_37, %c0_38] : memref<192x64xf32, #tpu.memory_space<vmem>>, vector<192x64xf32>
    %c0_39 = arith.constant 0 : index
    %c0_40 = arith.constant 0 : index
    %20 = vector.load %arg22[%c0_39, %c0_40] : memref<32x64xf32, #tpu.memory_space<vmem>>, vector<32x64xf32>
    %c0_41 = arith.constant 0 : index
    %c0_42 = arith.constant 0 : index
    %21 = vector.load %arg23[%c0_41, %c0_42] : memref<1x64xf32, #tpu.memory_space<vmem>>, vector<1x64xf32>
    %c0_43 = arith.constant 0 : index
    %c0_44 = arith.constant 0 : index
    %22 = vector.load %arg24[%c0_43, %c0_44] : memref<1x64xf32, #tpu.memory_space<vmem>>, vector<1x64xf32>
    %c0_45 = arith.constant 0 : index
    %c0_46 = arith.constant 0 : index
    %23 = vector.load %arg25[%c0_45, %c0_46] : memref<1x64xf32, #tpu.memory_space<vmem>>, vector<1x64xf32>
    %c0_47 = arith.constant 0 : index
    %c0_48 = arith.constant 0 : index
    %24 = vector.load %arg26[%c0_47, %c0_48] : memref<1x64xf32, #tpu.memory_space<vmem>>, vector<1x64xf32>
    %c0_49 = arith.constant 0 : index
    %c0_50 = arith.constant 0 : index
    %25 = vector.load %arg27[%c0_49, %c0_50] : memref<192x64xf32, #tpu.memory_space<vmem>>, vector<192x64xf32>
    %c0_51 = arith.constant 0 : index
    %c0_52 = arith.constant 0 : index
    %26 = vector.load %arg28[%c0_51, %c0_52] : memref<192x64xf32, #tpu.memory_space<vmem>>, vector<192x64xf32>
    %c0_53 = arith.constant 0 : index
    %c0_54 = arith.constant 0 : index
    %27 = vector.load %arg29[%c0_53, %c0_54] : memref<1x64xf32, #tpu.memory_space<vmem>>, vector<1x64xf32>
    %c0_55 = arith.constant 0 : index
    %c0_56 = arith.constant 0 : index
    %28 = vector.load %arg30[%c0_55, %c0_56] : memref<1x64xf32, #tpu.memory_space<vmem>>, vector<1x64xf32>
    %c0_57 = arith.constant 0 : index
    %c0_58 = arith.constant 0 : index
    %29 = vector.load %arg31[%c0_57, %c0_58] : memref<1x128xf32, #tpu.memory_space<vmem>>, vector<1x128xf32>
    %c0_59 = arith.constant 0 : index
    %c0_60 = arith.constant 0 : index
    %30 = vector.load %arg32[%c0_59, %c0_60] : memref<1x128xf32, #tpu.memory_space<vmem>>, vector<1x128xf32>
    %c0_61 = arith.constant 0 : index
    %c0_62 = arith.constant 0 : index
    %31 = vector.load %arg33[%c0_61, %c0_62] : memref<1x128xf32, #tpu.memory_space<vmem>>, vector<1x128xf32>
    %c0_63 = arith.constant 0 : index
    %c0_64 = arith.constant 0 : index
    %32 = vector.load %arg34[%c0_63, %c0_64] : memref<1x128xf32, #tpu.memory_space<vmem>>, vector<1x128xf32>
    %c0_65 = arith.constant 0 : index
    %c0_66 = arith.constant 0 : index
    %33 = vector.load %arg35[%c0_65, %c0_66] : memref<192x128xf32, #tpu.memory_space<vmem>>, vector<192x128xf32>
    %c0_67 = arith.constant 0 : index
    %c0_68 = arith.constant 0 : index
    %34 = vector.load %arg36[%c0_67, %c0_68] : memref<384x128xf32, #tpu.memory_space<vmem>>, vector<384x128xf32>
    %c0_69 = arith.constant 0 : index
    %c0_70 = arith.constant 0 : index
    %35 = vector.load %arg37[%c0_69, %c0_70] : memref<64x128xf32, #tpu.memory_space<vmem>>, vector<64x128xf32>
    %c0_71 = arith.constant 0 : index
    %c0_72 = arith.constant 0 : index
    %36 = vector.load %arg38[%c0_71, %c0_72] : memref<1x128xf32, #tpu.memory_space<vmem>>, vector<1x128xf32>
    %c0_73 = arith.constant 0 : index
    %c0_74 = arith.constant 0 : index
    %37 = vector.load %arg39[%c0_73, %c0_74] : memref<1x128xf32, #tpu.memory_space<vmem>>, vector<1x128xf32>
    %c0_75 = arith.constant 0 : index
    %c0_76 = arith.constant 0 : index
    %38 = vector.load %arg40[%c0_75, %c0_76] : memref<1x128xf32, #tpu.memory_space<vmem>>, vector<1x128xf32>
    %c0_77 = arith.constant 0 : index
    %c0_78 = arith.constant 0 : index
    %39 = vector.load %arg41[%c0_77, %c0_78] : memref<1x128xf32, #tpu.memory_space<vmem>>, vector<1x128xf32>
    %c0_79 = arith.constant 0 : index
    %c0_80 = arith.constant 0 : index
    %40 = vector.load %arg42[%c0_79, %c0_80] : memref<384x128xf32, #tpu.memory_space<vmem>>, vector<384x128xf32>
    %c0_81 = arith.constant 0 : index
    %c0_82 = arith.constant 0 : index
    %41 = vector.load %arg43[%c0_81, %c0_82] : memref<384x128xf32, #tpu.memory_space<vmem>>, vector<384x128xf32>
    %c0_83 = arith.constant 0 : index
    %c0_84 = arith.constant 0 : index
    %42 = vector.load %arg44[%c0_83, %c0_84] : memref<1x128xf32, #tpu.memory_space<vmem>>, vector<1x128xf32>
    %c0_85 = arith.constant 0 : index
    %c0_86 = arith.constant 0 : index
    %43 = vector.load %arg45[%c0_85, %c0_86] : memref<1x128xf32, #tpu.memory_space<vmem>>, vector<1x128xf32>
    %c0_87 = arith.constant 0 : index
    %c0_88 = arith.constant 0 : index
    %44 = vector.load %arg46[%c0_87, %c0_88] : memref<1x256xf32, #tpu.memory_space<vmem>>, vector<1x256xf32>
    %c0_89 = arith.constant 0 : index
    %c0_90 = arith.constant 0 : index
    %45 = vector.load %arg47[%c0_89, %c0_90] : memref<1x256xf32, #tpu.memory_space<vmem>>, vector<1x256xf32>
    %c0_91 = arith.constant 0 : index
    %c0_92 = arith.constant 0 : index
    %46 = vector.load %arg48[%c0_91, %c0_92] : memref<1x256xf32, #tpu.memory_space<vmem>>, vector<1x256xf32>
    %c0_93 = arith.constant 0 : index
    %c0_94 = arith.constant 0 : index
    %47 = vector.load %arg49[%c0_93, %c0_94] : memref<1x256xf32, #tpu.memory_space<vmem>>, vector<1x256xf32>
    %c0_95 = arith.constant 0 : index
    %c0_96 = arith.constant 0 : index
    %48 = vector.load %arg50[%c0_95, %c0_96] : memref<384x256xf32, #tpu.memory_space<vmem>>, vector<384x256xf32>
    %c0_97 = arith.constant 0 : index
    %c0_98 = arith.constant 0 : index
    %49 = vector.load %arg51[%c0_97, %c0_98] : memref<768x256xf32, #tpu.memory_space<vmem>>, vector<768x256xf32>
    %c0_99 = arith.constant 0 : index
    %c0_100 = arith.constant 0 : index
    %50 = vector.load %arg52[%c0_99, %c0_100] : memref<128x256xf32, #tpu.memory_space<vmem>>, vector<128x256xf32>
    %c0_101 = arith.constant 0 : index
    %c0_102 = arith.constant 0 : index
    %51 = vector.load %arg53[%c0_101, %c0_102] : memref<1x256xf32, #tpu.memory_space<vmem>>, vector<1x256xf32>
    %c0_103 = arith.constant 0 : index
    %c0_104 = arith.constant 0 : index
    %52 = vector.load %arg54[%c0_103, %c0_104] : memref<1x256xf32, #tpu.memory_space<vmem>>, vector<1x256xf32>
    %c0_105 = arith.constant 0 : index
    %c0_106 = arith.constant 0 : index
    %53 = vector.load %arg55[%c0_105, %c0_106] : memref<1x256xf32, #tpu.memory_space<vmem>>, vector<1x256xf32>
    %c0_107 = arith.constant 0 : index
    %c0_108 = arith.constant 0 : index
    %54 = vector.load %arg56[%c0_107, %c0_108] : memref<1x256xf32, #tpu.memory_space<vmem>>, vector<1x256xf32>
    %c0_109 = arith.constant 0 : index
    %c0_110 = arith.constant 0 : index
    %55 = vector.load %arg57[%c0_109, %c0_110] : memref<768x256xf32, #tpu.memory_space<vmem>>, vector<768x256xf32>
    %c0_111 = arith.constant 0 : index
    %c0_112 = arith.constant 0 : index
    %56 = vector.load %arg58[%c0_111, %c0_112] : memref<768x256xf32, #tpu.memory_space<vmem>>, vector<768x256xf32>
    %c0_113 = arith.constant 0 : index
    %c0_114 = arith.constant 0 : index
    %57 = vector.load %arg59[%c0_113, %c0_114] : memref<1x4xf32, #tpu.memory_space<vmem>>, vector<1x4xf32>
    %c0_115 = arith.constant 0 : index
    %c0_116 = arith.constant 0 : index
    %58 = vector.load %arg60[%c0_115, %c0_116] : memref<256x4xf32, #tpu.memory_space<vmem>>, vector<256x4xf32>
    %c0_117 = arith.constant 0 : index
    %c0_118 = arith.constant 0 : index
    %59 = vector.load %arg61[%c0_117, %c0_118] : memref<28x32xf32, #tpu.memory_space<vmem>>, vector<28x32xf32>
    %c0_119 = arith.constant 0 : index
    %c0_120 = arith.constant 0 : index
    %c0_121 = arith.constant 0 : index
    %60 = vector.load %arg1[%c0_119, %c0_120, %c0_121] : memref<1x48x28xf32, #tpu.memory_space<vmem>>, vector<1x48x28xf32>
    %61 = vector.shape_cast %60 : vector<1x48x28xf32> to vector<48x28xf32>
    %cst = arith.constant dense<0.000000e+00> : vector<48x32xf32>
    %62 = tpu.matmul %61, %59, %cst {dimension_numbers = #tpu.dot_dimension_numbers<[1], [0], [0], [1], [0, 0, 1, 1], [], []>} : vector<48x28xf32>, vector<28x32xf32>, vector<48x32xf32> -> vector<48x32xf32>
    %63 = vector.broadcast %1 : vector<1x32xf32> to vector<48x32xf32>
    %64 = arith.mulf %62, %63 : vector<48x32xf32>
    %65 = vector.broadcast %0 : vector<1x32xf32> to vector<48x32xf32>
    %66 = arith.addf %64, %65 : vector<48x32xf32>
    %cst_122 = arith.constant 0.000000e+00 : f32
    %67 = vector.broadcast %cst_122 : f32 to vector<48x32xf32>
    %68 = arith.cmpf ogt, %66, %67 : vector<48x32xf32>
    %cst_123 = arith.constant 0.000000e+00 : f32
    %69 = vector.broadcast %cst_123 : f32 to vector<48x32xf32>
    %70 = arith.minimumf %66, %69 : vector<48x32xf32>
    %71 = math.exp %70 : vector<48x32xf32>
    %cst_124 = arith.constant 1.000000e+00 : f32
    %72 = vector.broadcast %cst_124 : f32 to vector<48x32xf32>
    %73 = arith.subf %71, %72 : vector<48x32xf32>
    %74 = arith.select %68, %66, %73 : vector<48x32xi1>, vector<48x32xf32>
    %cst_125 = arith.constant 0.000000e+00 : f32
    %75 = vector.broadcast %cst_125 : f32 to vector<1x32xf32>
    %76 = tpu.concatenate %75, %74, %75 in 0 : vector<1x32xf32>, vector<48x32xf32>, vector<1x32xf32> -> vector<50x32xf32>
    %77 = vector.extract_strided_slice %76 {offsets = [0, 0], sizes = [48, 32], strides = [1, 1]} : vector<50x32xf32> to vector<48x32xf32>
    %78 = vector.extract_strided_slice %76 {offsets = [1, 0], sizes = [48, 32], strides = [1, 1]} : vector<50x32xf32> to vector<48x32xf32>
    %79 = vector.extract_strided_slice %76 {offsets = [2, 0], sizes = [48, 32], strides = [1, 1]} : vector<50x32xf32> to vector<48x32xf32>
    %80 = tpu.concatenate %77, %78, %79 in 1 : vector<48x32xf32>, vector<48x32xf32>, vector<48x32xf32> -> vector<48x96xf32>
    %cst_126 = arith.constant dense<0.000000e+00> : vector<48x32xf32>
    %81 = tpu.matmul %80, %4, %cst_126 {dimension_numbers = #tpu.dot_dimension_numbers<[1], [0], [0], [1], [0, 0, 1, 1], [], []>} : vector<48x96xf32>, vector<96x32xf32>, vector<48x32xf32> -> vector<48x32xf32>
    %82 = vector.broadcast %3 : vector<1x32xf32> to vector<48x32xf32>
    %83 = arith.mulf %81, %82 : vector<48x32xf32>
    %84 = vector.broadcast %2 : vector<1x32xf32> to vector<48x32xf32>
    %85 = arith.addf %83, %84 : vector<48x32xf32>
    %cst_127 = arith.constant 0.000000e+00 : f32
    %86 = vector.broadcast %cst_127 : f32 to vector<48x32xf32>
    %87 = arith.cmpf ogt, %85, %86 : vector<48x32xf32>
    %cst_128 = arith.constant 0.000000e+00 : f32
    %88 = vector.broadcast %cst_128 : f32 to vector<48x32xf32>
    %89 = arith.minimumf %85, %88 : vector<48x32xf32>
    %90 = math.exp %89 : vector<48x32xf32>
    %cst_129 = arith.constant 1.000000e+00 : f32
    %91 = vector.broadcast %cst_129 : f32 to vector<48x32xf32>
    %92 = arith.subf %90, %91 : vector<48x32xf32>
    %93 = arith.select %87, %85, %92 : vector<48x32xi1>, vector<48x32xf32>
    %cst_130 = arith.constant 0.000000e+00 : f32
    %94 = vector.broadcast %cst_130 : f32 to vector<1x32xf32>
    %95 = tpu.concatenate %94, %93, %94 in 0 : vector<1x32xf32>, vector<48x32xf32>, vector<1x32xf32> -> vector<50x32xf32>
    %96 = vector.extract_strided_slice %95 {offsets = [0, 0], sizes = [48, 32], strides = [1, 1]} : vector<50x32xf32> to vector<48x32xf32>
    %97 = vector.extract_strided_slice %95 {offsets = [1, 0], sizes = [48, 32], strides = [1, 1]} : vector<50x32xf32> to vector<48x32xf32>
    %98 = vector.extract_strided_slice %95 {offsets = [2, 0], sizes = [48, 32], strides = [1, 1]} : vector<50x32xf32> to vector<48x32xf32>
    %99 = tpu.concatenate %96, %97, %98 in 1 : vector<48x32xf32>, vector<48x32xf32>, vector<48x32xf32> -> vector<48x96xf32>
    %cst_131 = arith.constant dense<0.000000e+00> : vector<48x32xf32>
    %100 = tpu.matmul %99, %5, %cst_131 {dimension_numbers = #tpu.dot_dimension_numbers<[1], [0], [0], [1], [0, 0, 1, 1], [], []>} : vector<48x96xf32>, vector<96x32xf32>, vector<48x32xf32> -> vector<48x32xf32>
    %101 = arith.addf %100, %74 : vector<48x32xf32>
    %102 = vector.broadcast %7 : vector<1x32xf32> to vector<48x32xf32>
    %103 = arith.mulf %101, %102 : vector<48x32xf32>
    %104 = vector.broadcast %6 : vector<1x32xf32> to vector<48x32xf32>
    %105 = arith.addf %103, %104 : vector<48x32xf32>
    %cst_132 = arith.constant 0.000000e+00 : f32
    %106 = vector.broadcast %cst_132 : f32 to vector<48x32xf32>
    %107 = arith.cmpf ogt, %105, %106 : vector<48x32xf32>
    %cst_133 = arith.constant 0.000000e+00 : f32
    %108 = vector.broadcast %cst_133 : f32 to vector<48x32xf32>
    %109 = arith.minimumf %105, %108 : vector<48x32xf32>
    %110 = math.exp %109 : vector<48x32xf32>
    %cst_134 = arith.constant 1.000000e+00 : f32
    %111 = vector.broadcast %cst_134 : f32 to vector<48x32xf32>
    %112 = arith.subf %110, %111 : vector<48x32xf32>
    %113 = arith.select %107, %105, %112 : vector<48x32xi1>, vector<48x32xf32>
    %cst_135 = arith.constant 0.000000e+00 : f32
    %114 = vector.broadcast %cst_135 : f32 to vector<1x32xf32>
    %115 = tpu.concatenate %114, %113, %114 in 0 : vector<1x32xf32>, vector<48x32xf32>, vector<1x32xf32> -> vector<50x32xf32>
    %116 = vector.extract_strided_slice %115 {offsets = [0, 0], sizes = [48, 32], strides = [1, 1]} : vector<50x32xf32> to vector<48x32xf32>
    %117 = vector.extract_strided_slice %115 {offsets = [1, 0], sizes = [48, 32], strides = [1, 1]} : vector<50x32xf32> to vector<48x32xf32>
    %118 = vector.extract_strided_slice %115 {offsets = [2, 0], sizes = [48, 32], strides = [1, 1]} : vector<50x32xf32> to vector<48x32xf32>
    %119 = tpu.concatenate %116, %117, %118 in 1 : vector<48x32xf32>, vector<48x32xf32>, vector<48x32xf32> -> vector<48x96xf32>
    %cst_136 = arith.constant dense<0.000000e+00> : vector<48x32xf32>
    %120 = tpu.matmul %119, %10, %cst_136 {dimension_numbers = #tpu.dot_dimension_numbers<[1], [0], [0], [1], [0, 0, 1, 1], [], []>} : vector<48x96xf32>, vector<96x32xf32>, vector<48x32xf32> -> vector<48x32xf32>
    %121 = vector.broadcast %9 : vector<1x32xf32> to vector<48x32xf32>
    %122 = arith.mulf %120, %121 : vector<48x32xf32>
    %123 = vector.broadcast %8 : vector<1x32xf32> to vector<48x32xf32>
    %124 = arith.addf %122, %123 : vector<48x32xf32>
    %cst_137 = arith.constant 0.000000e+00 : f32
    %125 = vector.broadcast %cst_137 : f32 to vector<48x32xf32>
    %126 = arith.cmpf ogt, %124, %125 : vector<48x32xf32>
    %cst_138 = arith.constant 0.000000e+00 : f32
    %127 = vector.broadcast %cst_138 : f32 to vector<48x32xf32>
    %128 = arith.minimumf %124, %127 : vector<48x32xf32>
    %129 = math.exp %128 : vector<48x32xf32>
    %cst_139 = arith.constant 1.000000e+00 : f32
    %130 = vector.broadcast %cst_139 : f32 to vector<48x32xf32>
    %131 = arith.subf %129, %130 : vector<48x32xf32>
    %132 = arith.select %126, %124, %131 : vector<48x32xi1>, vector<48x32xf32>
    %cst_140 = arith.constant 0.000000e+00 : f32
    %133 = vector.broadcast %cst_140 : f32 to vector<1x32xf32>
    %134 = tpu.concatenate %133, %132, %133 in 0 : vector<1x32xf32>, vector<48x32xf32>, vector<1x32xf32> -> vector<50x32xf32>
    %135 = vector.extract_strided_slice %134 {offsets = [0, 0], sizes = [48, 32], strides = [1, 1]} : vector<50x32xf32> to vector<48x32xf32>
    %136 = vector.extract_strided_slice %134 {offsets = [1, 0], sizes = [48, 32], strides = [1, 1]} : vector<50x32xf32> to vector<48x32xf32>
    %137 = vector.extract_strided_slice %134 {offsets = [2, 0], sizes = [48, 32], strides = [1, 1]} : vector<50x32xf32> to vector<48x32xf32>
    %138 = tpu.concatenate %135, %136, %137 in 1 : vector<48x32xf32>, vector<48x32xf32>, vector<48x32xf32> -> vector<48x96xf32>
    %cst_141 = arith.constant dense<0.000000e+00> : vector<48x32xf32>
    %139 = tpu.matmul %138, %11, %cst_141 {dimension_numbers = #tpu.dot_dimension_numbers<[1], [0], [0], [1], [0, 0, 1, 1], [], []>} : vector<48x96xf32>, vector<96x32xf32>, vector<48x32xf32> -> vector<48x32xf32>
    %140 = arith.addf %139, %113 : vector<48x32xf32>
    %141 = vector.broadcast %13 : vector<1x32xf32> to vector<48x32xf32>
    %142 = arith.mulf %140, %141 : vector<48x32xf32>
    %143 = vector.broadcast %12 : vector<1x32xf32> to vector<48x32xf32>
    %144 = arith.addf %142, %143 : vector<48x32xf32>
    %cst_142 = arith.constant 0.000000e+00 : f32
    %145 = vector.broadcast %cst_142 : f32 to vector<48x32xf32>
    %146 = arith.cmpf ogt, %144, %145 : vector<48x32xf32>
    %cst_143 = arith.constant 0.000000e+00 : f32
    %147 = vector.broadcast %cst_143 : f32 to vector<48x32xf32>
    %148 = arith.minimumf %144, %147 : vector<48x32xf32>
    %149 = math.exp %148 : vector<48x32xf32>
    %cst_144 = arith.constant 1.000000e+00 : f32
    %150 = vector.broadcast %cst_144 : f32 to vector<48x32xf32>
    %151 = arith.subf %149, %150 : vector<48x32xf32>
    %152 = arith.select %146, %144, %151 : vector<48x32xi1>, vector<48x32xf32>
    %cst_145 = arith.constant 0.000000e+00 : f32
    %153 = vector.broadcast %cst_145 : f32 to vector<1x32xf32>
    %154 = tpu.concatenate %153, %152, %153 in 0 : vector<1x32xf32>, vector<48x32xf32>, vector<1x32xf32> -> vector<50x32xf32>
    %155 = vector.extract_strided_slice %154 {offsets = [0, 0], sizes = [48, 32], strides = [1, 1]} : vector<50x32xf32> to vector<48x32xf32>
    %156 = vector.extract_strided_slice %154 {offsets = [1, 0], sizes = [48, 32], strides = [1, 1]} : vector<50x32xf32> to vector<48x32xf32>
    %157 = vector.extract_strided_slice %154 {offsets = [2, 0], sizes = [48, 32], strides = [1, 1]} : vector<50x32xf32> to vector<48x32xf32>
    %158 = tpu.concatenate %155, %156, %157 in 1 : vector<48x32xf32>, vector<48x32xf32>, vector<48x32xf32> -> vector<48x96xf32>
    %cst_146 = arith.constant dense<0.000000e+00> : vector<48x64xf32>
    %159 = tpu.matmul %158, %18, %cst_146 {dimension_numbers = #tpu.dot_dimension_numbers<[1], [0], [0], [1], [0, 0, 1, 1], [], []>} : vector<48x96xf32>, vector<96x64xf32>, vector<48x64xf32> -> vector<48x64xf32>
    %160 = vector.broadcast %15 : vector<1x64xf32> to vector<48x64xf32>
    %161 = arith.mulf %159, %160 : vector<48x64xf32>
    %162 = vector.broadcast %14 : vector<1x64xf32> to vector<48x64xf32>
    %163 = arith.addf %161, %162 : vector<48x64xf32>
    %cst_147 = arith.constant 0.000000e+00 : f32
    %164 = vector.broadcast %cst_147 : f32 to vector<48x64xf32>
    %165 = arith.cmpf ogt, %163, %164 : vector<48x64xf32>
    %cst_148 = arith.constant 0.000000e+00 : f32
    %166 = vector.broadcast %cst_148 : f32 to vector<48x64xf32>
    %167 = arith.minimumf %163, %166 : vector<48x64xf32>
    %168 = math.exp %167 : vector<48x64xf32>
    %cst_149 = arith.constant 1.000000e+00 : f32
    %169 = vector.broadcast %cst_149 : f32 to vector<48x64xf32>
    %170 = arith.subf %168, %169 : vector<48x64xf32>
    %171 = arith.select %165, %163, %170 : vector<48x64xi1>, vector<48x64xf32>
    %cst_150 = arith.constant 0.000000e+00 : f32
    %172 = vector.broadcast %cst_150 : f32 to vector<1x64xf32>
    %173 = tpu.concatenate %172, %171, %172 in 0 : vector<1x64xf32>, vector<48x64xf32>, vector<1x64xf32> -> vector<50x64xf32>
    %174 = vector.extract_strided_slice %173 {offsets = [0, 0], sizes = [48, 64], strides = [1, 1]} : vector<50x64xf32> to vector<48x64xf32>
    %175 = vector.extract_strided_slice %173 {offsets = [1, 0], sizes = [48, 64], strides = [1, 1]} : vector<50x64xf32> to vector<48x64xf32>
    %176 = vector.extract_strided_slice %173 {offsets = [2, 0], sizes = [48, 64], strides = [1, 1]} : vector<50x64xf32> to vector<48x64xf32>
    %177 = tpu.concatenate %174, %175, %176 in 1 : vector<48x64xf32>, vector<48x64xf32>, vector<48x64xf32> -> vector<48x192xf32>
    %cst_151 = arith.constant dense<0.000000e+00> : vector<48x64xf32>
    %178 = tpu.matmul %177, %19, %cst_151 {dimension_numbers = #tpu.dot_dimension_numbers<[1], [0], [0], [1], [0, 0, 1, 1], [], []>} : vector<48x192xf32>, vector<192x64xf32>, vector<48x64xf32> -> vector<48x64xf32>
    %cst_152 = arith.constant dense<0.000000e+00> : vector<48x64xf32>
    %179 = tpu.matmul %152, %20, %cst_152 {dimension_numbers = #tpu.dot_dimension_numbers<[1], [0], [0], [1], [0, 0, 1, 1], [], []>} : vector<48x32xf32>, vector<32x64xf32>, vector<48x64xf32> -> vector<48x64xf32>
    %180 = vector.broadcast %17 : vector<1x64xf32> to vector<48x64xf32>
    %181 = arith.mulf %179, %180 : vector<48x64xf32>
    %182 = vector.broadcast %16 : vector<1x64xf32> to vector<48x64xf32>
    %183 = arith.addf %181, %182 : vector<48x64xf32>
    %184 = arith.addf %178, %183 : vector<48x64xf32>
    %185 = vector.broadcast %22 : vector<1x64xf32> to vector<48x64xf32>
    %186 = arith.mulf %184, %185 : vector<48x64xf32>
    %187 = vector.broadcast %21 : vector<1x64xf32> to vector<48x64xf32>
    %188 = arith.addf %186, %187 : vector<48x64xf32>
    %cst_153 = arith.constant 0.000000e+00 : f32
    %189 = vector.broadcast %cst_153 : f32 to vector<48x64xf32>
    %190 = arith.cmpf ogt, %188, %189 : vector<48x64xf32>
    %cst_154 = arith.constant 0.000000e+00 : f32
    %191 = vector.broadcast %cst_154 : f32 to vector<48x64xf32>
    %192 = arith.minimumf %188, %191 : vector<48x64xf32>
    %193 = math.exp %192 : vector<48x64xf32>
    %cst_155 = arith.constant 1.000000e+00 : f32
    %194 = vector.broadcast %cst_155 : f32 to vector<48x64xf32>
    %195 = arith.subf %193, %194 : vector<48x64xf32>
    %196 = arith.select %190, %188, %195 : vector<48x64xi1>, vector<48x64xf32>
    %cst_156 = arith.constant 0.000000e+00 : f32
    %197 = vector.broadcast %cst_156 : f32 to vector<1x64xf32>
    %198 = tpu.concatenate %197, %196, %197 in 0 : vector<1x64xf32>, vector<48x64xf32>, vector<1x64xf32> -> vector<50x64xf32>
    %199 = vector.extract_strided_slice %198 {offsets = [0, 0], sizes = [48, 64], strides = [1, 1]} : vector<50x64xf32> to vector<48x64xf32>
    %200 = vector.extract_strided_slice %198 {offsets = [1, 0], sizes = [48, 64], strides = [1, 1]} : vector<50x64xf32> to vector<48x64xf32>
    %201 = vector.extract_strided_slice %198 {offsets = [2, 0], sizes = [48, 64], strides = [1, 1]} : vector<50x64xf32> to vector<48x64xf32>
    %202 = tpu.concatenate %199, %200, %201 in 1 : vector<48x64xf32>, vector<48x64xf32>, vector<48x64xf32> -> vector<48x192xf32>
    %cst_157 = arith.constant dense<0.000000e+00> : vector<48x64xf32>
    %203 = tpu.matmul %202, %25, %cst_157 {dimension_numbers = #tpu.dot_dimension_numbers<[1], [0], [0], [1], [0, 0, 1, 1], [], []>} : vector<48x192xf32>, vector<192x64xf32>, vector<48x64xf32> -> vector<48x64xf32>
    %204 = vector.broadcast %24 : vector<1x64xf32> to vector<48x64xf32>
    %205 = arith.mulf %203, %204 : vector<48x64xf32>
    %206 = vector.broadcast %23 : vector<1x64xf32> to vector<48x64xf32>
    %207 = arith.addf %205, %206 : vector<48x64xf32>
    %cst_158 = arith.constant 0.000000e+00 : f32
    %208 = vector.broadcast %cst_158 : f32 to vector<48x64xf32>
    %209 = arith.cmpf ogt, %207, %208 : vector<48x64xf32>
    %cst_159 = arith.constant 0.000000e+00 : f32
    %210 = vector.broadcast %cst_159 : f32 to vector<48x64xf32>
    %211 = arith.minimumf %207, %210 : vector<48x64xf32>
    %212 = math.exp %211 : vector<48x64xf32>
    %cst_160 = arith.constant 1.000000e+00 : f32
    %213 = vector.broadcast %cst_160 : f32 to vector<48x64xf32>
    %214 = arith.subf %212, %213 : vector<48x64xf32>
    %215 = arith.select %209, %207, %214 : vector<48x64xi1>, vector<48x64xf32>
    %cst_161 = arith.constant 0.000000e+00 : f32
    %216 = vector.broadcast %cst_161 : f32 to vector<1x64xf32>
    %217 = tpu.concatenate %216, %215, %216 in 0 : vector<1x64xf32>, vector<48x64xf32>, vector<1x64xf32> -> vector<50x64xf32>
    %218 = vector.extract_strided_slice %217 {offsets = [0, 0], sizes = [48, 64], strides = [1, 1]} : vector<50x64xf32> to vector<48x64xf32>
    %219 = vector.extract_strided_slice %217 {offsets = [1, 0], sizes = [48, 64], strides = [1, 1]} : vector<50x64xf32> to vector<48x64xf32>
    %220 = vector.extract_strided_slice %217 {offsets = [2, 0], sizes = [48, 64], strides = [1, 1]} : vector<50x64xf32> to vector<48x64xf32>
    %221 = tpu.concatenate %218, %219, %220 in 1 : vector<48x64xf32>, vector<48x64xf32>, vector<48x64xf32> -> vector<48x192xf32>
    %cst_162 = arith.constant dense<0.000000e+00> : vector<48x64xf32>
    %222 = tpu.matmul %221, %26, %cst_162 {dimension_numbers = #tpu.dot_dimension_numbers<[1], [0], [0], [1], [0, 0, 1, 1], [], []>} : vector<48x192xf32>, vector<192x64xf32>, vector<48x64xf32> -> vector<48x64xf32>
    %223 = arith.addf %222, %196 : vector<48x64xf32>
    %cst_163 = arith.constant -1.000000e+30 : f32
    %224 = vector.broadcast %cst_163 : f32 to vector<1x64xf32>
    %225 = tpu.concatenate %224, %223, %224 in 0 : vector<1x64xf32>, vector<48x64xf32>, vector<1x64xf32> -> vector<50x64xf32>
    %226 = vector.extract_strided_slice %225 {offsets = [0, 0], sizes = [48, 64], strides = [1, 1]} : vector<50x64xf32> to vector<48x64xf32>
    %227 = vector.extract_strided_slice %225 {offsets = [1, 0], sizes = [48, 64], strides = [1, 1]} : vector<50x64xf32> to vector<48x64xf32>
    %228 = arith.maximumf %226, %227 : vector<48x64xf32>
    %229 = vector.extract_strided_slice %225 {offsets = [2, 0], sizes = [48, 64], strides = [1, 1]} : vector<50x64xf32> to vector<48x64xf32>
    %230 = arith.maximumf %228, %229 : vector<48x64xf32>
    %231 = tpu.iota {dimensions = array<i32: 0>} : vector<16x48xi32>
    %232 = tpu.iota {dimensions = array<i32: 1>} : vector<16x48xi32>
    %c3_i32 = arith.constant 3 : i32
    %233 = vector.broadcast %c3_i32 : i32 to vector<16x48xi32>
    %234 = arith.muli %233, %231 : vector<16x48xi32>
    %c0_i32 = arith.constant 0 : i32
    %235 = vector.broadcast %c0_i32 : i32 to vector<16x48xi32>
    %236 = arith.addi %235, %234 : vector<16x48xi32>
    %237 = arith.cmpi eq, %232, %236 : vector<16x48xi32>
    %238 = arith.extui %237 : vector<16x48xi1> to vector<16x48xi32>
    %239 = arith.sitofp %238 : vector<16x48xi32> to vector<16x48xf32>
    %cst_164 = arith.constant dense<0.000000e+00> : vector<16x64xf32>
    %240 = tpu.matmul %239, %230, %cst_164 {dimension_numbers = #tpu.dot_dimension_numbers<[1], [0], [0], [1], [0, 0, 1, 1], [], []>} : vector<16x48xf32>, vector<48x64xf32>, vector<16x64xf32> -> vector<16x64xf32>
    %241 = vector.broadcast %28 : vector<1x64xf32> to vector<16x64xf32>
    %242 = arith.mulf %240, %241 : vector<16x64xf32>
    %243 = vector.broadcast %27 : vector<1x64xf32> to vector<16x64xf32>
    %244 = arith.addf %242, %243 : vector<16x64xf32>
    %cst_165 = arith.constant 0.000000e+00 : f32
    %245 = vector.broadcast %cst_165 : f32 to vector<16x64xf32>
    %246 = arith.cmpf ogt, %244, %245 : vector<16x64xf32>
    %cst_166 = arith.constant 0.000000e+00 : f32
    %247 = vector.broadcast %cst_166 : f32 to vector<16x64xf32>
    %248 = arith.minimumf %244, %247 : vector<16x64xf32>
    %249 = math.exp %248 : vector<16x64xf32>
    %cst_167 = arith.constant 1.000000e+00 : f32
    %250 = vector.broadcast %cst_167 : f32 to vector<16x64xf32>
    %251 = arith.subf %249, %250 : vector<16x64xf32>
    %252 = arith.select %246, %244, %251 : vector<16x64xi1>, vector<16x64xf32>
    %cst_168 = arith.constant 0.000000e+00 : f32
    %253 = vector.broadcast %cst_168 : f32 to vector<1x64xf32>
    %254 = tpu.concatenate %253, %252, %253 in 0 : vector<1x64xf32>, vector<16x64xf32>, vector<1x64xf32> -> vector<18x64xf32>
    %255 = vector.extract_strided_slice %254 {offsets = [0, 0], sizes = [16, 64], strides = [1, 1]} : vector<18x64xf32> to vector<16x64xf32>
    %256 = vector.extract_strided_slice %254 {offsets = [1, 0], sizes = [16, 64], strides = [1, 1]} : vector<18x64xf32> to vector<16x64xf32>
    %257 = vector.extract_strided_slice %254 {offsets = [2, 0], sizes = [16, 64], strides = [1, 1]} : vector<18x64xf32> to vector<16x64xf32>
    %258 = tpu.concatenate %255, %256, %257 in 1 : vector<16x64xf32>, vector<16x64xf32>, vector<16x64xf32> -> vector<16x192xf32>
    %cst_169 = arith.constant dense<0.000000e+00> : vector<16x128xf32>
    %259 = tpu.matmul %258, %33, %cst_169 {dimension_numbers = #tpu.dot_dimension_numbers<[1], [0], [0], [1], [0, 0, 1, 1], [], []>} : vector<16x192xf32>, vector<192x128xf32>, vector<16x128xf32> -> vector<16x128xf32>
    %260 = tpu.iota {dimensions = array<i32: 0>} : vector<8x16xi32>
    %261 = tpu.iota {dimensions = array<i32: 1>} : vector<8x16xi32>
    %c2_i32 = arith.constant 2 : i32
    %262 = vector.broadcast %c2_i32 : i32 to vector<8x16xi32>
    %263 = arith.muli %262, %260 : vector<8x16xi32>
    %c0_i32_170 = arith.constant 0 : i32
    %264 = vector.broadcast %c0_i32_170 : i32 to vector<8x16xi32>
    %265 = arith.addi %264, %263 : vector<8x16xi32>
    %266 = arith.cmpi eq, %261, %265 : vector<8x16xi32>
    %267 = arith.extui %266 : vector<8x16xi1> to vector<8x16xi32>
    %268 = arith.sitofp %267 : vector<8x16xi32> to vector<8x16xf32>
    %cst_171 = arith.constant dense<0.000000e+00> : vector<8x128xf32>
    %269 = tpu.matmul %268, %259, %cst_171 {dimension_numbers = #tpu.dot_dimension_numbers<[1], [0], [0], [1], [0, 0, 1, 1], [], []>} : vector<8x16xf32>, vector<16x128xf32>, vector<8x128xf32> -> vector<8x128xf32>
    %270 = vector.broadcast %30 : vector<1x128xf32> to vector<8x128xf32>
    %271 = arith.mulf %269, %270 : vector<8x128xf32>
    %272 = vector.broadcast %29 : vector<1x128xf32> to vector<8x128xf32>
    %273 = arith.addf %271, %272 : vector<8x128xf32>
    %cst_172 = arith.constant 0.000000e+00 : f32
    %274 = vector.broadcast %cst_172 : f32 to vector<8x128xf32>
    %275 = arith.cmpf ogt, %273, %274 : vector<8x128xf32>
    %cst_173 = arith.constant 0.000000e+00 : f32
    %276 = vector.broadcast %cst_173 : f32 to vector<8x128xf32>
    %277 = arith.minimumf %273, %276 : vector<8x128xf32>
    %278 = math.exp %277 : vector<8x128xf32>
    %cst_174 = arith.constant 1.000000e+00 : f32
    %279 = vector.broadcast %cst_174 : f32 to vector<8x128xf32>
    %280 = arith.subf %278, %279 : vector<8x128xf32>
    %281 = arith.select %275, %273, %280 : vector<8x128xi1>, vector<8x128xf32>
    %cst_175 = arith.constant 0.000000e+00 : f32
    %282 = vector.broadcast %cst_175 : f32 to vector<1x128xf32>
    %283 = tpu.concatenate %282, %281, %282 in 0 : vector<1x128xf32>, vector<8x128xf32>, vector<1x128xf32> -> vector<10x128xf32>
    %284 = vector.extract_strided_slice %283 {offsets = [0, 0], sizes = [8, 128], strides = [1, 1]} : vector<10x128xf32> to vector<8x128xf32>
    %285 = vector.extract_strided_slice %283 {offsets = [1, 0], sizes = [8, 128], strides = [1, 1]} : vector<10x128xf32> to vector<8x128xf32>
    %286 = vector.extract_strided_slice %283 {offsets = [2, 0], sizes = [8, 128], strides = [1, 1]} : vector<10x128xf32> to vector<8x128xf32>
    %287 = tpu.concatenate %284, %285, %286 in 1 : vector<8x128xf32>, vector<8x128xf32>, vector<8x128xf32> -> vector<8x384xf32>
    %cst_176 = arith.constant dense<0.000000e+00> : vector<8x128xf32>
    %288 = tpu.matmul %287, %34, %cst_176 {dimension_numbers = #tpu.dot_dimension_numbers<[1], [0], [0], [1], [0, 0, 1, 1], [], []>} : vector<8x384xf32>, vector<384x128xf32>, vector<8x128xf32> -> vector<8x128xf32>
    %289 = tpu.iota {dimensions = array<i32: 0>} : vector<8x16xi32>
    %290 = tpu.iota {dimensions = array<i32: 1>} : vector<8x16xi32>
    %c2_i32_177 = arith.constant 2 : i32
    %291 = vector.broadcast %c2_i32_177 : i32 to vector<8x16xi32>
    %292 = arith.muli %291, %289 : vector<8x16xi32>
    %c0_i32_178 = arith.constant 0 : i32
    %293 = vector.broadcast %c0_i32_178 : i32 to vector<8x16xi32>
    %294 = arith.addi %293, %292 : vector<8x16xi32>
    %295 = arith.cmpi eq, %290, %294 : vector<8x16xi32>
    %296 = arith.extui %295 : vector<8x16xi1> to vector<8x16xi32>
    %297 = arith.sitofp %296 : vector<8x16xi32> to vector<8x16xf32>
    %cst_179 = arith.constant dense<0.000000e+00> : vector<8x64xf32>
    %298 = tpu.matmul %297, %252, %cst_179 {dimension_numbers = #tpu.dot_dimension_numbers<[1], [0], [0], [1], [0, 0, 1, 1], [], []>} : vector<8x16xf32>, vector<16x64xf32>, vector<8x64xf32> -> vector<8x64xf32>
    %cst_180 = arith.constant dense<0.000000e+00> : vector<8x128xf32>
    %299 = tpu.matmul %298, %35, %cst_180 {dimension_numbers = #tpu.dot_dimension_numbers<[1], [0], [0], [1], [0, 0, 1, 1], [], []>} : vector<8x64xf32>, vector<64x128xf32>, vector<8x128xf32> -> vector<8x128xf32>
    %300 = vector.broadcast %32 : vector<1x128xf32> to vector<8x128xf32>
    %301 = arith.mulf %299, %300 : vector<8x128xf32>
    %302 = vector.broadcast %31 : vector<1x128xf32> to vector<8x128xf32>
    %303 = arith.addf %301, %302 : vector<8x128xf32>
    %304 = arith.addf %288, %303 : vector<8x128xf32>
    %305 = vector.broadcast %37 : vector<1x128xf32> to vector<8x128xf32>
    %306 = arith.mulf %304, %305 : vector<8x128xf32>
    %307 = vector.broadcast %36 : vector<1x128xf32> to vector<8x128xf32>
    %308 = arith.addf %306, %307 : vector<8x128xf32>
    %cst_181 = arith.constant 0.000000e+00 : f32
    %309 = vector.broadcast %cst_181 : f32 to vector<8x128xf32>
    %310 = arith.cmpf ogt, %308, %309 : vector<8x128xf32>
    %cst_182 = arith.constant 0.000000e+00 : f32
    %311 = vector.broadcast %cst_182 : f32 to vector<8x128xf32>
    %312 = arith.minimumf %308, %311 : vector<8x128xf32>
    %313 = math.exp %312 : vector<8x128xf32>
    %cst_183 = arith.constant 1.000000e+00 : f32
    %314 = vector.broadcast %cst_183 : f32 to vector<8x128xf32>
    %315 = arith.subf %313, %314 : vector<8x128xf32>
    %316 = arith.select %310, %308, %315 : vector<8x128xi1>, vector<8x128xf32>
    %cst_184 = arith.constant 0.000000e+00 : f32
    %317 = vector.broadcast %cst_184 : f32 to vector<1x128xf32>
    %318 = tpu.concatenate %317, %316, %317 in 0 : vector<1x128xf32>, vector<8x128xf32>, vector<1x128xf32> -> vector<10x128xf32>
    %319 = vector.extract_strided_slice %318 {offsets = [0, 0], sizes = [8, 128], strides = [1, 1]} : vector<10x128xf32> to vector<8x128xf32>
    %320 = vector.extract_strided_slice %318 {offsets = [1, 0], sizes = [8, 128], strides = [1, 1]} : vector<10x128xf32> to vector<8x128xf32>
    %321 = vector.extract_strided_slice %318 {offsets = [2, 0], sizes = [8, 128], strides = [1, 1]} : vector<10x128xf32> to vector<8x128xf32>
    %322 = tpu.concatenate %319, %320, %321 in 1 : vector<8x128xf32>, vector<8x128xf32>, vector<8x128xf32> -> vector<8x384xf32>
    %cst_185 = arith.constant dense<0.000000e+00> : vector<8x128xf32>
    %323 = tpu.matmul %322, %40, %cst_185 {dimension_numbers = #tpu.dot_dimension_numbers<[1], [0], [0], [1], [0, 0, 1, 1], [], []>} : vector<8x384xf32>, vector<384x128xf32>, vector<8x128xf32> -> vector<8x128xf32>
    %324 = vector.broadcast %39 : vector<1x128xf32> to vector<8x128xf32>
    %325 = arith.mulf %323, %324 : vector<8x128xf32>
    %326 = vector.broadcast %38 : vector<1x128xf32> to vector<8x128xf32>
    %327 = arith.addf %325, %326 : vector<8x128xf32>
    %cst_186 = arith.constant 0.000000e+00 : f32
    %328 = vector.broadcast %cst_186 : f32 to vector<8x128xf32>
    %329 = arith.cmpf ogt, %327, %328 : vector<8x128xf32>
    %cst_187 = arith.constant 0.000000e+00 : f32
    %330 = vector.broadcast %cst_187 : f32 to vector<8x128xf32>
    %331 = arith.minimumf %327, %330 : vector<8x128xf32>
    %332 = math.exp %331 : vector<8x128xf32>
    %cst_188 = arith.constant 1.000000e+00 : f32
    %333 = vector.broadcast %cst_188 : f32 to vector<8x128xf32>
    %334 = arith.subf %332, %333 : vector<8x128xf32>
    %335 = arith.select %329, %327, %334 : vector<8x128xi1>, vector<8x128xf32>
    %cst_189 = arith.constant 0.000000e+00 : f32
    %336 = vector.broadcast %cst_189 : f32 to vector<1x128xf32>
    %337 = tpu.concatenate %336, %335, %336 in 0 : vector<1x128xf32>, vector<8x128xf32>, vector<1x128xf32> -> vector<10x128xf32>
    %338 = vector.extract_strided_slice %337 {offsets = [0, 0], sizes = [8, 128], strides = [1, 1]} : vector<10x128xf32> to vector<8x128xf32>
    %339 = vector.extract_strided_slice %337 {offsets = [1, 0], sizes = [8, 128], strides = [1, 1]} : vector<10x128xf32> to vector<8x128xf32>
    %340 = vector.extract_strided_slice %337 {offsets = [2, 0], sizes = [8, 128], strides = [1, 1]} : vector<10x128xf32> to vector<8x128xf32>
    %341 = tpu.concatenate %338, %339, %340 in 1 : vector<8x128xf32>, vector<8x128xf32>, vector<8x128xf32> -> vector<8x384xf32>
    %cst_190 = arith.constant dense<0.000000e+00> : vector<8x128xf32>
    %342 = tpu.matmul %341, %41, %cst_190 {dimension_numbers = #tpu.dot_dimension_numbers<[1], [0], [0], [1], [0, 0, 1, 1], [], []>} : vector<8x384xf32>, vector<384x128xf32>, vector<8x128xf32> -> vector<8x128xf32>
    %343 = arith.addf %342, %316 : vector<8x128xf32>
    %cst_191 = arith.constant -1.000000e+30 : f32
    %344 = vector.broadcast %cst_191 : f32 to vector<1x128xf32>
    %345 = tpu.concatenate %344, %343, %344 in 0 : vector<1x128xf32>, vector<8x128xf32>, vector<1x128xf32> -> vector<10x128xf32>
    %346 = vector.extract_strided_slice %345 {offsets = [0, 0], sizes = [8, 128], strides = [1, 1]} : vector<10x128xf32> to vector<8x128xf32>
    %347 = vector.extract_strided_slice %345 {offsets = [1, 0], sizes = [8, 128], strides = [1, 1]} : vector<10x128xf32> to vector<8x128xf32>
    %348 = arith.maximumf %346, %347 : vector<8x128xf32>
    %349 = vector.extract_strided_slice %345 {offsets = [2, 0], sizes = [8, 128], strides = [1, 1]} : vector<10x128xf32> to vector<8x128xf32>
    %350 = arith.maximumf %348, %349 : vector<8x128xf32>
    %351 = tpu.iota {dimensions = array<i32: 0>} : vector<3x8xi32>
    %352 = tpu.iota {dimensions = array<i32: 1>} : vector<3x8xi32>
    %c3_i32_192 = arith.constant 3 : i32
    %353 = vector.broadcast %c3_i32_192 : i32 to vector<3x8xi32>
    %354 = arith.muli %353, %351 : vector<3x8xi32>
    %c0_i32_193 = arith.constant 0 : i32
    %355 = vector.broadcast %c0_i32_193 : i32 to vector<3x8xi32>
    %356 = arith.addi %355, %354 : vector<3x8xi32>
    %357 = arith.cmpi eq, %352, %356 : vector<3x8xi32>
    %358 = arith.extui %357 : vector<3x8xi1> to vector<3x8xi32>
    %359 = arith.sitofp %358 : vector<3x8xi32> to vector<3x8xf32>
    %cst_194 = arith.constant dense<0.000000e+00> : vector<3x128xf32>
    %360 = tpu.matmul %359, %350, %cst_194 {dimension_numbers = #tpu.dot_dimension_numbers<[1], [0], [0], [1], [0, 0, 1, 1], [], []>} : vector<3x8xf32>, vector<8x128xf32>, vector<3x128xf32> -> vector<3x128xf32>
    %361 = vector.broadcast %43 : vector<1x128xf32> to vector<3x128xf32>
    %362 = arith.mulf %360, %361 : vector<3x128xf32>
    %363 = vector.broadcast %42 : vector<1x128xf32> to vector<3x128xf32>
    %364 = arith.addf %362, %363 : vector<3x128xf32>
    %cst_195 = arith.constant 0.000000e+00 : f32
    %365 = vector.broadcast %cst_195 : f32 to vector<3x128xf32>
    %366 = arith.cmpf ogt, %364, %365 : vector<3x128xf32>
    %cst_196 = arith.constant 0.000000e+00 : f32
    %367 = vector.broadcast %cst_196 : f32 to vector<3x128xf32>
    %368 = arith.minimumf %364, %367 : vector<3x128xf32>
    %369 = math.exp %368 : vector<3x128xf32>
    %cst_197 = arith.constant 1.000000e+00 : f32
    %370 = vector.broadcast %cst_197 : f32 to vector<3x128xf32>
    %371 = arith.subf %369, %370 : vector<3x128xf32>
    %372 = arith.select %366, %364, %371 : vector<3x128xi1>, vector<3x128xf32>
    %cst_198 = arith.constant 0.000000e+00 : f32
    %373 = vector.broadcast %cst_198 : f32 to vector<1x128xf32>
    %374 = tpu.concatenate %373, %372, %373 in 0 : vector<1x128xf32>, vector<3x128xf32>, vector<1x128xf32> -> vector<5x128xf32>
    %375 = vector.extract_strided_slice %374 {offsets = [0, 0], sizes = [3, 128], strides = [1, 1]} : vector<5x128xf32> to vector<3x128xf32>
    %376 = vector.extract_strided_slice %374 {offsets = [1, 0], sizes = [3, 128], strides = [1, 1]} : vector<5x128xf32> to vector<3x128xf32>
    %377 = vector.extract_strided_slice %374 {offsets = [2, 0], sizes = [3, 128], strides = [1, 1]} : vector<5x128xf32> to vector<3x128xf32>
    %378 = tpu.concatenate %375, %376, %377 in 1 : vector<3x128xf32>, vector<3x128xf32>, vector<3x128xf32> -> vector<3x384xf32>
    %cst_199 = arith.constant dense<0.000000e+00> : vector<3x256xf32>
    %379 = tpu.matmul %378, %48, %cst_199 {dimension_numbers = #tpu.dot_dimension_numbers<[1], [0], [0], [1], [0, 0, 1, 1], [], []>} : vector<3x384xf32>, vector<384x256xf32>, vector<3x256xf32> -> vector<3x256xf32>
    %380 = tpu.iota {dimensions = array<i32: 0>} : vector<2x3xi32>
    %381 = tpu.iota {dimensions = array<i32: 1>} : vector<2x3xi32>
    %c2_i32_200 = arith.constant 2 : i32
    %382 = vector.broadcast %c2_i32_200 : i32 to vector<2x3xi32>
    %383 = arith.muli %382, %380 : vector<2x3xi32>
    %c0_i32_201 = arith.constant 0 : i32
    %384 = vector.broadcast %c0_i32_201 : i32 to vector<2x3xi32>
    %385 = arith.addi %384, %383 : vector<2x3xi32>
    %386 = arith.cmpi eq, %381, %385 : vector<2x3xi32>
    %387 = arith.extui %386 : vector<2x3xi1> to vector<2x3xi32>
    %388 = arith.sitofp %387 : vector<2x3xi32> to vector<2x3xf32>
    %cst_202 = arith.constant dense<0.000000e+00> : vector<2x256xf32>
    %389 = tpu.matmul %388, %379, %cst_202 {dimension_numbers = #tpu.dot_dimension_numbers<[1], [0], [0], [1], [0, 0, 1, 1], [], []>} : vector<2x3xf32>, vector<3x256xf32>, vector<2x256xf32> -> vector<2x256xf32>
    %390 = vector.broadcast %45 : vector<1x256xf32> to vector<2x256xf32>
    %391 = arith.mulf %389, %390 : vector<2x256xf32>
    %392 = vector.broadcast %44 : vector<1x256xf32> to vector<2x256xf32>
    %393 = arith.addf %391, %392 : vector<2x256xf32>
    %cst_203 = arith.constant 0.000000e+00 : f32
    %394 = vector.broadcast %cst_203 : f32 to vector<2x256xf32>
    %395 = arith.cmpf ogt, %393, %394 : vector<2x256xf32>
    %cst_204 = arith.constant 0.000000e+00 : f32
    %396 = vector.broadcast %cst_204 : f32 to vector<2x256xf32>
    %397 = arith.minimumf %393, %396 : vector<2x256xf32>
    %398 = math.exp %397 : vector<2x256xf32>
    %cst_205 = arith.constant 1.000000e+00 : f32
    %399 = vector.broadcast %cst_205 : f32 to vector<2x256xf32>
    %400 = arith.subf %398, %399 : vector<2x256xf32>
    %401 = arith.select %395, %393, %400 : vector<2x256xi1>, vector<2x256xf32>
    %cst_206 = arith.constant 0.000000e+00 : f32
    %402 = vector.broadcast %cst_206 : f32 to vector<1x256xf32>
    %403 = tpu.concatenate %402, %401, %402 in 0 : vector<1x256xf32>, vector<2x256xf32>, vector<1x256xf32> -> vector<4x256xf32>
    %404 = vector.extract_strided_slice %403 {offsets = [0, 0], sizes = [2, 256], strides = [1, 1]} : vector<4x256xf32> to vector<2x256xf32>
    %405 = vector.extract_strided_slice %403 {offsets = [1, 0], sizes = [2, 256], strides = [1, 1]} : vector<4x256xf32> to vector<2x256xf32>
    %406 = vector.extract_strided_slice %403 {offsets = [2, 0], sizes = [2, 256], strides = [1, 1]} : vector<4x256xf32> to vector<2x256xf32>
    %407 = tpu.concatenate %404, %405, %406 in 1 : vector<2x256xf32>, vector<2x256xf32>, vector<2x256xf32> -> vector<2x768xf32>
    %cst_207 = arith.constant dense<0.000000e+00> : vector<2x256xf32>
    %408 = tpu.matmul %407, %49, %cst_207 {dimension_numbers = #tpu.dot_dimension_numbers<[1], [0], [0], [1], [0, 0, 1, 1], [], []>} : vector<2x768xf32>, vector<768x256xf32>, vector<2x256xf32> -> vector<2x256xf32>
    %409 = tpu.iota {dimensions = array<i32: 0>} : vector<2x3xi32>
    %410 = tpu.iota {dimensions = array<i32: 1>} : vector<2x3xi32>
    %c2_i32_208 = arith.constant 2 : i32
    %411 = vector.broadcast %c2_i32_208 : i32 to vector<2x3xi32>
    %412 = arith.muli %411, %409 : vector<2x3xi32>
    %c0_i32_209 = arith.constant 0 : i32
    %413 = vector.broadcast %c0_i32_209 : i32 to vector<2x3xi32>
    %414 = arith.addi %413, %412 : vector<2x3xi32>
    %415 = arith.cmpi eq, %410, %414 : vector<2x3xi32>
    %416 = arith.extui %415 : vector<2x3xi1> to vector<2x3xi32>
    %417 = arith.sitofp %416 : vector<2x3xi32> to vector<2x3xf32>
    %cst_210 = arith.constant dense<0.000000e+00> : vector<2x128xf32>
    %418 = tpu.matmul %417, %372, %cst_210 {dimension_numbers = #tpu.dot_dimension_numbers<[1], [0], [0], [1], [0, 0, 1, 1], [], []>} : vector<2x3xf32>, vector<3x128xf32>, vector<2x128xf32> -> vector<2x128xf32>
    %cst_211 = arith.constant dense<0.000000e+00> : vector<2x256xf32>
    %419 = tpu.matmul %418, %50, %cst_211 {dimension_numbers = #tpu.dot_dimension_numbers<[1], [0], [0], [1], [0, 0, 1, 1], [], []>} : vector<2x128xf32>, vector<128x256xf32>, vector<2x256xf32> -> vector<2x256xf32>
    %420 = vector.broadcast %47 : vector<1x256xf32> to vector<2x256xf32>
    %421 = arith.mulf %419, %420 : vector<2x256xf32>
    %422 = vector.broadcast %46 : vector<1x256xf32> to vector<2x256xf32>
    %423 = arith.addf %421, %422 : vector<2x256xf32>
    %424 = arith.addf %408, %423 : vector<2x256xf32>
    %425 = vector.broadcast %52 : vector<1x256xf32> to vector<2x256xf32>
    %426 = arith.mulf %424, %425 : vector<2x256xf32>
    %427 = vector.broadcast %51 : vector<1x256xf32> to vector<2x256xf32>
    %428 = arith.addf %426, %427 : vector<2x256xf32>
    %cst_212 = arith.constant 0.000000e+00 : f32
    %429 = vector.broadcast %cst_212 : f32 to vector<2x256xf32>
    %430 = arith.cmpf ogt, %428, %429 : vector<2x256xf32>
    %cst_213 = arith.constant 0.000000e+00 : f32
    %431 = vector.broadcast %cst_213 : f32 to vector<2x256xf32>
    %432 = arith.minimumf %428, %431 : vector<2x256xf32>
    %433 = math.exp %432 : vector<2x256xf32>
    %cst_214 = arith.constant 1.000000e+00 : f32
    %434 = vector.broadcast %cst_214 : f32 to vector<2x256xf32>
    %435 = arith.subf %433, %434 : vector<2x256xf32>
    %436 = arith.select %430, %428, %435 : vector<2x256xi1>, vector<2x256xf32>
    %cst_215 = arith.constant 0.000000e+00 : f32
    %437 = vector.broadcast %cst_215 : f32 to vector<1x256xf32>
    %438 = tpu.concatenate %437, %436, %437 in 0 : vector<1x256xf32>, vector<2x256xf32>, vector<1x256xf32> -> vector<4x256xf32>
    %439 = vector.extract_strided_slice %438 {offsets = [0, 0], sizes = [2, 256], strides = [1, 1]} : vector<4x256xf32> to vector<2x256xf32>
    %440 = vector.extract_strided_slice %438 {offsets = [1, 0], sizes = [2, 256], strides = [1, 1]} : vector<4x256xf32> to vector<2x256xf32>
    %441 = vector.extract_strided_slice %438 {offsets = [2, 0], sizes = [2, 256], strides = [1, 1]} : vector<4x256xf32> to vector<2x256xf32>
    %442 = tpu.concatenate %439, %440, %441 in 1 : vector<2x256xf32>, vector<2x256xf32>, vector<2x256xf32> -> vector<2x768xf32>
    %cst_216 = arith.constant dense<0.000000e+00> : vector<2x256xf32>
    %443 = tpu.matmul %442, %55, %cst_216 {dimension_numbers = #tpu.dot_dimension_numbers<[1], [0], [0], [1], [0, 0, 1, 1], [], []>} : vector<2x768xf32>, vector<768x256xf32>, vector<2x256xf32> -> vector<2x256xf32>
    %444 = vector.broadcast %54 : vector<1x256xf32> to vector<2x256xf32>
    %445 = arith.mulf %443, %444 : vector<2x256xf32>
    %446 = vector.broadcast %53 : vector<1x256xf32> to vector<2x256xf32>
    %447 = arith.addf %445, %446 : vector<2x256xf32>
    %cst_217 = arith.constant 0.000000e+00 : f32
    %448 = vector.broadcast %cst_217 : f32 to vector<2x256xf32>
    %449 = arith.cmpf ogt, %447, %448 : vector<2x256xf32>
    %cst_218 = arith.constant 0.000000e+00 : f32
    %450 = vector.broadcast %cst_218 : f32 to vector<2x256xf32>
    %451 = arith.minimumf %447, %450 : vector<2x256xf32>
    %452 = math.exp %451 : vector<2x256xf32>
    %cst_219 = arith.constant 1.000000e+00 : f32
    %453 = vector.broadcast %cst_219 : f32 to vector<2x256xf32>
    %454 = arith.subf %452, %453 : vector<2x256xf32>
    %455 = arith.select %449, %447, %454 : vector<2x256xi1>, vector<2x256xf32>
    %cst_220 = arith.constant 0.000000e+00 : f32
    %456 = vector.broadcast %cst_220 : f32 to vector<1x256xf32>
    %457 = tpu.concatenate %456, %455, %456 in 0 : vector<1x256xf32>, vector<2x256xf32>, vector<1x256xf32> -> vector<4x256xf32>
    %458 = vector.extract_strided_slice %457 {offsets = [0, 0], sizes = [2, 256], strides = [1, 1]} : vector<4x256xf32> to vector<2x256xf32>
    %459 = vector.extract_strided_slice %457 {offsets = [1, 0], sizes = [2, 256], strides = [1, 1]} : vector<4x256xf32> to vector<2x256xf32>
    %460 = vector.extract_strided_slice %457 {offsets = [2, 0], sizes = [2, 256], strides = [1, 1]} : vector<4x256xf32> to vector<2x256xf32>
    %461 = tpu.concatenate %458, %459, %460 in 1 : vector<2x256xf32>, vector<2x256xf32>, vector<2x256xf32> -> vector<2x768xf32>
    %cst_221 = arith.constant dense<0.000000e+00> : vector<2x256xf32>
    %462 = tpu.matmul %461, %56, %cst_221 {dimension_numbers = #tpu.dot_dimension_numbers<[1], [0], [0], [1], [0, 0, 1, 1], [], []>} : vector<2x768xf32>, vector<768x256xf32>, vector<2x256xf32> -> vector<2x256xf32>
    %463 = arith.addf %462, %436 : vector<2x256xf32>
    %cst_222 = arith.constant 0.000000e+00 : f32
    %464 = vector.broadcast %cst_222 : f32 to vector<2x256xf32>
    %465 = arith.cmpf ogt, %463, %464 : vector<2x256xf32>
    %cst_223 = arith.constant 0.000000e+00 : f32
    %466 = vector.broadcast %cst_223 : f32 to vector<2x256xf32>
    %467 = arith.minimumf %463, %466 : vector<2x256xf32>
    %468 = math.exp %467 : vector<2x256xf32>
    %cst_224 = arith.constant 1.000000e+00 : f32
    %469 = vector.broadcast %cst_224 : f32 to vector<2x256xf32>
    %470 = arith.subf %468, %469 : vector<2x256xf32>
    %471 = arith.select %465, %463, %470 : vector<2x256xi1>, vector<2x256xf32>
    %cst_225 = arith.constant dense<0.000000e+00> : vector<256xf32>
    %472 = vector.multi_reduction <add>, %471, %cst_225 [0] : vector<2x256xf32> to vector<256xf32>
    %473 = vector.shape_cast %472 : vector<256xf32> to vector<1x256xf32>
    %cst_226 = arith.constant 5.000000e-01 : f32
    %474 = vector.broadcast %cst_226 : f32 to vector<1x256xf32>
    %475 = arith.mulf %473, %474 : vector<1x256xf32>
    %cst_227 = arith.constant dense<0.000000e+00> : vector<1x4xf32>
    %476 = tpu.matmul %475, %58, %cst_227 {dimension_numbers = #tpu.dot_dimension_numbers<[1], [0], [0], [1], [0, 0, 1, 1], [], []>} : vector<1x256xf32>, vector<256x4xf32>, vector<1x4xf32> -> vector<1x4xf32>
    %477 = arith.addf %476, %57 : vector<1x4xf32>
    %478 = vector.shape_cast %477 : vector<1x4xf32> to vector<1x1x4xf32>
    %c0_228 = arith.constant 0 : index
    %c0_229 = arith.constant 0 : index
    %c0_230 = arith.constant 0 : index
    %479 = vector.load %arg62[%c0_228, %c0_229, %c0_230] : memref<1x1x4xf32, #tpu.memory_space<vmem>>, vector<1x1x4xf32>
    tpu.vector_store %arg62[%c0_228, %c0_229, %c0_230], %478 {strides = array<i32>} : memref<1x1x4xf32, #tpu.memory_space<vmem>>, vector<1x1x4xf32>,
    return
  }
  func.func @transform_0(%arg0: i32) -> (i32, i32, i32) {
    %c0_i32 = arith.constant 0 : i32
    %c0_i32_0 = arith.constant 0 : i32
    %c0_i32_1 = arith.constant 0 : i32
    return %arg0, %c0_i32, %c0_i32_0 : i32, i32, i32
  }
  func.func @transform_1(%arg0: i32) -> (i32, i32) {
    %c0_i32 = arith.constant 0 : i32
    %c0_i32_0 = arith.constant 0 : i32
    %c0_i32_1 = arith.constant 0 : i32
    return %c0_i32, %c0_i32_0 : i32, i32
  }
  func.func @transform_2(%arg0: i32) -> (i32, i32) {
    %c0_i32 = arith.constant 0 : i32
    %c0_i32_0 = arith.constant 0 : i32
    %c0_i32_1 = arith.constant 0 : i32
    return %c0_i32, %c0_i32_0 : i32, i32
  }
  func.func @transform_3(%arg0: i32) -> (i32, i32) {
    %c0_i32 = arith.constant 0 : i32
    %c0_i32_0 = arith.constant 0 : i32
    %c0_i32_1 = arith.constant 0 : i32
    return %c0_i32, %c0_i32_0 : i32, i32
  }
  func.func @transform_4(%arg0: i32) -> (i32, i32) {
    %c0_i32 = arith.constant 0 : i32
    %c0_i32_0 = arith.constant 0 : i32
    %c0_i32_1 = arith.constant 0 : i32
    return %c0_i32, %c0_i32_0 : i32, i32
  }
  func.func @transform_5(%arg0: i32) -> (i32, i32) {
    %c0_i32 = arith.constant 0 : i32
    %c0_i32_0 = arith.constant 0 : i32
    %c0_i32_1 = arith.constant 0 : i32
    return %c0_i32, %c0_i32_0 : i32, i32
  }
  func.func @transform_6(%arg0: i32) -> (i32, i32) {
    %c0_i32 = arith.constant 0 : i32
    %c0_i32_0 = arith.constant 0 : i32
    %c0_i32_1 = arith.constant 0 : i32
    return %c0_i32, %c0_i32_0 : i32, i32
  }
  func.func @transform_7(%arg0: i32) -> (i32, i32) {
    %c0_i32 = arith.constant 0 : i32
    %c0_i32_0 = arith.constant 0 : i32
    %c0_i32_1 = arith.constant 0 : i32
    return %c0_i32, %c0_i32_0 : i32, i32
  }
  func.func @transform_8(%arg0: i32) -> (i32, i32) {
    %c0_i32 = arith.constant 0 : i32
    %c0_i32_0 = arith.constant 0 : i32
    %c0_i32_1 = arith.constant 0 : i32
    return %c0_i32, %c0_i32_0 : i32, i32
  }
  func.func @transform_9(%arg0: i32) -> (i32, i32) {
    %c0_i32 = arith.constant 0 : i32
    %c0_i32_0 = arith.constant 0 : i32
    %c0_i32_1 = arith.constant 0 : i32
    return %c0_i32, %c0_i32_0 : i32, i32
  }
  func.func @transform_10(%arg0: i32) -> (i32, i32) {
    %c0_i32 = arith.constant 0 : i32
    %c0_i32_0 = arith.constant 0 : i32
    %c0_i32_1 = arith.constant 0 : i32
    return %c0_i32, %c0_i32_0 : i32, i32
  }
  func.func @transform_11(%arg0: i32) -> (i32, i32) {
    %c0_i32 = arith.constant 0 : i32
    %c0_i32_0 = arith.constant 0 : i32
    %c0_i32_1 = arith.constant 0 : i32
    return %c0_i32, %c0_i32_0 : i32, i32
  }
  func.func @transform_12(%arg0: i32) -> (i32, i32) {
    %c0_i32 = arith.constant 0 : i32
    %c0_i32_0 = arith.constant 0 : i32
    %c0_i32_1 = arith.constant 0 : i32
    return %c0_i32, %c0_i32_0 : i32, i32
  }
  func.func @transform_13(%arg0: i32) -> (i32, i32) {
    %c0_i32 = arith.constant 0 : i32
    %c0_i32_0 = arith.constant 0 : i32
    %c0_i32_1 = arith.constant 0 : i32
    return %c0_i32, %c0_i32_0 : i32, i32
  }
  func.func @transform_14(%arg0: i32) -> (i32, i32) {
    %c0_i32 = arith.constant 0 : i32
    %c0_i32_0 = arith.constant 0 : i32
    %c0_i32_1 = arith.constant 0 : i32
    return %c0_i32, %c0_i32_0 : i32, i32
  }
  func.func @transform_15(%arg0: i32) -> (i32, i32) {
    %c0_i32 = arith.constant 0 : i32
    %c0_i32_0 = arith.constant 0 : i32
    %c0_i32_1 = arith.constant 0 : i32
    return %c0_i32, %c0_i32_0 : i32, i32
  }
  func.func @transform_16(%arg0: i32) -> (i32, i32) {
    %c0_i32 = arith.constant 0 : i32
    %c0_i32_0 = arith.constant 0 : i32
    %c0_i32_1 = arith.constant 0 : i32
    return %c0_i32, %c0_i32_0 : i32, i32
  }
  func.func @transform_17(%arg0: i32) -> (i32, i32) {
    %c0_i32 = arith.constant 0 : i32
    %c0_i32_0 = arith.constant 0 : i32
    %c0_i32_1 = arith.constant 0 : i32
    return %c0_i32, %c0_i32_0 : i32, i32
  }
  func.func @transform_18(%arg0: i32) -> (i32, i32) {
    %c0_i32 = arith.constant 0 : i32
    %c0_i32_0 = arith.constant 0 : i32
    %c0_i32_1 = arith.constant 0 : i32
    return %c0_i32, %c0_i32_0 : i32, i32
  }
  func.func @transform_19(%arg0: i32) -> (i32, i32) {
    %c0_i32 = arith.constant 0 : i32
    %c0_i32_0 = arith.constant 0 : i32
    %c0_i32_1 = arith.constant 0 : i32
    return %c0_i32, %c0_i32_0 : i32, i32
  }
  func.func @transform_20(%arg0: i32) -> (i32, i32) {
    %c0_i32 = arith.constant 0 : i32
    %c0_i32_0 = arith.constant 0 : i32
    %c0_i32_1 = arith.constant 0 : i32
    return %c0_i32, %c0_i32_0 : i32, i32
  }
  func.func @transform_21(%arg0: i32) -> (i32, i32) {
    %c0_i32 = arith.constant 0 : i32
    %c0_i32_0 = arith.constant 0 : i32
    %c0_i32_1 = arith.constant 0 : i32
    return %c0_i32, %c0_i32_0 : i32, i32
  }
  func.func @transform_22(%arg0: i32) -> (i32, i32) {
    %c0_i32 = arith.constant 0 : i32
    %c0_i32_0 = arith.constant 0 : i32
    %c0_i32_1 = arith.constant 0 : i32
    return %c0_i32, %c0_i32_0 : i32, i32
  }
  func.func @transform_23(%arg0: i32) -> (i32, i32) {
    %c0_i32 = arith.constant 0 : i32
    %c0_i32_0 = arith.constant 0 : i32
    %c0_i32_1 = arith.constant 0 : i32
    return %c0_i32, %c0_i32_0 : i32, i32
  }
  func.func @transform_24(%arg0: i32) -> (i32, i32) {
    %c0_i32 = arith.constant 0 : i32
    %c0_i32_0 = arith.constant 0 : i32
    %c0_i32_1 = arith.constant 0 : i32
    return %c0_i32, %c0_i32_0 : i32, i32
  }
  func.func @transform_25(%arg0: i32) -> (i32, i32) {
    %c0_i32 = arith.constant 0 : i32
    %c0_i32_0 = arith.constant 0 : i32
    %c0_i32_1 = arith.constant 0 : i32
    return %c0_i32, %c0_i32_0 : i32, i32
  }
  func.func @transform_26(%arg0: i32) -> (i32, i32) {
    %c0_i32 = arith.constant 0 : i32
    %c0_i32_0 = arith.constant 0 : i32
    %c0_i32_1 = arith.constant 0 : i32
    return %c0_i32, %c0_i32_0 : i32, i32
  }
  func.func @transform_27(%arg0: i32) -> (i32, i32) {
    %c0_i32 = arith.constant 0 : i32
    %c0_i32_0 = arith.constant 0 : i32
    %c0_i32_1 = arith.constant 0 : i32
    return %c0_i32, %c0_i32_0 : i32, i32
  }
  func.func @transform_28(%arg0: i32) -> (i32, i32) {
    %c0_i32 = arith.constant 0 : i32
    %c0_i32_0 = arith.constant 0 : i32
    %c0_i32_1 = arith.constant 0 : i32
    return %c0_i32, %c0_i32_0 : i32, i32
  }
  func.func @transform_29(%arg0: i32) -> (i32, i32) {
    %c0_i32 = arith.constant 0 : i32
    %c0_i32_0 = arith.constant 0 : i32
    %c0_i32_1 = arith.constant 0 : i32
    return %c0_i32, %c0_i32_0 : i32, i32
  }
  func.func @transform_30(%arg0: i32) -> (i32, i32) {
    %c0_i32 = arith.constant 0 : i32
    %c0_i32_0 = arith.constant 0 : i32
    %c0_i32_1 = arith.constant 0 : i32
    return %c0_i32, %c0_i32_0 : i32, i32
  }
  func.func @transform_31(%arg0: i32) -> (i32, i32) {
    %c0_i32 = arith.constant 0 : i32
    %c0_i32_0 = arith.constant 0 : i32
    %c0_i32_1 = arith.constant 0 : i32
    return %c0_i32, %c0_i32_0 : i32, i32
  }
  func.func @transform_32(%arg0: i32) -> (i32, i32) {
    %c0_i32 = arith.constant 0 : i32
    %c0_i32_0 = arith.constant 0 : i32
    %c0_i32_1 = arith.constant 0 : i32
    return %c0_i32, %c0_i32_0 : i32, i32
  }
  func.func @transform_33(%arg0: i32) -> (i32, i32) {
    %c0_i32 = arith.constant 0 : i32
    %c0_i32_0 = arith.constant 0 : i32
    %c0_i32_1 = arith.constant 0 : i32
    return %c0_i32, %c0_i32_0 : i32, i32
  }
  func.func @transform_34(%arg0: i32) -> (i32, i32) {
    %c0_i32 = arith.constant 0 : i32
    %c0_i32_0 = arith.constant 0 : i32
    %c0_i32_1 = arith.constant 0 : i32
    return %c0_i32, %c0_i32_0 : i32, i32
  }
  func.func @transform_35(%arg0: i32) -> (i32, i32) {
    %c0_i32 = arith.constant 0 : i32
    %c0_i32_0 = arith.constant 0 : i32
    %c0_i32_1 = arith.constant 0 : i32
    return %c0_i32, %c0_i32_0 : i32, i32
  }
  func.func @transform_36(%arg0: i32) -> (i32, i32) {
    %c0_i32 = arith.constant 0 : i32
    %c0_i32_0 = arith.constant 0 : i32
    %c0_i32_1 = arith.constant 0 : i32
    return %c0_i32, %c0_i32_0 : i32, i32
  }
  func.func @transform_37(%arg0: i32) -> (i32, i32) {
    %c0_i32 = arith.constant 0 : i32
    %c0_i32_0 = arith.constant 0 : i32
    %c0_i32_1 = arith.constant 0 : i32
    return %c0_i32, %c0_i32_0 : i32, i32
  }
  func.func @transform_38(%arg0: i32) -> (i32, i32) {
    %c0_i32 = arith.constant 0 : i32
    %c0_i32_0 = arith.constant 0 : i32
    %c0_i32_1 = arith.constant 0 : i32
    return %c0_i32, %c0_i32_0 : i32, i32
  }
  func.func @transform_39(%arg0: i32) -> (i32, i32) {
    %c0_i32 = arith.constant 0 : i32
    %c0_i32_0 = arith.constant 0 : i32
    %c0_i32_1 = arith.constant 0 : i32
    return %c0_i32, %c0_i32_0 : i32, i32
  }
  func.func @transform_40(%arg0: i32) -> (i32, i32) {
    %c0_i32 = arith.constant 0 : i32
    %c0_i32_0 = arith.constant 0 : i32
    %c0_i32_1 = arith.constant 0 : i32
    return %c0_i32, %c0_i32_0 : i32, i32
  }
  func.func @transform_41(%arg0: i32) -> (i32, i32) {
    %c0_i32 = arith.constant 0 : i32
    %c0_i32_0 = arith.constant 0 : i32
    %c0_i32_1 = arith.constant 0 : i32
    return %c0_i32, %c0_i32_0 : i32, i32
  }
  func.func @transform_42(%arg0: i32) -> (i32, i32) {
    %c0_i32 = arith.constant 0 : i32
    %c0_i32_0 = arith.constant 0 : i32
    %c0_i32_1 = arith.constant 0 : i32
    return %c0_i32, %c0_i32_0 : i32, i32
  }
  func.func @transform_43(%arg0: i32) -> (i32, i32) {
    %c0_i32 = arith.constant 0 : i32
    %c0_i32_0 = arith.constant 0 : i32
    %c0_i32_1 = arith.constant 0 : i32
    return %c0_i32, %c0_i32_0 : i32, i32
  }
  func.func @transform_44(%arg0: i32) -> (i32, i32) {
    %c0_i32 = arith.constant 0 : i32
    %c0_i32_0 = arith.constant 0 : i32
    %c0_i32_1 = arith.constant 0 : i32
    return %c0_i32, %c0_i32_0 : i32, i32
  }
  func.func @transform_45(%arg0: i32) -> (i32, i32) {
    %c0_i32 = arith.constant 0 : i32
    %c0_i32_0 = arith.constant 0 : i32
    %c0_i32_1 = arith.constant 0 : i32
    return %c0_i32, %c0_i32_0 : i32, i32
  }
  func.func @transform_46(%arg0: i32) -> (i32, i32) {
    %c0_i32 = arith.constant 0 : i32
    %c0_i32_0 = arith.constant 0 : i32
    %c0_i32_1 = arith.constant 0 : i32
    return %c0_i32, %c0_i32_0 : i32, i32
  }
  func.func @transform_47(%arg0: i32) -> (i32, i32) {
    %c0_i32 = arith.constant 0 : i32
    %c0_i32_0 = arith.constant 0 : i32
    %c0_i32_1 = arith.constant 0 : i32
    return %c0_i32, %c0_i32_0 : i32, i32
  }
  func.func @transform_48(%arg0: i32) -> (i32, i32) {
    %c0_i32 = arith.constant 0 : i32
    %c0_i32_0 = arith.constant 0 : i32
    %c0_i32_1 = arith.constant 0 : i32
    return %c0_i32, %c0_i32_0 : i32, i32
  }
  func.func @transform_49(%arg0: i32) -> (i32, i32) {
    %c0_i32 = arith.constant 0 : i32
    %c0_i32_0 = arith.constant 0 : i32
    %c0_i32_1 = arith.constant 0 : i32
    return %c0_i32, %c0_i32_0 : i32, i32
  }
  func.func @transform_50(%arg0: i32) -> (i32, i32) {
    %c0_i32 = arith.constant 0 : i32
    %c0_i32_0 = arith.constant 0 : i32
    %c0_i32_1 = arith.constant 0 : i32
    return %c0_i32, %c0_i32_0 : i32, i32
  }
  func.func @transform_51(%arg0: i32) -> (i32, i32) {
    %c0_i32 = arith.constant 0 : i32
    %c0_i32_0 = arith.constant 0 : i32
    %c0_i32_1 = arith.constant 0 : i32
    return %c0_i32, %c0_i32_0 : i32, i32
  }
  func.func @transform_52(%arg0: i32) -> (i32, i32) {
    %c0_i32 = arith.constant 0 : i32
    %c0_i32_0 = arith.constant 0 : i32
    %c0_i32_1 = arith.constant 0 : i32
    return %c0_i32, %c0_i32_0 : i32, i32
  }
  func.func @transform_53(%arg0: i32) -> (i32, i32) {
    %c0_i32 = arith.constant 0 : i32
    %c0_i32_0 = arith.constant 0 : i32
    %c0_i32_1 = arith.constant 0 : i32
    return %c0_i32, %c0_i32_0 : i32, i32
  }
  func.func @transform_54(%arg0: i32) -> (i32, i32) {
    %c0_i32 = arith.constant 0 : i32
    %c0_i32_0 = arith.constant 0 : i32
    %c0_i32_1 = arith.constant 0 : i32
    return %c0_i32, %c0_i32_0 : i32, i32
  }
  func.func @transform_55(%arg0: i32) -> (i32, i32) {
    %c0_i32 = arith.constant 0 : i32
    %c0_i32_0 = arith.constant 0 : i32
    %c0_i32_1 = arith.constant 0 : i32
    return %c0_i32, %c0_i32_0 : i32, i32
  }
  func.func @transform_56(%arg0: i32) -> (i32, i32) {
    %c0_i32 = arith.constant 0 : i32
    %c0_i32_0 = arith.constant 0 : i32
    %c0_i32_1 = arith.constant 0 : i32
    return %c0_i32, %c0_i32_0 : i32, i32
  }
  func.func @transform_57(%arg0: i32) -> (i32, i32) {
    %c0_i32 = arith.constant 0 : i32
    %c0_i32_0 = arith.constant 0 : i32
    %c0_i32_1 = arith.constant 0 : i32
    return %c0_i32, %c0_i32_0 : i32, i32
  }
  func.func @transform_58(%arg0: i32) -> (i32, i32) {
    %c0_i32 = arith.constant 0 : i32
    %c0_i32_0 = arith.constant 0 : i32
    %c0_i32_1 = arith.constant 0 : i32
    return %c0_i32, %c0_i32_0 : i32, i32
  }
  func.func @transform_59(%arg0: i32) -> (i32, i32) {
    %c0_i32 = arith.constant 0 : i32
    %c0_i32_0 = arith.constant 0 : i32
    %c0_i32_1 = arith.constant 0 : i32
    return %c0_i32, %c0_i32_0 : i32, i32
  }
  func.func @transform_60(%arg0: i32) -> (i32, i32) {
    %c0_i32 = arith.constant 0 : i32
    %c0_i32_0 = arith.constant 0 : i32
    %c0_i32_1 = arith.constant 0 : i32
    return %c0_i32, %c0_i32_0 : i32, i32
  }
  func.func @transform_61(%arg0: i32) -> (i32, i32, i32) {
    %c0_i32 = arith.constant 0 : i32
    %c0_i32_0 = arith.constant 0 : i32
    %c0_i32_1 = arith.constant 0 : i32
    return %arg0, %c0_i32, %c0_i32_0 : i32, i32, i32
  }
}

</mosaic_0001>

<bundles_post_ra>
// kernel: resnet18_pallas.1
= control target key start
LH: loop header
LB: loop body
LE: loop exit
PB: predicated region body
PF: predicated region fallthrough
CT: control target
= control target key end

     0   :  { %s13036_s6 = smov 1   ;;  %s13037_s10 = smov 2   ;;  %s15802_s0 = inlined_call_operand.smem [shape: u32[62], index: -1, kind: input, shape index: {}] }
   0x1   :  { %s13162_s5 = sld [smem:[%s15802_s0]]   ;;  %s13038_s14 = smov 3  }
   0x2   :  { %s13167_s9 = sld [smem:[%s15802_s0 + %s13036_s6]]   ;;  %s13039_s18 = smov 4  }
   0x3   :  { %s13172_s13 = sld [smem:[%s15802_s0 + %s13037_s10]]   ;;  %s13040_s22 = smov 5  }
   0x4   :  { %s13177_s17 = sld [smem:[%s15802_s0 + %s13038_s14]]   ;;  %s13041_s26 = smov 6  }
   0x5   :  { %s13182_s21 = sld [smem:[%s15802_s0 + %s13039_s18]]   ;;  %s13042_s30 = smov 7  }
   0x6   :  { %s13187_s25 = sld [smem:[%s15802_s0 + %s13040_s22]]   ;;  %s13043_s4 = smov 8  }
   0x7   :  { %15897 = sst [smem:[#allocation99_spill]] %s13162_s5  ;;  %s13044_s10 = smov 9  }
   0x8   :  { %15898 = sst [smem:[#allocation100_spill]] %s13167_s9  ;;  %s13045_s15 = smov 10  }
   0x9   :  { %15899 = sst [smem:[#allocation101_spill]] %s13172_s13  ;;  %s13046_s20 = smov 11  }
   0xa   :  { %15900 = sst [smem:[#allocation102_spill]] %s13177_s17  ;;  %s13048_s1 = smov 13  }
   0xb   :  { %15901 = sst [smem:[#allocation103_spill]] %s13182_s21  ;;  %s13049_s7 = smov 14  }
   0xc   :  { %15902 = sst [smem:[#allocation104_spill]] %s13187_s25  ;;  %s13051_s22 = smov 16  }
   0xd   :  { %s13192_s29 = sld [smem:[%s15802_s0 + %s13041_s26]]   ;;  %s13047_s26 = smov 12  }
   0xe   :  { %s13197_s3 = sld [smem:[%s15802_s0 + %s13042_s30]]   ;;  %s13052_s28 = smov 17  }
   0xf   :  { %s13202_s8 = sld [smem:[%s15802_s0 + %s13043_s4]]  }
  0x10   :  { %s13207_s14 = sld [smem:[%s15802_s0 + %s13044_s10]]  }
  0x11   :  { %s13212_s19 = sld [smem:[%s15802_s0 + %s13045_s15]]   ;;  %s13050_s15 = smov 15  }
  0x12   :  { %s13217_s24 = sld [smem:[%s15802_s0 + %s13046_s20]]  }
  0x13   :  { %15903 = sst [smem:[#allocation105_spill]] %s13192_s29 }
  0x14   :  { %15904 = sst [smem:[#allocation106_spill]] %s13197_s3 }
  0x15   :  { %15905 = sst [smem:[#allocation107_spill]] %s13202_s8 }
  0x16   :  { %15906 = sst [smem:[#allocation108_spill]] %s13207_s14 }
  0x17   :  { %15907 = sst [smem:[#allocation109_spill]] %s13212_s19 }
  0x18   :  { %15908 = sst [smem:[#allocation110_spill]] %s13217_s24 }
  0x19   :  { %s13222_s30 = sld [smem:[%s15802_s0 + %s13047_s26]]  }
  0x1a   :  { %s13227_s6 = sld [smem:[%s15802_s0 + %s13048_s1]]  }
  0x1b   :  { %s13232_s12 = sld [smem:[%s15802_s0 + %s13049_s7]]   ;;  %s13053_s7 = smov 18  }
  0x1c   :  { %s13237_s20 = sld [smem:[%s15802_s0 + %s13050_s15]]   ;;  %s13054_s15 = smov 19  }
  0x1d   :  { %s13242_s27 = sld [smem:[%s15802_s0 + %s13051_s22]]   ;;  %s13055_s22 = smov 20  }
  0x1e   :  { %s13247_s4 = sld [smem:[%s15802_s0 + %s13052_s28]]   ;;  %s13056_s28 = smov 21  }
  0x1f   :  { %15909 = sst [smem:[#allocation111_spill]] %s13222_s30 }
  0x20   :  { %15910 = sst [smem:[#allocation112_spill]] %s13227_s6 }
  0x21   :  { %15911 = sst [smem:[#allocation113_spill]] %s13232_s12 }
  0x22   :  { %s13252_s30 = sld [smem:[%s15802_s0 + %s13053_s7]]   ;;  %s13057_s7 = smov 22  }
  0x23   :  { %15912 = sst [smem:[#allocation114_spill]] %s13242_s27 }
  0x24   :  { %15913 = sst [smem:[#allocation115_spill]] %s13247_s4 }
  0x25   :  { %s13257_s24 = sld [smem:[%s15802_s0 + %s13054_s15]]   ;;  %s13058_s15 = smov 23  }
  0x26   :  { %s13262_s29 = sld [smem:[%s15802_s0 + %s13055_s22]]   ;;  %s13059_s22 = smov 24  }
  0x27   :  { %s13267_s9 = sld [smem:[%s15802_s0 + %s13056_s28]]   ;;  %s13060_s28 = smov 25  }
  0x28   :  { %15914 = sst [smem:[#allocation116_spill]] %s13252_s30 }
  0x29   :  { %s13272_s25 = sld [smem:[%s15802_s0 + %s13057_s7]]   ;;  %s13061_s7 = smov 26  }
  0x2a   :  { %s13287_s5 = sld [smem:[%s15802_s0 + %s13060_s28]]   ;;  %s13064_s28 = smov 29  }
  0x2b   :  { %15915 = sst [smem:[#allocation117_spill]] %s13257_s24 }
  0x2c   :  { %15916 = sst [smem:[#allocation118_spill]] %s13262_s29 }
  0x2d   :  { %15917 = sst [smem:[#allocation119_spill]] %s13267_s9 }
  0x2e   :  { %s13277_s24 = sld [smem:[%s15802_s0 + %s13058_s15]]   ;;  %s13062_s15 = smov 27  }
  0x2f   :  { %15918 = sst [smem:[#allocation120_spill]] %s13272_s25 }
  0x30   :  { %s13282_s29 = sld [smem:[%s15802_s0 + %s13059_s22]]   ;;  %s13063_s22 = smov 28  }
  0x31   :  { %15920 = sst [smem:[#allocation122_spill]] %s13287_s5 }
  0x32   :  { %s13292_s25 = sld [smem:[%s15802_s0 + %s13061_s7]]   ;;  %s13065_s7 = smov 30  }
  0x33   :  { %s13297_s30 = sld [smem:[%s15802_s0 + %s13062_s15]]   ;;  %s13066_s15 = smov 31  }
  0x34   :  { %s13307_s27 = sld [smem:[%s15802_s0 + %s13064_s28]]   ;;  %s13068_s28 = smov 33  }
  0x35   :  { %s13327_s12 = sld [smem:[%s15802_s0 + %s13068_s28]]   ;;  %s13072_s28 = smov 37  }
  0x36   :  { %15919 = sst [smem:[#allocation121_spill]] %s13282_s29 }
  0x37   :  { %s13302_s29 = sld [smem:[%s15802_s0 + %s13063_s22]]   ;;  %s13067_s22 = smov 32  }
  0x38   :  { %15921 = sst [smem:[#allocation123_spill]] %s13292_s25 }
  0x39   :  { %15922 = sst [smem:[#allocation124_spill]] %s13297_s30 }
  0x3a   :  { %s13312_s25 = sld [smem:[%s15802_s0 + %s13065_s7]]   ;;  %s13069_s7 = smov 34  }
  0x3b   :  { %s13317_s30 = sld [smem:[%s15802_s0 + %s13066_s15]]   ;;  %s13070_s15 = smov 35  }
  0x3c   :  { %15926 = sst [smem:[#allocation128_spill]] %s13327_s12 }
  0x3d   :  { %15923 = sst [smem:[#allocation125_spill]] %s13302_s29 }
  0x3e   :  { %s13322_s29 = sld [smem:[%s15802_s0 + %s13067_s22]]   ;;  %s13071_s22 = smov 36  }
  0x3f   :  { %s13337_s19 = sld [smem:[%s15802_s0 + %s13070_s15]]   ;;  %s13074_s15 = smov 39  }
  0x40   :  { %15924 = sst [smem:[#allocation126_spill]] %s13312_s25 }
  0x41   :  { %s13332_s25 = sld [smem:[%s15802_s0 + %s13069_s7]]   ;;  %s13073_s7 = smov 38  }
  0x42   :  { %s13347_s8 = sld [smem:[%s15802_s0 + %s13072_s28]]   ;;  %s13076_s28 = smov 41  }
  0x43   :  { %s13357_s21 = sld [smem:[%s15802_s0 + %s13074_s15]]   ;;  %s13078_s15 = smov 43  }
  0x44   :  { %15925 = sst [smem:[#allocation127_spill]] %s13322_s29 }
  0x45   :  { %s13342_s29 = sld [smem:[%s15802_s0 + %s13071_s22]]   ;;  %s13075_s22 = smov 40  }
  0x46   :  { %s13367_s13 = sld [smem:[%s15802_s0 + %s13076_s28]]   ;;  %s13080_s28 = smov 45  }
  0x47   :  { %15927 = sst [smem:[#allocation129_spill]] %s13332_s25 }
  0x48   :  { %15929 = sst [smem:[#allocation131_spill]] %s13347_s8 }
  0x49   :  { %s13352_s25 = sld [smem:[%s15802_s0 + %s13073_s7]]   ;;  %s13077_s7 = smov 42  }
  0x4a   :  { %15931 = sst [smem:[#allocation133_spill]] %s13357_s21 }
  0x4b   :  { %15928 = sst [smem:[#allocation130_spill]] %s13342_s29 }
  0x4c   :  { %s13362_s29 = sld [smem:[%s15802_s0 + %s13075_s22]]   ;;  %s13079_s22 = smov 44  }
  0x4d   :  { %15933 = sst [smem:[#allocation135_spill]] %s13367_s13 }
  0x4e   :  { %s13377_s21 = sld [smem:[%s15802_s0 + %s13078_s15]]   ;;  %s13082_s15 = smov 47  }
  0x4f   :  { %15930 = sst [smem:[#allocation132_spill]] %s13352_s25 }
  0x50   :  { %s13372_s25 = sld [smem:[%s15802_s0 + %s13077_s7]]   ;;  %s13081_s7 = smov 46  }
  0x51   :  { %s13387_s13 = sld [smem:[%s15802_s0 + %s13080_s28]]   ;;  %s13084_s28 = smov 49  }
  0x52   :  { %15932 = sst [smem:[#allocation134_spill]] %s13362_s29 }
  0x53   :  { %s13382_s29 = sld [smem:[%s15802_s0 + %s13079_s22]]   ;;  %s13083_s22 = smov 48  }
  0x54   :  { %15935 = sst [smem:[#allocation137_spill]] %s13377_s21 }
  0x55   :  { %s13397_s21 = sld [smem:[%s15802_s0 + %s13082_s15]]   ;;  %s13086_s15 = smov 51  }
  0x56   :  { %15934 = sst [smem:[#allocation136_spill]] %s13372_s25 }
  0x57   :  { %15937 = sst [smem:[#allocation139_spill]] %s13387_s13 }
  0x58   :  { %s13392_s25 = sld [smem:[%s15802_s0 + %s13081_s7]]   ;;  %s13085_s7 = smov 50  }
  0x59   :  { %15936 = sst [smem:[#allocation138_spill]] %s13382_s29 }
  0x5a   :  { %s13402_s29 = sld [smem:[%s15802_s0 + %s13083_s22]]   ;;  %s13087_s22 = smov 52  }
  0x5b   :  { %15939 = sst [smem:[#allocation141_spill]] %s13397_s21 }
  0x5c   :  { %s13407_s13 = sld [smem:[%s15802_s0 + %s13084_s28]]   ;;  %s13088_s28 = smov 53  }
  0x5d   :  { %s13417_s21 = sld [smem:[%s15802_s0 + %s13086_s15]]   ;;  %s13090_s15 = smov 55  }
  0x5e   :  { %15938 = sst [smem:[#allocation140_spill]] %s13392_s25 }
  0x5f   :  { %s13412_s25 = sld [smem:[%s15802_s0 + %s13085_s7]]   ;;  %s13089_s7 = smov 54  }
  0x60   :  { %15940 = sst [smem:[#allocation142_spill]] %s13402_s29 }
  0x61   :  { %s13422_s29 = sld [smem:[%s15802_s0 + %s13087_s22]]   ;;  %s13091_s22 = smov 56  }
  0x62   :  { %15941 = sst [smem:[#allocation143_spill]] %s13407_s13 }
  0x63   :  { %15943 = sst [smem:[#allocation145_spill]] %s13417_s21 }
  0x64   :  { %s13427_s13 = sld [smem:[%s15802_s0 + %s13088_s28]]   ;;  %s13092_s28 = smov 57  }
  0x65   :  { %15942 = sst [smem:[#allocation144_spill]] %s13412_s25 }
  0x66   :  { %s13432_s25 = sld [smem:[%s15802_s0 + %s13089_s7]]   ;;  %s13093_s7 = smov 58  }
  0x67   :  { %15944 = sst [smem:[#allocation146_spill]] %s13422_s29 }
  0x68   :  { %s13437_s21 = sld [smem:[%s15802_s0 + %s13090_s15]]   ;;  %s13094_s15 = smov 59  }
  0x69   :  { %s13442_s29 = sld [smem:[%s15802_s0 + %s13091_s22]]   ;;  %s13095_s22 = smov 60  }
  0x6a   :  { %15945 = sst [smem:[#allocation147_spill]] %s13427_s13 }
  0x6b   :  { %s13447_s13 = sld [smem:[%s15802_s0 + %s13092_s28]]   ;;  %s13096_s28 = smov 61  }
  0x6c   :  { %15946 = sst [smem:[#allocation148_spill]] %s13432_s25 }
  0x6d   :  { %s13452_s25 = sld [smem:[%s15802_s0 + %s13093_s7]]  }
  0x6e   :  { %15947 = sst [smem:[#allocation149_spill]] %s13437_s21 }
  0x6f   :  { %15948 = sst [smem:[#allocation150_spill]] %s13442_s29 }
  0x70   :  { %s13457_s21 = sld [smem:[%s15802_s0 + %s13094_s15]]  }
  0x71   :  { %15949 = sst [smem:[#allocation151_spill]] %s13447_s13 }
  0x72   :  { %s13462_s29 = sld [smem:[%s15802_s0 + %s13095_s22]]  }
  0x73   :  { %s13467_s13 = sld [smem:[%s15802_s0 + %s13096_s28]]  }
  0x74   :  { %128 = vsyncpa [#allocation3], 0 }
  0x75   :  { %129 = vsyncpa [#allocation6], 0 }
  0x76   :  { %130 = vsyncpa [#allocation9], 0 }
  0x77   :  { %131 = vsyncpa [#allocation12], 0 }
  0x78   :  { %132 = vsyncpa [#allocation15], 0 }
  0x79   :  { %133 = vsyncpa [#allocation18], 0 }
  0x7a   :  { %134 = vsyncpa [#allocation21], 0 }
  0x7b   :  { %135 = vsyncpa [#allocation24], 0 }
  0x7c   :  { %136 = vsyncpa [#allocation27], 0 }
  0x7d   :  { %137 = vsyncpa [#allocation30], 0 }
  0x7e   :  { %138 = vsyncpa [#allocation33], 0 }
  0x7f   :  { %139 = vsyncpa [#allocation36], 0 }
  0x80   :  { %140 = vsyncpa [#allocation39], 0 }
  0x81   :  { %141 = vsyncpa [#allocation42], 0 }
  0x82   :  { %142 = vsyncpa [#allocation45], 0 }
  0x83   :  { %143 = vsyncpa [#allocation48], 0 }
  0x84   :  { %144 = vsyncpa [#allocation51], 0 }
  0x85   :  { %145 = vsyncpa [#allocation54], 0 }
  0x86   :  { %146 = vsyncpa [#allocation57], 0 }
  0x87   :  { %147 = vsyncpa [#allocation60], 0 }
  0x88   :  { %148 = vsyncpa [#allocation63], 0 }
  0x89   :  { %149 = vsyncpa [#allocation66], 0 }
  0x8a   :  { %150 = vsyncpa [#allocation69], 0 }
  0x8b   :  { %151 = vsyncpa [#allocation72], 0 }
  0x8c   :  { %152 = vsyncpa [#allocation4], 0 }
  0x8d   :  { %154 = vsyncpa [#allocation4 + $0x1], 0  ;;  %s13469_s0 = smov 0   ;;  %s13471_s7 = smov 0  }
  0x8e   :  { %s13473_s10 = smov 0   ;;  %s13475_s11 = smov 0  }
  0x8f LB: > { %s15950_s14 = sld [smem:[#allocation108_spill]]  ;;  %s15951_s12 = sld [smem:[#allocation128_spill]]  ;;  %s13022_s0 = sphi %s13469_s0, %s16027_s0   ;;  %s13034_s11 = sphi %s13475_s11, %s16024_s11   ;;  %s13030_s10 = sphi %s13473_s10, %s16029_s10   ;;  %s13026_s7 = sphi %s13471_s7, %s16028_s7  }
  0x90   : > { %s15952_s9 = sld [smem:[#allocation119_spill]]  ;;  %s15953_s8 = sld [smem:[#allocation131_spill]] }
  0x91   : > { %s15954_s6 = sld [smem:[#allocation112_spill]]  ;;  %s15955_s5 = sld [smem:[#allocation122_spill]] }
  0x92   : > { %s15956_s4 = sld [smem:[#allocation115_spill]]  ;;  %s15957_s3 = sld [smem:[#allocation106_spill]] }
  0x93   : > { %s15958_s17 = sld [smem:[#allocation102_spill]]  ;;  %15959 = sst [smem:[#allocation152_spill]] %s13030_s10 }
  0x94   : > { %s13490_s15 = sadd.s32 4294967295, %s13034_s11   ;;  %s8917_s16 = sadd.s32 4294967294, %s13034_s11  }
  0x95   : > { %s13494_s18 = sadd.s32 1, %s13034_s11   ;;  %s1453_s22 = sadd.s32 1, %s13030_s10 }
  0x96   : > { %15960 = sst [smem:[#allocation153_spill]] %s13494_s18  ;;  %s1450_s23 = ssub.s32 %s13034_s11, %s13494_s18 }
  0x97   : > { %p1463_p0 = scmp.ne.s32.totalorder %s13030_s10, %s13026_s7  ;;  %p1451_p1 = scmp.eq.s32.totalorder %s1450_s23, 0 }
  0x98   : > { %p1464_p2 = scmp.eq.s32.totalorder %s13490_s15, 1  ;;  %p1469_p3 = scmp.ne.s32.totalorder %s13026_s7, %s13022_s0 }
  0x99   : > { %p1470_p4 = scmp.eq.s32.totalorder %s8917_s16, 1  ;;  %p8918_p7 = scmp.ge.s32.totalorder %s13034_s11, 1 }
  0x9a   : > { %s13505_s26 = scalar_select %p1451_p1, %s13030_s10, %s1453_s22  }
  0x9b   : > { %p13507_p5 = por %p1464_p2, %p1463_p0  ;;  %p13511_p6 = por %p1470_p4, %p1469_p3 }
  0x9c   : > { %15961 = sst [smem:[#allocation154_spill]] %s13505_s26  ;;  %p1477_p8 = scmp.lt.s32.totalorder %s13034_s11, 3 }
  0x9d   : > { %s15962_s28 = scalar_select %p13507_p5, 1, 0 }
  0x9e   : > { %s15963_s1 = scalar_select %p13511_p6, 1, 0 }
  0x9f   : > { %p13517_p9 = pnand %p8918_p7, %p1477_p8 }
  0xa0   : > { %15964 = sst [smem:[#allocation155_spill]] %s15963_s1  ;;  %p11314_p10 = scmp.eq.s32.totalorder (!%p13517_p9), %s13490_s15, 0 }
  0xa1   : > { %1481 = sbr.rel (%p13517_p9) target bundleno = 1294 (0x50e), region = 12  ;;  %s13097_s16 = smov (!%p13517_p9), [#allocation5]  }
  0xa2   : > { %s1504_s22 = sshll.u32 (!%p13517_p9), %s13097_s16, 4  ;;  %s13098_s23 = smov (!%p13517_p9), [#allocation8]   ;;  %s1505_s22 = int_to_ptr.vmem [resolvable:$true] %s1504_s22 }
  0xa3   : > { %s1532_s26 = sshll.u32 (!%p13517_p9), %s13098_s23, 4  ;;  %s11680_s10 = scalar_lea.hbm (!%p13517_p9), %s15958_s17, 16  ;;  %s1533_s26 = int_to_ptr.vmem [resolvable:$true] %s1532_s26 }
  0xa4   : > { %p11681_p11 = scmp.ne.s32.totalorder (!%p13517_p9), %s15958_s17, %s11680_s10  ;;  %p11686_p0 = scmp.lt.u32.totalorder (!%p13517_p9), %s11680_s10, %s15958_s17 }
  0xa6   : > { %p11682_p12 = pnand (!%p13517_p9), %p11681_p11, %p11314_p10 }
  0xa8   : > { %p11683_p13 = pneg %p11682_p12 }
  0xaa   : > { %p11688_p1 = pnand %p11686_p0, %p11683_p13 }
  0xac   : > { %11691 = shalt.err (!%p11688_p1)
}
  0xad   : > { %s11692_s18 = scalar_lea.vmem %s1505_s22, 16  ;;  %s11698_s1 = scalar_lea.vmem %s1505_s22, 32 }
  0xae   : > { %p11693_p2 = scmp.ne.s32.totalorder %s1505_s22, %s11692_s18  ;;  %p11699_p7 = scmp.lt.s32.totalorder %s1505_s22, %s1505_s22 }
  0xaf   : > { %p11700_p8 = scmp.lt.s32.totalorder %s11698_s1, %s11692_s18 }
  0xb0   : > { %p11694_p3 = pnand %p11693_p2, %p11314_p10 }
  0xb1   : > { %p11701_p6 = por %p11700_p8, %p11699_p7 }
  0xb2   : > { %p11695_p4 = pneg %p11694_p3 }
  0xb4   : > { %p11702_p5 = pnand %p11701_p6, %p11695_p4 }
  0xb6   : > { %11705 = shalt.err (!%p11702_p5)
}
  0xb7   : > { %11127 = dma.hbm_to_vmem [thread:$0]  (%p11314_p10), %s15958_s17, 16, %s1505_s22, [#allocation6]  }
  0xb8   : > { %s11706_s10 = scalar_lea.hbm %s15957_s3, 16 }
  0xb9   : > { %p11707_p11 = scmp.ne.s32.totalorder %s15957_s3, %s11706_s10  ;;  %p11712_p0 = scmp.lt.u32.totalorder %s11706_s10, %s15957_s3 }
  0xbb   : > { %p11708_p12 = pnand %p11707_p11, %p11314_p10 }
  0xbd   : > { %p11709_p13 = pneg %p11708_p12 }
  0xbf   : > { %p11714_p1 = pnand %p11712_p0, %p11709_p13 }
  0xc1   : > { %11717 = shalt.err (!%p11714_p1)
}
  0xc2   : > { %s11718_s18 = scalar_lea.vmem %s1533_s26, 16  ;;  %s11724_s1 = scalar_lea.vmem %s1533_s26, 32 }
  0xc3   : > { %p11719_p5 = scmp.ne.s32.totalorder %s1533_s26, %s11718_s18  ;;  %p11725_p3 = scmp.lt.s32.totalorder %s1533_s26, %s1533_s26 }
  0xc4   : > { %p11726_p4 = scmp.lt.s32.totalorder %s11724_s1, %s11718_s18 }
  0xc5   : > { %p11720_p6 = pnand %p11719_p5, %p11314_p10 }
  0xc6   : > { %p11727_p7 = por %p11726_p4, %p11725_p3 }
  0xc7   : > { %p11721_p2 = pneg %p11720_p6 }
  0xc9   : > { %p11728_p8 = pnand %p11727_p7, %p11721_p2 }
  0xcb   : > { %11731 = shalt.err (!%p11728_p8)
}
  0xcc   : > { %11131 = dma.hbm_to_vmem [thread:$0]  (%p11314_p10), %s15957_s3, 16, %s1533_s26, [#allocation9]  }
  0xcd   : > { %s13099_s16 = smov [#allocation11]   ;;  %s13100_s23 = smov [#allocation14]  }
  0xce   : > { %s1554_s22 = sshll.u32 %s13099_s16, 4  ;;  %s1582_s10 = sshll.u32 %s13100_s23, 4  ;;  %s1555_s22 = int_to_ptr.vmem [resolvable:$true] %s1554_s22  ;;  %s1583_s10 = int_to_ptr.vmem [resolvable:$true] %s1582_s10 }
  0xcf   : > { %s11732_s17 = scalar_lea.hbm %s15950_s14, 16 }
  0xd0   : > { %p11733_p11 = scmp.ne.s32.totalorder %s15950_s14, %s11732_s17  ;;  %p11738_p0 = scmp.lt.u32.totalorder %s11732_s17, %s15950_s14 }
  0xd2   : > { %p11734_p12 = pnand %p11733_p11, %p11314_p10 }
  0xd4   : > { %p11735_p13 = pneg %p11734_p12 }
  0xd6   : > { %p11740_p1 = pnand %p11738_p0, %p11735_p13 }
  0xd8   : > { %11743 = shalt.err (!%p11740_p1)
}
  0xd9   : > { %s11744_s18 = scalar_lea.vmem %s1555_s22, 16  ;;  %s11750_s26 = scalar_lea.vmem %s1555_s22, 32 }
  0xda   : > { %p11745_p5 = scmp.ne.s32.totalorder %s1555_s22, %s11744_s18  ;;  %p11751_p3 = scmp.lt.s32.totalorder %s1555_s22, %s1555_s22 }
  0xdb   : > { %p11752_p4 = scmp.lt.s32.totalorder %s11750_s26, %s11744_s18 }
  0xdc   : > { %p11746_p6 = pnand %p11745_p5, %p11314_p10 }
  0xdd   : > { %p11753_p7 = por %p11752_p4, %p11751_p3 }
  0xde   : > { %p11747_p2 = pneg %p11746_p6 }
  0xe0   : > { %p11754_p8 = pnand %p11753_p7, %p11747_p2 }
  0xe2   : > { %11757 = shalt.err (!%p11754_p8)
}
  0xe3   : > { %11135 = dma.hbm_to_vmem [thread:$0]  (%p11314_p10), %s15950_s14, 16, %s1555_s22, [#allocation12]  }
  0xe4   : > { %s11758_s17 = scalar_lea.hbm %s15954_s6, 16 }
  0xe5   : > { %p11759_p11 = scmp.ne.s32.totalorder %s15954_s6, %s11758_s17  ;;  %p11764_p0 = scmp.lt.u32.totalorder %s11758_s17, %s15954_s6 }
  0xe7   : > { %p11760_p12 = pnand %p11759_p11, %p11314_p10 }
  0xe9   : > { %p11761_p13 = pneg %p11760_p12 }
  0xeb   : > { %p11766_p1 = pnand %p11764_p0, %p11761_p13 }
  0xed   : > { %11769 = shalt.err (!%p11766_p1)
}
  0xee   : > { %s11770_s1 = scalar_lea.vmem %s1583_s10, 16  ;;  %s11776_s16 = scalar_lea.vmem %s1583_s10, 32 }
  0xef   : > { %p11771_p5 = scmp.ne.s32.totalorder %s1583_s10, %s11770_s1  ;;  %p11777_p3 = scmp.lt.s32.totalorder %s1583_s10, %s1583_s10 }
  0xf0   : > { %p11778_p4 = scmp.lt.s32.totalorder %s11776_s16, %s11770_s1 }
  0xf1   : > { %p11772_p6 = pnand %p11771_p5, %p11314_p10 }
  0xf2   : > { %p11779_p7 = por %p11778_p4, %p11777_p3 }
  0xf3   : > { %p11773_p2 = pneg %p11772_p6 }
  0xf5   : > { %p11780_p8 = pnand %p11779_p7, %p11773_p2 }
  0xf7   : > { %11783 = shalt.err (!%p11780_p8)
}
  0xf8   : > { %11139 = dma.hbm_to_vmem [thread:$0]  (%p11314_p10), %s15954_s6, 16, %s1583_s10, [#allocation15]  }
  0xf9   : > { %s13101_s22 = smov [#allocation17]   ;;  %s13102_s18 = smov [#allocation20]  }
  0xfa   : > { %s1604_s23 = sshll.u32 %s13101_s22, 4  ;;  %s1626_s26 = sshll.u32 %s13102_s18, 4  ;;  %s1605_s23 = int_to_ptr.vmem [resolvable:$true] %s1604_s23  ;;  %s1627_s26 = int_to_ptr.vmem [resolvable:$true] %s1626_s26 }
  0xfb   : > { %s11784_s17 = scalar_lea.hbm %s13237_s20, 16 }
  0xfc   : > { %p11785_p11 = scmp.ne.s32.totalorder %s13237_s20, %s11784_s17  ;;  %p11790_p0 = scmp.lt.u32.totalorder %s11784_s17, %s13237_s20 }
  0xfe   : > { %p11786_p12 = pnand %p11785_p11, %p11314_p10 }
 0x100   : > { %p11787_p13 = pneg %p11786_p12 }
 0x102   : > { %p11792_p1 = pnand %p11790_p0, %p11787_p13 }
 0x104   : > { %11795 = shalt.err (!%p11792_p1)
}
 0x105   : > { %s11796_s1 = scalar_lea.vmem %s1605_s23, 16  ;;  %s11802_s10 = scalar_lea.vmem %s1605_s23, 32 }
 0x106   : > { %p11797_p5 = scmp.ne.s32.totalorder %s1605_s23, %s11796_s1  ;;  %p11803_p3 = scmp.lt.s32.totalorder %s1605_s23, %s1605_s23 }
 0x107   : > { %p11804_p4 = scmp.lt.s32.totalorder %s11802_s10, %s11796_s1 }
 0x108   : > { %p11798_p6 = pnand %p11797_p5, %p11314_p10 }
 0x109   : > { %p11805_p7 = por %p11804_p4, %p11803_p3 }
 0x10a   : > { %p11799_p2 = pneg %p11798_p6 }
 0x10c   : > { %p11806_p8 = pnand %p11805_p7, %p11799_p2 }
 0x10e   : > { %11809 = shalt.err (!%p11806_p8)
}
 0x10f   : > { %11143 = dma.hbm_to_vmem [thread:$0]  (%p11314_p10), %s13237_s20, 16, %s1605_s23, [#allocation18]  }
 0x110   : > { %s11810_s16 = scalar_lea.hbm %s15956_s4, 16 }
 0x111   : > { %p11811_p11 = scmp.ne.s32.totalorder %s15956_s4, %s11810_s16  ;;  %p11816_p0 = scmp.lt.u32.totalorder %s11810_s16, %s15956_s4 }
 0x113   : > { %p11812_p12 = pnand %p11811_p11, %p11314_p10 }
 0x115   : > { %p11813_p13 = pneg %p11812_p12 }
 0x117   : > { %p11818_p1 = pnand %p11816_p0, %p11813_p13 }
 0x119   : > { %11821 = shalt.err (!%p11818_p1)
}
 0x11a   : > { %s11822_s22 = scalar_lea.vmem %s1627_s26, 16  ;;  %s11828_s18 = scalar_lea.vmem %s1627_s26, 32 }
 0x11b   : > { %p11823_p5 = scmp.ne.s32.totalorder %s1627_s26, %s11822_s22  ;;  %p11829_p3 = scmp.lt.s32.totalorder %s1627_s26, %s1627_s26 }
 0x11c   : > { %p11830_p4 = scmp.lt.s32.totalorder %s11828_s18, %s11822_s22 }
 0x11d   : > { %p11824_p6 = pnand %p11823_p5, %p11314_p10 }
 0x11e   : > { %p11831_p7 = por %p11830_p4, %p11829_p3 }
 0x11f   : > { %p11825_p2 = pneg %p11824_p6 }
 0x121   : > { %p11832_p8 = pnand %p11831_p7, %p11825_p2 }
 0x123   : > { %11835 = shalt.err (!%p11832_p8)
}
 0x124   : > { %11147 = dma.hbm_to_vmem [thread:$0]  (%p11314_p10), %s15956_s4, 16, %s1627_s26, [#allocation21]  }
 0x125   : > { %s13103_s23 = smov [#allocation23]   ;;  %s11836_s1 = scalar_lea.hbm %s15952_s9, 512 }
 0x126   : > { %s1653_s17 = sshll.u32 %s13103_s23, 4  ;;  %p11837_p11 = scmp.ne.s32.totalorder %s15952_s9, %s11836_s1  ;;  %s1654_s17 = int_to_ptr.vmem [resolvable:$true] %s1653_s17 }
 0x127   : > { %p11842_p0 = scmp.lt.u32.totalorder %s11836_s1, %s15952_s9 }
 0x128   : > { %p11838_p12 = pnand %p11837_p11, %p11314_p10 }
 0x12a   : > { %p11839_p13 = pneg %p11838_p12 }
 0x12c   : > { %p11844_p1 = pnand %p11842_p0, %p11839_p13 }
 0x12e   : > { %11847 = shalt.err (!%p11844_p1)
}
 0x12f   : > { %s11848_s10 = scalar_lea.vmem %s1654_s17, 512  ;;  %p11855_p3 = scmp.lt.s32.totalorder %s1654_s17, %s1654_s17 }
 0x130   : > { %p11849_p5 = scmp.ne.s32.totalorder %s1654_s17, %s11848_s10  ;;  %p11856_p4 = scmp.lt.s32.totalorder %s11848_s10, %s11848_s10 }
 0x132   : > { %p11850_p6 = pnand %p11849_p5, %p11314_p10  ;;  %p11857_p7 = por %p11856_p4, %p11855_p3 }
 0x134   : > { %p11851_p2 = pneg %p11850_p6 }
 0x136   : > { %p11858_p8 = pnand %p11857_p7, %p11851_p2 }
 0x138   : > { %11861 = shalt.err (!%p11858_p8)
}
 0x139   : > { %s15851_s26 = smov 128   ;;  %s15853_s16 = smov 8  }
 0x13a   : > { %11151 = dma.hbm_to_vmem [thread:$0]  (%p11314_p10), %s15952_s9, 512, %s1654_s17, [#allocation24], %s15851_s26, %s15851_s26, %s15853_s16  }
 0x13b   : > { %s13106_s22 = smov [#allocation26]   ;;  %s13107_s23 = smov [#allocation29]  }
 0x13c   : > { %s1678_s18 = sshll.u32 %s13106_s22, 4  ;;  %s1700_s1 = sshll.u32 %s13107_s23, 4  ;;  %s1679_s18 = int_to_ptr.vmem [resolvable:$true] %s1678_s18  ;;  %s13597_s1 = int_to_ptr.vmem [resolvable:$true] %s1700_s1 }
 0x13d   : > { %s11862_s10 = scalar_lea.hbm %s13277_s24, 16 }
 0x13e   : > { %p11863_p11 = scmp.ne.s32.totalorder %s13277_s24, %s11862_s10  ;;  %p11868_p0 = scmp.lt.u32.totalorder %s11862_s10, %s13277_s24 }
 0x140   : > { %p11864_p12 = pnand %p11863_p11, %p11314_p10 }
 0x142   : > { %p11865_p13 = pneg %p11864_p12 }
 0x144   : > { %p11870_p1 = pnand %p11868_p0, %p11865_p13 }
 0x146   : > { %11873 = shalt.err (!%p11870_p1)
}
 0x147   : > { %s11874_s3 = scalar_lea.vmem %s1679_s18, 16  ;;  %s11880_s17 = scalar_lea.vmem %s1679_s18, 32 }
 0x148   : > { %p11875_p5 = scmp.ne.s32.totalorder %s1679_s18, %s11874_s3  ;;  %p11881_p3 = scmp.lt.s32.totalorder %s1679_s18, %s1679_s18 }
 0x149   : > { %p11882_p4 = scmp.lt.s32.totalorder %s11880_s17, %s11874_s3 }
 0x14a   : > { %p11876_p6 = pnand %p11875_p5, %p11314_p10 }
 0x14b   : > { %p11883_p7 = por %p11882_p4, %p11881_p3 }
 0x14c   : > { %p11877_p2 = pneg %p11876_p6 }
 0x14e   : > { %p11884_p8 = pnand %p11883_p7, %p11877_p2 }
 0x150   : > { %11887 = shalt.err (!%p11884_p8)
}
 0x151   : > { %11155 = dma.hbm_to_vmem [thread:$0]  (%p11314_p10), %s13277_s24, 16, %s1679_s18, [#allocation27]  }
 0x152   : > { %s11888_s22 = scalar_lea.hbm %s15955_s5, 16 }
 0x153   : > { %p11889_p11 = scmp.ne.s32.totalorder %s15955_s5, %s11888_s22  ;;  %p11894_p0 = scmp.lt.u32.totalorder %s11888_s22, %s15955_s5 }
 0x155   : > { %p11890_p12 = pnand %p11889_p11, %p11314_p10 }
 0x157   : > { %p11891_p13 = pneg %p11890_p12 }
 0x159   : > { %p11896_p1 = pnand %p11894_p0, %p11891_p13 }
 0x15b   : > { %11899 = shalt.err (!%p11896_p1)
}
 0x15c   : > { %s11900_s3 = scalar_lea.vmem %s13597_s1, 16  ;;  %s11906_s23 = scalar_lea.vmem %s13597_s1, 32 }
 0x15d   : > { %p11901_p5 = scmp.ne.s32.totalorder %s13597_s1, %s11900_s3  ;;  %p11907_p3 = scmp.lt.s32.totalorder %s13597_s1, %s13597_s1 }
 0x15e   : > { %p11908_p4 = scmp.lt.s32.totalorder %s11906_s23, %s11900_s3 }
 0x15f   : > { %p11902_p6 = pnand %p11901_p5, %p11314_p10 }
 0x160   : > { %p11909_p7 = por %p11908_p4, %p11907_p3 }
 0x161   : > { %p11903_p2 = pneg %p11902_p6 }
 0x163   : > { %p11910_p8 = pnand %p11909_p7, %p11903_p2 }
 0x165   : > { %11913 = shalt.err (!%p11910_p8)
}
 0x166   : > { %11159 = dma.hbm_to_vmem [thread:$0]  (%p11314_p10), %s15955_s5, 16, %s13597_s1, [#allocation30]  }
 0x167   : > { %s13108_s18 = smov [#allocation32]   ;;  %s13109_s17 = smov [#allocation35]  }
 0x168   : > { %s1728_s10 = sshll.u32 %s13108_s18, 4  ;;  %s1750_s22 = sshll.u32 %s13109_s17, 4  ;;  %s1729_s10 = int_to_ptr.vmem [resolvable:$true] %s1728_s10  ;;  %s13625_s22 = int_to_ptr.vmem [resolvable:$true] %s1750_s22 }
 0x169   : > { %s11914_s3 = scalar_lea.hbm %s13307_s27, 16 }
 0x16a   : > { %p11915_p11 = scmp.ne.s32.totalorder %s13307_s27, %s11914_s3  ;;  %p11920_p0 = scmp.lt.u32.totalorder %s11914_s3, %s13307_s27 }
 0x16c   : > { %p11916_p12 = pnand %p11915_p11, %p11314_p10 }
 0x16e   : > { %p11917_p13 = pneg %p11916_p12 }
 0x170   : > { %p11922_p1 = pnand %p11920_p0, %p11917_p13 }
 0x172   : > { %11925 = shalt.err (!%p11922_p1)
}
 0x173   : > { %s11926_s23 = scalar_lea.vmem %s1729_s10, 16  ;;  %s11932_s1 = scalar_lea.vmem %s1729_s10, 32 }
 0x174   : > { %p11927_p5 = scmp.ne.s32.totalorder %s1729_s10, %s11926_s23  ;;  %p11933_p3 = scmp.lt.s32.totalorder %s1729_s10, %s1729_s10 }
 0x175   : > { %p11934_p4 = scmp.lt.s32.totalorder %s11932_s1, %s11926_s23 }
 0x176   : > { %p11928_p6 = pnand %p11927_p5, %p11314_p10 }
 0x177   : > { %p11935_p7 = por %p11934_p4, %p11933_p3 }
 0x178   : > { %p11929_p2 = pneg %p11928_p6 }
 0x17a   : > { %p11936_p8 = pnand %p11935_p7, %p11929_p2 }
 0x17c   : > { %11939 = shalt.err (!%p11936_p8)
}
 0x17d   : > { %11163 = dma.hbm_to_vmem [thread:$0]  (%p11314_p10), %s13307_s27, 16, %s1729_s10, [#allocation33]  }
 0x17e   : > { %s11940_s18 = scalar_lea.hbm %s13317_s30, 16 }
 0x17f   : > { %p11941_p11 = scmp.ne.s32.totalorder %s13317_s30, %s11940_s18  ;;  %p11946_p0 = scmp.lt.u32.totalorder %s11940_s18, %s13317_s30 }
 0x181   : > { %p11942_p12 = pnand %p11941_p11, %p11314_p10 }
 0x183   : > { %p11943_p13 = pneg %p11942_p12 }
 0x185   : > { %p11948_p1 = pnand %p11946_p0, %p11943_p13 }
 0x187   : > { %11951 = shalt.err (!%p11948_p1)
}
 0x188   : > { %s11952_s17 = scalar_lea.vmem %s13625_s22, 16  ;;  %s11958_s3 = scalar_lea.vmem %s13625_s22, 32 }
 0x189   : > { %p11953_p5 = scmp.ne.s32.totalorder %s13625_s22, %s11952_s17  ;;  %p11959_p3 = scmp.lt.s32.totalorder %s13625_s22, %s13625_s22 }
 0x18a   : > { %p11960_p4 = scmp.lt.s32.totalorder %s11958_s3, %s11952_s17 }
 0x18b   : > { %p11954_p6 = pnand %p11953_p5, %p11314_p10 }
 0x18c   : > { %p11961_p7 = por %p11960_p4, %p11959_p3 }
 0x18d   : > { %p11955_p2 = pneg %p11954_p6 }
 0x18f   : > { %p11962_p8 = pnand %p11961_p7, %p11955_p2 }
 0x191   : > { %11965 = shalt.err (!%p11962_p8)
}
 0x192   : > { %11167 = dma.hbm_to_vmem [thread:$0]  (%p11314_p10), %s13317_s30, 16, %s13625_s22, [#allocation36]  }
 0x193   : > { %s13110_s10 = smov [#allocation38]   ;;  %s13111_s1 = smov [#allocation41]  }
 0x194   : > { %s1772_s23 = sshll.u32 %s13110_s10, 4  ;;  %s1795_s18 = sshll.u32 %s13111_s1, 4  ;;  %s1773_s23 = int_to_ptr.vmem [resolvable:$true] %s1772_s23  ;;  %s13653_s18 = int_to_ptr.vmem [resolvable:$true] %s1795_s18 }
 0x195   : > { %s11966_s17 = scalar_lea.hbm %s15951_s12, 16 }
 0x196   : > { %p11967_p11 = scmp.ne.s32.totalorder %s15951_s12, %s11966_s17  ;;  %p11972_p0 = scmp.lt.u32.totalorder %s11966_s17, %s15951_s12 }
 0x198   : > { %p11968_p12 = pnand %p11967_p11, %p11314_p10 }
 0x19a   : > { %p11969_p13 = pneg %p11968_p12 }
 0x19c   : > { %p11974_p1 = pnand %p11972_p0, %p11969_p13 }
 0x19e   : > { %11977 = shalt.err (!%p11974_p1)
}
 0x19f   : > { %s11978_s3 = scalar_lea.vmem %s1773_s23, 16  ;;  %s11984_s22 = scalar_lea.vmem %s1773_s23, 32 }
 0x1a0   : > { %p11979_p5 = scmp.ne.s32.totalorder %s1773_s23, %s11978_s3  ;;  %p11985_p3 = scmp.lt.s32.totalorder %s1773_s23, %s1773_s23 }
 0x1a1   : > { %p11986_p4 = scmp.lt.s32.totalorder %s11984_s22, %s11978_s3 }
 0x1a2   : > { %p11980_p6 = pnand %p11979_p5, %p11314_p10 }
 0x1a3   : > { %p11987_p7 = por %p11986_p4, %p11985_p3 }
 0x1a4   : > { %p11981_p2 = pneg %p11980_p6 }
 0x1a6   : > { %p11988_p8 = pnand %p11987_p7, %p11981_p2 }
 0x1a8   : > { %11991 = shalt.err (!%p11988_p8)
}
 0x1a9   : > { %11171 = dma.hbm_to_vmem [thread:$0]  (%p11314_p10), %s15951_s12, 16, %s1773_s23, [#allocation39]  }
 0x1aa   : > { %s11992_s10 = scalar_lea.hbm %s13337_s19, 6144 }
 0x1ab   : > { %p11993_p11 = scmp.ne.s32.totalorder %s13337_s19, %s11992_s10  ;;  %p11998_p0 = scmp.lt.u32.totalorder %s11992_s10, %s13337_s19 }
 0x1ad   : > { %p11994_p12 = pnand %p11993_p11, %p11314_p10 }
 0x1af   : > { %p11995_p13 = pneg %p11994_p12 }
 0x1b1   : > { %p12000_p1 = pnand %p11998_p0, %p11995_p13 }
 0x1b3   : > { %12003 = shalt.err (!%p12000_p1)
}
 0x1b4   : > { %s12004_s1 = scalar_lea.vmem %s13653_s18, 6144  ;;  %p12011_p3 = scmp.lt.s32.totalorder %s13653_s18, %s13653_s18 }
 0x1b5   : > { %p12005_p5 = scmp.ne.s32.totalorder %s13653_s18, %s12004_s1  ;;  %p12012_p4 = scmp.lt.s32.totalorder %s12004_s1, %s12004_s1 }
 0x1b7   : > { %p12006_p6 = pnand %p12005_p5, %p11314_p10  ;;  %p12013_p7 = por %p12012_p4, %p12011_p3 }
 0x1b9   : > { %p12007_p2 = pneg %p12006_p6 }
 0x1bb   : > { %p12014_p8 = pnand %p12013_p7, %p12007_p2 }
 0x1bd   : > { %12017 = shalt.err (!%p12014_p8)
}
 0x1be   : > { %11175 = dma.hbm_to_vmem [thread:$0]  (%p11314_p10), %s13337_s19, 6144, %s13653_s18, [#allocation42], %s15851_s26, %s15851_s26, %s15853_s16  }
 0x1bf   : > { %s13112_s23 = smov [#allocation44]   ;;  %s13113_s3 = smov [#allocation47]  }
 0x1c0   : > { %s1822_s17 = sshll.u32 %s13112_s23, 4  ;;  %s1844_s22 = sshll.u32 %s13113_s3, 4  ;;  %s1823_s17 = int_to_ptr.vmem [resolvable:$true] %s1822_s17  ;;  %s13683_s22 = int_to_ptr.vmem [resolvable:$true] %s1844_s22 }
 0x1c1   : > { %s12018_s10 = scalar_lea.hbm %s15953_s8, 16 }
 0x1c2   : > { %p12019_p11 = scmp.ne.s32.totalorder %s15953_s8, %s12018_s10  ;;  %p12024_p0 = scmp.lt.u32.totalorder %s12018_s10, %s15953_s8 }
 0x1c4   : > { %p12020_p12 = pnand %p12019_p11, %p11314_p10 }
 0x1c6   : > { %p12021_p13 = pneg %p12020_p12 }
 0x1c8   : > { %p12026_p1 = pnand %p12024_p0, %p12021_p13 }
 0x1ca   : > { %12029 = shalt.err (!%p12026_p1)
}
 0x1cb   : > { %s12030_s1 = scalar_lea.vmem %s1823_s17, 16  ;;  %s12036_s18 = scalar_lea.vmem %s1823_s17, 32 }
 0x1cc   : > { %p12031_p5 = scmp.ne.s32.totalorder %s1823_s17, %s12030_s1  ;;  %p12037_p3 = scmp.lt.s32.totalorder %s1823_s17, %s1823_s17 }
 0x1cd   : > { %p12038_p4 = scmp.lt.s32.totalorder %s12036_s18, %s12030_s1 }
 0x1ce   : > { %p12032_p6 = pnand %p12031_p5, %p11314_p10 }
 0x1cf   : > { %p12039_p7 = por %p12038_p4, %p12037_p3 }
 0x1d0   : > { %p12033_p2 = pneg %p12032_p6 }
 0x1d2   : > { %p12040_p8 = pnand %p12039_p7, %p12033_p2 }
 0x1d4   : > { %12043 = shalt.err (!%p12040_p8)
}
 0x1d5   : > { %s15966_s23 = sld [smem:[#allocation133_spill]] }
 0x1d6   : > { %11179 = dma.hbm_to_vmem [thread:$0]  (%p11314_p10), %s15953_s8, 16, %s1823_s17, [#allocation45]  }
 0x1db   : > { %s12044_s3 = scalar_lea.hbm %s15966_s23, 16 }
 0x1dc   : > { %p12045_p11 = scmp.ne.s32.totalorder %s15966_s23, %s12044_s3  ;;  %p12050_p0 = scmp.lt.u32.totalorder %s12044_s3, %s15966_s23 }
 0x1de   : > { %p12046_p12 = pnand %p12045_p11, %p11314_p10 }
 0x1e0   : > { %p12047_p13 = pneg %p12046_p12 }
 0x1e2   : > { %p12052_p1 = pnand %p12050_p0, %p12047_p13 }
 0x1e4   : > { %12055 = shalt.err (!%p12052_p1)
}
 0x1e5   : > { %s12056_s10 = scalar_lea.vmem %s13683_s22, 16  ;;  %s12062_s1 = scalar_lea.vmem %s13683_s22, 32 }
 0x1e6   : > { %p12057_p5 = scmp.ne.s32.totalorder %s13683_s22, %s12056_s10  ;;  %p12063_p3 = scmp.lt.s32.totalorder %s13683_s22, %s13683_s22 }
 0x1e7   : > { %p12064_p4 = scmp.lt.s32.totalorder %s12062_s1, %s12056_s10 }
 0x1e8   : > { %p12058_p6 = pnand %p12057_p5, %p11314_p10 }
 0x1e9   : > { %p12065_p7 = por %p12064_p4, %p12063_p3 }
 0x1ea   : > { %p12059_p2 = pneg %p12058_p6 }
 0x1ec   : > { %p12066_p8 = pnand %p12065_p7, %p12059_p2 }
 0x1ee   : > { %12069 = shalt.err (!%p12066_p8)
}
 0x1ef   : > { %s15967_s17 = sld [smem:[#allocation135_spill]]  ;;  %s13114_s18 = smov [#allocation50]  }
 0x1f0   : > { %11183 = dma.hbm_to_vmem [thread:$0]  (%p11314_p10), %s15966_s23, 16, %s13683_s22, [#allocation48]  }
 0x1f1   : > { %s1865_s3 = sshll.u32 %s13114_s18, 4  ;;  %s13115_s26 = smov [#allocation53]   ;;  %s1866_s3 = int_to_ptr.vmem [resolvable:$true] %s1865_s3 }
 0x1f2   : > { %s1892_s16 = sshll.u32 %s13115_s26, 4  ;;  %s13711_s16 = int_to_ptr.vmem [resolvable:$true] %s1892_s16 }
 0x1f5   : > { %s12070_s10 = scalar_lea.hbm %s15967_s17, 6144 }
 0x1f6   : > { %p12071_p11 = scmp.ne.s32.totalorder %s15967_s17, %s12070_s10  ;;  %p12076_p0 = scmp.lt.u32.totalorder %s12070_s10, %s15967_s17 }
 0x1f8   : > { %p12072_p12 = pnand %p12071_p11, %p11314_p10 }
 0x1fa   : > { %p12073_p13 = pneg %p12072_p12 }
 0x1fc   : > { %p12078_p1 = pnand %p12076_p0, %p12073_p13 }
 0x1fe   : > { %12081 = shalt.err (!%p12078_p1)
}
 0x1ff   : > { %s12082_s1 = scalar_lea.vmem %s1866_s3, 6144  ;;  %p12089_p3 = scmp.lt.s32.totalorder %s1866_s3, %s1866_s3 }
 0x200   : > { %p12083_p5 = scmp.ne.s32.totalorder %s1866_s3, %s12082_s1  ;;  %p12090_p4 = scmp.lt.s32.totalorder %s12082_s1, %s12082_s1 }
 0x202   : > { %p12084_p6 = pnand %p12083_p5, %p11314_p10  ;;  %p12091_p7 = por %p12090_p4, %p12089_p3 }
 0x204   : > { %p12085_p2 = pneg %p12084_p6 }
 0x206   : > { %p12092_p8 = pnand %p12091_p7, %p12085_p2 }
 0x208   : > { %12095 = shalt.err (!%p12092_p8)
}
 0x209   : > { %s15968_s26 = smov 8   ;;  %s15969_s22 = smov 128  }
 0x20a   : > { %s15970_s18 = sld [smem:[#allocation137_spill]] }
 0x20b   : > { %11187 = dma.hbm_to_vmem [thread:$0]  (%p11314_p10), %s15967_s17, 6144, %s1866_s3, [#allocation51], %s15969_s22, %s15969_s22, %s15968_s26  }
 0x210   : > { %s12096_s10 = scalar_lea.hbm %s15970_s18, 16 }
 0x211   : > { %p12097_p11 = scmp.ne.s32.totalorder %s15970_s18, %s12096_s10  ;;  %p12102_p0 = scmp.lt.u32.totalorder %s12096_s10, %s15970_s18 }
 0x213   : > { %p12098_p12 = pnand %p12097_p11, %p11314_p10 }
 0x215   : > { %p12099_p13 = pneg %p12098_p12 }
 0x217   : > { %p12104_p1 = pnand %p12102_p0, %p12099_p13 }
 0x219   : > { %12107 = shalt.err (!%p12104_p1)
}
 0x21a   : > { %s12108_s1 = scalar_lea.vmem %s13711_s16, 16  ;;  %s12114_s4 = scalar_lea.vmem %s13711_s16, 32 }
 0x21b   : > { %p12109_p5 = scmp.ne.s32.totalorder %s13711_s16, %s12108_s1  ;;  %p12115_p3 = scmp.lt.s32.totalorder %s13711_s16, %s13711_s16 }
 0x21c   : > { %p12116_p4 = scmp.lt.s32.totalorder %s12114_s4, %s12108_s1 }
 0x21d   : > { %p12110_p6 = pnand %p12109_p5, %p11314_p10 }
 0x21e   : > { %p12117_p7 = por %p12116_p4, %p12115_p3 }
 0x21f   : > { %p12111_p2 = pneg %p12110_p6 }
 0x221   : > { %p12118_p8 = pnand %p12117_p7, %p12111_p2 }
 0x223   : > { %12121 = shalt.err (!%p12118_p8)
}
 0x224   : > { %s15971_s3 = sld [smem:[#allocation140_spill]]  ;;  %s13116_s10 = smov [#allocation56]  }
 0x225   : > { %11191 = dma.hbm_to_vmem [thread:$0]  (%p11314_p10), %s15970_s18, 16, %s13711_s16, [#allocation54]  }
 0x226   : > { %s1917_s5 = sshll.u32 %s13116_s10, 4  ;;  %s13117_s6 = smov [#allocation59]   ;;  %s1918_s5 = int_to_ptr.vmem [resolvable:$true] %s1917_s5 }
 0x227   : > { %s1939_s8 = sshll.u32 %s13117_s6, 4  ;;  %s13742_s8 = int_to_ptr.vmem [resolvable:$true] %s1939_s8 }
 0x22a   : > { %s12122_s4 = scalar_lea.hbm %s15971_s3, 32 }
 0x22b   : > { %p12123_p11 = scmp.ne.s32.totalorder %s15971_s3, %s12122_s4  ;;  %p12128_p0 = scmp.lt.u32.totalorder %s12122_s4, %s15971_s3 }
 0x22d   : > { %p12124_p12 = pnand %p12123_p11, %p11314_p10 }
 0x22f   : > { %p12125_p13 = pneg %p12124_p12 }
 0x231   : > { %p12130_p1 = pnand %p12128_p0, %p12125_p13 }
 0x233   : > { %12133 = shalt.err (!%p12130_p1)
}
 0x234   : > { %s12134_s1 = scalar_lea.vmem %s1918_s5, 32  ;;  %p12141_p3 = scmp.lt.s32.totalorder %s1918_s5, %s1918_s5 }
 0x235   : > { %p12135_p5 = scmp.ne.s32.totalorder %s1918_s5, %s12134_s1  ;;  %p12142_p4 = scmp.lt.s32.totalorder %s12134_s1, %s12134_s1 }
 0x237   : > { %p12136_p6 = pnand %p12135_p5, %p11314_p10  ;;  %p12143_p7 = por %p12142_p4, %p12141_p3 }
 0x239   : > { %p12137_p2 = pneg %p12136_p6 }
 0x23b   : > { %p12144_p8 = pnand %p12143_p7, %p12137_p2 }
 0x23d   : > { %12147 = shalt.err (!%p12144_p8)
}
 0x23e   : > { %s15972_s6 = sld [smem:[#allocation142_spill]] }
 0x23f   : > { %11195 = dma.hbm_to_vmem [thread:$0]  (%p11314_p10), %s15971_s3, 32, %s1918_s5, [#allocation57]  }
 0x244   : > { %s12148_s16 = scalar_lea.hbm %s15972_s6, 32 }
 0x245   : > { %p12149_p11 = scmp.ne.s32.totalorder %s15972_s6, %s12148_s16  ;;  %p12154_p0 = scmp.lt.u32.totalorder %s12148_s16, %s15972_s6 }
 0x247   : > { %p12150_p12 = pnand %p12149_p11, %p11314_p10 }
 0x249   : > { %p12151_p13 = pneg %p12150_p12 }
 0x24b   : > { %p12156_p1 = pnand %p12154_p0, %p12151_p13 }
 0x24d   : > { %12159 = shalt.err (!%p12156_p1)
}
 0x24e   : > { %s12160_s10 = scalar_lea.vmem %s13742_s8, 32  ;;  %p12167_p3 = scmp.lt.s32.totalorder %s13742_s8, %s13742_s8 }
 0x24f   : > { %p12161_p5 = scmp.ne.s32.totalorder %s13742_s8, %s12160_s10  ;;  %p12168_p4 = scmp.lt.s32.totalorder %s12160_s10, %s12160_s10 }
 0x251   : > { %p12162_p6 = pnand %p12161_p5, %p11314_p10  ;;  %p12169_p7 = por %p12168_p4, %p12167_p3 }
 0x253   : > { %p12163_p2 = pneg %p12162_p6 }
 0x255   : > { %p12170_p8 = pnand %p12169_p7, %p12163_p2 }
 0x257   : > { %12173 = shalt.err (!%p12170_p8)
}
 0x258   : > { %s15973_s5 = sld [smem:[#allocation145_spill]]  ;;  %s13118_s4 = smov [#allocation62]  }
 0x259   : > { %11199 = dma.hbm_to_vmem [thread:$0]  (%p11314_p10), %s15972_s6, 32, %s13742_s8, [#allocation60]  }
 0x25a   : > { %s1965_s1 = sshll.u32 %s13118_s4, 4  ;;  %s13119_s16 = smov [#allocation65]   ;;  %s1966_s1 = int_to_ptr.vmem [resolvable:$true] %s1965_s1 }
 0x25b   : > { %s1990_s3 = sshll.u32 %s13119_s16, 4  ;;  %s13769_s3 = int_to_ptr.vmem [resolvable:$true] %s1990_s3 }
 0x25e   : > { %s12174_s10 = scalar_lea.hbm %s15973_s5, 4096 }
 0x25f   : > { %p12175_p11 = scmp.ne.s32.totalorder %s15973_s5, %s12174_s10  ;;  %p12180_p0 = scmp.lt.u32.totalorder %s12174_s10, %s15973_s5 }
 0x261   : > { %p12176_p12 = pnand %p12175_p11, %p11314_p10 }
 0x263   : > { %p12177_p13 = pneg %p12176_p12 }
 0x265   : > { %p12182_p1 = pnand %p12180_p0, %p12177_p13 }
 0x267   : > { %12185 = shalt.err (!%p12182_p1)
}
 0x268   : > { %s12186_s9 = scalar_lea.vmem %s1966_s1, 4096  ;;  %p12193_p3 = scmp.lt.s32.totalorder %s1966_s1, %s1966_s1 }
 0x269   : > { %p12187_p5 = scmp.ne.s32.totalorder %s1966_s1, %s12186_s9  ;;  %p12194_p4 = scmp.lt.s32.totalorder %s12186_s9, %s12186_s9 }
 0x26b   : > { %p12188_p6 = pnand %p12187_p5, %p11314_p10  ;;  %p12195_p7 = por %p12194_p4, %p12193_p3 }
 0x26d   : > { %p12189_p2 = pneg %p12188_p6 }
 0x26f   : > { %p12196_p8 = pnand %p12195_p7, %p12189_p2 }
 0x271   : > { %12199 = shalt.err (!%p12196_p8)
}
 0x272   : > { %s15861_s8 = smov 256   ;;  %s15974_s4 = sld [smem:[#allocation147_spill]] }
 0x273   : > { %s15862_s16 = smov 16  }
 0x274   : > { %11203 = dma.hbm_to_vmem [thread:$0]  (%p11314_p10), %s15973_s5, 4096, %s1966_s1, [#allocation63], %s15861_s8, %s15861_s8, %s15862_s16  }
 0x278   : > { %s12200_s10 = scalar_lea.hbm %s15974_s4, 32 }
 0x279   : > { %p12201_p11 = scmp.ne.s32.totalorder %s15974_s4, %s12200_s10  ;;  %p12206_p0 = scmp.lt.u32.totalorder %s12200_s10, %s15974_s4 }
 0x27b   : > { %p12202_p12 = pnand %p12201_p11, %p11314_p10 }
 0x27d   : > { %p12203_p13 = pneg %p12202_p12 }
 0x27f   : > { %p12208_p1 = pnand %p12206_p0, %p12203_p13 }
 0x281   : > { %12211 = shalt.err (!%p12208_p1)
}
 0x282   : > { %s12212_s9 = scalar_lea.vmem %s13769_s3, 32  ;;  %p12219_p3 = scmp.lt.s32.totalorder %s13769_s3, %s13769_s3 }
 0x283   : > { %p12213_p5 = scmp.ne.s32.totalorder %s13769_s3, %s12212_s9  ;;  %p12220_p4 = scmp.lt.s32.totalorder %s12212_s9, %s12212_s9 }
 0x285   : > { %p12214_p6 = pnand %p12213_p5, %p11314_p10  ;;  %p12221_p7 = por %p12220_p4, %p12219_p3 }
 0x287   : > { %p12215_p2 = pneg %p12214_p6 }
 0x289   : > { %p12222_p8 = pnand %p12221_p7, %p12215_p2 }
 0x28b   : > { %12225 = shalt.err (!%p12222_p8)
}
 0x28c   : > { %s15975_s1 = sld [smem:[#allocation149_spill]]  ;;  %s13122_s10 = smov [#allocation68]  }
 0x28d   : > { %11207 = dma.hbm_to_vmem [thread:$0]  (%p11314_p10), %s15974_s4, 32, %s13769_s3, [#allocation66]  }
 0x28e   : > { %s2012_s8 = sshll.u32 %s13122_s10, 4  ;;  %s13123_s16 = smov [#allocation2]   ;;  %s2013_s8 = int_to_ptr.vmem [resolvable:$true] %s2012_s8 }
 0x28f   : > { %s1493_s5 = sshll.u32 %s13123_s16, 4  ;;  %s1494_s5 = int_to_ptr.vmem [resolvable:$true] %s1493_s5 }
 0x292   : > { %s12226_s6 = scalar_lea.hbm %s15975_s1, 32 }
 0x293   : > { %p12227_p11 = scmp.ne.s32.totalorder %s15975_s1, %s12226_s6  ;;  %p12232_p0 = scmp.lt.u32.totalorder %s12226_s6, %s15975_s1 }
 0x295   : > { %p12228_p12 = pnand %p12227_p11, %p11314_p10 }
 0x297   : > { %p12229_p13 = pneg %p12228_p12 }
 0x299   : > { %p12234_p1 = pnand %p12232_p0, %p12229_p13 }
 0x29b   : > { %12237 = shalt.err (!%p12234_p1)
}
 0x29c   : > { %s12238_s9 = scalar_lea.vmem %s2013_s8, 32  ;;  %p12245_p3 = scmp.lt.s32.totalorder %s2013_s8, %s2013_s8 }
 0x29d   : > { %p12239_p5 = scmp.ne.s32.totalorder %s2013_s8, %s12238_s9  ;;  %p12246_p4 = scmp.lt.s32.totalorder %s12238_s9, %s12238_s9 }
 0x29f   : > { %p12240_p6 = pnand %p12239_p5, %p11314_p10  ;;  %p12247_p7 = por %p12246_p4, %p12245_p3 }
 0x2a1   : > { %p12241_p2 = pneg %p12240_p6 }
 0x2a3   : > { %p12248_p8 = pnand %p12247_p7, %p12241_p2 }
 0x2a5   : > { %12251 = shalt.err (!%p12248_p8)
}
 0x2a6   : > { %s15976_s3 = sld [smem:[#allocation101_spill]] }
 0x2a7   : > { %11211 = dma.hbm_to_vmem [thread:$0]  (%p11314_p10), %s15975_s1, 32, %s2013_s8, [#allocation69]  }
 0x2ac   : > { %s12252_s6 = scalar_lea.hbm %s15976_s3, 16 }
 0x2ad   : > { %p12253_p11 = scmp.ne.s32.totalorder %s15976_s3, %s12252_s6  ;;  %p12258_p0 = scmp.lt.u32.totalorder %s12252_s6, %s15976_s3 }
 0x2af   : > { %p12254_p12 = pnand %p12253_p11, %p11314_p10 }
 0x2b1   : > { %p12255_p13 = pneg %p12254_p12 }
 0x2b3   : > { %p12260_p1 = pnand %p12258_p0, %p12255_p13 }
 0x2b5   : > { %12263 = shalt.err (!%p12260_p1)
}
 0x2b6   : > { %s12264_s16 = scalar_lea.vmem %s1494_s5, 16  ;;  %s12270_s10 = scalar_lea.vmem %s1494_s5, 32 }
 0x2b7   : > { %p12265_p5 = scmp.ne.s32.totalorder %s1494_s5, %s12264_s16  ;;  %p12271_p3 = scmp.lt.s32.totalorder %s1494_s5, %s1494_s5 }
 0x2b8   : > { %p12272_p4 = scmp.lt.s32.totalorder %s12270_s10, %s12264_s16 }
 0x2b9   : > { %p12266_p6 = pnand %p12265_p5, %p11314_p10 }
 0x2ba   : > { %p12273_p7 = por %p12272_p4, %p12271_p3 }
 0x2bb   : > { %p12267_p2 = pneg %p12266_p6 }
 0x2bd   : > { %p12274_p8 = pnand %p12273_p7, %p12267_p2 }
 0x2bf   : > { %12277 = shalt.err (!%p12274_p8)
}
 0x2c0   : > { %s15977_s8 = sld [smem:[#allocation103_spill]]  ;;  %s13124_s9 = smov [#allocation7]  }
 0x2c1   : > { %11125 = dma.hbm_to_vmem [thread:$0]  (%p11314_p10), %s15976_s3, 16, %s1494_s5, [#allocation3]  }
 0x2c2   : > { %s1515_s6 = sshll.u32 %s13124_s9, 4  ;;  %s13125_s1 = smov [#allocation10]   ;;  %s1516_s6 = int_to_ptr.vmem [resolvable:$true] %s1515_s6 }
 0x2c3   : > { %s1543_s4 = sshll.u32 %s13125_s1, 4  ;;  %s1544_s4 = int_to_ptr.vmem [resolvable:$true] %s1543_s4 }
 0x2c6   : > { %s12278_s12 = scalar_lea.hbm %s15977_s8, 16 }
 0x2c7   : > { %p12279_p11 = scmp.ne.s32.totalorder %s15977_s8, %s12278_s12  ;;  %p12284_p0 = scmp.lt.u32.totalorder %s12278_s12, %s15977_s8 }
 0x2c9   : > { %p12280_p12 = pnand %p12279_p11, %p11314_p10 }
 0x2cb   : > { %p12281_p13 = pneg %p12280_p12 }
 0x2cd   : > { %p12286_p1 = pnand %p12284_p0, %p12281_p13 }
 0x2cf   : > { %12289 = shalt.err (!%p12286_p1)
}
 0x2d0   : > { %s12290_s16 = scalar_lea.vmem %s1516_s6, 16  ;;  %s12296_s5 = scalar_lea.vmem %s1516_s6, 32 }
 0x2d1   : > { %p12291_p5 = scmp.ne.s32.totalorder %s1516_s6, %s12290_s16  ;;  %p12297_p3 = scmp.lt.s32.totalorder %s1516_s6, %s1516_s6 }
 0x2d2   : > { %p12298_p4 = scmp.lt.s32.totalorder %s12296_s5, %s12290_s16 }
 0x2d3   : > { %p12292_p6 = pnand %p12291_p5, %p11314_p10 }
 0x2d4   : > { %p12299_p7 = por %p12298_p4, %p12297_p3 }
 0x2d5   : > { %p12293_p2 = pneg %p12292_p6 }
 0x2d7   : > { %p12300_p8 = pnand %p12299_p7, %p12293_p2 }
 0x2d9   : > { %12303 = shalt.err (!%p12300_p8)
}
 0x2da   : > { %s15978_s1 = sld [smem:[#allocation107_spill]] }
 0x2db   : > { %11129 = dma.hbm_to_vmem [thread:$0]  (%p11314_p10), %s15977_s8, 16, %s1516_s6, [#allocation6]  }
 0x2e0   : > { %s12304_s12 = scalar_lea.hbm %s15978_s1, 16 }
 0x2e1   : > { %p12305_p11 = scmp.ne.s32.totalorder %s15978_s1, %s12304_s12  ;;  %p12310_p0 = scmp.lt.u32.totalorder %s12304_s12, %s15978_s1 }
 0x2e3   : > { %p12306_p12 = pnand %p12305_p11, %p11314_p10 }
 0x2e5   : > { %p12307_p13 = pneg %p12306_p12 }
 0x2e7   : > { %p12312_p1 = pnand %p12310_p0, %p12307_p13 }
 0x2e9   : > { %12315 = shalt.err (!%p12312_p1)
}
 0x2ea   : > { %s12316_s10 = scalar_lea.vmem %s1544_s4, 16  ;;  %s12322_s9 = scalar_lea.vmem %s1544_s4, 32 }
 0x2eb   : > { %p12317_p5 = scmp.ne.s32.totalorder %s1544_s4, %s12316_s10  ;;  %p12323_p3 = scmp.lt.s32.totalorder %s1544_s4, %s1544_s4 }
 0x2ec   : > { %p12324_p4 = scmp.lt.s32.totalorder %s12322_s9, %s12316_s10 }
 0x2ed   : > { %p12318_p6 = pnand %p12317_p5, %p11314_p10 }
 0x2ee   : > { %p12325_p7 = por %p12324_p4, %p12323_p3 }
 0x2ef   : > { %p12319_p2 = pneg %p12318_p6 }
 0x2f1   : > { %p12326_p8 = pnand %p12325_p7, %p12319_p2 }
 0x2f3   : > { %12329 = shalt.err (!%p12326_p8)
}
 0x2f4   : > { %s15979_s6 = sld [smem:[#allocation109_spill]]  ;;  %s13126_s16 = smov [#allocation13]  }
 0x2f5   : > { %11133 = dma.hbm_to_vmem [thread:$0]  (%p11314_p10), %s15978_s1, 16, %s1544_s4, [#allocation9]  }
 0x2f6   : > { %s1565_s5 = sshll.u32 %s13126_s16, 4  ;;  %s13127_s12 = smov [#allocation16]   ;;  %s1566_s5 = int_to_ptr.vmem [resolvable:$true] %s1565_s5 }
 0x2f7   : > { %s1593_s3 = sshll.u32 %s13127_s12, 4  ;;  %s1594_s3 = int_to_ptr.vmem [resolvable:$true] %s1593_s3 }
 0x2fa   : > { %s12330_s8 = scalar_lea.hbm %s15979_s6, 16 }
 0x2fb   : > { %p12331_p11 = scmp.ne.s32.totalorder %s15979_s6, %s12330_s8  ;;  %p12336_p0 = scmp.lt.u32.totalorder %s12330_s8, %s15979_s6 }
 0x2fd   : > { %p12332_p12 = pnand %p12331_p11, %p11314_p10 }
 0x2ff   : > { %p12333_p13 = pneg %p12332_p12 }
 0x301   : > { %p12338_p1 = pnand %p12336_p0, %p12333_p13 }
 0x303   : > { %12341 = shalt.err (!%p12338_p1)
}
 0x304   : > { %s12342_s10 = scalar_lea.vmem %s1566_s5, 16  ;;  %s12348_s4 = scalar_lea.vmem %s1566_s5, 32 }
 0x305   : > { %p12343_p5 = scmp.ne.s32.totalorder %s1566_s5, %s12342_s10  ;;  %p12349_p3 = scmp.lt.s32.totalorder %s1566_s5, %s1566_s5 }
 0x306   : > { %p12350_p4 = scmp.lt.s32.totalorder %s12348_s4, %s12342_s10 }
 0x307   : > { %p12344_p6 = pnand %p12343_p5, %p11314_p10 }
 0x308   : > { %p12351_p7 = por %p12350_p4, %p12349_p3 }
 0x309   : > { %p12345_p2 = pneg %p12344_p6 }
 0x30b   : > { %p12352_p8 = pnand %p12351_p7, %p12345_p2 }
 0x30d   : > { %12355 = shalt.err (!%p12352_p8)
}
 0x30e   : > { %s15980_s9 = sld [smem:[#allocation113_spill]] }
 0x30f   : > { %11137 = dma.hbm_to_vmem [thread:$0]  (%p11314_p10), %s15979_s6, 16, %s1566_s5, [#allocation12]  }
 0x314   : > { %s12356_s8 = scalar_lea.hbm %s15980_s9, 16 }
 0x315   : > { %p12357_p11 = scmp.ne.s32.totalorder %s15980_s9, %s12356_s8  ;;  %p12362_p0 = scmp.lt.u32.totalorder %s12356_s8, %s15980_s9 }
 0x317   : > { %p12358_p12 = pnand %p12357_p11, %p11314_p10 }
 0x319   : > { %p12359_p13 = pneg %p12358_p12 }
 0x31b   : > { %p12364_p1 = pnand %p12362_p0, %p12359_p13 }
 0x31d   : > { %12367 = shalt.err (!%p12364_p1)
}
 0x31e   : > { %s12368_s16 = scalar_lea.vmem %s1594_s3, 16  ;;  %s12374_s12 = scalar_lea.vmem %s1594_s3, 32 }
 0x31f   : > { %p12369_p5 = scmp.ne.s32.totalorder %s1594_s3, %s12368_s16  ;;  %p12375_p3 = scmp.lt.s32.totalorder %s1594_s3, %s1594_s3 }
 0x320   : > { %p12376_p4 = scmp.lt.s32.totalorder %s12374_s12, %s12368_s16 }
 0x321   : > { %p12370_p6 = pnand %p12369_p5, %p11314_p10 }
 0x322   : > { %p12377_p7 = por %p12376_p4, %p12375_p3 }
 0x323   : > { %p12371_p2 = pneg %p12370_p6 }
 0x325   : > { %p12378_p8 = pnand %p12377_p7, %p12371_p2 }
 0x327   : > { %12381 = shalt.err (!%p12378_p8)
}
 0x328   : > { %s15981_s5 = sld [smem:[#allocation114_spill]]  ;;  %s13128_s10 = smov [#allocation19]  }
 0x329   : > { %11141 = dma.hbm_to_vmem [thread:$0]  (%p11314_p10), %s15980_s9, 16, %s1594_s3, [#allocation15]  }
 0x32a   : > { %s1615_s4 = sshll.u32 %s13128_s10, 4  ;;  %s13129_s8 = smov [#allocation22]   ;;  %s1616_s4 = int_to_ptr.vmem [resolvable:$true] %s1615_s4 }
 0x32b   : > { %s1637_s1 = sshll.u32 %s13129_s8, 4  ;;  %s1638_s1 = int_to_ptr.vmem [resolvable:$true] %s1637_s1 }
 0x32e   : > { %s12382_s6 = scalar_lea.hbm %s15981_s5, 16 }
 0x32f   : > { %p12383_p11 = scmp.ne.s32.totalorder %s15981_s5, %s12382_s6  ;;  %p12388_p0 = scmp.lt.u32.totalorder %s12382_s6, %s15981_s5 }
 0x331   : > { %p12384_p12 = pnand %p12383_p11, %p11314_p10 }
 0x333   : > { %p12385_p13 = pneg %p12384_p12 }
 0x335   : > { %p12390_p1 = pnand %p12388_p0, %p12385_p13 }
 0x337   : > { %12393 = shalt.err (!%p12390_p1)
}
 0x338   : > { %s12394_s16 = scalar_lea.vmem %s1616_s4, 16  ;;  %s12400_s3 = scalar_lea.vmem %s1616_s4, 32 }
 0x339   : > { %p12395_p5 = scmp.ne.s32.totalorder %s1616_s4, %s12394_s16  ;;  %p12401_p3 = scmp.lt.s32.totalorder %s1616_s4, %s1616_s4 }
 0x33a   : > { %p12402_p4 = scmp.lt.s32.totalorder %s12400_s3, %s12394_s16 }
 0x33b   : > { %p12396_p6 = pnand %p12395_p5, %p11314_p10 }
 0x33c   : > { %p12403_p7 = por %p12402_p4, %p12401_p3 }
 0x33d   : > { %p12397_p2 = pneg %p12396_p6 }
 0x33f   : > { %p12404_p8 = pnand %p12403_p7, %p12397_p2 }
 0x341   : > { %12407 = shalt.err (!%p12404_p8)
}
 0x342   : > { %s15982_s12 = sld [smem:[#allocation116_spill]] }
 0x343   : > { %11145 = dma.hbm_to_vmem [thread:$0]  (%p11314_p10), %s15981_s5, 16, %s1616_s4, [#allocation18]  }
 0x348   : > { %s12408_s6 = scalar_lea.hbm %s15982_s12, 16 }
 0x349   : > { %p12409_p11 = scmp.ne.s32.totalorder %s15982_s12, %s12408_s6  ;;  %p12414_p0 = scmp.lt.u32.totalorder %s12408_s6, %s15982_s12 }
 0x34b   : > { %p12410_p12 = pnand %p12409_p11, %p11314_p10 }
 0x34d   : > { %p12411_p13 = pneg %p12410_p12 }
 0x34f   : > { %p12416_p1 = pnand %p12414_p0, %p12411_p13 }
 0x351   : > { %12419 = shalt.err (!%p12416_p1)
}
 0x352   : > { %s12420_s10 = scalar_lea.vmem %s1638_s1, 16  ;;  %s12426_s8 = scalar_lea.vmem %s1638_s1, 32 }
 0x353   : > { %p12421_p5 = scmp.ne.s32.totalorder %s1638_s1, %s12420_s10  ;;  %p12427_p3 = scmp.lt.s32.totalorder %s1638_s1, %s1638_s1 }
 0x354   : > { %p12428_p4 = scmp.lt.s32.totalorder %s12426_s8, %s12420_s10 }
 0x355   : > { %p12422_p6 = pnand %p12421_p5, %p11314_p10 }
 0x356   : > { %p12429_p7 = por %p12428_p4, %p12427_p3 }
 0x357   : > { %p12423_p2 = pneg %p12422_p6 }
 0x359   : > { %p12430_p8 = pnand %p12429_p7, %p12423_p2 }
 0x35b   : > { %12433 = shalt.err (!%p12430_p8)
}
 0x35c   : > { %s15983_s4 = sld [smem:[#allocation120_spill]]  ;;  %s13130_s16 = smov [#allocation25]  }
 0x35d   : > { %11149 = dma.hbm_to_vmem [thread:$0]  (%p11314_p10), %s15982_s12, 16, %s1638_s1, [#allocation21]  }
 0x35e   : > { %s1667_s3 = sshll.u32 %s13130_s16, 4  ;;  %s13131_s6 = smov [#allocation28]   ;;  %s1668_s3 = int_to_ptr.vmem [resolvable:$true] %s1667_s3 }
 0x35f   : > { %s1689_s5 = sshll.u32 %s13131_s6, 4  ;;  %s1690_s5 = int_to_ptr.vmem [resolvable:$true] %s1689_s5 }
 0x362   : > { %s12434_s9 = scalar_lea.hbm %s15983_s4, 16 }
 0x363   : > { %p12435_p11 = scmp.ne.s32.totalorder %s15983_s4, %s12434_s9  ;;  %p12440_p0 = scmp.lt.u32.totalorder %s12434_s9, %s15983_s4 }
 0x365   : > { %p12436_p12 = pnand %p12435_p11, %p11314_p10 }
 0x367   : > { %p12437_p13 = pneg %p12436_p12 }
 0x369   : > { %p12442_p1 = pnand %p12440_p0, %p12437_p13 }
 0x36b   : > { %12445 = shalt.err (!%p12442_p1)
}
 0x36c   : > { %s12446_s10 = scalar_lea.vmem %s1668_s3, 16  ;;  %s12452_s1 = scalar_lea.vmem %s1668_s3, 32 }
 0x36d   : > { %p12447_p5 = scmp.ne.s32.totalorder %s1668_s3, %s12446_s10  ;;  %p12453_p3 = scmp.lt.s32.totalorder %s1668_s3, %s1668_s3 }
 0x36e   : > { %p12454_p4 = scmp.lt.s32.totalorder %s12452_s1, %s12446_s10 }
 0x36f   : > { %p12448_p6 = pnand %p12447_p5, %p11314_p10 }
 0x370   : > { %p12455_p7 = por %p12454_p4, %p12453_p3 }
 0x371   : > { %p12449_p2 = pneg %p12448_p6 }
 0x373   : > { %p12456_p8 = pnand %p12455_p7, %p12449_p2 }
 0x375   : > { %12459 = shalt.err (!%p12456_p8)
}
 0x376   : > { %s15984_s8 = sld [smem:[#allocation121_spill]] }
 0x377   : > { %11153 = dma.hbm_to_vmem [thread:$0]  (%p11314_p10), %s15983_s4, 16, %s1668_s3, [#allocation24]  }
 0x37c   : > { %s12460_s9 = scalar_lea.hbm %s15984_s8, 16 }
 0x37d   : > { %p12461_p11 = scmp.ne.s32.totalorder %s15984_s8, %s12460_s9  ;;  %p12466_p0 = scmp.lt.u32.totalorder %s12460_s9, %s15984_s8 }
 0x37f   : > { %p12462_p12 = pnand %p12461_p11, %p11314_p10 }
 0x381   : > { %p12463_p13 = pneg %p12462_p12 }
 0x383   : > { %p12468_p1 = pnand %p12466_p0, %p12463_p13 }
 0x385   : > { %12471 = shalt.err (!%p12468_p1)
}
 0x386   : > { %s12472_s16 = scalar_lea.vmem %s1690_s5, 16  ;;  %s12478_s6 = scalar_lea.vmem %s1690_s5, 32 }
 0x387   : > { %p12473_p5 = scmp.ne.s32.totalorder %s1690_s5, %s12472_s16  ;;  %p12479_p3 = scmp.lt.s32.totalorder %s1690_s5, %s1690_s5 }
 0x388   : > { %p12480_p4 = scmp.lt.s32.totalorder %s12478_s6, %s12472_s16 }
 0x389   : > { %p12474_p6 = pnand %p12473_p5, %p11314_p10 }
 0x38a   : > { %p12481_p7 = por %p12480_p4, %p12479_p3 }
 0x38b   : > { %p12475_p2 = pneg %p12474_p6 }
 0x38d   : > { %p12482_p8 = pnand %p12481_p7, %p12475_p2 }
 0x38f   : > { %12485 = shalt.err (!%p12482_p8)
}
 0x390   : > { %s15985_s3 = sld [smem:[#allocation125_spill]]  ;;  %s13132_s10 = smov [#allocation31]  }
 0x391   : > { %11157 = dma.hbm_to_vmem [thread:$0]  (%p11314_p10), %s15984_s8, 16, %s1690_s5, [#allocation27]  }
 0x392   : > { %s1717_s1 = sshll.u32 %s13132_s10, 4  ;;  %s13133_s9 = smov [#allocation34]   ;;  %s1718_s1 = int_to_ptr.vmem [resolvable:$true] %s1717_s1 }
 0x393   : > { %s1739_s4 = sshll.u32 %s13133_s9, 4  ;;  %s1740_s4 = int_to_ptr.vmem [resolvable:$true] %s1739_s4 }
 0x396   : > { %s12486_s12 = scalar_lea.hbm %s15985_s3, 16 }
 0x397   : > { %p12487_p11 = scmp.ne.s32.totalorder %s15985_s3, %s12486_s12  ;;  %p12492_p0 = scmp.lt.u32.totalorder %s12486_s12, %s15985_s3 }
 0x399   : > { %p12488_p12 = pnand %p12487_p11, %p11314_p10 }
 0x39b   : > { %p12489_p13 = pneg %p12488_p12 }
 0x39d   : > { %p12494_p1 = pnand %p12492_p0, %p12489_p13 }
 0x39f   : > { %12497 = shalt.err (!%p12494_p1)
}
 0x3a0   : > { %s12498_s16 = scalar_lea.vmem %s1718_s1, 16  ;;  %s12504_s5 = scalar_lea.vmem %s1718_s1, 32 }
 0x3a1   : > { %p12499_p5 = scmp.ne.s32.totalorder %s1718_s1, %s12498_s16  ;;  %p12505_p3 = scmp.lt.s32.totalorder %s1718_s1, %s1718_s1 }
 0x3a2   : > { %p12506_p4 = scmp.lt.s32.totalorder %s12504_s5, %s12498_s16 }
 0x3a3   : > { %p12500_p6 = pnand %p12499_p5, %p11314_p10 }
 0x3a4   : > { %p12507_p7 = por %p12506_p4, %p12505_p3 }
 0x3a5   : > { %p12501_p2 = pneg %p12500_p6 }
 0x3a7   : > { %p12508_p8 = pnand %p12507_p7, %p12501_p2 }
 0x3a9   : > { %12511 = shalt.err (!%p12508_p8)
}
 0x3aa   : > { %s15986_s6 = sld [smem:[#allocation126_spill]] }
 0x3ab   : > { %11161 = dma.hbm_to_vmem [thread:$0]  (%p11314_p10), %s15985_s3, 16, %s1718_s1, [#allocation30]  }
 0x3b0   : > { %s12512_s12 = scalar_lea.hbm %s15986_s6, 16 }
 0x3b1   : > { %p12513_p11 = scmp.ne.s32.totalorder %s15986_s6, %s12512_s12  ;;  %p12518_p0 = scmp.lt.u32.totalorder %s12512_s12, %s15986_s6 }
 0x3b3   : > { %p12514_p12 = pnand %p12513_p11, %p11314_p10 }
 0x3b5   : > { %p12515_p13 = pneg %p12514_p12 }
 0x3b7   : > { %p12520_p1 = pnand %p12518_p0, %p12515_p13 }
 0x3b9   : > { %12523 = shalt.err (!%p12520_p1)
}
 0x3ba   : > { %s12524_s10 = scalar_lea.vmem %s1740_s4, 16  ;;  %s12530_s9 = scalar_lea.vmem %s1740_s4, 32 }
 0x3bb   : > { %p12525_p5 = scmp.ne.s32.totalorder %s1740_s4, %s12524_s10  ;;  %p12531_p3 = scmp.lt.s32.totalorder %s1740_s4, %s1740_s4 }
 0x3bc   : > { %p12532_p4 = scmp.lt.s32.totalorder %s12530_s9, %s12524_s10 }
 0x3bd   : > { %p12526_p6 = pnand %p12525_p5, %p11314_p10 }
 0x3be   : > { %p12533_p7 = por %p12532_p4, %p12531_p3 }
 0x3bf   : > { %p12527_p2 = pneg %p12526_p6 }
 0x3c1   : > { %p12534_p8 = pnand %p12533_p7, %p12527_p2 }
 0x3c3   : > { %12537 = shalt.err (!%p12534_p8)
}
 0x3c4   : > { %s15987_s1 = sld [smem:[#allocation127_spill]]  ;;  %s13134_s16 = smov [#allocation37]  }
 0x3c5   : > { %11165 = dma.hbm_to_vmem [thread:$0]  (%p11314_p10), %s15986_s6, 16, %s1740_s4, [#allocation33]  }
 0x3c6   : > { %s1761_s5 = sshll.u32 %s13134_s16, 4  ;;  %s13135_s12 = smov [#allocation40]   ;;  %s1762_s5 = int_to_ptr.vmem [resolvable:$true] %s1761_s5 }
 0x3c7   : > { %s1782_s3 = sshll.u32 %s13135_s12, 4  ;;  %s1783_s3 = int_to_ptr.vmem [resolvable:$true] %s1782_s3 }
 0x3ca   : > { %s12538_s8 = scalar_lea.hbm %s15987_s1, 16 }
 0x3cb   : > { %p12539_p11 = scmp.ne.s32.totalorder %s15987_s1, %s12538_s8  ;;  %p12544_p0 = scmp.lt.u32.totalorder %s12538_s8, %s15987_s1 }
 0x3cd   : > { %p12540_p12 = pnand %p12539_p11, %p11314_p10 }
 0x3cf   : > { %p12541_p13 = pneg %p12540_p12 }
 0x3d1   : > { %p12546_p1 = pnand %p12544_p0, %p12541_p13 }
 0x3d3   : > { %12549 = shalt.err (!%p12546_p1)
}
 0x3d4   : > { %s12550_s10 = scalar_lea.vmem %s1762_s5, 16  ;;  %s12556_s4 = scalar_lea.vmem %s1762_s5, 32 }
 0x3d5   : > { %p12551_p5 = scmp.ne.s32.totalorder %s1762_s5, %s12550_s10  ;;  %p12557_p3 = scmp.lt.s32.totalorder %s1762_s5, %s1762_s5 }
 0x3d6   : > { %p12558_p4 = scmp.lt.s32.totalorder %s12556_s4, %s12550_s10 }
 0x3d7   : > { %p12552_p6 = pnand %p12551_p5, %p11314_p10 }
 0x3d8   : > { %p12559_p7 = por %p12558_p4, %p12557_p3 }
 0x3d9   : > { %p12553_p2 = pneg %p12552_p6 }
 0x3db   : > { %p12560_p8 = pnand %p12559_p7, %p12553_p2 }
 0x3dd   : > { %12563 = shalt.err (!%p12560_p8)
}
 0x3de   : > { %s15988_s9 = sld [smem:[#allocation129_spill]] }
 0x3df   : > { %11169 = dma.hbm_to_vmem [thread:$0]  (%p11314_p10), %s15987_s1, 16, %s1762_s5, [#allocation36]  }
 0x3e4   : > { %s12564_s8 = scalar_lea.hbm %s15988_s9, 3072 }
 0x3e5   : > { %p12565_p11 = scmp.ne.s32.totalorder %s15988_s9, %s12564_s8  ;;  %p12570_p0 = scmp.lt.u32.totalorder %s12564_s8, %s15988_s9 }
 0x3e7   : > { %p12566_p12 = pnand %p12565_p11, %p11314_p10 }
 0x3e9   : > { %p12567_p13 = pneg %p12566_p12 }
 0x3eb   : > { %p12572_p1 = pnand %p12570_p0, %p12567_p13 }
 0x3ed   : > { %12575 = shalt.err (!%p12572_p1)
}
 0x3ee   : > { %s12576_s16 = scalar_lea.vmem %s1783_s3, 3072  ;;  %p12583_p3 = scmp.lt.s32.totalorder %s1783_s3, %s1783_s3 }
 0x3ef   : > { %p12577_p5 = scmp.ne.s32.totalorder %s1783_s3, %s12576_s16  ;;  %p12584_p4 = scmp.lt.s32.totalorder %s12576_s16, %s12576_s16 }
 0x3f1   : > { %p12578_p6 = pnand %p12577_p5, %p11314_p10  ;;  %p12585_p7 = por %p12584_p4, %p12583_p3 }
 0x3f3   : > { %p12579_p2 = pneg %p12578_p6 }
 0x3f5   : > { %p12586_p8 = pnand %p12585_p7, %p12579_p2 }
 0x3f7   : > { %12589 = shalt.err (!%p12586_p8)
}
 0x3f8   : > { %s15989_s5 = sld [smem:[#allocation130_spill]]  ;;  %s13136_s12 = smov [#allocation43]  }
 0x3f9   : > { %11173 = dma.hbm_to_vmem [thread:$0]  (%p11314_p10), %s15988_s9, 3072, %s1783_s3, [#allocation39], %s15969_s22, %s15969_s22, %s15968_s26  }
 0x3fa   : > { %s1808_s10 = sshll.u32 %s13136_s12, 4  ;;  %s13137_s4 = smov [#allocation46]   ;;  %s1809_s10 = int_to_ptr.vmem [resolvable:$true] %s1808_s10 }
 0x3fb   : > { %s1833_s8 = sshll.u32 %s13137_s4, 4  ;;  %s1834_s8 = int_to_ptr.vmem [resolvable:$true] %s1833_s8 }
 0x3fe   : > { %s12590_s16 = scalar_lea.hbm %s15989_s5, 1024 }
 0x3ff   : > { %p12591_p11 = scmp.ne.s32.totalorder %s15989_s5, %s12590_s16  ;;  %p12596_p0 = scmp.lt.u32.totalorder %s12590_s16, %s15989_s5 }
 0x401   : > { %p12592_p12 = pnand %p12591_p11, %p11314_p10 }
 0x403   : > { %p12593_p13 = pneg %p12592_p12 }
 0x405   : > { %p12598_p1 = pnand %p12596_p0, %p12593_p13 }
 0x407   : > { %12601 = shalt.err (!%p12598_p1)
}
 0x408   : > { %s12602_s1 = scalar_lea.vmem %s1809_s10, 1024  ;;  %p12609_p3 = scmp.lt.s32.totalorder %s1809_s10, %s1809_s10 }
 0x409   : > { %p12603_p5 = scmp.ne.s32.totalorder %s1809_s10, %s12602_s1  ;;  %p12610_p4 = scmp.lt.s32.totalorder %s12602_s1, %s12602_s1 }
 0x40b   : > { %p12604_p6 = pnand %p12603_p5, %p11314_p10  ;;  %p12611_p7 = por %p12610_p4, %p12609_p3 }
 0x40d   : > { %p12605_p2 = pneg %p12604_p6 }
 0x40f   : > { %p12612_p8 = pnand %p12611_p7, %p12605_p2 }
 0x411   : > { %12615 = shalt.err (!%p12612_p8)
}
 0x412   : > { %s15990_s3 = sld [smem:[#allocation132_spill]] }
 0x413   : > { %11177 = dma.hbm_to_vmem [thread:$0]  (%p11314_p10), %s15989_s5, 1024, %s1809_s10, [#allocation42], %s15969_s22, %s15969_s22, %s15968_s26  }
 0x418   : > { %s12616_s12 = scalar_lea.hbm %s15990_s3, 16 }
 0x419   : > { %p12617_p11 = scmp.ne.s32.totalorder %s15990_s3, %s12616_s12  ;;  %p12622_p0 = scmp.lt.u32.totalorder %s12616_s12, %s15990_s3 }
 0x41b   : > { %p12618_p12 = pnand %p12617_p11, %p11314_p10 }
 0x41d   : > { %p12619_p13 = pneg %p12618_p12 }
 0x41f   : > { %p12624_p1 = pnand %p12622_p0, %p12619_p13 }
 0x421   : > { %12627 = shalt.err (!%p12624_p1)
}
 0x422   : > { %s12628_s1 = scalar_lea.vmem %s1834_s8, 16  ;;  %s12634_s4 = scalar_lea.vmem %s1834_s8, 32 }
 0x423   : > { %p12629_p5 = scmp.ne.s32.totalorder %s1834_s8, %s12628_s1  ;;  %p12635_p3 = scmp.lt.s32.totalorder %s1834_s8, %s1834_s8 }
 0x424   : > { %p12636_p4 = scmp.lt.s32.totalorder %s12634_s4, %s12628_s1 }
 0x425   : > { %p12630_p6 = pnand %p12629_p5, %p11314_p10 }
 0x426   : > { %p12637_p7 = por %p12636_p4, %p12635_p3 }
 0x427   : > { %p12631_p2 = pneg %p12630_p6 }
 0x429   : > { %p12638_p8 = pnand %p12637_p7, %p12631_p2 }
 0x42b   : > { %12641 = shalt.err (!%p12638_p8)
}
 0x42c   : > { %s15991_s10 = sld [smem:[#allocation134_spill]]  ;;  %s13138_s12 = smov [#allocation49]  }
 0x42d   : > { %11181 = dma.hbm_to_vmem [thread:$0]  (%p11314_p10), %s15990_s3, 16, %s1834_s8, [#allocation45]  }
 0x42e   : > { %s1855_s5 = sshll.u32 %s13138_s12, 4  ;;  %s13139_s6 = smov [#allocation52]   ;;  %s1856_s5 = int_to_ptr.vmem [resolvable:$true] %s1855_s5 }
 0x42f   : > { %s1878_s9 = sshll.u32 %s13139_s6, 4  ;;  %s1879_s9 = int_to_ptr.vmem [resolvable:$true] %s1878_s9 }
 0x432   : > { %s15992_s16 = smov %s15991_s10  ;;  %s12642_s14 = scalar_lea.hbm %s15991_s10, 16 }
 0x433   : > { %p12643_p11 = scmp.ne.s32.totalorder %s15992_s16, %s12642_s14  ;;  %p12648_p0 = scmp.lt.u32.totalorder %s12642_s14, %s15992_s16 }
 0x435   : > { %p12644_p12 = pnand %p12643_p11, %p11314_p10 }
 0x437   : > { %p12645_p13 = pneg %p12644_p12 }
 0x439   : > { %p12650_p1 = pnand %p12648_p0, %p12645_p13 }
 0x43b   : > { %12653 = shalt.err (!%p12650_p1)
}
 0x43c   : > { %s12654_s1 = scalar_lea.vmem %s1856_s5, 16  ;;  %s12660_s8 = scalar_lea.vmem %s1856_s5, 32 }
 0x43d   : > { %p12655_p5 = scmp.ne.s32.totalorder %s1856_s5, %s12654_s1  ;;  %p12661_p3 = scmp.lt.s32.totalorder %s1856_s5, %s1856_s5 }
 0x43e   : > { %p12662_p4 = scmp.lt.s32.totalorder %s12660_s8, %s12654_s1 }
 0x43f   : > { %p12656_p6 = pnand %p12655_p5, %p11314_p10 }
 0x440   : > { %p12663_p7 = por %p12662_p4, %p12661_p3 }
 0x441   : > { %p12657_p2 = pneg %p12656_p6 }
 0x443   : > { %p12664_p8 = pnand %p12663_p7, %p12657_p2 }
 0x445   : > { %12667 = shalt.err (!%p12664_p8)
}
 0x446   : > { %s15993_s6 = sld [smem:[#allocation136_spill]] }
 0x447   : > { %11185 = dma.hbm_to_vmem [thread:$0]  (%p11314_p10), %s15992_s16, 16, %s1856_s5, [#allocation48]  }
 0x44c   : > { %s12668_s14 = scalar_lea.hbm %s15993_s6, 6144 }
 0x44d   : > { %p12669_p11 = scmp.ne.s32.totalorder %s15993_s6, %s12668_s14  ;;  %p12674_p0 = scmp.lt.u32.totalorder %s12668_s14, %s15993_s6 }
 0x44f   : > { %p12670_p12 = pnand %p12669_p11, %p11314_p10 }
 0x451   : > { %p12671_p13 = pneg %p12670_p12 }
 0x453   : > { %p12676_p1 = pnand %p12674_p0, %p12671_p13 }
 0x455   : > { %12679 = shalt.err (!%p12676_p1)
}
 0x456   : > { %s12680_s4 = scalar_lea.vmem %s1879_s9, 6144  ;;  %p12687_p3 = scmp.lt.s32.totalorder %s1879_s9, %s1879_s9 }
 0x457   : > { %p12681_p5 = scmp.ne.s32.totalorder %s1879_s9, %s12680_s4  ;;  %p12688_p4 = scmp.lt.s32.totalorder %s12680_s4, %s12680_s4 }
 0x459   : > { %p12682_p6 = pnand %p12681_p5, %p11314_p10  ;;  %p12689_p7 = por %p12688_p4, %p12687_p3 }
 0x45b   : > { %p12683_p2 = pneg %p12682_p6 }
 0x45d   : > { %p12690_p8 = pnand %p12689_p7, %p12683_p2 }
 0x45f   : > { %12693 = shalt.err (!%p12690_p8)
}
 0x460   : > { %s15994_s5 = sld [smem:[#allocation138_spill]]  ;;  %s13140_s10 = smov [#allocation55]  }
 0x461   : > { %11189 = dma.hbm_to_vmem [thread:$0]  (%p11314_p10), %s15993_s6, 6144, %s1879_s9, [#allocation51], %s15969_s22, %s15969_s22, %s15968_s26  }
 0x462   : > { %s1903_s12 = sshll.u32 %s13140_s10, 4  ;;  %s13141_s1 = smov [#allocation58]   ;;  %s1904_s12 = int_to_ptr.vmem [resolvable:$true] %s1903_s12 }
 0x463   : > { %s1928_s8 = sshll.u32 %s13141_s1, 4  ;;  %s1929_s8 = int_to_ptr.vmem [resolvable:$true] %s1928_s8 }
 0x466   : > { %s12694_s14 = scalar_lea.hbm %s15994_s5, 16 }
 0x467   : > { %p12695_p11 = scmp.ne.s32.totalorder %s15994_s5, %s12694_s14  ;;  %p12700_p0 = scmp.lt.u32.totalorder %s12694_s14, %s15994_s5 }
 0x469   : > { %p12696_p12 = pnand %p12695_p11, %p11314_p10 }
 0x46b   : > { %p12697_p13 = pneg %p12696_p12 }
 0x46d   : > { %p12702_p1 = pnand %p12700_p0, %p12697_p13 }
 0x46f   : > { %12705 = shalt.err (!%p12702_p1)
}
 0x470   : > { %s12706_s4 = scalar_lea.vmem %s1904_s12, 16  ;;  %s12712_s9 = scalar_lea.vmem %s1904_s12, 32 }
 0x471   : > { %p12707_p5 = scmp.ne.s32.totalorder %s1904_s12, %s12706_s4  ;;  %p12713_p3 = scmp.lt.s32.totalorder %s1904_s12, %s1904_s12 }
 0x472   : > { %p12714_p4 = scmp.lt.s32.totalorder %s12712_s9, %s12706_s4 }
 0x473   : > { %p12708_p6 = pnand %p12707_p5, %p11314_p10 }
 0x474   : > { %p12715_p7 = por %p12714_p4, %p12713_p3 }
 0x475   : > { %p12709_p2 = pneg %p12708_p6 }
 0x477   : > { %p12716_p8 = pnand %p12715_p7, %p12709_p2 }
 0x479   : > { %12719 = shalt.err (!%p12716_p8)
}
 0x47a   : > { %s15995_s10 = sld [smem:[#allocation141_spill]] }
 0x47b   : > { %11193 = dma.hbm_to_vmem [thread:$0]  (%p11314_p10), %s15994_s5, 16, %s1904_s12, [#allocation54]  }
 0x480   : > { %s15996_s1 = smov %s15995_s10  ;;  %s12720_s14 = scalar_lea.hbm %s15995_s10, 32 }
 0x481   : > { %p12721_p11 = scmp.ne.s32.totalorder %s15996_s1, %s12720_s14  ;;  %p12726_p0 = scmp.lt.u32.totalorder %s12720_s14, %s15996_s1 }
 0x483   : > { %p12722_p12 = pnand %p12721_p11, %p11314_p10 }
 0x485   : > { %p12723_p13 = pneg %p12722_p12 }
 0x487   : > { %p12728_p1 = pnand %p12726_p0, %p12723_p13 }
 0x489   : > { %12731 = shalt.err (!%p12728_p1)
}
 0x48a   : > { %s12732_s4 = scalar_lea.vmem %s1929_s8, 32  ;;  %p12739_p3 = scmp.lt.s32.totalorder %s1929_s8, %s1929_s8 }
 0x48b   : > { %p12733_p5 = scmp.ne.s32.totalorder %s1929_s8, %s12732_s4  ;;  %p12740_p4 = scmp.lt.s32.totalorder %s12732_s4, %s12732_s4 }
 0x48d   : > { %p12734_p6 = pnand %p12733_p5, %p11314_p10  ;;  %p12741_p7 = por %p12740_p4, %p12739_p3 }
 0x48f   : > { %p12735_p2 = pneg %p12734_p6 }
 0x491   : > { %p12742_p8 = pnand %p12741_p7, %p12735_p2 }
 0x493   : > { %12745 = shalt.err (!%p12742_p8)
}
 0x494   : > { %s15997_s12 = sld [smem:[#allocation143_spill]]  ;;  %s13142_s9 = smov [#allocation61]  }
 0x495   : > { %11197 = dma.hbm_to_vmem [thread:$0]  (%p11314_p10), %s15996_s1, 32, %s1929_s8, [#allocation57]  }
 0x496   : > { %s1949_s10 = sshll.u32 %s13142_s9, 4  ;;  %s13143_s14 = smov [#allocation64]   ;;  %s1950_s10 = int_to_ptr.vmem [resolvable:$true] %s1949_s10 }
 0x497   : > { %s1979_s3 = sshll.u32 %s13143_s14, 4  ;;  %s1980_s3 = int_to_ptr.vmem [resolvable:$true] %s1979_s3 }
 0x49a   : > { %s12746_s5 = scalar_lea.hbm %s15997_s12, 12288 }
 0x49b   : > { %p12747_p11 = scmp.ne.s32.totalorder %s15997_s12, %s12746_s5  ;;  %p12752_p0 = scmp.lt.u32.totalorder %s12746_s5, %s15997_s12 }
 0x49d   : > { %p12748_p12 = pnand %p12747_p11, %p11314_p10 }
 0x49f   : > { %p12749_p13 = pneg %p12748_p12 }
 0x4a1   : > { %p12754_p1 = pnand %p12752_p0, %p12749_p13 }
 0x4a3   : > { %12757 = shalt.err (!%p12754_p1)
}
 0x4a4   : > { %s12758_s4 = scalar_lea.vmem %s1950_s10, 12288  ;;  %p12765_p3 = scmp.lt.s32.totalorder %s1950_s10, %s1950_s10 }
 0x4a5   : > { %p12759_p5 = scmp.ne.s32.totalorder %s1950_s10, %s12758_s4  ;;  %p12766_p4 = scmp.lt.s32.totalorder %s12758_s4, %s12758_s4 }
 0x4a7   : > { %p12760_p6 = pnand %p12759_p5, %p11314_p10  ;;  %p12767_p7 = por %p12766_p4, %p12765_p3 }
 0x4a9   : > { %p12761_p2 = pneg %p12760_p6 }
 0x4ab   : > { %p12768_p8 = pnand %p12767_p7, %p12761_p2 }
 0x4ad   : > { %12771 = shalt.err (!%p12768_p8)
}
 0x4ae   : > { %s15998_s8 = smov 16   ;;  %s15999_s9 = smov 256  }
 0x4af   : > { %s16000_s5 = sld [smem:[#allocation146_spill]] }
 0x4b0   : > { %11201 = dma.hbm_to_vmem [thread:$0]  (%p11314_p10), %s15997_s12, 12288, %s1950_s10, [#allocation60], %s15999_s9, %s15999_s9, %s15998_s8  }
 0x4b5   : > { %s12772_s14 = scalar_lea.hbm %s16000_s5, 32 }
 0x4b6   : > { %p12773_p11 = scmp.ne.s32.totalorder %s16000_s5, %s12772_s14  ;;  %p12778_p0 = scmp.lt.u32.totalorder %s12772_s14, %s16000_s5 }
 0x4b8   : > { %p12774_p12 = pnand %p12773_p11, %p11314_p10 }
 0x4ba   : > { %p12775_p13 = pneg %p12774_p12 }
 0x4bc   : > { %p12780_p1 = pnand %p12778_p0, %p12775_p13 }
 0x4be   : > { %12783 = shalt.err (!%p12780_p1)
}
 0x4bf   : > { %s12784_s4 = scalar_lea.vmem %s1980_s3, 32  ;;  %p12791_p3 = scmp.lt.s32.totalorder %s1980_s3, %s1980_s3 }
 0x4c0   : > { %p12785_p5 = scmp.ne.s32.totalorder %s1980_s3, %s12784_s4  ;;  %p12792_p4 = scmp.lt.s32.totalorder %s12784_s4, %s12784_s4 }
 0x4c2   : > { %p12786_p6 = pnand %p12785_p5, %p11314_p10  ;;  %p12793_p7 = por %p12792_p4, %p12791_p3 }
 0x4c4   : > { %p12787_p2 = pneg %p12786_p6 }
 0x4c6   : > { %p12794_p8 = pnand %p12793_p7, %p12787_p2 }
 0x4c8   : > { %12797 = shalt.err (!%p12794_p8)
}
 0x4c9   : > { %s16001_s10 = sld [smem:[#allocation148_spill]]  ;;  %s13144_s9 = smov [#allocation67]  }
 0x4ca   : > { %11205 = dma.hbm_to_vmem [thread:$0]  (%p11314_p10), %s16000_s5, 32, %s1980_s3, [#allocation63]  }
 0x4cb   : > { %s2001_s14 = sshll.u32 %s13144_s9, 4  ;;  %s13145_s1 = smov [#allocation70]   ;;  %s2002_s14 = int_to_ptr.vmem [resolvable:$true] %s2001_s14 }
 0x4cc   : > { %s2029_s6 = sshll.u32 %s13145_s1, 4  ;;  %s2030_s6 = int_to_ptr.vmem [resolvable:$true] %s2029_s6 }
 0x4cf   : > { %s16002_s8 = smov %s16001_s10  ;;  %s12798_s12 = scalar_lea.hbm %s16001_s10, 32 }
 0x4d0   : > { %p12799_p11 = scmp.ne.s32.totalorder %s16002_s8, %s12798_s12  ;;  %p12804_p0 = scmp.lt.u32.totalorder %s12798_s12, %s16002_s8 }
 0x4d2   : > { %p12800_p12 = pnand %p12799_p11, %p11314_p10 }
 0x4d4   : > { %p12801_p13 = pneg %p12800_p12 }
 0x4d6   : > { %p12806_p1 = pnand %p12804_p0, %p12801_p13 }
 0x4d8   : > { %12809 = shalt.err (!%p12806_p1)
}
 0x4d9   : > { %s12810_s4 = scalar_lea.vmem %s2002_s14, 32  ;;  %p12817_p3 = scmp.lt.s32.totalorder %s2002_s14, %s2002_s14 }
 0x4da   : > { %p12811_p5 = scmp.ne.s32.totalorder %s2002_s14, %s12810_s4  ;;  %p12818_p4 = scmp.lt.s32.totalorder %s12810_s4, %s12810_s4 }
 0x4dc   : > { %p12812_p6 = pnand %p12811_p5, %p11314_p10  ;;  %p12819_p7 = por %p12818_p4, %p12817_p3 }
 0x4de   : > { %p12813_p2 = pneg %p12812_p6 }
 0x4e0   : > { %p12820_p8 = pnand %p12819_p7, %p12813_p2 }
 0x4e2   : > { %12823 = shalt.err (!%p12820_p8)
}
 0x4e3   : > { %11209 = dma.hbm_to_vmem [thread:$0]  (%p11314_p10), %s16002_s8, 32, %s2002_s14, [#allocation66]  }
 0x4e4   : > { %s12824_s3 = scalar_lea.hbm %s13452_s25, 16 }
 0x4e5   : > { %p12825_p11 = scmp.ne.s32.totalorder %s13452_s25, %s12824_s3  ;;  %p12830_p0 = scmp.lt.u32.totalorder %s12824_s3, %s13452_s25 }
 0x4e7   : > { %p12826_p12 = pnand %p12825_p11, %p11314_p10 }
 0x4e9   : > { %p12827_p13 = pneg %p12826_p12 }
 0x4eb   : > { %p12832_p1 = pnand %p12830_p0, %p12827_p13 }
 0x4ed   : > { %12835 = shalt.err (!%p12832_p1)
}
 0x4ee   : > { %s12836_s1 = scalar_lea.vmem %s2030_s6, 16  ;;  %s12842_s12 = scalar_lea.vmem %s2030_s6, 32 }
 0x4ef   : > { %p12837_p5 = scmp.ne.s32.totalorder %s2030_s6, %s12836_s1  ;;  %p12843_p3 = scmp.lt.s32.totalorder %s2030_s6, %s2030_s6 }
 0x4f0   : > { %p12844_p4 = scmp.lt.s32.totalorder %s12842_s12, %s12836_s1 }
 0x4f1   : > { %p12838_p6 = pnand %p12837_p5, %p11314_p10 }
 0x4f2   : > { %p12845_p7 = por %p12844_p4, %p12843_p3 }
 0x4f3   : > { %p12839_p2 = pneg %p12838_p6 }
 0x4f5   : > { %p12846_p8 = pnand %p12845_p7, %p12839_p2 }
 0x4f7   : > { %12849 = shalt.err (!%p12846_p8)
}
 0x4f8   : > { %11213 = dma.hbm_to_vmem [thread:$0]  (%p11314_p10), %s13452_s25, 16, %s2030_s6, [#allocation69]  }
 0x4f9   : > { %s13146_s10 = smov [#allocation71]   ;;  %s12850_s14 = scalar_lea.hbm %s13462_s29, 512 }
 0x4fa   : > { %s2042_s9 = sshll.u32 %s13146_s10, 4  ;;  %p12851_p11 = scmp.ne.s32.totalorder %s13462_s29, %s12850_s14  ;;  %s2043_s9 = int_to_ptr.vmem [resolvable:$true] %s2042_s9 }
 0x4fb   : > { %p12856_p0 = scmp.lt.u32.totalorder %s12850_s14, %s13462_s29 }
 0x4fc   : > { %p12852_p12 = pnand %p12851_p11, %p11314_p10 }
 0x4fe   : > { %p12853_p13 = pneg %p12852_p12 }
 0x500   : > { %p12858_p1 = pnand %p12856_p0, %p12853_p13 }
 0x502   : > { %12861 = shalt.err (!%p12858_p1)
}
 0x503   : > { %s12862_s4 = scalar_lea.vmem %s2043_s9, 512  ;;  %p12869_p3 = scmp.lt.s32.totalorder %s2043_s9, %s2043_s9 }
 0x504   : > { %p12863_p5 = scmp.ne.s32.totalorder %s2043_s9, %s12862_s4  ;;  %p12870_p4 = scmp.lt.s32.totalorder %s12862_s4, %s12862_s4 }
 0x506   : > { %p12864_p6 = pnand %p12863_p5, %p11314_p10  ;;  %p12871_p7 = por %p12870_p4, %p12869_p3 }
 0x508   : > { %p12865_p2 = pneg %p12864_p6 }
 0x50a   : > { %p12872_p8 = pnand %p12871_p7, %p12865_p2 }
 0x50c   : > { %12875 = shalt.err (!%p12872_p8)
}
 0x50d   : > { %11215 = dma.hbm_to_vmem [thread:$0]  (%p11314_p10), %s13462_s29, 512, %s2043_s9, [#allocation72], %s15969_s22, %s15969_s22, %s15968_s26  }
 0x50e PF: > { %2066 = sbr.rel (%p13517_p9) target bundleno = 8130 (0x1fc2), region = 264  ;;  %p11360_p11 = scmp.eq.s32.totalorder (!%p13517_p9), %s13490_s15, 0 }
 0x515   : > { %12921 = dma.done.wait (%p11360_p11), [#allocation3], 16  }
 0x516   : > { %12923 = vsyncadd (%p11360_p11), [#allocation3], 4294967280 }
 0x517   : > { %12925 = dma.done.wait (%p11360_p11), [#allocation6], 32  }
 0x518   : > { %12927 = vsyncadd (%p11360_p11), [#allocation6], 4294967264 }
 0x519   : > { %12929 = dma.done.wait (%p11360_p11), [#allocation9], 32  }
 0x51a   : > { %12931 = vsyncadd (%p11360_p11), [#allocation9], 4294967264 }
 0x51b   : > { %12933 = dma.done.wait (%p11360_p11), [#allocation12], 32  }
 0x51c   : > { %12935 = vsyncadd (%p11360_p11), [#allocation12], 4294967264 }
 0x51d   : > { %12937 = dma.done.wait (%p11360_p11), [#allocation15], 32  }
 0x51e   : > { %12939 = vsyncadd (%p11360_p11), [#allocation15], 4294967264 }
 0x51f   : > { %12941 = dma.done.wait (%p11360_p11), [#allocation18], 32  }
 0x520   : > { %12943 = vsyncadd (%p11360_p11), [#allocation18], 4294967264 }
 0x521   : > { %12945 = dma.done.wait (%p11360_p11), [#allocation21], 32  }
 0x522   : > { %12947 = vsyncadd (%p11360_p11), [#allocation21], 4294967264 }
 0x523   : > { %12949 = dma.done.wait (%p11360_p11), [#allocation24], 528  }
 0x524   : > { %12951 = vsyncadd (%p11360_p11), [#allocation24], 4294966768 }
 0x525   : > { %12953 = dma.done.wait (%p11360_p11), [#allocation27], 32  }
 0x526   : > { %12955 = vsyncadd (%p11360_p11), [#allocation27], 4294967264 }
 0x527   : > { %12957 = dma.done.wait (%p11360_p11), [#allocation30], 32  }
 0x528   : > { %12959 = vsyncadd (%p11360_p11), [#allocation30], 4294967264 }
 0x529   : > { %12961 = dma.done.wait (%p11360_p11), [#allocation33], 32  }
 0x52a   : > { %12963 = vsyncadd (%p11360_p11), [#allocation33], 4294967264 }
 0x52b   : > { %12965 = dma.done.wait (%p11360_p11), [#allocation36], 32  }
 0x52c   : > { %12967 = vsyncadd (%p11360_p11), [#allocation36], 4294967264 }
 0x52d   : > { %12969 = dma.done.wait (%p11360_p11), [#allocation39], 3088  }
 0x52e   : > { %12971 = vsyncadd (%p11360_p11), [#allocation39], 4294964208 }
 0x52f   : > { %12973 = dma.done.wait (%p11360_p11), [#allocation42], 7168  }
 0x530   : > { %12975 = vsyncadd (%p11360_p11), [#allocation42], 4294960128 }
 0x531   : > { %12977 = dma.done.wait (%p11360_p11), [#allocation45], 32  }
 0x532   : > { %12979 = vsyncadd (%p11360_p11), [#allocation45], 4294967264 }
 0x533   : > { %12981 = dma.done.wait (%p11360_p11), [#allocation48], 32  }
 0x534   : > { %12983 = vsyncadd (%p11360_p11), [#allocation48], 4294967264 }
 0x535   : > { %12985 = dma.done.wait (%p11360_p11), [#allocation51], 12288  }
 0x536   : > { %12987 = vsyncadd (%p11360_p11), [#allocation51], 4294955008 }
 0x537   : > { %12989 = dma.done.wait (%p11360_p11), [#allocation54], 32  }
 0x538   : > { %12991 = vsyncadd (%p11360_p11), [#allocation54], 4294967264 }
 0x539   : > { %12993 = dma.done.wait (%p11360_p11), [#allocation57], 64  }
 0x53a   : > { %12995 = vsyncadd (%p11360_p11), [#allocation57], 4294967232 }
 0x53b   : > { %12997 = dma.done.wait (%p11360_p11), [#allocation60], 12320  }
 0x53c   : > { %12999 = vsyncadd (%p11360_p11), [#allocation60], 4294954976 }
 0x53d   : > { %13001 = dma.done.wait (%p11360_p11), [#allocation63], 4128  }
 0x53e   : > { %13003 = vsyncadd (%p11360_p11), [#allocation63], 4294963168 }
 0x53f   : > { %13005 = dma.done.wait (%p11360_p11), [#allocation66], 64  }
 0x540   : > { %13007 = vsyncadd (%p11360_p11), [#allocation66], 4294967232 }
 0x541   : > { %13009 = dma.done.wait (%p11360_p11), [#allocation69], 48  }
 0x542   : > { %13011 = vsyncadd (%p11360_p11), [#allocation69], 4294967248 }
 0x543   : > { %13013 = dma.done.wait (%p11360_p11), [#allocation72], 512  }
 0x544   : > { %13015 = vsyncadd (%p11360_p11), [#allocation72], 4294966784  ;;  %s16003_s2 = sld [smem:[#allocation99_spill]]  ;;  %p2385_p9 = scmp.lt.s32.totalorder %s13490_s15, 1  ;;  %vm3506_vm0 = vcmask 1043456   ;;  %vm3487_vm1 = vcmask 228352  }
 0x545   : > { %v3477_v0 = vld [vmem:[#allocation71] sm:$0xff]  ;;  %v3478_v1 = vld [vmem:[#allocation71 + $0x8] sm:$0xff]  ;;  %v3479_v2 = vld [vmem:[#allocation71 + $0x10] sm:$0xff]  ;;  %vm13147_vm2 = vmmov 1   ;;  %s16004_s3 = sld [smem:[#allocation104_spill]]  ;;  %s16005_s1 = sld [smem:[#allocation100_spill]] }
 0x546   : > { %s2386_s26 = scalar_select %p2385_p9, %s13490_s15, 1  ;;  %v9889_v3 = vpack.c.bf16 %v3478_v1, %v3477_v0  ;;  %v3480_v4 = vld [vmem:[#allocation71 + $0x18] sm:$0xf]  ;;  %vm9894_vm3 = vmpackc.low %vm3506_vm0, %vm13147_vm2  ;;  %v9021_v27 = vld [vmem:[#allocation2] ss:$0 sm:$0xff]  ;;  %vm3671_vm6 = vcmask 1040384  }
 0x547   : > { %v9893_v6 = vpack.c.bf16 %v3480_v4, %v3479_v2  ;;  %vm3726_vm8 = vcmask 1045504   ;;  %vm3694_vm9 = vcmask 1046528   ;;  %s13148_s12 = smov 64   ;;  %s13149_s10 = smov 32   ;;  %vm3758_vm13 = vcmask 261120  }
 0x548   : > { %s11123_s22 = smul.u32 48, %s2386_s26  ;;  %9890 = vmatprep.subr.bf16.mxu1 %v9889_v3  ;;  %vm3765_vm14 = vcmask 523264   ;;  %vm3772_vm15 = vcmask 785408   ;;  %s16006_s9 = sld [smem:[#allocation105_spill]] }
 0x549   : > { %9892 = vmatpush3.bf16.msra.mxu1 %v9889_v3  ;;  %s16007_s14 = sld [smem:[#allocation110_spill]]  ;;  %s16008_s4 = sld [smem:[#allocation111_spill]] }
 0x54a   : > { %s2389_s6 = scalar_lea.vmem %s16003_s2, %s11123_s22  ;;  %9895 = vmatprep.subr.msk.bf16.mxu1 %vm9894_vm3, %v9893_v6  ;;  %s16009_s2 = sld [smem:[#allocation117_spill]] }
 0x54b   : > { %v3481_v5 = vld [vmem:[%s2389_s6] sm:$0xff]  ;;  %v3482_v7 = vld [vmem:[%s2389_s6 + $0x8] sm:$0xff]  ;;  %v3483_v8 = vld [vmem:[%s2389_s6 + $0x10] sm:$0xff]  ;;  %s16010_s26 = sld [smem:[#allocation118_spill]]  ;;  %s16011_s22 = sld [smem:[#allocation123_spill]] }
 0x54c   : > { %9535 = vmatprep.mubr.msk.f32.mxu1 %vm3487_vm1, %v3481_v5  ;;  %v3484_v9 = vld [vmem:[%s2389_s6 + $0x18] sm:$0xff]  ;;  %v3485_v10 = vld [vmem:[%s2389_s6 + $0x20] sm:$0xff]  ;;  %v3486_v11 = vld [vmem:[%s2389_s6 + $0x28] sm:$0xff]  ;;  %s16012_s6 = sld [smem:[#allocation124_spill]]  ;;  %p16021_p12 = scmp.ne.s32.totalorder %s15962_s28, 0 }
 0x54d   : > { %9898 = vmatpush3.bf16.msk.msra.mxu1 %vm9894_vm3, %v9893_v6  ;;  %v2394_v12 = vld [vmem:[%s16004_s3] sm:$0xff]  ;;  %v2395_v13 = vld [vmem:[%s16004_s3 + $0x8] sm:$0xff]  ;;  %v2396_v14 = vld [vmem:[%s16004_s3 + $0x10] sm:$0xff] }
 0x54e   : > { %v9899_v15 = vpack.c.bf16 %v2395_v13, %v2394_v12  ;;  %v2397_v16 = vld [vmem:[%s16004_s3 + $0x18] sm:$0xff]  ;;  %v2398_v18 = vld [vmem:[%s16004_s3 + $0x20] sm:$0xff]  ;;  %v2399_v19 = vld [vmem:[%s16004_s3 + $0x28] sm:$0xff] }
 0x54f   : > { %v9903_v17 = vpack.c.bf16 %v2397_v16, %v2396_v14  ;;  %v9907_v20 = vpack.c.bf16 %v2399_v19, %v2398_v18  ;;  %v2400_v21 = vld [vmem:[%s16004_s3 + $0x30] sm:$0xff]  ;;  %v2401_v22 = vld [vmem:[%s16004_s3 + $0x38] sm:$0xff]  ;;  %v2402_v24 = vld [vmem:[%s16004_s3 + $0x40] sm:$0xff] }
 0x550   : > { %9536 = vmatmul.mubr.msk.f32.vlgmr.msra.gmra.mrb[0].mxu1 %vm3487_vm1, %v3482_v7  ;;  %9900 = vmatprep.subr.bf16.mxu1 %v9899_v15  ;;  %v9911_v23 = vpack.c.bf16 %v2401_v22, %v2400_v21  ;;  %v2403_v25 = vld [vmem:[%s16004_s3 + $0x48] sm:$0xff]  ;;  %v9022_v28 = vld [vmem:[%s16005_s1] ss:$0 sm:$0xff]  ;;  %v2404_v59 = vld [vmem:[%s16004_s3 + $0x50] sm:$0xff]  ;;  %s16015_s1 = sld [smem:[#allocation144_spill]] }
 0x551   : > { %9538 = vmatprep.mubr.msk.f32.mxu1 %vm3487_vm1, %v3483_v8  ;;  %9902 = vmatpush3.bf16.msra.mxu1 %v9899_v15  ;;  %v9915_v26 = vpack.c.bf16 %v2403_v25, %v2402_v24  ;;  %v2405_v60 = vld [vmem:[%s16004_s3 + $0x58] sm:$0xff] }
 0x552   : > { %9904 = vmatprep.subr.bf16.mxu1 %v9903_v17  ;;  %v9919_v62 = vpack.c.bf16 %v2405_v60, %v2404_v59 }
 0x554   : > { %9539 = vmatmul.mubr.msk.f32.gmra.mrb[2].mxu1 %vm3487_vm1, %v3484_v9 }
 0x555   : > { %9541 = vmatprep.mubr.msk.f32.mxu1 %vm3487_vm1, %v3485_v10  ;;  %9906 = vmatpush3.bf16.msra.mxu1 %v9903_v17 }
 0x556   : > { %9908 = vmatprep.subr.bf16.mxu1 %v9907_v20 }
 0x558   : > { %9542 = vmatmul.mubr.msk.f32.gmra.mrb[4].mxu1 %vm3487_vm1, %v3486_v11 }
 0x559   : > { %9910 = vmatpush3.bf16.msra.mxu1 %v9907_v20 }
 0x55a   : > { %9912 = vmatprep.subr.bf16.mxu1 %v9911_v23 }
 0x55d   : > { %9914 = vmatpush3.bf16.msra.mxu1 %v9911_v23 }
 0x55e   : > { %9916 = vmatprep.subr.bf16.mxu1 %v9915_v26 }
 0x561   : > { %9918 = vmatpush3.bf16.msra.mxu1 %v9915_v26 }
 0x562   : > { %9920 = vmatprep.subr.bf16.mxu1 %v9919_v62 }
 0x565   : > { %9922 = vmatpush3.bf16.msra.mxu1 %v9919_v62 }
 0x623   : > { %v9537_v29 = vpop.f32.mrb[0].mxu1 }
 0x624   : > { %v3612_v30 = vmul.f32 %v9537_v29, %v9021_v27  ;;  %v3576_v31 = vpop.f32.mrb[1].mxu1 }
 0x625   : > { %v3611_v32 = vmul.f32 %v9021_v27, %v3576_v31 }
 0x626   : > { %v3624_v33 = vadd.f32 %v9022_v28, %v3612_v30 }
 0x627   : > { %v3623_v34 = vadd.f32 %v9022_v28, %v3611_v32  ;;  %v9540_v35 = vpop.f32.mrb[2].mxu1 }
 0x628   : > { %v3636_v36 = vmin.f32 %v3624_v33, 0.0  ;;  %v3614_v37 = vmul.f32 %v9540_v35, %v9021_v27  ;;  %v3586_v38 = vpop.f32.mrb[3].mxu1  ;;  %vm3630_vm4 = vcmp.gt.f32.partialorder %v3624_v33, 0.0 }
 0x629   : > { %v3635_v39 = vmin.f32 %v3623_v34, 0.0  ;;  %v3613_v40 = vmul.f32 %v9021_v27, %v3586_v38  ;;  %vm3629_vm5 = vcmp.gt.f32.partialorder %v3623_v34, 0.0 }
 0x62a   : > { %v3643_v41 = vmul.f32 1.442695, %v3636_v36  ;;  %v3626_v42 = vadd.f32 %v9022_v28, %v3614_v37 }
 0x62b   : > { %v3641_v43 = vmul.f32 1.442695, %v3635_v39  ;;  %v3625_v44 = vadd.f32 %v9022_v28, %v3613_v40  ;;  %v9543_v45 = vpop.f32.mrb[4].mxu1 }
 0x62c   : > { %11556 = vpow2.f32 %v3643_v41  ;;  %v3638_v46 = vmin.f32 %v3626_v42, 0.0  ;;  %v3616_v47 = vmul.f32 %v9543_v45, %v9021_v27  ;;  %v3596_v48 = vpop.f32.mrb[5].mxu1  ;;  %vm3632_vm7 = vcmp.gt.f32.partialorder %v3626_v42, 0.0 }
 0x62d   : > { %11558 = vpow2.f32 %v3641_v43  ;;  %v3637_v49 = vmin.f32 %v3625_v44, 0.0  ;;  %v3615_v50 = vmul.f32 %v9021_v27, %v3596_v48  ;;  %vm3631_vm10 = vcmp.gt.f32.partialorder %v3625_v44, 0.0 }
 0x62e   : > { %v3647_v51 = vmul.f32 1.442695, %v3638_v46  ;;  %v3628_v52 = vadd.f32 %v9022_v28, %v3616_v47 }
 0x62f   : > { %v3645_v53 = vmul.f32 1.442695, %v3637_v49  ;;  %v3627_v54 = vadd.f32 %v9022_v28, %v3615_v50 }
 0x630   : > { %11560 = vpow2.f32 %v3647_v51  ;;  %v3640_v55 = vmin.f32 %v3628_v52, 0.0  ;;  %vm3634_vm11 = vcmp.gt.f32.partialorder %v3628_v52, 0.0 }
 0x631   : > { %11562 = vpow2.f32 %v3645_v53  ;;  %v3639_v56 = vmin.f32 %v3627_v54, 0.0  ;;  %vm3633_vm12 = vcmp.gt.f32.partialorder %v3627_v54, 0.0 }
 0x632   : > { %v3651_v57 = vmul.f32 1.442695, %v3640_v55 }
 0x633   : > { %v3649_v58 = vmul.f32 1.442695, %v3639_v56 }
 0x634   : > { %11564 = vpow2.f32 %v3651_v57 }
 0x635   : > { %11566 = vpow2.f32 %v3649_v58 }
 0x636   : > { %v11557_v61 = vpop.eup %11556 }
 0x637   : > { %v11559_v63 = vpop.eup %11558  ;;  %v9024_v0 = vadd.f32 -1.0, %v11557_v61 }
 0x638   : > { %v9023_v1 = vadd.f32 -1.0, %v11559_v63 }
 0x639   : > { %v14186_v2 = vsel %vm3630_vm4, %v3624_v33, %v9024_v0 }
 0x63a   : > { %v11561_v3 = vpop.eup %11560  ;;  %v3673_v4 = vrot.slane %v14186_v2, 7  ;;  %v14189_v5 = vsel %vm3629_vm5, %v3623_v34, %v9023_v1 }
 0x63b   : > { %v11563_v6 = vpop.eup %11562  ;;  %v3672_v7 = vrot.slane %v14189_v5, 7  ;;  %v9026_v8 = vadd.f32 -1.0, %v11561_v3 }
 0x63c   : > { %v9025_v9 = vadd.f32 -1.0, %v11563_v6 }
 0x63d   : > { %v14192_v10 = vsel %vm3632_vm7, %v3626_v42, %v9026_v8  ;;  %v14195_v11 = vsel %vm3671_vm6, %v3672_v7, %v3673_v4  ;;  %v14198_v12 = vsel %vm3671_vm6, 0.0, %v3672_v7 }
 0x63e   : > { %v11565_v13 = vpop.eup %11564  ;;  %v3677_v14 = vrot.slane %v14192_v10, 7  ;;  %v14201_v15 = vsel %vm3631_vm10, %v3625_v44, %v9025_v9  ;;  %v3727_v16 = vrot.slane %v14198_v12, 2  ;;  %v3728_v17 = vrot.slane %v14195_v11, 2 }
 0x63f   : > { %v11567_v18 = vpop.eup %11566  ;;  %v3675_v19 = vrot.slane %v14201_v15, 7  ;;  %v9028_v20 = vadd.f32 -1.0, %v11565_v13  ;;  %v3695_v21 = vrot.slane %v14198_v12, 1  ;;  %v3696_v22 = vrot.slane %v14195_v11, 1 }
 0x640   : > { %v9027_v23 = vadd.f32 -1.0, %v11567_v18  ;;  %v3729_v24 = vsel %vm3726_vm8, %v3727_v16, %v3728_v17 }
 0x641   : > { %v14209_v25 = vsel %vm3634_vm11, %v3628_v52, %v9028_v20  ;;  %3740 = vrot.lane.b32.xlu1 %v3729_v24, %s13148_s12  ;;  %v3697_v26 = vsel %vm3694_vm9, %v3695_v21, %v3696_v22  ;;  %v3676_v27 = vsel %vm3671_vm6, %v3673_v4, %v3675_v19  ;;  %v3678_v31 = vsel %vm3671_vm6, %v3675_v19, %v3677_v14  ;;  %v2406_v19 = vld [vmem:[%s16006_s9] sm:$0xff]  ;;  %v2407_v20 = vld [vmem:[%s16006_s9 + $0x8] sm:$0xff]  ;;  %v2408_v21 = vld [vmem:[%s16006_s9 + $0x10] sm:$0xff] }
 0x642   : > { %v14214_v28 = vsel %vm3633_vm12, %v3627_v54, %v9027_v23  ;;  %3708 = vrot.lane.b32.xlu0 %v3697_v26, %s13149_s10  ;;  %v3730_v29 = vrot.slane %v3676_v27, 2  ;;  %v3698_v30 = vrot.slane %v3676_v27, 1  ;;  %v3681_v35 = vrot.slane %v14209_v25, 7  ;;  %v2409_v23 = vld [vmem:[%s16006_s9 + $0x18] sm:$0xff]  ;;  %v2410_v26 = vld [vmem:[%s16006_s9 + $0x20] sm:$0xff] }
 0x643   : > { %v3679_v32 = vrot.slane %v14214_v28, 7  ;;  %v3700_v37 = vrot.slane %v3678_v31, 1  ;;  %v3732_v42 = vrot.slane %v3678_v31, 2  ;;  %v9927_v24 = vpack.c.bf16 %v2409_v23, %v2408_v21 }
 0x644   : > { %v3731_v33 = vsel %vm3726_vm8, %v3728_v17, %v3730_v29  ;;  %v3699_v34 = vsel %vm3694_vm9, %v3696_v22, %v3698_v30  ;;  %v3691_v44 = vsel %vm3671_vm6, %v3681_v35, 0.0  ;;  %v9923_v22 = vpack.c.bf16 %v2407_v20, %v2406_v19 }
 0x645   : > { %3742 = vrot.lane.b32.xlu1 %v3731_v33, %s13148_s12  ;;  %v3680_v36 = vsel %vm3671_vm6, %v3677_v14, %v3679_v32  ;;  %v3701_v41 = vsel %vm3694_vm9, %v3698_v30, %v3700_v37  ;;  %v3682_v43 = vsel %vm3671_vm6, %v3679_v32, %v3681_v35  ;;  %v3706_v47 = vrot.slane %v3691_v44, 1  ;;  %v9035_v30 = vld [vmem:[#allocation7] ss:$0 sm:$0xff] }
 0x646   : > { %3710 = vrot.lane.b32.xlu0 %v3699_v34, %s13149_s10  ;;  %v3702_v38 = vrot.slane %v3680_v36, 1  ;;  %v3734_v40 = vrot.slane %v3680_v36, 2  ;;  %v3704_v46 = vrot.slane %v3682_v43, 1  ;;  %v3733_v48 = vsel %vm3726_vm8, %v3730_v29, %v3732_v42  ;;  %9924 = vmatprep.subr.bf16.mxu0 %v9923_v22 }
 0x647   : > { %v3736_v50 = vrot.slane %v3682_v43, 2  ;;  %v3738_v51 = vrot.slane %v3691_v44, 2  ;;  %9926 = vmatpush3.bf16.msra.mxu0 %v9923_v22 }
 0x648   : > { %v3703_v39 = vsel %vm3694_vm9, %v3700_v37, %v3702_v38  ;;  %v3735_v45 = vsel %vm3726_vm8, %v3732_v42, %v3734_v40  ;;  %v3707_v49 = vsel %vm3694_vm9, %v3704_v46, %v3706_v47  ;;  %v3705_v52 = vsel %vm3694_vm9, %v3702_v38, %v3704_v46  ;;  %9928 = vmatprep.subr.bf16.mxu0 %v9927_v24 }
 0x649   : > { %3714 = vrot.lane.b32.xlu1 %v3703_v39, %s13149_s10  ;;  %v3739_v53 = vsel %vm3726_vm8, %v3736_v50, %v3738_v51  ;;  %v3737_v54 = vsel %vm3726_vm8, %v3734_v40, %v3736_v50 }
 0x64a   : > { %3712 = vrot.lane.b32.xlu0 %v3701_v41, %s13149_s10 }
 0x64b   : > { %9930 = vmatpush3.bf16.msra.mxu0 %v9927_v24 }
 0x64d   : > { %3746 = vrot.lane.b32.xlu1 %v3735_v45, %s13148_s12 }
 0x64e   : > { %3744 = vrot.lane.b32.xlu0 %v3733_v48, %s13148_s12 }
 0x651   : > { %3718 = vrot.lane.b32.xlu1 %v3707_v49, %s13149_s10 }
 0x652   : > { %3716 = vrot.lane.b32.xlu0 %v3705_v52, %s13149_s10 }
 0x655   : > { %3750 = vrot.lane.b32.xlu1 %v3739_v53, %s13148_s12  ;;  %v2412_v53 = vld [vmem:[%s16006_s9 + $0x30] sm:$0xff] }
 0x656   : > { %3748 = vrot.lane.b32.xlu0 %v3737_v54, %s13148_s12  ;;  %v2413_v54 = vld [vmem:[%s16006_s9 + $0x38] sm:$0xff] }
 0x6b3   : > { %v3741_v55 = vpop.permute.xlu1 %3740 }
 0x6b4   : > { %v3709_v56 = vpop.permute.xlu0 %3708 }
 0x6b5   : > { %v3759_v57 = vsel %vm3758_vm13, %v14198_v12, %v3709_v56 }
 0x6b6   : > { %v3766_v58 = vsel %vm3765_vm14, %v3759_v57, %v3741_v55  ;;  %v9935_v57 = vpack.c.bf16 %v2413_v54, %v2412_v53 }
 0x6b7   : > { %9568 = vmatprep.mubr.msk.f32.mxu1 %vm3772_vm15, %v3766_v58  ;;  %v3743_v59 = vpop.permute.xlu1 %3742 }
 0x6b8   : > { %v3711_v60 = vpop.permute.xlu0 %3710 }
 0x6b9   : > { %v3760_v61 = vsel %vm3758_vm13, %v14195_v11, %v3711_v60 }
 0x6ba   : > { %v3767_v62 = vsel %vm3765_vm14, %v3760_v61, %v3743_v59 }
 0x6bb   : > { %9569 = vmatmul.mubr.msk.f32.vlgmr.msra.gmra.mrb[6].mxu1 %vm3772_vm15, %v3767_v62  ;;  %v3715_v63 = vpop.permute.xlu1 %3714 }
 0x6bc   : > { %v3713_v0 = vpop.permute.xlu0 %3712  ;;  %v3762_v1 = vsel %vm3758_vm13, %v3678_v31, %v3715_v63  ;;  %v9036_v31 = vld [vmem:[#allocation5] ss:$0 sm:$0xff] }
 0x6bd   : > { %v3761_v4 = vsel %vm3758_vm13, %v3676_v27, %v3713_v0  ;;  %v2411_v27 = vld [vmem:[%s16006_s9 + $0x28] sm:$0xff]  ;;  %v2414_v0 = vld [vmem:[%s16006_s9 + $0x40] sm:$0xff] }
 0x6be   : > { %v9931_v29 = vpack.c.bf16 %v2411_v27, %v2410_v26 }
 0x6bf   : > { %v3747_v3 = vpop.permute.xlu1 %3746 }
 0x6c0   : > { %v3769_v6 = vsel %vm3765_vm14, %v3762_v1, %v3747_v3  ;;  %v3745_v7 = vpop.permute.xlu0 %3744  ;;  %9932 = vmatprep.subr.bf16.mxu0 %v9931_v29  ;;  %v2415_v1 = vld [vmem:[%s16006_s9 + $0x48] sm:$0xff] }
 0x6c1   : > { %v3768_v8 = vsel %vm3765_vm14, %v3761_v4, %v3745_v7  ;;  %9934 = vmatpush3.bf16.msra.mxu0 %v9931_v29 }
 0x6c2   : > { %9571 = vmatprep.mubr.msk.f32.mxu1 %vm3772_vm15, %v3768_v8  ;;  %9936 = vmatprep.subr.bf16.mxu0 %v9935_v57 }
 0x6c3   : > { %9572 = vmatmul.mubr.msk.f32.gmra.mrb[8].mxu1 %vm3772_vm15, %v3769_v6  ;;  %v3719_v9 = vpop.permute.xlu1 %3718  ;;  %v9939_v6 = vpack.c.bf16 %v2415_v1, %v2414_v0 }
 0x6c4   : > { %v3717_v11 = vpop.permute.xlu0 %3716  ;;  %v3764_v12 = vsel %vm3758_vm13, %v3682_v43, %v3719_v9 }
 0x6c5   : > { %v3763_v14 = vsel %vm3758_vm13, %v3680_v36, %v3717_v11  ;;  %9938 = vmatpush3.bf16.msra.mxu0 %v9935_v57 }
 0x6c6   : > { %9940 = vmatprep.subr.bf16.mxu0 %v9939_v6 }
 0x6c7   : > { %v3751_v13 = vpop.permute.xlu1 %3750 }
 0x6c8   : > { %v3771_v16 = vsel %vm3765_vm14, %v3764_v12, %v3751_v13  ;;  %v3749_v17 = vpop.permute.xlu0 %3748 }
 0x6c9   : > { %v3770_v18 = vsel %vm3765_vm14, %v3763_v14, %v3749_v17  ;;  %9942 = vmatpush3.bf16.msra.mxu0 %v9939_v6  ;;  %v2417_v17 = vld [vmem:[%s16006_s9 + $0x58] sm:$0xff] }
 0x6ca   : > { %9574 = vmatprep.mubr.msk.f32.mxu1 %vm3772_vm15, %v3770_v18 }
 0x6cb   : > { %9575 = vmatmul.mubr.msk.f32.gmra.mrb[10].mxu1 %vm3772_vm15, %v3771_v16  ;;  %v2416_v16 = vld [vmem:[%s16006_s9 + $0x50] sm:$0xff] }
 0x6cc   : > { %v9943_v18 = vpack.c.bf16 %v2417_v17, %v2416_v16 }
 0x6ce   : > { %9944 = vmatprep.subr.bf16.mxu0 %v9943_v18 }
 0x6cf   : > { %9946 = vmatpush3.bf16.msra.mxu0 %v9943_v18 }
 0x78e   : > { %v9570_v32 = vpop.f32.mrb[6].mxu1 }
 0x78f   : > { %v3893_v33 = vmul.f32 %v9570_v32, %v9035_v30  ;;  %v3857_v34 = vpop.f32.mrb[7].mxu1 }
 0x790   : > { %v3892_v35 = vmul.f32 %v9035_v30, %v3857_v34 }
 0x791   : > { %v3905_v36 = vadd.f32 %v9036_v31, %v3893_v33 }
 0x792   : > { %v3904_v37 = vadd.f32 %v9036_v31, %v3892_v35 }
 0x793   : > { %v3917_v38 = vmin.f32 %v3905_v36, 0.0  ;;  %vm3911_vm1 = vcmp.gt.f32.partialorder %v3905_v36, 0.0 }
 0x794   : > { %v3916_v39 = vmin.f32 %v3904_v37, 0.0  ;;  %vm3910_vm2 = vcmp.gt.f32.partialorder %v3904_v37, 0.0 }
 0x795   : > { %v3924_v40 = vmul.f32 1.442695, %v3917_v38 }
 0x796   : > { %v3922_v41 = vmul.f32 1.442695, %v3916_v39  ;;  %v9573_v42 = vpop.f32.mrb[8].mxu1 }
 0x797   : > { %11568 = vpow2.f32 %v3924_v40  ;;  %v3895_v43 = vmul.f32 %v9573_v42, %v9035_v30  ;;  %v3867_v44 = vpop.f32.mrb[9].mxu1 }
 0x798   : > { %11570 = vpow2.f32 %v3922_v41  ;;  %v3894_v45 = vmul.f32 %v9035_v30, %v3867_v44 }
 0x799   : > { %v3907_v46 = vadd.f32 %v9036_v31, %v3895_v43 }
 0x79a   : > { %v3906_v47 = vadd.f32 %v9036_v31, %v3894_v45 }
 0x79b   : > { %v3919_v48 = vmin.f32 %v3907_v46, 0.0  ;;  %vm3913_vm3 = vcmp.gt.f32.partialorder %v3907_v46, 0.0 }
 0x79c   : > { %v3918_v49 = vmin.f32 %v3906_v47, 0.0  ;;  %vm3912_vm4 = vcmp.gt.f32.partialorder %v3906_v47, 0.0 }
 0x79d   : > { %v3928_v50 = vmul.f32 1.442695, %v3919_v48 }
 0x79e   : > { %v3926_v51 = vmul.f32 1.442695, %v3918_v49  ;;  %v9576_v52 = vpop.f32.mrb[10].mxu1 }
 0x79f   : > { %11572 = vpow2.f32 %v3928_v50  ;;  %v3897_v55 = vmul.f32 %v9576_v52, %v9035_v30  ;;  %v3877_v56 = vpop.f32.mrb[11].mxu1 }
 0x7a0   : > { %11574 = vpow2.f32 %v3926_v51  ;;  %v3896_v58 = vmul.f32 %v9035_v30, %v3877_v56 }
 0x7a1   : > { %v11569_v59 = vpop.eup %11568  ;;  %v14271_v60 = vadd.f32 %v9036_v31, %v3897_v55 }
 0x7a2   : > { %v11571_v61 = vpop.eup %11570  ;;  %v9038_v62 = vadd.f32 -1.0, %v11569_v59  ;;  %v14273_v63 = vadd.f32 %v9036_v31, %v3896_v58 }
 0x7a3   : > { %v9037_v3 = vadd.f32 -1.0, %v11571_v61  ;;  %v3921_v4 = vmin.f32 %v14271_v60, 0.0  ;;  %vm3915_vm5 = vcmp.gt.f32.partialorder %v14271_v60, 0.0 }
 0x7a4   : > { %v3941_v7 = vsel %vm3911_vm1, %v3905_v36, %v9038_v62  ;;  %v3920_v8 = vmin.f32 %v14273_v63, 0.0  ;;  %vm3914_vm7 = vcmp.gt.f32.partialorder %v14273_v63, 0.0 }
 0x7a5   : > { %v3953_v9 = vrot.slane %v3941_v7, 7  ;;  %v3940_v11 = vsel %vm3910_vm2, %v3904_v37, %v9037_v3  ;;  %v3932_v12 = vmul.f32 1.442695, %v3921_v4 }
 0x7a6   : > { %v3952_v13 = vrot.slane %v3940_v11, 7  ;;  %v3930_v14 = vmul.f32 1.442695, %v3920_v8 }
 0x7a7   : > { %11576 = vpow2.f32 %v3932_v12 }
 0x7a8   : > { %11578 = vpow2.f32 %v3930_v14  ;;  %v14282_v19 = vsel %vm3671_vm6, %v3952_v13, %v3953_v9  ;;  %v14285_v20 = vsel %vm3671_vm6, 0.0, %v3952_v13 }
 0x7a9   : > { %v11573_v21 = vpop.eup %11572  ;;  %v3974_v22 = vrot.slane %v14285_v20, 1  ;;  %v3975_v23 = vrot.slane %v14282_v19, 1  ;;  %v4005_v30 = vrot.slane %v14285_v20, 2  ;;  %v4006_v31 = vrot.slane %v14282_v19, 2 }
 0x7aa   : > { %v11575_v24 = vpop.eup %11574  ;;  %v9040_v26 = vadd.f32 -1.0, %v11573_v21 }
 0x7ab   : > { %v9039_v27 = vadd.f32 -1.0, %v11575_v24  ;;  %v3976_v29 = vsel %vm3694_vm9, %v3974_v22, %v3975_v23  ;;  %v4007_v36 = vsel %vm3726_vm8, %v4005_v30, %v4006_v31 }
 0x7ac   : > { %v3943_v32 = vsel %vm3913_vm3, %v3907_v46, %v9040_v26  ;;  %3987 = vrot.lane.b32.xlu0 %v3976_v29, %s13149_s10 }
 0x7ad   : > { %v3957_v33 = vrot.slane %v3943_v32, 7  ;;  %v3942_v34 = vsel %vm3912_vm4, %v3906_v47, %v9039_v27 }
 0x7ae   : > { %v3955_v35 = vrot.slane %v3942_v34, 7 }
 0x7b0   : > { %4018 = vrot.lane.b32.xlu0 %v4007_v36, %s13148_s12  ;;  %v3956_v37 = vsel %vm3671_vm6, %v3953_v9, %v3955_v35  ;;  %v3958_v38 = vsel %vm3671_vm6, %v3955_v35, %v3957_v33  ;;  %v2422_v36 = vld [vmem:[%s16007_s14] sm:$0xff] }
 0x7b1   : > { %v11577_v39 = vpop.eup %11576  ;;  %v3977_v40 = vrot.slane %v3956_v37, 1  ;;  %v3979_v41 = vrot.slane %v3958_v38, 1  ;;  %v4008_v44 = vrot.slane %v3956_v37, 2  ;;  %v4010_v48 = vrot.slane %v3958_v38, 2 }
 0x7b2   : > { %v11579_v42 = vpop.eup %11578  ;;  %v9042_v43 = vadd.f32 -1.0, %v11577_v39 }
 0x7b3   : > { %v9041_v45 = vadd.f32 -1.0, %v11579_v42  ;;  %v3980_v46 = vsel %vm3694_vm9, %v3977_v40, %v3979_v41  ;;  %v3978_v47 = vsel %vm3694_vm9, %v3975_v23, %v3977_v40  ;;  %v4011_v53 = vsel %vm3726_vm8, %v4008_v44, %v4010_v48  ;;  %v2425_v40 = vld [vmem:[%s16007_s14 + $0x18] sm:$0xff]  ;;  %v2426_v42 = vld [vmem:[%s16007_s14 + $0x20] sm:$0xff] }
 0x7b4   : > { %v3945_v49 = vsel %vm3915_vm5, %v14271_v60, %v9042_v43  ;;  %3991 = vrot.lane.b32.xlu0 %v3980_v46, %s13149_s10  ;;  %3989 = vrot.lane.b32.xlu1 %v3978_v47, %s13149_s10  ;;  %v4009_v54 = vsel %vm3726_vm8, %v4006_v31, %v4008_v44  ;;  %v2427_v43 = vld [vmem:[%s16007_s14 + $0x28] sm:$0xff] }
 0x7b5   : > { %v3961_v50 = vrot.slane %v3945_v49, 7  ;;  %v3944_v51 = vsel %vm3914_vm7, %v14273_v63, %v9041_v45  ;;  %v9955_v44 = vpack.c.bf16 %v2427_v43, %v2426_v42  ;;  %v9049_v45 = vld [vmem:[#allocation10] ss:$0 sm:$0xff]  ;;  %v9050_v49 = vld [vmem:[#allocation8] ss:$0 sm:$0xff] }
 0x7b6   : > { %v3959_v52 = vrot.slane %v3944_v51, 7 }
 0x7b7   : > { %v3971_v63 = vsel %vm3671_vm6, %v3961_v50, 0.0 }
 0x7b8   : > { %4022 = vrot.lane.b32.xlu0 %v4011_v53, %s13148_s12  ;;  %4020 = vrot.lane.b32.xlu1 %v4009_v54, %s13148_s12  ;;  %v3960_v55 = vsel %vm3671_vm6, %v3957_v33, %v3959_v52  ;;  %v3962_v56 = vsel %vm3671_vm6, %v3959_v52, %v3961_v50  ;;  %v3985_v3 = vrot.slane %v3971_v63, 1  ;;  %v4016_v6 = vrot.slane %v3971_v63, 2 }
 0x7b9   : > { %v3981_v57 = vrot.slane %v3960_v55, 1  ;;  %v3983_v58 = vrot.slane %v3962_v56, 1  ;;  %v4012_v61 = vrot.slane %v3960_v55, 2  ;;  %v4014_v62 = vrot.slane %v3962_v56, 2 }
 0x7bb   : > { %v3984_v59 = vsel %vm3694_vm9, %v3981_v57, %v3983_v58  ;;  %v3982_v60 = vsel %vm3694_vm9, %v3979_v41, %v3981_v57  ;;  %v4015_v0 = vsel %vm3726_vm8, %v4012_v61, %v4014_v62  ;;  %v4013_v1 = vsel %vm3726_vm8, %v4010_v48, %v4012_v61 }
 0x7bc   : > { %3995 = vrot.lane.b32.xlu0 %v3984_v59, %s13149_s10  ;;  %3993 = vrot.lane.b32.xlu1 %v3982_v60, %s13149_s10  ;;  %v3986_v4 = vsel %vm3694_vm9, %v3983_v58, %v3985_v3  ;;  %v4017_v7 = vsel %vm3726_vm8, %v4014_v62, %v4016_v6 }
 0x7c0   : > { %4026 = vrot.lane.b32.xlu0 %v4015_v0, %s13148_s12  ;;  %4024 = vrot.lane.b32.xlu1 %v4013_v1, %s13148_s12 }
 0x7c4   : > { %3997 = vrot.lane.b32.xlu1 %v3986_v4, %s13149_s10 }
 0x7c8   : > { %4028 = vrot.lane.b32.xlu1 %v4017_v7, %s13148_s12 }
 0x81e   : > { %v3988_v8 = vpop.permute.xlu0 %3987 }
 0x81f   : > { %v4036_v9 = vsel %vm3758_vm13, %v14285_v20, %v3988_v8 }
 0x822   : > { %v4019_v11 = vpop.permute.xlu0 %4018 }
 0x823   : > { %v4042_v12 = vsel %vm3765_vm14, %v4036_v9, %v4019_v11  ;;  %v2428_v9 = vld [vmem:[%s16007_s14 + $0x30] sm:$0xff]  ;;  %v2429_v11 = vld [vmem:[%s16007_s14 + $0x38] sm:$0xff] }
 0x824   : > { %9601 = vmatprep.mubr.msk.f32.mxu0 %vm3772_vm15, %v4042_v12 }
 0x826   : > { %v3990_v13 = vpop.permute.xlu1 %3989  ;;  %v3992_v14 = vpop.permute.xlu0 %3991 }
 0x827   : > { %v4037_v16 = vsel %vm3758_vm13, %v14282_v19, %v3990_v13  ;;  %v4038_v17 = vsel %vm3758_vm13, %v3956_v37, %v3992_v14  ;;  %v2423_v37 = vld [vmem:[%s16007_s14 + $0x8] sm:$0xff]  ;;  %v9959_v13 = vpack.c.bf16 %v2429_v11, %v2428_v9 }
 0x828   : > { %v9947_v39 = vpack.c.bf16 %v2423_v37, %v2422_v36 }
 0x82a   : > { %v4021_v18 = vpop.permute.xlu1 %4020  ;;  %v4023_v21 = vpop.permute.xlu0 %4022  ;;  %9948 = vmatprep.subr.bf16.mxu1 %v9947_v39 }
 0x82b   : > { %v4043_v22 = vsel %vm3765_vm14, %v4037_v16, %v4021_v18  ;;  %v4044_v23 = vsel %vm3765_vm14, %v4038_v17, %v4023_v21  ;;  %9950 = vmatpush3.bf16.msra.mxu1 %v9947_v39 }
 0x82c   : > { %9602 = vmatmul.mubr.msk.f32.vlgmr.msra.gmra.mrb[0].mxu0 %vm3772_vm15, %v4043_v22  ;;  %v2430_v22 = vld [vmem:[%s16007_s14 + $0x40] sm:$0xff] }
 0x82d   : > { %9604 = vmatprep.mubr.msk.f32.mxu0 %vm3772_vm15, %v4044_v23 }
 0x82e   : > { %v3994_v20 = vpop.permute.xlu1 %3993  ;;  %v3996_v24 = vpop.permute.xlu0 %3995 }
 0x82f   : > { %v4039_v26 = vsel %vm3758_vm13, %v3958_v38, %v3994_v20  ;;  %v4040_v19 = vsel %vm3758_vm13, %v3960_v55, %v3996_v24  ;;  %v2424_v38 = vld [vmem:[%s16007_s14 + $0x10] sm:$0xff] }
 0x830   : > { %v9951_v41 = vpack.c.bf16 %v2425_v40, %v2424_v38 }
 0x832   : > { %v4025_v27 = vpop.permute.xlu1 %4024  ;;  %v4027_v29 = vpop.permute.xlu0 %4026  ;;  %9952 = vmatprep.subr.bf16.mxu1 %v9951_v41 }
 0x833   : > { %v4045_v30 = vsel %vm3765_vm14, %v4039_v26, %v4025_v27  ;;  %v4046_v31 = vsel %vm3765_vm14, %v4040_v19, %v4027_v29  ;;  %9954 = vmatpush3.bf16.msra.mxu1 %v9951_v41 }
 0x834   : > { %9605 = vmatmul.mubr.msk.f32.gmra.mrb[2].mxu0 %vm3772_vm15, %v4045_v30  ;;  %9956 = vmatprep.subr.bf16.mxu1 %v9955_v44 }
 0x835   : > { %9607 = vmatprep.mubr.msk.f32.mxu0 %vm3772_vm15, %v4046_v31 }
 0x836   : > { %v3998_v32 = vpop.permute.xlu1 %3997 }
 0x837   : > { %v4041_v33 = vsel %vm3758_vm13, %v3962_v56, %v3998_v32  ;;  %9958 = vmatpush3.bf16.msra.mxu1 %v9955_v44 }
 0x838   : > { %9960 = vmatprep.subr.bf16.mxu1 %v9959_v13 }
 0x83a   : > { %v4029_v34 = vpop.permute.xlu1 %4028 }
 0x83b   : > { %v4047_v35 = vsel %vm3765_vm14, %v4041_v33, %v4029_v34  ;;  %9962 = vmatpush3.bf16.msra.mxu1 %v9959_v13  ;;  %v2432_v33 = vld [vmem:[%s16007_s14 + $0x50] sm:$0xff]  ;;  %v2433_v34 = vld [vmem:[%s16007_s14 + $0x58] sm:$0xff] }
 0x83c   : > { %9608 = vmatmul.mubr.msk.f32.gmra.mrb[4].mxu0 %vm3772_vm15, %v4047_v35  ;;  %v9967_v35 = vpack.c.bf16 %v2433_v34, %v2432_v33 }
 0x8ff   : > { %v9603_v46 = vpop.f32.mrb[0].mxu0 }
 0x900   : > { %v4138_v47 = vadd.f32 %v9603_v46, %v14186_v2  ;;  %v4132_v48 = vpop.f32.mrb[1].mxu0 }
 0x901   : > { %v4133_v50 = vadd.f32 %v4132_v48, %v14189_v5 }
 0x902   : > { %v4168_v51 = vmul.f32 %v9049_v45, %v4138_v47 }
 0x903   : > { %v4167_v52 = vmul.f32 %v9049_v45, %v4133_v50 }
 0x904   : > { %v4180_v53 = vadd.f32 %v9050_v49, %v4168_v51 }
 0x905   : > { %v4179_v54 = vadd.f32 %v9050_v49, %v4167_v52 }
 0x906   : > { %v4192_v55 = vmin.f32 %v4180_v53, 0.0  ;;  %vm4186_vm10 = vcmp.gt.f32.partialorder %v4180_v53, 0.0 }
 0x907   : > { %v4191_v56 = vmin.f32 %v4179_v54, 0.0  ;;  %v9606_v57 = vpop.f32.mrb[2].mxu0  ;;  %vm4185_vm11 = vcmp.gt.f32.partialorder %v4179_v54, 0.0 }
 0x908   : > { %v4199_v58 = vmul.f32 1.442695, %v4192_v55  ;;  %v4148_v59 = vadd.f32 %v9606_v57, %v14192_v10  ;;  %v4142_v60 = vpop.f32.mrb[3].mxu0 }
 0x909   : > { %v4197_v61 = vmul.f32 1.442695, %v4191_v56  ;;  %v4143_v62 = vadd.f32 %v4142_v60, %v14201_v15 }
 0x90a   : > { %11580 = vpow2.f32 %v4199_v58  ;;  %v4170_v2 = vmul.f32 %v9049_v45, %v4148_v59 }
 0x90b   : > { %11582 = vpow2.f32 %v4197_v61  ;;  %v4169_v5 = vmul.f32 %v9049_v45, %v4143_v62 }
 0x90c   : > { %v4182_v63 = vadd.f32 %v9050_v49, %v4170_v2 }
 0x90d   : > { %v14354_v0 = vadd.f32 %v9050_v49, %v4169_v5 }
 0x90e   : > { %v4194_v1 = vmin.f32 %v4182_v63, 0.0  ;;  %vm4188_vm12 = vcmp.gt.f32.partialorder %v4182_v63, 0.0 }
 0x90f   : > { %v4193_v3 = vmin.f32 %v14354_v0, 0.0  ;;  %v9609_v4 = vpop.f32.mrb[4].mxu0  ;;  %vm4187_vm1 = vcmp.gt.f32.partialorder %v14354_v0, 0.0 }
 0x910   : > { %v4203_v6 = vmul.f32 1.442695, %v4194_v1  ;;  %v4158_v10 = vadd.f32 %v9609_v4, %v14209_v25  ;;  %v4152_v7 = vpop.f32.mrb[5].mxu0 }
 0x911   : > { %v4201_v8 = vmul.f32 1.442695, %v4193_v3  ;;  %v4153_v15 = vadd.f32 %v4152_v7, %v14214_v28  ;;  %v2431_v28 = vld [vmem:[%s16007_s14 + $0x48] sm:$0xff] }
 0x912   : > { %11584 = vpow2.f32 %v4203_v6  ;;  %v4172_v12 = vmul.f32 %v9049_v45, %v4158_v10  ;;  %v9963_v24 = vpack.c.bf16 %v2431_v28, %v2430_v22 }
 0x913   : > { %11586 = vpow2.f32 %v4201_v8  ;;  %v4171_v14 = vmul.f32 %v9049_v45, %v4153_v15 }
 0x914   : > { %v11581_v16 = vpop.eup %11580  ;;  %v14361_v17 = vadd.f32 %v9050_v49, %v4172_v12  ;;  %9964 = vmatprep.subr.bf16.mxu1 %v9963_v24 }
 0x915   : > { %v11583_v18 = vpop.eup %11582  ;;  %v9052_v21 = vadd.f32 -1.0, %v11581_v16  ;;  %v14363_v25 = vadd.f32 %v9050_v49, %v4171_v14  ;;  %9966 = vmatpush3.bf16.msra.mxu1 %v9963_v24 }
 0x916   : > { %v9051_v23 = vadd.f32 -1.0, %v11583_v18  ;;  %v4196_v20 = vmin.f32 %v14361_v17, 0.0  ;;  %9968 = vmatprep.subr.bf16.mxu1 %v9967_v35  ;;  %vm4190_vm2 = vcmp.gt.f32.partialorder %v14361_v17, 0.0 }
 0x917   : > { %v14368_v26 = vsel %vm4186_vm10, %v4180_v53, %v9052_v21  ;;  %v4195_v19 = vmin.f32 %v14363_v25, 0.0  ;;  %vm4189_vm3 = vcmp.gt.f32.partialorder %v14363_v25, 0.0 }
 0x918   : > { %v4228_v27 = vrot.slane %v14368_v26, 7  ;;  %v14372_v29 = vsel %vm4185_vm11, %v4179_v54, %v9051_v23  ;;  %v4207_v30 = vmul.f32 1.442695, %v4196_v20 }
 0x919   : > { %v4227_v31 = vrot.slane %v14372_v29, 7  ;;  %v4205_v32 = vmul.f32 1.442695, %v4195_v19  ;;  %9970 = vmatpush3.bf16.msra.mxu1 %v9967_v35 }
 0x91a   : > { %11588 = vpow2.f32 %v4207_v30 }
 0x91b   : > { %11590 = vpow2.f32 %v4205_v32  ;;  %v14378_v36 = vsel %vm3671_vm6, %v4227_v31, %v4228_v27  ;;  %v14381_v37 = vsel %vm3671_vm6, 0.0, %v4227_v31 }
 0x91c   : > { %v11585_v38 = vpop.eup %11584  ;;  %v4249_v39 = vrot.slane %v14381_v37, 1  ;;  %v4250_v40 = vrot.slane %v14378_v36, 1  ;;  %v4280_v45 = vrot.slane %v14381_v37, 2  ;;  %v4281_v46 = vrot.slane %v14378_v36, 2 }
 0x91d   : > { %v11587_v41 = vpop.eup %11586  ;;  %v9054_v42 = vadd.f32 -1.0, %v11585_v38 }
 0x91e   : > { %v9053_v43 = vadd.f32 -1.0, %v11587_v41  ;;  %v4251_v44 = vsel %vm3694_vm9, %v4249_v39, %v4250_v40  ;;  %v4282_v51 = vsel %vm3726_vm8, %v4280_v45, %v4281_v46 }
 0x91f   : > { %v14388_v47 = vsel %vm4188_vm12, %v4182_v63, %v9054_v42  ;;  %4262 = vrot.lane.b32.xlu0 %v4251_v44, %s13149_s10 }
 0x920   : > { %v4232_v48 = vrot.slane %v14388_v47, 7  ;;  %v14394_v49 = vsel %vm4187_vm1, %v14354_v0, %v9053_v43 }
 0x921   : > { %v4230_v50 = vrot.slane %v14394_v49, 7 }
 0x923   : > { %4293 = vrot.lane.b32.xlu0 %v4282_v51, %s13148_s12  ;;  %v4231_v52 = vsel %vm3671_vm6, %v4228_v27, %v4230_v50  ;;  %v4233_v53 = vsel %vm3671_vm6, %v4230_v50, %v4232_v48  ;;  %v2435_v50 = vld [vmem:[%s16008_s4 + $0x8] sm:$0xff]  ;;  %v2436_v51 = vld [vmem:[%s16008_s4 + $0x10] sm:$0xff] }
 0x924   : > { %v11589_v54 = vpop.eup %11588  ;;  %v4252_v55 = vrot.slane %v4231_v52, 1  ;;  %v4254_v56 = vrot.slane %v4233_v53, 1  ;;  %v4283_v59 = vrot.slane %v4231_v52, 2  ;;  %v4285_v2 = vrot.slane %v4233_v53, 2 }
 0x925   : > { %v11591_v57 = vpop.eup %11590  ;;  %v9056_v58 = vadd.f32 -1.0, %v11589_v54 }
 0x926   : > { %v9055_v60 = vadd.f32 -1.0, %v11591_v57  ;;  %v4255_v61 = vsel %vm3694_vm9, %v4252_v55, %v4254_v56  ;;  %v4253_v62 = vsel %vm3694_vm9, %v4250_v40, %v4252_v55  ;;  %v4286_v3 = vsel %vm3726_vm8, %v4283_v59, %v4285_v2  ;;  %v2438_v55 = vld [vmem:[%s16008_s4 + $0x20] sm:$0xff] }
 0x927   : > { %v14405_v5 = vsel %vm4190_vm2, %v14361_v17, %v9056_v58  ;;  %4266 = vrot.lane.b32.xlu0 %v4255_v61, %s13149_s10  ;;  %4264 = vrot.lane.b32.xlu1 %v4253_v62, %s13149_s10  ;;  %v4284_v4 = vsel %vm3726_vm8, %v4281_v46, %v4283_v59  ;;  %v9063_v58 = vld [vmem:[#allocation13] ss:$0 sm:$0xff]  ;;  %v9064_v59 = vld [vmem:[#allocation11] ss:$0 sm:$0xff] }
 0x928   : > { %v4236_v63 = vrot.slane %v14405_v5, 7  ;;  %v14412_v0 = vsel %vm4189_vm3, %v14363_v25, %v9055_v60 }
 0x929   : > { %v4234_v1 = vrot.slane %v14412_v0, 7 }
 0x92a   : > { %v4246_v13 = vsel %vm3671_vm6, %v4236_v63, 0.0 }
 0x92b   : > { %4297 = vrot.lane.b32.xlu0 %v4286_v3, %s13148_s12  ;;  %4295 = vrot.lane.b32.xlu1 %v4284_v4, %s13148_s12  ;;  %v4235_v6 = vsel %vm3671_vm6, %v4232_v48, %v4234_v1  ;;  %v4237_v10 = vsel %vm3671_vm6, %v4234_v1, %v4236_v63  ;;  %v4260_v17 = vrot.slane %v4246_v13, 1  ;;  %v4291_v21 = vrot.slane %v4246_v13, 2  ;;  %v2434_v48 = vld [vmem:[%s16008_s4] sm:$0xff] }
 0x92c   : > { %v4256_v7 = vrot.slane %v4235_v6, 1  ;;  %v4258_v8 = vrot.slane %v4237_v10, 1  ;;  %v4287_v11 = vrot.slane %v4235_v6, 2  ;;  %v4289_v12 = vrot.slane %v4237_v10, 2 }
 0x92e   : > { %v4259_v15 = vsel %vm3694_vm9, %v4256_v7, %v4258_v8  ;;  %v4257_v9 = vsel %vm3694_vm9, %v4254_v56, %v4256_v7  ;;  %v4290_v14 = vsel %vm3726_vm8, %v4287_v11, %v4289_v12  ;;  %v4288_v16 = vsel %vm3726_vm8, %v4285_v2, %v4287_v11  ;;  %v2439_v56 = vld [vmem:[%s16008_s4 + $0x28] sm:$0xff] }
 0x92f   : > { %4270 = vrot.lane.b32.xlu0 %v4259_v15, %s13149_s10  ;;  %4268 = vrot.lane.b32.xlu1 %v4257_v9, %s13149_s10  ;;  %v4261_v18 = vsel %vm3694_vm9, %v4258_v8, %v4260_v17  ;;  %v4292_v25 = vsel %vm3726_vm8, %v4289_v12, %v4291_v21  ;;  %v9979_v57 = vpack.c.bf16 %v2439_v56, %v2438_v55  ;;  %v2440_v21 = vld [vmem:[%s16008_s4 + $0x30] sm:$0xff] }
 0x933   : > { %4301 = vrot.lane.b32.xlu0 %v4290_v14, %s13148_s12  ;;  %4299 = vrot.lane.b32.xlu1 %v4288_v16, %s13148_s12 }
 0x937   : > { %4272 = vrot.lane.b32.xlu1 %v4261_v18, %s13149_s10 }
 0x93b   : > { %4303 = vrot.lane.b32.xlu1 %v4292_v25, %s13148_s12  ;;  %v2441_v25 = vld [vmem:[%s16008_s4 + $0x38] sm:$0xff] }
 0x991   : > { %v4263_v22 = vpop.permute.xlu0 %4262 }
 0x992   : > { %v4311_v28 = vsel %vm3758_vm13, %v14381_v37, %v4263_v22 }
 0x995   : > { %v4294_v23 = vpop.permute.xlu0 %4293 }
 0x996   : > { %v4317_v20 = vsel %vm3765_vm14, %v4311_v28, %v4294_v23  ;;  %v9983_v23 = vpack.c.bf16 %v2441_v25, %v2440_v21 }
 0x997   : > { %9634 = vmatprep.mubr.msk.f32.mxu1 %vm3772_vm15, %v4317_v20 }
 0x999   : > { %v4265_v24 = vpop.permute.xlu1 %4264  ;;  %v4267_v19 = vpop.permute.xlu0 %4266 }
 0x99a   : > { %v4312_v27 = vsel %vm3758_vm13, %v14378_v36, %v4265_v24  ;;  %v4313_v30 = vsel %vm3758_vm13, %v4231_v52, %v4267_v19  ;;  %v9971_v52 = vpack.c.bf16 %v2435_v50, %v2434_v48 }
 0x99c   : > { %9972 = vmatprep.subr.bf16.mxu0 %v9971_v52 }
 0x99d   : > { %v4296_v31 = vpop.permute.xlu1 %4295  ;;  %v4298_v32 = vpop.permute.xlu0 %4297  ;;  %9974 = vmatpush3.bf16.msra.mxu0 %v9971_v52 }
 0x99e   : > { %v4318_v33 = vsel %vm3765_vm14, %v4312_v27, %v4296_v31  ;;  %v4319_v34 = vsel %vm3765_vm14, %v4313_v30, %v4298_v32  ;;  %v2442_v32 = vld [vmem:[%s16008_s4 + $0x40] sm:$0xff] }
 0x99f   : > { %9635 = vmatmul.mubr.msk.f32.vlgmr.msra.gmra.mrb[12].mxu1 %vm3772_vm15, %v4318_v33  ;;  %v2443_v33 = vld [vmem:[%s16008_s4 + $0x48] sm:$0xff] }
 0x9a0   : > { %9637 = vmatprep.mubr.msk.f32.mxu1 %vm3772_vm15, %v4319_v34 }
 0x9a1   : > { %v4269_v35 = vpop.permute.xlu1 %4268  ;;  %v4271_v37 = vpop.permute.xlu0 %4270 }
 0x9a2   : > { %v4314_v38 = vsel %vm3758_vm13, %v4233_v53, %v4269_v35  ;;  %v4315_v36 = vsel %vm3758_vm13, %v4235_v6, %v4271_v37  ;;  %v2437_v53 = vld [vmem:[%s16008_s4 + $0x18] sm:$0xff]  ;;  %v9987_v37 = vpack.c.bf16 %v2443_v33, %v2442_v32 }
 0x9a3   : > { %v9975_v54 = vpack.c.bf16 %v2437_v53, %v2436_v51 }
 0x9a5   : > { %v4300_v39 = vpop.permute.xlu1 %4299  ;;  %v4302_v40 = vpop.permute.xlu0 %4301  ;;  %9976 = vmatprep.subr.bf16.mxu0 %v9975_v54 }
 0x9a6   : > { %v4320_v41 = vsel %vm3765_vm14, %v4314_v38, %v4300_v39  ;;  %v4321_v42 = vsel %vm3765_vm14, %v4315_v36, %v4302_v40  ;;  %9978 = vmatpush3.bf16.msra.mxu0 %v9975_v54 }
 0x9a7   : > { %9638 = vmatmul.mubr.msk.f32.gmra.mrb[14].mxu1 %vm3772_vm15, %v4320_v41  ;;  %9980 = vmatprep.subr.bf16.mxu0 %v9979_v57 }
 0x9a8   : > { %9640 = vmatprep.mubr.msk.f32.mxu1 %vm3772_vm15, %v4321_v42 }
 0x9a9   : > { %v4273_v43 = vpop.permute.xlu1 %4272 }
 0x9aa   : > { %v4316_v44 = vsel %vm3758_vm13, %v4237_v10, %v4273_v43  ;;  %9982 = vmatpush3.bf16.msra.mxu0 %v9979_v57 }
 0x9ab   : > { %9984 = vmatprep.subr.bf16.mxu0 %v9983_v23 }
 0x9ad   : > { %v4304_v45 = vpop.permute.xlu1 %4303 }
 0x9ae   : > { %v4322_v46 = vsel %vm3765_vm14, %v4316_v44, %v4304_v45  ;;  %9986 = vmatpush3.bf16.msra.mxu0 %v9983_v23  ;;  %v2444_v44 = vld [vmem:[%s16008_s4 + $0x50] sm:$0xff]  ;;  %v2445_v45 = vld [vmem:[%s16008_s4 + $0x58] sm:$0xff] }
 0x9af   : > { %9641 = vmatmul.mubr.msk.f32.gmra.mrb[16].mxu1 %vm3772_vm15, %v4322_v46  ;;  %9988 = vmatprep.subr.bf16.mxu0 %v9987_v37  ;;  %v9991_v46 = vpack.c.bf16 %v2445_v45, %v2444_v44 }
 0x9b2   : > { %9990 = vmatpush3.bf16.msra.mxu0 %v9987_v37 }
 0x9b3   : > { %9992 = vmatprep.subr.bf16.mxu0 %v9991_v46 }
 0x9b6   : > { %9994 = vmatpush3.bf16.msra.mxu0 %v9991_v46 }
 0xa72   : > { %v9636_v60 = vpop.f32.mrb[12].mxu1 }
 0xa73   : > { %v4443_v61 = vmul.f32 %v9636_v60, %v9063_v58  ;;  %v4407_v62 = vpop.f32.mrb[13].mxu1 }
 0xa74   : > { %v4442_v2 = vmul.f32 %v9063_v58, %v4407_v62 }
 0xa75   : > { %v4455_v63 = vadd.f32 %v9064_v59, %v4443_v61 }
 0xa76   : > { %v4454_v1 = vadd.f32 %v9064_v59, %v4442_v2 }
 0xa77   : > { %v4467_v3 = vmin.f32 %v4455_v63, 0.0  ;;  %vm4461_vm4 = vcmp.gt.f32.partialorder %v4455_v63, 0.0 }
 0xa78   : > { %v4466_v4 = vmin.f32 %v4454_v1, 0.0  ;;  %vm4460_vm5 = vcmp.gt.f32.partialorder %v4454_v1, 0.0 }
 0xa79   : > { %v4474_v6 = vmul.f32 1.442695, %v4467_v3 }
 0xa7a   : > { %v4472_v10 = vmul.f32 1.442695, %v4466_v4  ;;  %v9639_v7 = vpop.f32.mrb[14].mxu1 }
 0xa7b   : > { %11592 = vpow2.f32 %v4474_v6  ;;  %v4445_v8 = vmul.f32 %v9639_v7, %v9063_v58  ;;  %v4417_v15 = vpop.f32.mrb[15].mxu1 }
 0xa7c   : > { %11594 = vpow2.f32 %v4472_v10  ;;  %v4444_v9 = vmul.f32 %v9063_v58, %v4417_v15 }
 0xa7d   : > { %v4457_v11 = vadd.f32 %v9064_v59, %v4445_v8 }
 0xa7e   : > { %v4456_v12 = vadd.f32 %v9064_v59, %v4444_v9 }
 0xa7f   : > { %v4469_v13 = vmin.f32 %v4457_v11, 0.0  ;;  %vm4463_vm7 = vcmp.gt.f32.partialorder %v4457_v11, 0.0 }
 0xa80   : > { %v4468_v14 = vmin.f32 %v4456_v12, 0.0  ;;  %vm4462_vm10 = vcmp.gt.f32.partialorder %v4456_v12, 0.0 }
 0xa81   : > { %v4478_v16 = vmul.f32 1.442695, %v4469_v13 }
 0xa82   : > { %v4476_v17 = vmul.f32 1.442695, %v4468_v14  ;;  %v9642_v18 = vpop.f32.mrb[16].mxu1 }
 0xa83   : > { %11596 = vpow2.f32 %v4478_v16  ;;  %v4447_v22 = vmul.f32 %v9642_v18, %v9063_v58  ;;  %v4427_v28 = vpop.f32.mrb[17].mxu1 }
 0xa84   : > { %11598 = vpow2.f32 %v4476_v17  ;;  %v4446_v20 = vmul.f32 %v9063_v58, %v4427_v28 }
 0xa85   : > { %v11593_v24 = vpop.eup %11592  ;;  %v14462_v19 = vadd.f32 %v9064_v59, %v4447_v22 }
 0xa86   : > { %v11595_v27 = vpop.eup %11594  ;;  %v9066_v30 = vadd.f32 -1.0, %v11593_v24  ;;  %v14464_v31 = vadd.f32 %v9064_v59, %v4446_v20 }
 0xa87   : > { %v9065_v34 = vadd.f32 -1.0, %v11595_v27  ;;  %v4471_v35 = vmin.f32 %v14462_v19, 0.0  ;;  %vm4465_vm11 = vcmp.gt.f32.partialorder %v14462_v19, 0.0 }
 0xa88   : > { %v4491_v38 = vsel %vm4461_vm4, %v4455_v63, %v9066_v30  ;;  %v4470_v36 = vmin.f32 %v14464_v31, 0.0  ;;  %vm4464_vm12 = vcmp.gt.f32.partialorder %v14464_v31, 0.0 }
 0xa89   : > { %v4503_v39 = vrot.slane %v4491_v38, 7  ;;  %v4490_v40 = vsel %vm4460_vm5, %v4454_v1, %v9065_v34  ;;  %v4482_v41 = vmul.f32 1.442695, %v4471_v35 }
 0xa8a   : > { %v4502_v42 = vrot.slane %v4490_v40, 7  ;;  %v4480_v43 = vmul.f32 1.442695, %v4470_v36 }
 0xa8b   : > { %11600 = vpow2.f32 %v4482_v41 }
 0xa8c   : > { %11602 = vpow2.f32 %v4480_v43  ;;  %v14473_v48 = vsel %vm3671_vm6, %v4502_v42, %v4503_v39  ;;  %v14476_v50 = vsel %vm3671_vm6, 0.0, %v4502_v42 }
 0xa8d   : > { %v11597_v51 = vpop.eup %11596  ;;  %v4524_v52 = vrot.slane %v14476_v50, 1  ;;  %v4525_v53 = vrot.slane %v14473_v48, 1  ;;  %v4555_v58 = vrot.slane %v14476_v50, 2  ;;  %v4556_v59 = vrot.slane %v14473_v48, 2 }
 0xa8e   : > { %v11599_v54 = vpop.eup %11598  ;;  %v9068_v55 = vadd.f32 -1.0, %v11597_v51 }
 0xa8f   : > { %v9067_v56 = vadd.f32 -1.0, %v11599_v54  ;;  %v4526_v57 = vsel %vm3694_vm9, %v4524_v52, %v4525_v53  ;;  %v4557_v63 = vsel %vm3726_vm8, %v4555_v58, %v4556_v59 }
 0xa90   : > { %v4493_v60 = vsel %vm4463_vm7, %v4457_v11, %v9068_v55  ;;  %4537 = vrot.lane.b32.xlu0 %v4526_v57, %s13149_s10 }
 0xa91   : > { %v4507_v61 = vrot.slane %v4493_v60, 7  ;;  %v4492_v62 = vsel %vm4462_vm10, %v4456_v12, %v9067_v56 }
 0xa92   : > { %v4505_v2 = vrot.slane %v4492_v62, 7 }
 0xa94   : > { %4568 = vrot.lane.b32.xlu0 %v4557_v63, %s13148_s12  ;;  %v4506_v1 = vsel %vm3671_vm6, %v4503_v39, %v4505_v2  ;;  %v4508_v3 = vsel %vm3671_vm6, %v4505_v2, %v4507_v61  ;;  %v2488_v63 = vld [vmem:[#allocation23] sm:$0xff] }
 0xa95   : > { %v11601_v4 = vpop.eup %11600  ;;  %v4527_v6 = vrot.slane %v4506_v1, 1  ;;  %v4529_v10 = vrot.slane %v4508_v3, 1  ;;  %v4558_v15 = vrot.slane %v4506_v1, 2  ;;  %v4560_v13 = vrot.slane %v4508_v3, 2 }
 0xa96   : > { %v11603_v7 = vpop.eup %11602  ;;  %v9070_v8 = vadd.f32 -1.0, %v11601_v4  ;;  %v2490_v4 = vld [vmem:[#allocation23 + $0x10] sm:$0xff] }
 0xa97   : > { %v9069_v9 = vadd.f32 -1.0, %v11603_v7  ;;  %v4530_v11 = vsel %vm3694_vm9, %v4527_v6, %v4529_v10  ;;  %v4528_v12 = vsel %vm3694_vm9, %v4525_v53, %v4527_v6  ;;  %v4561_v21 = vsel %vm3726_vm8, %v4558_v15, %v4560_v13  ;;  %v2491_v6 = vld [vmem:[#allocation23 + $0x18] sm:$0xff]  ;;  %v2452_v7 = vld [vmem:[%s16009_s2] sm:$0xff] }
 0xa98   : > { %v4495_v14 = vsel %vm4465_vm11, %v14462_v19, %v9070_v8  ;;  %4541 = vrot.lane.b32.xlu0 %v4530_v11, %s13149_s10  ;;  %4539 = vrot.lane.b32.xlu1 %v4528_v12, %s13149_s10  ;;  %v4559_v25 = vsel %vm3726_vm8, %v4556_v59, %v4558_v15  ;;  %v2453_v8 = vld [vmem:[%s16009_s2 + $0x8] sm:$0xff]  ;;  %v2454_v15 = vld [vmem:[%s16009_s2 + $0x10] sm:$0xff] }
 0xa99   : > { %v4511_v16 = vrot.slane %v4495_v14, 7  ;;  %v4494_v17 = vsel %vm4464_vm12, %v14464_v31, %v9069_v9  ;;  %v9995_v9 = vpack.c.bf16 %v2453_v8, %v2452_v7  ;;  %v2455_v11 = vld [vmem:[%s16009_s2 + $0x18] sm:$0xff]  ;;  %v2457_v14 = vld [vmem:[%s16009_s2 + $0x28] sm:$0xff] }
 0xa9a   : > { %v4509_v18 = vrot.slane %v4494_v17, 7  ;;  %v9999_v12 = vpack.c.bf16 %v2455_v11, %v2454_v15  ;;  %v9077_v17 = vld [vmem:[#allocation16] ss:$0 sm:$0xff] }
 0xa9b   : > { %v4521_v31 = vsel %vm3671_vm6, %v4511_v16, 0.0  ;;  %9996 = vmatprep.subr.bf16.mxu1 %v9995_v9 }
 0xa9c   : > { %4572 = vrot.lane.b32.xlu0 %v4561_v21, %s13148_s12  ;;  %4570 = vrot.lane.b32.xlu1 %v4559_v25, %s13148_s12  ;;  %v4510_v22 = vsel %vm3671_vm6, %v4507_v61, %v4509_v18  ;;  %v4512_v28 = vsel %vm3671_vm6, %v4509_v18, %v4511_v16  ;;  %v4535_v34 = vrot.slane %v4521_v31, 1  ;;  %v4566_v37 = vrot.slane %v4521_v31, 2 }
 0xa9d   : > { %v4531_v23 = vrot.slane %v4510_v22, 1  ;;  %v4533_v20 = vrot.slane %v4512_v28, 1  ;;  %v4562_v27 = vrot.slane %v4510_v22, 2  ;;  %v4564_v30 = vrot.slane %v4512_v28, 2  ;;  %9998 = vmatpush3.bf16.msra.mxu1 %v9995_v9 }
 0xa9e   : > { %10000 = vmatprep.subr.bf16.mxu1 %v9999_v12 }
 0xa9f   : > { %v4534_v24 = vsel %vm3694_vm9, %v4531_v23, %v4533_v20  ;;  %v4532_v19 = vsel %vm3694_vm9, %v4529_v10, %v4531_v23  ;;  %v4565_v32 = vsel %vm3726_vm8, %v4562_v27, %v4564_v30  ;;  %v4563_v33 = vsel %vm3726_vm8, %v4560_v13, %v4562_v27  ;;  %v2456_v13 = vld [vmem:[%s16009_s2 + $0x20] sm:$0xff] }
 0xaa0   : > { %4545 = vrot.lane.b32.xlu0 %v4534_v24, %s13149_s10  ;;  %4543 = vrot.lane.b32.xlu1 %v4532_v19, %s13149_s10  ;;  %v4536_v35 = vsel %vm3694_vm9, %v4533_v20, %v4535_v34  ;;  %v4567_v38 = vsel %vm3726_vm8, %v4564_v30, %v4566_v37  ;;  %v10023_v10 = vpack.c.bf16 %v2491_v6, %v2490_v4  ;;  %v2462_v4 = vld [vmem:[%s16009_s2 + $0x50] sm:$0xff]  ;;  %v2463_v6 = vld [vmem:[%s16009_s2 + $0x58] sm:$0xff] }
 0xaa1   : > { %v10003_v16 = vpack.c.bf16 %v2457_v14, %v2456_v13  ;;  %10002 = vmatpush3.bf16.msra.mxu1 %v9999_v12 }
 0xaa3   : > { %10004 = vmatprep.subr.bf16.mxu1 %v10003_v16 }
 0xaa4   : > { %4576 = vrot.lane.b32.xlu0 %v4565_v32, %s13148_s12  ;;  %4574 = vrot.lane.b32.xlu1 %v4563_v33, %s13148_s12 }
 0xaa5   : > { %10006 = vmatpush3.bf16.msra.mxu1 %v10003_v16 }
 0xaa8   : > { %4547 = vrot.lane.b32.xlu1 %v4536_v35, %s13149_s10 }
 0xaac   : > { %4578 = vrot.lane.b32.xlu1 %v4567_v38, %s13148_s12 }
 0xb02   : > { %v4538_v36 = vpop.permute.xlu0 %4537 }
 0xb03   : > { %v4586_v39 = vsel %vm3758_vm13, %v14476_v50, %v4538_v36 }
 0xb06   : > { %v4569_v40 = vpop.permute.xlu0 %4568 }
 0xb07   : > { %v4592_v41 = vsel %vm3765_vm14, %v4586_v39, %v4569_v40 }
 0xb08   : > { %9667 = vmatprep.mubr.msk.f32.mxu0 %vm3772_vm15, %v4592_v41 }
 0xb0a   : > { %v4540_v42 = vpop.permute.xlu1 %4539  ;;  %v4542_v43 = vpop.permute.xlu0 %4541 }
 0xb0b   : > { %v4587_v44 = vsel %vm3758_vm13, %v14473_v48, %v4540_v42  ;;  %v4588_v45 = vsel %vm3758_vm13, %v4506_v1, %v4542_v43  ;;  %v2489_v1 = vld [vmem:[#allocation23 + $0x8] sm:$0xff] }
 0xb0e   : > { %v4571_v46 = vpop.permute.xlu1 %4570  ;;  %v4573_v51 = vpop.permute.xlu0 %4572 }
 0xb0f   : > { %v4593_v52 = vsel %vm3765_vm14, %v4587_v44, %v4571_v46  ;;  %v4594_v53 = vsel %vm3765_vm14, %v4588_v45, %v4573_v51  ;;  %v2458_v45 = vld [vmem:[%s16009_s2 + $0x30] sm:$0xff]  ;;  %v2459_v46 = vld [vmem:[%s16009_s2 + $0x38] sm:$0xff] }
 0xb10   : > { %9668 = vmatmul.mubr.msk.f32.vlgmr.msra.gmra.mrb[6].mxu0 %vm3772_vm15, %v4593_v52  ;;  %v10007_v52 = vpack.c.bf16 %v2459_v46, %v2458_v45 }
 0xb11   : > { %9670 = vmatprep.mubr.msk.f32.mxu0 %vm3772_vm15, %v4594_v53 }
 0xb12   : > { %v4544_v50 = vpop.permute.xlu1 %4543  ;;  %v4546_v54 = vpop.permute.xlu0 %4545  ;;  %10008 = vmatprep.subr.bf16.mxu1 %v10007_v52 }
 0xb13   : > { %v4589_v55 = vsel %vm3758_vm13, %v4508_v3, %v4544_v50  ;;  %v4590_v56 = vsel %vm3758_vm13, %v4510_v22, %v4546_v54  ;;  %v10019_v3 = vpack.c.bf16 %v2489_v1, %v2488_v63  ;;  %v9078_v22 = vld [vmem:[#allocation14] ss:$0 sm:$0xff]  ;;  %10010 = vmatpush3.bf16.msra.mxu1 %v10007_v52 }
 0xb15   : > { %10020 = vmatprep.subr.bf16.mxu0 %v10019_v3 }
 0xb16   : > { %v4575_v57 = vpop.permute.xlu1 %4574  ;;  %v4577_v48 = vpop.permute.xlu0 %4576  ;;  %10022 = vmatpush3.bf16.msra.mxu0 %v10019_v3 }
 0xb17   : > { %v4595_v58 = vsel %vm3765_vm14, %v4589_v55, %v4575_v57  ;;  %v4596_v59 = vsel %vm3765_vm14, %v4590_v56, %v4577_v48  ;;  %10024 = vmatprep.subr.bf16.mxu0 %v10023_v10  ;;  %v2460_v57 = vld [vmem:[%s16009_s2 + $0x40] sm:$0xff]  ;;  %v2461_v48 = vld [vmem:[%s16009_s2 + $0x48] sm:$0xff] }
 0xb18   : > { %9671 = vmatmul.mubr.msk.f32.gmra.mrb[8].mxu0 %vm3772_vm15, %v4595_v58 }
 0xb19   : > { %9673 = vmatprep.mubr.msk.f32.mxu0 %vm3772_vm15, %v4596_v59  ;;  %v10011_v59 = vpack.c.bf16 %v2461_v48, %v2460_v57 }
 0xb1a   : > { %v4548_v60 = vpop.permute.xlu1 %4547  ;;  %10026 = vmatpush3.bf16.msra.mxu0 %v10023_v10  ;;  %v10015_v10 = vpack.c.bf16 %v2463_v6, %v2462_v4 }
 0xb1b   : > { %v4591_v61 = vsel %vm3758_vm13, %v4512_v28, %v4548_v60  ;;  %10012 = vmatprep.subr.bf16.mxu1 %v10011_v59 }
 0xb1c   : > { %10014 = vmatpush3.bf16.msra.mxu1 %v10011_v59 }
 0xb1d   : > { %10016 = vmatprep.subr.bf16.mxu1 %v10015_v10 }
 0xb1e   : > { %v4579_v62 = vpop.permute.xlu1 %4578 }
 0xb1f   : > { %v4597_v2 = vsel %vm3765_vm14, %v4591_v61, %v4579_v62 }
 0xb20   : > { %9674 = vmatmul.mubr.msk.f32.gmra.mrb[10].mxu0 %vm3772_vm15, %v4597_v2  ;;  %10018 = vmatpush3.bf16.msra.mxu1 %v10015_v10 }
 0xbe3   : > { %v9669_v18 = vpop.f32.mrb[6].mxu0 }
 0xbe4   : > { %v4688_v21 = vadd.f32 %v9669_v18, %v14368_v26  ;;  %v4682_v25 = vpop.f32.mrb[7].mxu0 }
 0xbe5   : > { %v4683_v28 = vadd.f32 %v4682_v25, %v14372_v29 }
 0xbe6   : > { %v4718_v23 = vmul.f32 %v9077_v17, %v4688_v21 }
 0xbe7   : > { %v4717_v20 = vmul.f32 %v9077_v17, %v4683_v28 }
 0xbe8   : > { %v4730_v24 = vadd.f32 %v9078_v22, %v4718_v23 }
 0xbe9   : > { %v4729_v19 = vadd.f32 %v9078_v22, %v4717_v20 }
 0xbea   : > { %v4742_v27 = vmin.f32 %v4730_v24, 0.0  ;;  %vm4736_vm1 = vcmp.gt.f32.partialorder %v4730_v24, 0.0 }
 0xbeb   : > { %v4741_v30 = vmin.f32 %v4729_v19, 0.0  ;;  %v9672_v31 = vpop.f32.mrb[8].mxu0  ;;  %vm4735_vm2 = vcmp.gt.f32.partialorder %v4729_v19, 0.0 }
 0xbec   : > { %v4749_v32 = vmul.f32 1.442695, %v4742_v27  ;;  %v4698_v33 = vadd.f32 %v9672_v31, %v14388_v47  ;;  %v4692_v34 = vpop.f32.mrb[9].mxu0 }
 0xbed   : > { %v4747_v35 = vmul.f32 1.442695, %v4741_v30  ;;  %v4693_v37 = vadd.f32 %v4692_v34, %v14394_v49 }
 0xbee   : > { %11604 = vpow2.f32 %v4749_v32  ;;  %v4720_v26 = vmul.f32 %v9077_v17, %v4698_v33 }
 0xbef   : > { %11606 = vpow2.f32 %v4747_v35  ;;  %v4719_v29 = vmul.f32 %v9077_v17, %v4693_v37 }
 0xbf0   : > { %v14545_v38 = vadd.f32 %v9078_v22, %v4720_v26 }
 0xbf1   : > { %v14547_v36 = vadd.f32 %v9078_v22, %v4719_v29 }
 0xbf2   : > { %v4744_v39 = vmin.f32 %v14545_v38, 0.0  ;;  %vm4738_vm3 = vcmp.gt.f32.partialorder %v14545_v38, 0.0 }
 0xbf3   : > { %v4743_v40 = vmin.f32 %v14547_v36, 0.0  ;;  %v9675_v41 = vpop.f32.mrb[10].mxu0  ;;  %vm4737_vm4 = vcmp.gt.f32.partialorder %v14547_v36, 0.0 }
 0xbf4   : > { %v4753_v47 = vmul.f32 1.442695, %v4744_v39  ;;  %v4708_v42 = vadd.f32 %v9675_v41, %v14405_v5  ;;  %v4702_v43 = vpop.f32.mrb[11].mxu0 }
 0xbf5   : > { %v4751_v44 = vmul.f32 1.442695, %v4743_v40  ;;  %v4703_v49 = vadd.f32 %v4702_v43, %v14412_v0 }
 0xbf6   : > { %11608 = vpow2.f32 %v4753_v47  ;;  %v4722_v51 = vmul.f32 %v9077_v17, %v4708_v42 }
 0xbf7   : > { %11610 = vpow2.f32 %v4751_v44  ;;  %v4721_v53 = vmul.f32 %v9077_v17, %v4703_v49 }
 0xbf8   : > { %v11605_v50 = vpop.eup %11604  ;;  %v14555_v54 = vadd.f32 %v9078_v22, %v4722_v51 }
 0xbf9   : > { %v11607_v55 = vpop.eup %11606  ;;  %v9080_v56 = vadd.f32 -1.0, %v11605_v50  ;;  %v14557_v5 = vadd.f32 %v9078_v22, %v4721_v53 }
 0xbfa   : > { %v4746_v0 = vmin.f32 %v14555_v54, 0.0  ;;  %v9079_v58 = vadd.f32 -1.0, %v11607_v55  ;;  %vm4740_vm5 = vcmp.gt.f32.partialorder %v14555_v54, 0.0 }
 0xbfb   : > { %v4745_v60 = vmin.f32 %v14557_v5, 0.0  ;;  %v4766_v61 = vsel %vm4736_vm1, %v4730_v24, %v9080_v56  ;;  %vm4739_vm7 = vcmp.gt.f32.partialorder %v14557_v5, 0.0 }
 0xbfc   : > { %v4757_v62 = vmul.f32 1.442695, %v4746_v0  ;;  %v4765_v2 = vsel %vm4735_vm2, %v4729_v19, %v9079_v58  ;;  %v4778_v63 = vrot.slane %v4766_v61, 7 }
 0xbfd   : > { %v4755_v1 = vmul.f32 1.442695, %v4745_v60  ;;  %v4777_v3 = vrot.slane %v4765_v2, 7  ;;  %9717 = vmatprep.mubr.msk.f32.mxu0 %vm3758_vm13, %v4765_v2 }
 0xbfe   : > { %11612 = vpow2.f32 %v4757_v62  ;;  %9718 = vmatmul.mubr.msk.f32.vlgmr.msra.gmra.mrb[12].mxu0 %vm3758_vm13, %v4766_v61 }
 0xbff   : > { %11614 = vpow2.f32 %v4755_v1  ;;  %v14568_v7 = vsel %vm3671_vm6, 0.0, %v4777_v3  ;;  %v14571_v8 = vsel %vm3671_vm6, %v4777_v3, %v4778_v63 }
 0xc00   : > { %v11609_v15 = vpop.eup %11608  ;;  %v4799_v9 = vrot.slane %v14568_v7, 1  ;;  %v4800_v11 = vrot.slane %v14571_v8, 1  ;;  %v4830_v17 = vrot.slane %v14568_v7, 2  ;;  %v4831_v18 = vrot.slane %v14571_v8, 2 }
 0xc01   : > { %v11611_v12 = vpop.eup %11610  ;;  %v9082_v13 = vadd.f32 -1.0, %v11609_v15 }
 0xc02   : > { %v4801_v14 = vsel %vm3694_vm9, %v4799_v9, %v4800_v11  ;;  %v9081_v16 = vadd.f32 -1.0, %v11611_v12  ;;  %v4832_v23 = vsel %vm3726_vm8, %v4830_v17, %v4831_v18 }
 0xc03   : > { %4812 = vrot.lane.b32.xlu0 %v4801_v14, %s13149_s10  ;;  %v4768_v21 = vsel %vm4738_vm3, %v14545_v38, %v9082_v13 }
 0xc04   : > { %v4767_v25 = vsel %vm4737_vm4, %v14547_v36, %v9081_v16  ;;  %v4782_v22 = vrot.slane %v4768_v21, 7 }
 0xc05   : > { %v4780_v28 = vrot.slane %v4767_v25, 7  ;;  %9720 = vmatprep.mubr.msk.f32.mxu0 %vm3758_vm13, %v4767_v25 }
 0xc06   : > { %9721 = vmatmul.mubr.msk.f32.gmra.mrb[14].mxu0 %vm3758_vm13, %v4768_v21 }
 0xc07   : > { %4843 = vrot.lane.b32.xlu0 %v4832_v23, %s13148_s12  ;;  %v4781_v20 = vsel %vm3671_vm6, %v4778_v63, %v4780_v28  ;;  %v14589_v24 = vsel %vm3671_vm6, %v4780_v28, %v4782_v22  ;;  %v2464_v23 = vld [vmem:[%s16010_s26] sm:$0xff] }
 0xc08   : > { %v11613_v19 = vpop.eup %11612  ;;  %v4802_v27 = vrot.slane %v4781_v20, 1  ;;  %v4804_v30 = vrot.slane %v14589_v24, 1  ;;  %v4833_v33 = vrot.slane %v4781_v20, 2  ;;  %v4835_v26 = vrot.slane %v14589_v24, 2 }
 0xc09   : > { %v11615_v31 = vpop.eup %11614  ;;  %v9084_v32 = vadd.f32 -1.0, %v11613_v19  ;;  %v13150_v19 = vmov 0.0|0.0  }
 0xc0a   : > { %v4805_v34 = vsel %vm3694_vm9, %v4802_v27, %v4804_v30  ;;  %v4803_v35 = vsel %vm3694_vm9, %v4800_v11, %v4802_v27  ;;  %v9083_v37 = vadd.f32 -1.0, %v11615_v31  ;;  %v4836_v40 = vsel %vm3726_vm8, %v4833_v33, %v4835_v26  ;;  %10027 = vmatprep.subr.bf16.mxu0 %v13150_v19  ;;  %10063 = vmatprep.subr.bf16.mxu1 %v13150_v19 }
 0xc0b   : > { %4816 = vrot.lane.b32.xlu0 %v4805_v34, %s13149_s10  ;;  %4814 = vrot.lane.b32.xlu1 %v4803_v35, %s13149_s10  ;;  %v4770_v29 = vsel %vm4740_vm5, %v14555_v54, %v9084_v32  ;;  %v4834_v41 = vsel %vm3726_vm8, %v4831_v18, %v4833_v33  ;;  %v2468_v32 = vld [vmem:[%s16010_s26 + $0x20] sm:$0xff]  ;;  %v2469_v33 = vld [vmem:[%s16010_s26 + $0x28] sm:$0xff] }
 0xc0c   : > { %v4769_v38 = vsel %vm4739_vm7, %v14557_v5, %v9083_v37  ;;  %v4786_v36 = vrot.slane %v4770_v29, 7  ;;  %v10034_v34 = vpack.c.bf16 %v2469_v33, %v2468_v32  ;;  %v2470_v35 = vld [vmem:[%s16010_s26 + $0x30] sm:$0xff]  ;;  %v2471_v37 = vld [vmem:[%s16010_s26 + $0x38] sm:$0xff] }
 0xc0d   : > { %v4784_v39 = vrot.slane %v4769_v38, 7  ;;  %9723 = vmatprep.mubr.msk.f32.mxu0 %vm3758_vm13, %v4769_v38  ;;  %v2473_v38 = vld [vmem:[%s16010_s26 + $0x48] sm:$0xff] }
 0xc0e   : > { %9724 = vmatmul.mubr.msk.f32.gmra.mrb[16].mxu0 %vm3758_vm13, %v4770_v29  ;;  %v4796_v52 = vsel %vm3671_vm6, %v4786_v36, 0.0  ;;  %v2472_v29 = vld [vmem:[%s16010_s26 + $0x40] sm:$0xff] }
 0xc0f   : > { %4847 = vrot.lane.b32.xlu0 %v4836_v40, %s13148_s12  ;;  %4845 = vrot.lane.b32.xlu1 %v4834_v41, %s13148_s12  ;;  %v4785_v47 = vsel %vm3671_vm6, %v4782_v22, %v4784_v39  ;;  %v4787_v42 = vsel %vm3671_vm6, %v4784_v39, %v4786_v36  ;;  %v4810_v54 = vrot.slane %v4796_v52, 1  ;;  %v4841_v56 = vrot.slane %v4796_v52, 2  ;;  %v2474_v39 = vld [vmem:[%s16010_s26 + $0x50] sm:$0xff]  ;;  %v2475_v40 = vld [vmem:[%s16010_s26 + $0x58] sm:$0xff] }
 0xc10   : > { %v4806_v43 = vrot.slane %v4785_v47, 1  ;;  %v4808_v44 = vrot.slane %v4787_v42, 1  ;;  %v4837_v46 = vrot.slane %v4785_v47, 2  ;;  %v4839_v51 = vrot.slane %v4787_v42, 2 }
 0xc11   : > { %v10040_v36 = vpack.c.bf16 %v2473_v38, %v2472_v29  ;;  %v10043_v41 = vpack.c.bf16 %v2475_v40, %v2474_v39 }
 0xc12   : > { %v4809_v49 = vsel %vm3694_vm9, %v4806_v43, %v4808_v44  ;;  %v4807_v45 = vsel %vm3694_vm9, %v4804_v30, %v4806_v43  ;;  %v4840_v53 = vsel %vm3726_vm8, %v4837_v46, %v4839_v51  ;;  %v4838_v50 = vsel %vm3726_vm8, %v4835_v26, %v4837_v46  ;;  %v2467_v30 = vld [vmem:[%s16010_s26 + $0x18] sm:$0xff]  ;;  %v2480_v46 = vld [vmem:[%s16010_s26 + $0x80] sm:$0xff] }
 0xc13   : > { %4820 = vrot.lane.b32.xlu0 %v4809_v49, %s13149_s10  ;;  %4818 = vrot.lane.b32.xlu1 %v4807_v45, %s13149_s10  ;;  %v4811_v55 = vsel %vm3694_vm9, %v4808_v44, %v4810_v54  ;;  %v4842_v5 = vsel %vm3726_vm8, %v4839_v51, %v4841_v56  ;;  %v10037_v26 = vpack.c.bf16 %v2471_v37, %v2470_v35  ;;  %v2478_v44 = vld [vmem:[%s16010_s26 + $0x70] sm:$0xff]  ;;  %v2479_v49 = vld [vmem:[%s16010_s26 + $0x78] sm:$0xff] }
 0xc14   : > { %v10049_v45 = vpack.c.bf16 %v2479_v49, %v2478_v44  ;;  %v2481_v51 = vld [vmem:[%s16010_s26 + $0x88] sm:$0xff] }
 0xc15   : > { %v10052_v52 = vpack.c.bf16 %v2481_v51, %v2480_v46  ;;  %v2485_v56 = vld [vmem:[%s16010_s26 + $0xa8] sm:$0xff] }
 0xc17   : > { %4851 = vrot.lane.b32.xlu0 %v4840_v53, %s13148_s12  ;;  %4849 = vrot.lane.b32.xlu1 %v4838_v50, %s13148_s12  ;;  %v2482_v53 = vld [vmem:[%s16010_s26 + $0x90] sm:$0xff]  ;;  %v2483_v50 = vld [vmem:[%s16010_s26 + $0x98] sm:$0xff] }
 0xc18   : > { %v10055_v54 = vpack.c.bf16 %v2483_v50, %v2482_v53 }
 0xc1b   : > { %4822 = vrot.lane.b32.xlu1 %v4811_v55, %s13149_s10  ;;  %v2484_v55 = vld [vmem:[%s16010_s26 + $0xa0] sm:$0xff]  ;;  %s16017_s10 = sld [smem:[#allocation150_spill]] }
 0xc1f   : > { %4853 = vrot.lane.b32.xlu1 %v4842_v5, %s13148_s12  ;;  %v10058_v5 = vpack.c.bf16 %v2485_v56, %v2484_v55 }
 0xc75   : > { %v4813_v57 = vpop.permute.xlu0 %4812 }
 0xc76   : > { %v4861_v48 = vsel %vm3758_vm13, %v14568_v7, %v4813_v57  ;;  %v2486_v57 = vld [vmem:[%s16010_s26 + $0xb0] sm:$0xff] }
 0xc79   : > { %v4844_v0 = vpop.permute.xlu0 %4843 }
 0xc7a   : > { %v4867_v58 = vsel %vm3765_vm14, %v4861_v48, %v4844_v0  ;;  %v2487_v48 = vld [vmem:[%s16010_s26 + $0xb8] sm:$0xff] }
 0xc7b   : > { %9700 = vmatprep.mubr.msk.f32.mxu1 %vm3772_vm15, %v4867_v58  ;;  %v10061_v0 = vpack.c.bf16 %v2487_v48, %v2486_v57  ;;  %v9091_v58 = vld [vmem:[#allocation19] ss:$0 sm:$0xff] }
 0xc7d   : > { %v4815_v59 = vpop.permute.xlu1 %4814  ;;  %v4817_v60 = vpop.permute.xlu0 %4816 }
 0xc7e   : > { %v4862_v61 = vsel %vm3758_vm13, %v14571_v8, %v4815_v59  ;;  %v4863_v62 = vsel %vm3758_vm13, %v4781_v20, %v4817_v60  ;;  %v2465_v20 = vld [vmem:[%s16010_s26 + $0x8] sm:$0xff]  ;;  %v9092_v59 = vld [vmem:[#allocation17] ss:$0 sm:$0xff] }
 0xc7f   : > { %v10028_v27 = vpack.c.bf16 %v2465_v20, %v2464_v23 }
 0xc81   : > { %v4846_v2 = vpop.permute.xlu1 %4845  ;;  %v4848_v63 = vpop.permute.xlu0 %4847  ;;  %10029 = vmatpush1.bf16.msra.mxu0 %v10028_v27 }
 0xc82   : > { %v4868_v1 = vsel %vm3765_vm14, %v4862_v61, %v4846_v2  ;;  %v4869_v3 = vsel %vm3765_vm14, %v4863_v62, %v4848_v63  ;;  %10030 = vmatprep.subr.bf16.mxu0 %v13150_v19 }
 0xc83   : > { %9701 = vmatmul.mubr.msk.f32.vlgmr.msra.gmra.mrb[18].mxu1 %vm3772_vm15, %v4868_v1 }
 0xc84   : > { %9703 = vmatprep.mubr.msk.f32.mxu1 %vm3772_vm15, %v4869_v3 }
 0xc85   : > { %v4819_v4 = vpop.permute.xlu1 %4818  ;;  %v4821_v6 = vpop.permute.xlu0 %4820 }
 0xc86   : > { %v4864_v10 = vsel %vm3758_vm13, %v14589_v24, %v4819_v4  ;;  %v4865_v7 = vsel %vm3758_vm13, %v4785_v47, %v4821_v6  ;;  %v2466_v24 = vld [vmem:[%s16010_s26 + $0x10] sm:$0xff]  ;;  %v2476_v47 = vld [vmem:[%s16010_s26 + $0x60] sm:$0xff] }
 0xc87   : > { %v10031_v31 = vpack.c.bf16 %v2467_v30, %v2466_v24 }
 0xc89   : > { %v4850_v8 = vpop.permute.xlu1 %4849  ;;  %v4852_v15 = vpop.permute.xlu0 %4851  ;;  %10032 = vmatpush1.bf16.msra.mxu0 %v10031_v31 }
 0xc8a   : > { %v4870_v9 = vsel %vm3765_vm14, %v4864_v10, %v4850_v8  ;;  %v4871_v11 = vsel %vm3765_vm14, %v4865_v7, %v4852_v15  ;;  %10033 = vmatprep.subr.bf16.mxu0 %v13150_v19 }
 0xc8b   : > { %9704 = vmatmul.mubr.msk.f32.gmra.mrb[20].mxu1 %vm3772_vm15, %v4870_v9 }
 0xc8c   : > { %9706 = vmatprep.mubr.msk.f32.mxu1 %vm3772_vm15, %v4871_v11 }
 0xc8d   : > { %v4823_v12 = vpop.permute.xlu1 %4822  ;;  %10035 = vmatpush1.bf16.msra.mxu0 %v10034_v34 }
 0xc8e   : > { %v4866_v13 = vsel %vm3758_vm13, %v4787_v42, %v4823_v12  ;;  %10036 = vmatprep.subr.bf16.mxu0 %v13150_v19  ;;  %v2477_v42 = vld [vmem:[%s16010_s26 + $0x68] sm:$0xff] }
 0xc8f   : > { %v10046_v43 = vpack.c.bf16 %v2477_v42, %v2476_v47 }
 0xc91   : > { %v4854_v14 = vpop.permute.xlu1 %4853  ;;  %10038 = vmatpush1.bf16.msra.mxu0 %v10037_v26 }
 0xc92   : > { %v4872_v16 = vsel %vm3765_vm14, %v4866_v13, %v4854_v14  ;;  %10039 = vmatprep.subr.bf16.mxu0 %v13150_v19 }
 0xc93   : > { %9707 = vmatmul.mubr.msk.f32.gmra.mrb[22].mxu1 %vm3772_vm15, %v4872_v16 }
 0xc95   : > { %10041 = vmatpush1.bf16.msra.mxu0 %v10040_v36 }
 0xc96   : > { %10042 = vmatprep.subr.bf16.mxu0 %v13150_v19 }
 0xc99   : > { %10044 = vmatpush1.bf16.msra.mxu0 %v10043_v41 }
 0xc9a   : > { %10045 = vmatprep.subr.bf16.mxu0 %v13150_v19 }
 0xc9d   : > { %10047 = vmatpush1.bf16.msra.mxu0 %v10046_v43 }
 0xc9e   : > { %10048 = vmatprep.subr.bf16.mxu0 %v13150_v19 }
 0xca1   : > { %10050 = vmatpush1.bf16.msra.mxu0 %v10049_v45 }
 0xca2   : > { %10051 = vmatprep.subr.bf16.mxu0 %v13150_v19 }
 0xca5   : > { %10053 = vmatpush1.bf16.msra.mxu0 %v10052_v52 }
 0xca6   : > { %10054 = vmatprep.subr.bf16.mxu0 %v13150_v19 }
 0xca9   : > { %10056 = vmatpush1.bf16.msra.mxu0 %v10055_v54 }
 0xcaa   : > { %10057 = vmatprep.subr.bf16.mxu0 %v13150_v19 }
 0xcad   : > { %10059 = vmatpush1.bf16.msra.mxu0 %v10058_v5 }
 0xcae   : > { %10060 = vmatprep.subr.bf16.mxu0 %v13150_v19 }
 0xcb1   : > { %10062 = vmatpush1.bf16.msra.mxu0 %v10061_v0 }
 0xcb2   : > { %10099 = vmatprep.subr.bf16.mxu0 %v13150_v19 }
 0xcd1   : > { %v14643_v17 = vpop.f32.mrb[12].mxu0 }
 0xcd2   : > { %v14645_v18 = vpop.f32.mrb[13].mxu0 }
 0xcd9   : > { %v14647_v21 = vpop.f32.mrb[14].mxu0 }
 0xcda   : > { %v14649_v25 = vpop.f32.mrb[15].mxu0 }
 0xce1   : > { %v14651_v22 = vpop.f32.mrb[16].mxu0 }
 0xce2   : > { %v14653_v28 = vpop.f32.mrb[17].mxu0 }
 0xd56   : > { %v9702_v60 = vpop.f32.mrb[18].mxu1 }
 0xd57   : > { %v4993_v61 = vmul.f32 %v9702_v60, %v9091_v58  ;;  %v4957_v62 = vpop.f32.mrb[19].mxu1 }
 0xd58   : > { %v4992_v2 = vmul.f32 %v9091_v58, %v4957_v62 }
 0xd59   : > { %v5005_v63 = vadd.f32 %v9092_v59, %v4993_v61 }
 0xd5a   : > { %v5004_v1 = vadd.f32 %v9092_v59, %v4992_v2 }
 0xd5b   : > { %v5017_v3 = vmin.f32 %v5005_v63, 0.0  ;;  %vm5011_vm13 = vcmp.gt.f32.partialorder %v5005_v63, 0.0 }
 0xd5c   : > { %v5016_v4 = vmin.f32 %v5004_v1, 0.0  ;;  %vm5010_vm15 = vcmp.gt.f32.partialorder %v5004_v1, 0.0 }
 0xd5d   : > { %v5024_v6 = vmul.f32 1.442695, %v5017_v3 }
 0xd5e   : > { %v5022_v10 = vmul.f32 1.442695, %v5016_v4  ;;  %v9705_v7 = vpop.f32.mrb[20].mxu1 }
 0xd5f   : > { %11616 = vpow2.f32 %v5024_v6  ;;  %v4995_v8 = vmul.f32 %v9705_v7, %v9091_v58  ;;  %v4967_v15 = vpop.f32.mrb[21].mxu1 }
 0xd60   : > { %11618 = vpow2.f32 %v5022_v10  ;;  %v4994_v9 = vmul.f32 %v9091_v58, %v4967_v15 }
 0xd61   : > { %v5007_v11 = vadd.f32 %v9092_v59, %v4995_v8 }
 0xd62   : > { %v5006_v12 = vadd.f32 %v9092_v59, %v4994_v9 }
 0xd63   : > { %v5019_v13 = vmin.f32 %v5007_v11, 0.0  ;;  %vm5013_vm10 = vcmp.gt.f32.partialorder %v5007_v11, 0.0 }
 0xd64   : > { %v5018_v14 = vmin.f32 %v5006_v12, 0.0  ;;  %vm5012_vm11 = vcmp.gt.f32.partialorder %v5006_v12, 0.0 }
 0xd65   : > { %v5028_v16 = vmul.f32 1.442695, %v5019_v13 }
 0xd66   : > { %v5026_v23 = vmul.f32 1.442695, %v5018_v14  ;;  %v9708_v20 = vpop.f32.mrb[22].mxu1 }
 0xd67   : > { %11620 = vpow2.f32 %v5028_v16  ;;  %v4997_v24 = vmul.f32 %v9708_v20, %v9091_v58  ;;  %v4977_v27 = vpop.f32.mrb[23].mxu1 }
 0xd68   : > { %11622 = vpow2.f32 %v5026_v23  ;;  %v4996_v30 = vmul.f32 %v9091_v58, %v4977_v27 }
 0xd69   : > { %v11617_v31 = vpop.eup %11616  ;;  %v5009_v32 = vadd.f32 %v9092_v59, %v4997_v24 }
 0xd6a   : > { %v11619_v33 = vpop.eup %11618  ;;  %v9094_v34 = vadd.f32 -1.0, %v11617_v31  ;;  %v5008_v35 = vadd.f32 %v9092_v59, %v4996_v30 }
 0xd6b   : > { %v9093_v37 = vadd.f32 -1.0, %v11619_v33  ;;  %v5021_v26 = vmin.f32 %v5009_v32, 0.0  ;;  %vm5015_vm12 = vcmp.gt.f32.partialorder %v5009_v32, 0.0 }
 0xd6c   : > { %v5041_v29 = vsel %vm5011_vm13, %v5005_v63, %v9094_v34  ;;  %v5020_v38 = vmin.f32 %v5008_v35, 0.0  ;;  %vm5014_vm1 = vcmp.gt.f32.partialorder %v5008_v35, 0.0 }
 0xd6d   : > { %v5053_v36 = vrot.slane %v5041_v29, 7  ;;  %v5040_v39 = vsel %vm5010_vm15, %v5004_v1, %v9093_v37  ;;  %v5032_v40 = vmul.f32 1.442695, %v5021_v26 }
 0xd6e   : > { %v5052_v41 = vrot.slane %v5040_v39, 7  ;;  %v5030_v47 = vmul.f32 1.442695, %v5020_v38 }
 0xd6f   : > { %11624 = vpow2.f32 %v5032_v40 }
 0xd70   : > { %v5070_v42 = vsel %vm3671_vm6, 0.0, %v5052_v41  ;;  %11626 = vpow2.f32 %v5030_v47  ;;  %v5054_v43 = vsel %vm3671_vm6, %v5052_v41, %v5053_v36 }
 0xd71   : > { %v11621_v44 = vpop.eup %11620  ;;  %v5105_v49 = vrot.slane %v5070_v42, 2  ;;  %v5106_v45 = vrot.slane %v5054_v43, 2  ;;  %v5074_v46 = vrot.slane %v5070_v42, 1  ;;  %v5075_v51 = vrot.slane %v5054_v43, 1 }
 0xd72   : > { %v11623_v52 = vpop.eup %11622  ;;  %v9096_v53 = vadd.f32 -1.0, %v11621_v44 }
 0xd73   : > { %v9095_v50 = vadd.f32 -1.0, %v11623_v52  ;;  %v5107_v54 = vsel %vm3726_vm8, %v5105_v49, %v5106_v45  ;;  %v5076_v55 = vsel %vm3694_vm9, %v5074_v46, %v5075_v51  ;;  %v2497_v46 = vld [vmem:[%s16011_s22 + $0x8] sm:$0xff] }
 0xd74   : > { %v5043_v56 = vsel %vm5013_vm10, %v5007_v11, %v9096_v53  ;;  %9107 = vmatprep.mubr.msk.f32.mxu0 %vm3765_vm14, %v5107_v54  ;;  %5087 = vrot.lane.b32.xlu0 %v5076_v55, %s13148_s12  ;;  %v2499_v53 = vld [vmem:[%s16011_s22 + $0x18] sm:$0xff]  ;;  %v2500_v54 = vld [vmem:[%s16011_s22 + $0x20] sm:$0xff]  ;;  %v2501_v55 = vld [vmem:[%s16011_s22 + $0x28] sm:$0xff] }
 0xd75   : > { %v5057_v5 = vrot.slane %v5043_v56, 7  ;;  %v5042_v57 = vsel %vm5012_vm11, %v5006_v12, %v9095_v50  ;;  %v10070_v56 = vpack.c.bf16 %v2501_v55, %v2500_v54 }
 0xd76   : > { %v5055_v48 = vrot.slane %v5042_v57, 7  ;;  %v2503_v57 = vld [vmem:[%s16011_s22 + $0x38] sm:$0xff] }
 0xd78   : > { %v5056_v0 = vsel %vm3671_vm6, %v5053_v36, %v5055_v48  ;;  %v5058_v58 = vsel %vm3671_vm6, %v5055_v48, %v5057_v5 }
 0xd79   : > { %v11625_v59 = vpop.eup %11624  ;;  %v5077_v60 = vrot.slane %v5056_v0, 1  ;;  %v5079_v61 = vrot.slane %v5058_v58, 1  ;;  %v5108_v20 = vrot.slane %v5056_v0, 2  ;;  %v5110_v31 = vrot.slane %v5058_v58, 2 }
 0xd7a   : > { %v11627_v62 = vpop.eup %11626  ;;  %v9098_v2 = vadd.f32 -1.0, %v11625_v59 }
 0xd7b   : > { %v9097_v63 = vadd.f32 -1.0, %v11627_v62  ;;  %v5080_v1 = vsel %vm3694_vm9, %v5077_v60, %v5079_v61  ;;  %v5078_v3 = vsel %vm3694_vm9, %v5075_v51, %v5077_v60  ;;  %v5109_v30 = vsel %vm3726_vm8, %v5106_v45, %v5108_v20  ;;  %v2496_v45 = vld [vmem:[%s16011_s22] sm:$0xff]  ;;  %v2498_v51 = vld [vmem:[%s16011_s22 + $0x10] sm:$0xff] }
 0xd7c   : > { %v5045_v4 = vsel %vm5015_vm12, %v5009_v32, %v9098_v2  ;;  %5091 = vrot.lane.b32.xlu0 %v5080_v1, %s13148_s12  ;;  %5089 = vrot.lane.b32.xlu1 %v5078_v3, %s13148_s12  ;;  %v10064_v52 = vpack.c.bf16 %v2497_v46, %v2496_v45  ;;  %v10067_v50 = vpack.c.bf16 %v2499_v53, %v2498_v51  ;;  %v2506_v60 = vld [vmem:[%s16011_s22 + $0x50] sm:$0xff]  ;;  %v2508_v2 = vld [vmem:[%s16011_s22 + $0x60] sm:$0xff] }
 0xd7d   : > { %v5061_v6 = vrot.slane %v5045_v4, 7  ;;  %v5044_v10 = vsel %vm5014_vm1, %v5008_v35, %v9097_v63  ;;  %v5111_v35 = vsel %vm3726_vm8, %v5108_v20, %v5110_v31  ;;  %v2509_v63 = vld [vmem:[%s16011_s22 + $0x68] sm:$0xff]  ;;  %v2510_v3 = vld [vmem:[%s16011_s22 + $0x70] sm:$0xff]  ;;  %v2511_v4 = vld [vmem:[%s16011_s22 + $0x78] sm:$0xff] }
 0xd7e   : > { %v5059_v7 = vrot.slane %v5044_v10, 7  ;;  %10065 = vmatpush1.bf16.msra.mxu1 %v10064_v52  ;;  %v10082_v1 = vpack.c.bf16 %v2509_v63, %v2508_v2  ;;  %v2512_v10 = vld [vmem:[%s16011_s22 + $0x80] sm:$0xff] }
 0xd7f   : > { %v5071_v9 = vsel %vm3671_vm6, %v5061_v6, 0.0  ;;  %10066 = vmatprep.subr.bf16.mxu1 %v13150_v19 }
 0xd80   : > { %v5060_v8 = vsel %vm3671_vm6, %v5057_v5, %v5059_v7  ;;  %v5062_v15 = vsel %vm3671_vm6, %v5059_v7, %v5061_v6  ;;  %v5085_v16 = vrot.slane %v5071_v9, 1  ;;  %v5116_v47 = vrot.slane %v5071_v9, 2  ;;  %v2502_v5 = vld [vmem:[%s16011_s22 + $0x30] sm:$0xff]  ;;  %v2513_v7 = vld [vmem:[%s16011_s22 + $0x88] sm:$0xff]  ;;  %v2515_v9 = vld [vmem:[%s16011_s22 + $0x98] sm:$0xff] }
 0xd81   : > { %v5081_v11 = vrot.slane %v5060_v8, 1  ;;  %v5083_v12 = vrot.slane %v5062_v15, 1  ;;  %v5112_v37 = vrot.slane %v5060_v8, 2  ;;  %v5114_v38 = vrot.slane %v5062_v15, 2 }
 0xd82   : > { %10068 = vmatpush1.bf16.msra.mxu1 %v10067_v50  ;;  %v10073_v48 = vpack.c.bf16 %v2503_v57, %v2502_v5  ;;  %v10085_v6 = vpack.c.bf16 %v2511_v4, %v2510_v3 }
 0xd83   : > { %v5084_v13 = vsel %vm3694_vm9, %v5081_v11, %v5083_v12  ;;  %v5082_v14 = vsel %vm3694_vm9, %v5079_v61, %v5081_v11  ;;  %v5086_v23 = vsel %vm3694_vm9, %v5083_v12, %v5085_v16  ;;  %v5113_v29 = vsel %vm3726_vm8, %v5110_v31, %v5112_v37  ;;  %10069 = vmatprep.subr.bf16.mxu1 %v13150_v19  ;;  %v2507_v61 = vld [vmem:[%s16011_s22 + $0x58] sm:$0xff]  ;;  %v2516_v12 = vld [vmem:[%s16011_s22 + $0xa0] sm:$0xff]  ;;  %v2518_v16 = vld [vmem:[%s16011_s22 + $0xb0] sm:$0xff] }
 0xd84   : > { %5095 = vrot.lane.b32.xlu0 %v5084_v13, %s13148_s12  ;;  %5093 = vrot.lane.b32.xlu1 %v5082_v14, %s13148_s12  ;;  %v5115_v41 = vsel %vm3726_vm8, %v5112_v37, %v5114_v38  ;;  %v5117_v44 = vsel %vm3726_vm8, %v5114_v38, %v5116_v47  ;;  %v10079_v62 = vpack.c.bf16 %v2507_v61, %v2506_v60  ;;  %v2517_v13 = vld [vmem:[%s16011_s22 + $0xa8] sm:$0xff]  ;;  %v9114_v37 = vld [vmem:[#allocation25] ss:$0 sm:$0xff] }
 0xd85   : > { %v10094_v14 = vpack.c.bf16 %v2517_v13, %v2516_v12 }
 0xd86   : > { %10071 = vmatpush1.bf16.msra.mxu1 %v10070_v56 }
 0xd87   : > { %10072 = vmatprep.subr.bf16.mxu1 %v13150_v19 }
 0xd88   : > { %5097 = vrot.lane.b32.xlu1 %v5086_v23, %s13148_s12  ;;  %v2519_v23 = vld [vmem:[%s16011_s22 + $0xb8] sm:$0xff] }
 0xd89   : > { %v10097_v20 = vpack.c.bf16 %v2519_v23, %v2518_v16 }
 0xd8a   : > { %10074 = vmatpush1.bf16.msra.mxu1 %v10073_v48 }
 0xd8b   : > { %10075 = vmatprep.subr.bf16.mxu1 %v13150_v19 }
 0xde6   : > { %v5088_v24 = vpop.permute.xlu0 %5087 }
 0xde7   : > { %v5118_v27 = vsel %vm3765_vm14, %v5070_v42, %v5088_v24  ;;  %v9105_v24 = vld [vmem:[#allocation22] ss:$0 sm:$0xff] }
 0xde8   : > { %5332 = vmatmul.mubr.f32.vlgmr.msra.gmra.mrb[18].mxu0 %v5118_v27  ;;  %v5237_v27 = vmul.f32 %v9105_v24, %v14645_v18  ;;  %v5240_v18 = vmul.f32 %v14647_v21, %v9105_v24  ;;  %v5242_v48 = vmul.f32 %v14651_v22, %v9105_v24 }
 0xde9   : > { %9108 = vmatprep.mubr.msk.f32.mxu0 %vm3765_vm14, %v5109_v30  ;;  %v9106_v30 = vld [vmem:[#allocation20] ss:$0 sm:$0xff] }
 0xdea   : > { %v5249_v31 = vadd.f32 %v9106_v30, %v5237_v27  ;;  %v5254_v4 = vadd.f32 %v9106_v30, %v5242_v48 }
 0xdee   : > { %v5090_v32 = vpop.permute.xlu1 %5089  ;;  %v5092_v34 = vpop.permute.xlu0 %5091 }
 0xdef   : > { %v5119_v33 = vsel %vm3765_vm14, %v5054_v43, %v5090_v32  ;;  %v5120_v26 = vsel %vm3765_vm14, %v5056_v0, %v5092_v34  ;;  %v2504_v0 = vld [vmem:[%s16011_s22 + $0x40] sm:$0xff]  ;;  %v9113_v32 = vld [vmem:[#allocation26] ss:$0 sm:$0xff] }
 0xdf0   : > { %5337 = vmatmul.mubr.f32.gmra.mrb[20].mxu0 %v5119_v33 }
 0xdf1   : > { %9109 = vmatprep.mubr.msk.f32.mxu0 %vm3765_vm14, %v5111_v35 }
 0xdf4   : > { %5342 = vmatmul.mubr.f32.gmra.mrb[22].mxu0 %v5120_v26  ;;  %v5238_v26 = vmul.f32 %v14643_v17, %v9105_v24  ;;  %v5241_v17 = vmul.f32 %v9105_v24, %v14653_v28 }
 0xdf5   : > { %9110 = vmatprep.mubr.msk.f32.mxu0 %vm3765_vm14, %v5113_v29 }
 0xdf6   : > { %v5094_v36 = vpop.permute.xlu1 %5093  ;;  %v5096_v40 = vpop.permute.xlu0 %5095 }
 0xdf7   : > { %v5121_v39 = vsel %vm3765_vm14, %v5058_v58, %v5094_v36  ;;  %v5122_v42 = vsel %vm3765_vm14, %v5060_v8, %v5096_v40  ;;  %v2505_v58 = vld [vmem:[%s16011_s22 + $0x48] sm:$0xff]  ;;  %v10088_v8 = vpack.c.bf16 %v2513_v7, %v2512_v10  ;;  %v5239_v36 = vmul.f32 %v9105_v24, %v14649_v25 }
 0xdf8   : > { %5347 = vmatmul.mubr.f32.gmra.mrb[24].mxu0 %v5121_v39  ;;  %v10076_v59 = vpack.c.bf16 %v2505_v58, %v2504_v0  ;;  %v5250_v40 = vadd.f32 %v9106_v30, %v5238_v26  ;;  %v5252_v25 = vadd.f32 %v9106_v30, %v5240_v18  ;;  %v5253_v58 = vadd.f32 %v9106_v30, %v5241_v17 }
 0xdf9   : > { %9111 = vmatprep.mubr.msk.f32.mxu0 %vm3765_vm14, %v5115_v41 }
 0xdfa   : > { %v5098_v43 = vpop.permute.xlu1 %5097  ;;  %10077 = vmatpush1.bf16.msra.mxu1 %v10076_v59 }
 0xdfb   : > { %v5123_v49 = vsel %vm3765_vm14, %v5062_v15, %v5098_v43  ;;  %10078 = vmatprep.subr.bf16.mxu1 %v13150_v19  ;;  %v2514_v15 = vld [vmem:[%s16011_s22 + $0x90] sm:$0xff] }
 0xdfc   : > { %5352 = vmatmul.mubr.f32.gmra.mrb[26].mxu0 %v5122_v42  ;;  %v10091_v11 = vpack.c.bf16 %v2515_v9, %v2514_v15 }
 0xdfd   : > { %9112 = vmatprep.mubr.msk.f32.mxu0 %vm3765_vm14, %v5117_v44 }
 0xdfe   : > { %10080 = vmatpush1.bf16.msra.mxu1 %v10079_v62 }
 0xdff   : > { %10081 = vmatprep.subr.bf16.mxu1 %v13150_v19 }
 0xe00   : > { %5357 = vmatmul.mubr.f32.gmra.mrb[28].mxu0 %v5123_v49  ;;  %v5251_v49 = vadd.f32 %v9106_v30, %v5239_v36 }
 0xe02   : > { %10083 = vmatpush1.bf16.msra.mxu1 %v10082_v1 }
 0xe03   : > { %10084 = vmatprep.subr.bf16.mxu1 %v13150_v19 }
 0xe06   : > { %10086 = vmatpush1.bf16.msra.mxu1 %v10085_v6 }
 0xe07   : > { %10087 = vmatprep.subr.bf16.mxu1 %v13150_v19 }
 0xe0a   : > { %10089 = vmatpush1.bf16.msra.mxu1 %v10088_v8 }
 0xe0b   : > { %10090 = vmatprep.subr.bf16.mxu1 %v13150_v19 }
 0xe0e   : > { %10092 = vmatpush1.bf16.msra.mxu1 %v10091_v11 }
 0xe0f   : > { %10093 = vmatprep.subr.bf16.mxu1 %v13150_v19 }
 0xe12   : > { %10095 = vmatpush1.bf16.msra.mxu1 %v10094_v14 }
 0xe13   : > { %10096 = vmatprep.subr.bf16.mxu1 %v13150_v19 }
 0xe16   : > { %10098 = vmatpush1.bf16.msra.mxu1 %v10097_v20 }
 0xe17   : > { %10147 = vmatprep.subr.bf16.mxu1 %v13150_v19 }
 0xebb   : > { %v5333_v33 = vpop.f32.mrb[18].mxu0 }
 0xebc   : > { %v5334_v34 = vadd.f32 %v5333_v33, %v5249_v31  ;;  %v5335_v35 = vpop.f32.mrb[19].mxu0 }
 0xebe   : > { %v5368_v29 = vmul.f32 %v9113_v32, %v5334_v34 }
 0xec0   : > { %v5380_v38 = vadd.f32 %v9114_v37, %v5368_v29 }
 0xec2   : > { %v5392_v39 = vmin.f32 %v5380_v38, 0.0  ;;  %vm5386_vm2 = vcmp.gt.f32.partialorder %v5380_v38, 0.0 }
 0xec3   : > { %v5338_v41 = vpop.f32.mrb[20].mxu0 }
 0xec4   : > { %v5398_v47 = vmul.f32 1.442695, %v5392_v39  ;;  %v5339_v42 = vadd.f32 %v5338_v41, %v5250_v40  ;;  %v5340_v43 = vpop.f32.mrb[21].mxu0 }
 0xec6   : > { %11628 = vpow2.f32 %v5398_v47  ;;  %v5369_v44 = vmul.f32 %v9113_v32, %v5339_v42 }
 0xec7   : > { %v5343_v45 = vpop.f32.mrb[22].mxu0 }
 0xec8   : > { %v5381_v46 = vadd.f32 %v9114_v37, %v5369_v44  ;;  %v5344_v51 = vadd.f32 %v5343_v45, %v5251_v49  ;;  %v5345_v52 = vpop.f32.mrb[23].mxu0 }
 0xeca   : > { %v5393_v53 = vmin.f32 %v5381_v46, 0.0  ;;  %v5370_v50 = vmul.f32 %v9113_v32, %v5344_v51  ;;  %vm5387_vm3 = vcmp.gt.f32.partialorder %v5381_v46, 0.0 }
 0xecb   : > { %v5348_v54 = vpop.f32.mrb[24].mxu0 }
 0xecc   : > { %v5400_v55 = vmul.f32 1.442695, %v5393_v53  ;;  %v5382_v56 = vadd.f32 %v9114_v37, %v5370_v50  ;;  %v5349_v5 = vadd.f32 %v5348_v54, %v5252_v25  ;;  %v5350_v57 = vpop.f32.mrb[25].mxu0 }
 0xece   : > { %11630 = vpow2.f32 %v5400_v55  ;;  %v5394_v21 = vmin.f32 %v5382_v56, 0.0  ;;  %v5371_v0 = vmul.f32 %v9113_v32, %v5349_v5  ;;  %vm5388_vm4 = vcmp.gt.f32.partialorder %v5382_v56, 0.0 }
 0xecf   : > { %v5353_v59 = vpop.f32.mrb[26].mxu0 }
 0xed0   : > { %v11629_v60 = vpop.eup %11628  ;;  %v5402_v61 = vmul.f32 1.442695, %v5394_v21  ;;  %v5383_v62 = vadd.f32 %v9114_v37, %v5371_v0  ;;  %v5354_v2 = vadd.f32 %v5353_v59, %v5253_v58  ;;  %v5355_v28 = vpop.f32.mrb[27].mxu0 }
 0xed1   : > { %v9115_v63 = vadd.f32 -1.0, %v11629_v60 }
 0xed2   : > { %11632 = vpow2.f32 %v5402_v61  ;;  %v5395_v1 = vmin.f32 %v5383_v62, 0.0  ;;  %v5372_v3 = vmul.f32 %v9113_v32, %v5354_v2  ;;  %vm5389_vm5 = vcmp.gt.f32.partialorder %v5383_v62, 0.0 }
 0xed3   : > { %v5358_v6 = vpop.f32.mrb[28].mxu0  ;;  %v14772_v10 = vsel %vm5386_vm2, %v5380_v38, %v9115_v63 }
 0xed4   : > { %v5404_v22 = vmul.f32 1.442695, %v5395_v1  ;;  %v5384_v7 = vadd.f32 %v9114_v37, %v5372_v3  ;;  %v5359_v8 = vadd.f32 %v5358_v6, %v5254_v4  ;;  %v5360_v15 = vpop.f32.mrb[29].mxu0  ;;  %v5428_v12 = vrot.slane %v14772_v10, 7 }
 0xed6   : > { %11634 = vpow2.f32 %v5404_v22  ;;  %v5396_v9 = vmin.f32 %v5384_v7, 0.0  ;;  %v5373_v11 = vmul.f32 %v9113_v32, %v5359_v8  ;;  %v5446_v27 = vsel %vm3671_vm6, 0.0, %v5428_v12 }
 0xed7   : > { %v5481_v35 = vrot.slane %v5446_v27, 2  ;;  %v5450_v29 = vrot.slane %v5446_v27, 1  ;;  %vm5390_vm7 = vcmp.gt.f32.partialorder %v5384_v7, 0.0 }
 0xed8   : > { %v11631_v13 = vpop.eup %11630  ;;  %v5406_v14 = vmul.f32 1.442695, %v5396_v9  ;;  %v5385_v16 = vadd.f32 %v9114_v37, %v5373_v11 }
 0xed9   : > { %v9116_v23 = vadd.f32 -1.0, %v11631_v13 }
 0xeda   : > { %11636 = vpow2.f32 %v5406_v14  ;;  %v5397_v20 = vmin.f32 %v5385_v16, 0.0  ;;  %vm5391_vm13 = vcmp.gt.f32.partialorder %v5385_v16, 0.0 }
 0xedb   : > { %v14775_v24 = vsel %vm5387_vm3, %v5381_v46, %v9116_v23  ;;  %vm5943_vm3 = vcmask 392192  }
 0xedc   : > { %v11633_v30 = vpop.eup %11632  ;;  %v5429_v31 = vrot.slane %v14775_v24, 7  ;;  %v5408_v33 = vmul.f32 1.442695, %v5397_v20 }
 0xedd   : > { %v9117_v34 = vadd.f32 -1.0, %v11633_v30 }
 0xede   : > { %11638 = vpow2.f32 %v5408_v33  ;;  %v5430_v32 = vsel %vm3671_vm6, %v5428_v12, %v5429_v31  ;;  %v2521_v33 = vld [vmem:[%s16012_s6 + $0x8] sm:$0xff] }
 0xedf   : > { %v14780_v26 = vsel %vm5388_vm4, %v5382_v56, %v9117_v34  ;;  %v5482_v37 = vrot.slane %v5430_v32, 2  ;;  %v5451_v38 = vrot.slane %v5430_v32, 1  ;;  %v2522_v34 = vld [vmem:[%s16012_s6 + $0x10] sm:$0xff] }
 0xee0   : > { %v11635_v36 = vpop.eup %11634  ;;  %v5431_v39 = vrot.slane %v14780_v26, 7 }
 0xee1   : > { %v9118_v40 = vadd.f32 -1.0, %v11635_v36  ;;  %v5483_v41 = vsel %vm3726_vm8, %v5481_v35, %v5482_v37  ;;  %v5452_v47 = vsel %vm3694_vm9, %v5450_v29, %v5451_v38  ;;  %v2523_v35 = vld [vmem:[%s16012_s6 + $0x18] sm:$0xff]  ;;  %v2524_v29 = vld [vmem:[%s16012_s6 + $0x20] sm:$0xff] }
 0xee2   : > { %9121 = vmatprep.mubr.msk.f32.mxu1 %vm3765_vm14, %v5483_v41  ;;  %5463 = vrot.lane.b32.xlu0 %v5452_v47, %s13148_s12  ;;  %v5432_v42 = vsel %vm3671_vm6, %v5429_v31, %v5431_v39  ;;  %v2520_v31 = vld [vmem:[%s16012_s6] sm:$0xff] }
 0xee3   : > { %v14788_v43 = vsel %vm5389_vm5, %v5383_v62, %v9118_v40  ;;  %v5453_v18 = vrot.slane %v5432_v42, 1  ;;  %v5484_v62 = vrot.slane %v5432_v42, 2  ;;  %v2527_v40 = vld [vmem:[%s16012_s6 + $0x38] sm:$0xff]  ;;  %v2528_v47 = vld [vmem:[%s16012_s6 + $0x40] sm:$0xff] }
 0xee4   : > { %v11637_v44 = vpop.eup %11636  ;;  %v5433_v49 = vrot.slane %v14788_v43, 7 }
 0xee5   : > { %v9119_v45 = vadd.f32 -1.0, %v11637_v44  ;;  %v5454_v46 = vsel %vm3694_vm9, %v5451_v38, %v5453_v18  ;;  %v5485_v63 = vsel %vm3726_vm8, %v5482_v37, %v5484_v62  ;;  %v10103_v37 = vpack.c.bf16 %v2523_v35, %v2522_v34  ;;  %v2525_v38 = vld [vmem:[%s16012_s6 + $0x28] sm:$0xff]  ;;  %v2530_v44 = vld [vmem:[%s16012_s6 + $0x50] sm:$0xff] }
 0xee6   : > { %5465 = vrot.lane.b32.xlu1 %v5454_v46, %s13148_s12  ;;  %v5434_v51 = vsel %vm3671_vm6, %v5431_v39, %v5433_v49  ;;  %v10106_v36 = vpack.c.bf16 %v2525_v38, %v2524_v29  ;;  %v2526_v39 = vld [vmem:[%s16012_s6 + $0x30] sm:$0xff]  ;;  %v2532_v46 = vld [vmem:[%s16012_s6 + $0x60] sm:$0xff] }
 0xee7   : > { %v14794_v52 = vsel %vm5390_vm7, %v5384_v7, %v9119_v45  ;;  %v5455_v17 = vrot.slane %v5434_v51, 1  ;;  %v5486_v1 = vrot.slane %v5434_v51, 2  ;;  %v10109_v41 = vpack.c.bf16 %v2527_v40, %v2526_v39 }
 0xee8   : > { %v11639_v53 = vpop.eup %11638  ;;  %v5435_v50 = vrot.slane %v14794_v52, 7 }
 0xee9   : > { %v9120_v25 = vadd.f32 -1.0, %v11639_v53  ;;  %v5456_v54 = vsel %vm3694_vm9, %v5453_v18, %v5455_v17  ;;  %v5487_v6 = vsel %vm3726_vm8, %v5484_v62, %v5486_v1  ;;  %v2534_v53 = vld [vmem:[%s16012_s6 + $0x70] sm:$0xff] }
 0xeea   : > { %5467 = vrot.lane.b32.xlu0 %v5456_v54, %s13148_s12  ;;  %v5436_v55 = vsel %vm3671_vm6, %v5433_v49, %v5435_v50  ;;  %v2531_v49 = vld [vmem:[%s16012_s6 + $0x58] sm:$0xff]  ;;  %v2536_v54 = vld [vmem:[%s16012_s6 + $0x80] sm:$0xff] }
 0xeeb   : > { %v14800_v56 = vsel %vm5391_vm13, %v5385_v16, %v9120_v25  ;;  %v5457_v5 = vrot.slane %v5436_v55, 1  ;;  %v5488_v22 = vrot.slane %v5436_v55, 2  ;;  %v10115_v45 = vpack.c.bf16 %v2531_v49, %v2530_v44 }
 0xeec   : > { %v5437_v57 = vrot.slane %v14800_v56, 7 }
 0xeed   : > { %v5458_v48 = vsel %vm3694_vm9, %v5455_v17, %v5457_v5  ;;  %v5489_v15 = vsel %vm3726_vm8, %v5486_v1, %v5488_v22 }
 0xeee   : > { %5469 = vrot.lane.b32.xlu1 %v5458_v48, %s13148_s12  ;;  %v5438_v21 = vsel %vm3671_vm6, %v5435_v50, %v5437_v57  ;;  %v5447_v0 = vsel %vm3671_vm6, %v5437_v57, 0.0  ;;  %v2535_v50 = vld [vmem:[%s16012_s6 + $0x78] sm:$0xff]  ;;  %v2538_v57 = vld [vmem:[%s16012_s6 + $0x90] sm:$0xff] }
 0xeef   : > { %v5459_v58 = vrot.slane %v5438_v21, 1  ;;  %v5461_v59 = vrot.slane %v5447_v0, 1  ;;  %v5490_v9 = vrot.slane %v5438_v21, 2  ;;  %v5492_v14 = vrot.slane %v5447_v0, 2  ;;  %v2539_v48 = vld [vmem:[%s16012_s6 + $0x98] sm:$0xff]  ;;  %v2540_v0 = vld [vmem:[%s16012_s6 + $0xa0] sm:$0xff] }
 0xef0   : > { %v10121_v25 = vpack.c.bf16 %v2535_v50, %v2534_v53 }
 0xef1   : > { %v5460_v60 = vsel %vm3694_vm9, %v5457_v5, %v5459_v58  ;;  %v5462_v61 = vsel %vm3694_vm9, %v5459_v58, %v5461_v59  ;;  %v5491_v13 = vsel %vm3726_vm8, %v5488_v22, %v5490_v9  ;;  %v2541_v58 = vld [vmem:[%s16012_s6 + $0xa8] sm:$0xff] }
 0xef2   : > { %5471 = vrot.lane.b32.xlu0 %v5460_v60, %s13148_s12  ;;  %5473 = vrot.lane.b32.xlu1 %v5462_v61, %s13148_s12  ;;  %v10130_v59 = vpack.c.bf16 %v2541_v58, %v2540_v0  ;;  %v2542_v60 = vld [vmem:[%s16012_s6 + $0xb0] sm:$0xff]  ;;  %v2543_v61 = vld [vmem:[%s16012_s6 + $0xb8] sm:$0xff] }
 0xef3   : > { %v10133_v62 = vpack.c.bf16 %v2543_v61, %v2542_v60 }
 0xf54   : > { %v5464_v2 = vpop.permute.xlu0 %5463 }
 0xf55   : > { %v5494_v28 = vsel %vm3765_vm14, %v5446_v27, %v5464_v2  ;;  %v5493_v27 = vsel %vm3726_vm8, %v5490_v9, %v5492_v14  ;;  %v9127_v2 = vld [vmem:[#allocation29] ss:$0 sm:$0xff] }
 0xf56   : > { %5577 = vmatmul.mubr.f32.vlgmr.msra.gmra.mrb[24].mxu1 %v5494_v28  ;;  %v9128_v28 = vld [vmem:[#allocation28] ss:$0 sm:$0xff] }
 0xf57   : > { %9122 = vmatprep.mubr.msk.f32.mxu1 %vm3765_vm14, %v5485_v63 }
 0xf58   : > { %v5466_v3 = vpop.permute.xlu1 %5465 }
 0xf59   : > { %v5495_v4 = vsel %vm3765_vm14, %v5430_v32, %v5466_v3  ;;  %v10100_v32 = vpack.c.bf16 %v2521_v33, %v2520_v31 }
 0xf5a   : > { %5582 = vmatmul.mubr.f32.gmra.mrb[26].mxu1 %v5495_v4 }
 0xf5b   : > { %9123 = vmatprep.mubr.msk.f32.mxu1 %vm3765_vm14, %v5487_v6  ;;  %10101 = vmatpush1.bf16.msra.mxu0 %v10100_v32 }
 0xf5c   : > { %v5468_v7 = vpop.permute.xlu0 %5467  ;;  %10102 = vmatprep.subr.bf16.mxu0 %v13150_v19 }
 0xf5d   : > { %v5496_v8 = vsel %vm3765_vm14, %v5432_v42, %v5468_v7  ;;  %v2529_v42 = vld [vmem:[%s16012_s6 + $0x48] sm:$0xff] }
 0xf5e   : > { %5587 = vmatmul.mubr.f32.gmra.mrb[28].mxu1 %v5496_v8  ;;  %v10112_v18 = vpack.c.bf16 %v2529_v42, %v2528_v47 }
 0xf5f   : > { %9124 = vmatprep.mubr.msk.f32.mxu1 %vm3765_vm14, %v5489_v15  ;;  %10104 = vmatpush1.bf16.msra.mxu0 %v10103_v37 }
 0xf60   : > { %v5470_v11 = vpop.permute.xlu1 %5469  ;;  %10105 = vmatprep.subr.bf16.mxu0 %v13150_v19 }
 0xf61   : > { %v5497_v12 = vsel %vm3765_vm14, %v5434_v51, %v5470_v11  ;;  %v2533_v51 = vld [vmem:[%s16012_s6 + $0x68] sm:$0xff] }
 0xf62   : > { %5592 = vmatmul.mubr.f32.gmra.mrb[30].mxu1 %v5497_v12  ;;  %v10118_v17 = vpack.c.bf16 %v2533_v51, %v2532_v46 }
 0xf63   : > { %9125 = vmatprep.mubr.msk.f32.mxu1 %vm3765_vm14, %v5491_v13  ;;  %10107 = vmatpush1.bf16.msra.mxu0 %v10106_v36 }
 0xf64   : > { %v5472_v16 = vpop.permute.xlu0 %5471  ;;  %v5474_v20 = vpop.permute.xlu1 %5473  ;;  %10108 = vmatprep.subr.bf16.mxu0 %v13150_v19 }
 0xf65   : > { %v5498_v23 = vsel %vm3765_vm14, %v5436_v55, %v5472_v16  ;;  %v5499_v30 = vsel %vm3765_vm14, %v5438_v21, %v5474_v20  ;;  %v2537_v55 = vld [vmem:[%s16012_s6 + $0x88] sm:$0xff]  ;;  %v10127_v21 = vpack.c.bf16 %v2539_v48, %v2538_v57 }
 0xf66   : > { %5597 = vmatmul.mubr.f32.gmra.mrb[32].mxu1 %v5498_v23  ;;  %v10124_v5 = vpack.c.bf16 %v2537_v55, %v2536_v54 }
 0xf67   : > { %9126 = vmatprep.mubr.msk.f32.mxu1 %vm3765_vm14, %v5493_v27  ;;  %10110 = vmatpush1.bf16.msra.mxu0 %v10109_v41 }
 0xf68   : > { %10111 = vmatprep.subr.bf16.mxu0 %v13150_v19 }
 0xf6a   : > { %5602 = vmatmul.mubr.f32.gmra.mrb[34].mxu1 %v5499_v30 }
 0xf6b   : > { %10113 = vmatpush1.bf16.msra.mxu0 %v10112_v18 }
 0xf6c   : > { %10114 = vmatprep.subr.bf16.mxu0 %v13150_v19 }
 0xf6f   : > { %10116 = vmatpush1.bf16.msra.mxu0 %v10115_v45 }
 0xf70   : > { %10117 = vmatprep.subr.bf16.mxu0 %v13150_v19 }
 0xf73   : > { %10119 = vmatpush1.bf16.msra.mxu0 %v10118_v17 }
 0xf74   : > { %10120 = vmatprep.subr.bf16.mxu0 %v13150_v19 }
 0xf77   : > { %10122 = vmatpush1.bf16.msra.mxu0 %v10121_v25 }
 0xf78   : > { %10123 = vmatprep.subr.bf16.mxu0 %v13150_v19 }
 0xf7b   : > { %10125 = vmatpush1.bf16.msra.mxu0 %v10124_v5 }
 0xf7c   : > { %10126 = vmatprep.subr.bf16.mxu0 %v13150_v19 }
 0xf7f   : > { %10128 = vmatpush1.bf16.msra.mxu0 %v10127_v21 }
 0xf80   : > { %10129 = vmatprep.subr.bf16.mxu0 %v13150_v19 }
 0xf83   : > { %10131 = vmatpush1.bf16.msra.mxu0 %v10130_v59 }
 0xf84   : > { %10132 = vmatprep.subr.bf16.mxu0 %v13150_v19 }
 0xf87   : > { %10134 = vmatpush1.bf16.msra.mxu0 %v10133_v62 }
0x1029   : > { %v5578_v63 = vpop.f32.mrb[24].mxu1 }
0x102a   : > { %v5613_v1 = vmul.f32 %v9127_v2, %v5578_v63  ;;  %v5580_v3 = vpop.f32.mrb[25].mxu1 }
0x102c   : > { %v5625_v4 = vadd.f32 %v9128_v28, %v5613_v1 }
0x102d   : > { %v5583_v6 = vpop.f32.mrb[26].mxu1 }
0x102e   : > { %v5637_v22 = vmin.f32 %v5625_v4, 0.0  ;;  %v5614_v7 = vmul.f32 %v9127_v2, %v5583_v6  ;;  %v5585_v8 = vpop.f32.mrb[27].mxu1  ;;  %vm5631_vm15 = vcmp.gt.f32.partialorder %v5625_v4, 0.0 }
0x1030   : > { %v5643_v15 = vmul.f32 1.442695, %v5637_v22  ;;  %v5626_v9 = vadd.f32 %v9128_v28, %v5614_v7 }
0x1031   : > { %v5588_v11 = vpop.f32.mrb[28].mxu1 }
0x1032   : > { %11640 = vpow2.f32 %v5643_v15  ;;  %v5638_v12 = vmin.f32 %v5626_v9, 0.0  ;;  %v5615_v13 = vmul.f32 %v9127_v2, %v5588_v11  ;;  %v5590_v14 = vpop.f32.mrb[29].mxu1  ;;  %vm5632_vm10 = vcmp.gt.f32.partialorder %v5626_v9, 0.0 }
0x1034   : > { %v5645_v16 = vmul.f32 1.442695, %v5638_v12  ;;  %v5627_v23 = vadd.f32 %v9128_v28, %v5615_v13 }
0x1035   : > { %v5593_v20 = vpop.f32.mrb[30].mxu1 }
0x1036   : > { %11642 = vpow2.f32 %v5645_v16  ;;  %v5639_v27 = vmin.f32 %v5627_v23, 0.0  ;;  %v5616_v30 = vmul.f32 %v9127_v2, %v5593_v20  ;;  %v5595_v31 = vpop.f32.mrb[31].mxu1  ;;  %vm5633_vm11 = vcmp.gt.f32.partialorder %v5627_v23, 0.0 }
0x1038   : > { %v5647_v33 = vmul.f32 1.442695, %v5639_v27  ;;  %v5628_v34 = vadd.f32 %v9128_v28, %v5616_v30 }
0x1039   : > { %v5598_v32 = vpop.f32.mrb[32].mxu1 }
0x103a   : > { %11644 = vpow2.f32 %v5647_v33  ;;  %v5640_v35 = vmin.f32 %v5628_v34, 0.0  ;;  %v5617_v37 = vmul.f32 %v9127_v2, %v5598_v32  ;;  %v5600_v29 = vpop.f32.mrb[33].mxu1  ;;  %vm5634_vm12 = vcmp.gt.f32.partialorder %v5628_v34, 0.0 }
0x103c   : > { %v11641_v38 = vpop.eup %11640  ;;  %v5649_v36 = vmul.f32 1.442695, %v5640_v35  ;;  %v5629_v39 = vadd.f32 %v9128_v28, %v5617_v37 }
0x103d   : > { %v9129_v40 = vadd.f32 -1.0, %v11641_v38  ;;  %v5603_v41 = vpop.f32.mrb[34].mxu1 }
0x103e   : > { %11646 = vpow2.f32 %v5649_v36  ;;  %v5641_v47 = vmin.f32 %v5629_v39, 0.0  ;;  %v5618_v42 = vmul.f32 %v9127_v2, %v5603_v41  ;;  %v5605_v18 = vpop.f32.mrb[35].mxu1  ;;  %vm5635_vm1 = vcmp.gt.f32.partialorder %v5629_v39, 0.0 }
0x103f   : > { %v5661_v44 = vsel %vm5631_vm15, %v5625_v4, %v9129_v40  ;;  %vm13152_vm15 = vmmov 0  }
0x1040   : > { %v11643_v49 = vpop.eup %11642  ;;  %v5673_v45 = vrot.slane %v5661_v44, 7  ;;  %v5651_v46 = vmul.f32 1.442695, %v5641_v47  ;;  %v5630_v51 = vadd.f32 %v9128_v28, %v5618_v42 }
0x1041   : > { %v9130_v17 = vadd.f32 -1.0, %v11643_v49 }
0x1042   : > { %11648 = vpow2.f32 %v5651_v46  ;;  %v5642_v53 = vmin.f32 %v5630_v51, 0.0  ;;  %v5691_v50 = vsel %vm3671_vm6, 0.0, %v5673_v45  ;;  %vm5636_vm2 = vcmp.gt.f32.partialorder %v5630_v51, 0.0 }
0x1043   : > { %v5662_v25 = vsel %vm5632_vm10, %v5626_v9, %v9130_v17  ;;  %v5726_v21 = vrot.slane %v5691_v50, 2  ;;  %v5695_v59 = vrot.slane %v5691_v50, 1 }
0x1044   : > { %v11645_v54 = vpop.eup %11644  ;;  %v5674_v55 = vrot.slane %v5662_v25, 7  ;;  %v5653_v5 = vmul.f32 1.442695, %v5642_v53 }
0x1045   : > { %v9131_v57 = vadd.f32 -1.0, %v11645_v54 }
0x1046   : > { %11650 = vpow2.f32 %v5653_v5  ;;  %v5675_v48 = vsel %vm3671_vm6, %v5673_v45, %v5674_v55 }
0x1047   : > { %v5663_v0 = vsel %vm5633_vm11, %v5627_v23, %v9131_v57  ;;  %v5727_v58 = vrot.slane %v5675_v48, 2  ;;  %v5696_v60 = vrot.slane %v5675_v48, 1  ;;  %vm6166_vm11 = vcmask 130048  }
0x1048   : > { %v11647_v61 = vpop.eup %11646  ;;  %v5676_v62 = vrot.slane %v5663_v0, 7 }
0x1049   : > { %v9132_v2 = vadd.f32 -1.0, %v11647_v61  ;;  %v5728_v28 = vsel %vm3726_vm8, %v5726_v21, %v5727_v58  ;;  %v5697_v63 = vsel %vm3694_vm9, %v5695_v59, %v5696_v60  ;;  %v5930_v21 = vlaneseq }
0x104a   : > { %9135 = vmatprep.mubr.msk.f32.mxu0 %vm3765_vm14, %v5728_v28  ;;  %5708 = vrot.lane.b32.xlu0 %v5697_v63, %s13148_s12  ;;  %v5677_v1 = vsel %vm3671_vm6, %v5674_v55, %v5676_v62 }
0x104b   : > { %v5664_v3 = vsel %vm5634_vm12, %v5628_v34, %v9132_v2  ;;  %v5698_v4 = vrot.slane %v5677_v1, 1  ;;  %v5729_v38 = vrot.slane %v5677_v1, 2  ;;  %v14899_v0 = vshrl.u32 %v5930_v21, 7  ;;  %vm14995_vm12 = vmneg %vm3671_vm6 }
0x104c   : > { %v11649_v6 = vpop.eup %11648  ;;  %v5678_v22 = vrot.slane %v5664_v3, 7 }
0x104d   : > { %v9133_v7 = vadd.f32 -1.0, %v11649_v6  ;;  %v5699_v8 = vsel %vm3694_vm9, %v5696_v60, %v5698_v4  ;;  %v5730_v40 = vsel %vm3726_vm8, %v5727_v58, %v5729_v38  ;;  %v14901_v58 = vand.u32 127, %v5930_v21 }
0x104e   : > { %5710 = vrot.lane.b32.xlu1 %v5699_v8, %s13148_s12  ;;  %v5679_v15 = vsel %vm3671_vm6, %v5676_v62, %v5678_v22  ;;  %v5935_v59 = vmul.u32 3, %v14899_v0  ;;  %v13151_v60 = vmov 0.0  }
0x104f   : > { %v5665_v9 = vsel %vm5635_vm1, %v5629_v39, %v9133_v7  ;;  %v5700_v11 = vrot.slane %v5679_v15, 1  ;;  %v5731_v41 = vrot.slane %v5679_v15, 2 }
0x1050   : > { %v11651_v12 = vpop.eup %11650  ;;  %v5680_v13 = vrot.slane %v5665_v9, 7  ;;  %vm5937_vm4 = vcmp.eq.s32.totalorder %v14901_v58, %v5935_v59 }
0x1051   : > { %v9134_v14 = vadd.f32 -1.0, %v11651_v12  ;;  %v5701_v16 = vsel %vm3694_vm9, %v5698_v4, %v5700_v11  ;;  %v5732_v18 = vsel %vm3726_vm8, %v5729_v38, %v5731_v41  ;;  %v14906_v61 = vsel %vm5937_vm4, 1.0, %v13151_v60 }
0x1052   : > { %5712 = vrot.lane.b32.xlu0 %v5701_v16, %s13148_s12  ;;  %v5681_v23 = vsel %vm3671_vm6, %v5678_v22, %v5680_v13 }
0x1053   : > { %v5666_v20 = vsel %vm5636_vm2, %v5630_v51, %v9134_v14  ;;  %v5702_v27 = vrot.slane %v5681_v23, 1  ;;  %v5733_v44 = vrot.slane %v5681_v23, 2 }
0x1054   : > { %v5682_v30 = vrot.slane %v5666_v20, 7 }
0x1055   : > { %v5703_v31 = vsel %vm3694_vm9, %v5700_v11, %v5702_v27  ;;  %v5734_v46 = vsel %vm3726_vm8, %v5731_v41, %v5733_v44 }
0x1056   : > { %5714 = vrot.lane.b32.xlu1 %v5703_v31, %s13148_s12  ;;  %v5683_v33 = vsel %vm3671_vm6, %v5680_v13, %v5682_v30  ;;  %v5692_v34 = vsel %vm3671_vm6, %v5682_v30, 0.0 }
0x1057   : > { %v5704_v32 = vrot.slane %v5683_v33, 1  ;;  %v5706_v35 = vrot.slane %v5692_v34, 1  ;;  %v5735_v51 = vrot.slane %v5683_v33, 2  ;;  %v5737_v25 = vrot.slane %v5692_v34, 2 }
0x1059   : > { %v5707_v37 = vsel %vm3694_vm9, %v5704_v32, %v5706_v35  ;;  %v5705_v29 = vsel %vm3694_vm9, %v5702_v27, %v5704_v32  ;;  %v5738_v57 = vsel %vm3726_vm8, %v5735_v51, %v5737_v25 }
0x105a   : > { %5718 = vrot.lane.b32.xlu1 %v5707_v37, %s13148_s12  ;;  %5716 = vrot.lane.b32.xlu0 %v5705_v29, %s13148_s12 }
0x10bc   : > { %v5709_v36 = vpop.permute.xlu0 %5708 }
0x10bd   : > { %v5739_v39 = vsel %vm3765_vm14, %v5691_v50, %v5709_v36  ;;  %v5736_v50 = vsel %vm3726_vm8, %v5733_v44, %v5735_v51 }
0x10be   : > { %5822 = vmatmul.mubr.f32.vlgmr.msra.gmra.mrb[30].mxu0 %v5739_v39 }
0x10bf   : > { %9136 = vmatprep.mubr.msk.f32.mxu0 %vm3765_vm14, %v5730_v40 }
0x10c0   : > { %v5711_v47 = vpop.permute.xlu1 %5710 }
0x10c1   : > { %v5740_v42 = vsel %vm3765_vm14, %v5675_v48, %v5711_v47 }
0x10c2   : > { %5827 = vmatmul.mubr.f32.gmra.mrb[32].mxu0 %v5740_v42 }
0x10c3   : > { %9137 = vmatprep.mubr.msk.f32.mxu0 %vm3765_vm14, %v5732_v18 }
0x10c4   : > { %v5713_v49 = vpop.permute.xlu0 %5712 }
0x10c5   : > { %v5741_v45 = vsel %vm3765_vm14, %v5677_v1, %v5713_v49 }
0x10c6   : > { %5832 = vmatmul.mubr.f32.gmra.mrb[34].mxu0 %v5741_v45 }
0x10c7   : > { %9138 = vmatprep.mubr.msk.f32.mxu0 %vm3765_vm14, %v5734_v46 }
0x10c8   : > { %v5715_v17 = vpop.permute.xlu1 %5714 }
0x10c9   : > { %v5742_v53 = vsel %vm3765_vm14, %v5679_v15, %v5715_v17 }
0x10ca   : > { %5837 = vmatmul.mubr.f32.gmra.mrb[36].mxu0 %v5742_v53 }
0x10cb   : > { %9139 = vmatprep.mubr.msk.f32.mxu0 %vm3765_vm14, %v5736_v50 }
0x10cc   : > { %v5717_v54 = vpop.permute.xlu0 %5716  ;;  %v5719_v5 = vpop.permute.xlu1 %5718 }
0x10cd   : > { %v5743_v55 = vsel %vm3765_vm14, %v5681_v23, %v5717_v54  ;;  %v5744_v48 = vsel %vm3765_vm14, %v5683_v33, %v5719_v5 }
0x10ce   : > { %5842 = vmatmul.mubr.f32.gmra.mrb[38].mxu0 %v5743_v55 }
0x10cf   : > { %9140 = vmatprep.mubr.msk.f32.mxu0 %vm3765_vm14, %v5738_v57 }
0x10d2   : > { %5847 = vmatmul.mubr.f32.gmra.mrb[40].mxu0 %v5744_v48 }
0x10d3   : > { %9738 = vmatprep.mubr.msk.f32.mxu0 %vm5943_vm3, %v14906_v61 }
0x1191   : > { %v5823_v62 = vpop.f32.mrb[30].mxu0 }
0x1192   : > { %v5824_v2 = vadd.f32 %v5823_v62, %v14772_v10  ;;  %v5825_v28 = vpop.f32.mrb[31].mxu0 }
0x1194   : > { %v5858_v63 = vrot.slane %v5824_v2, 7 }
0x1195   : > { %v5828_v1 = vpop.f32.mrb[32].mxu0 }
0x1196   : > { %v5829_v3 = vadd.f32 %v5828_v1, %v14775_v24  ;;  %v5830_v4 = vpop.f32.mrb[33].mxu0  ;;  %v5876_v6 = vsel %vm3671_vm6, -1e+30, %v5858_v63 }
0x1197   : > { %v5880_v11 = vrot.slane %v5876_v6, 1  ;;  %v5905_v12 = vrot.slane %v5876_v6, 2 }
0x1198   : > { %v5859_v22 = vrot.slane %v5829_v3, 7 }
0x1199   : > { %v5833_v7 = vpop.f32.mrb[34].mxu0 }
0x119a   : > { %v5860_v8 = vsel %vm3671_vm6, %v5858_v63, %v5859_v22  ;;  %v5834_v15 = vadd.f32 %v5833_v7, %v14780_v26  ;;  %v5835_v9 = vpop.f32.mrb[35].mxu0 }
0x119b   : > { %v5881_v13 = vrot.slane %v5860_v8, 1  ;;  %v5906_v14 = vrot.slane %v5860_v8, 2 }
0x119c   : > { %v5861_v10 = vrot.slane %v5834_v15, 7 }
0x119d   : > { %v5838_v16 = vpop.f32.mrb[36].mxu0  ;;  %v5882_v23 = vsel %vm3694_vm9, %v5880_v11, %v5881_v13  ;;  %v5907_v24 = vsel %vm3726_vm8, %v5905_v12, %v5906_v14 }
0x119e   : > { %v5862_v20 = vsel %vm3671_vm6, %v5859_v22, %v5861_v10  ;;  %v5839_v27 = vadd.f32 %v5838_v16, %v14788_v43  ;;  %v5840_v30 = vpop.f32.mrb[37].mxu0  ;;  %v5899_v31 = vmax.f32 %v5876_v6, %v5882_v23  ;;  %v2552_v16 = vld [vmem:[#allocation40 + $0x10] sm:$0xff] }
0x119f   : > { %v5883_v33 = vrot.slane %v5862_v20, 1  ;;  %v5908_v34 = vrot.slane %v5862_v20, 2  ;;  %v2555_v30 = vld [vmem:[#allocation40 + $0x28] sm:$0xff] }
0x11a0   : > { %v5863_v26 = vrot.slane %v5839_v27, 7  ;;  %v5924_v32 = vmax.f32 %v5899_v31, %v5907_v24  ;;  %v2553_v24 = vld [vmem:[#allocation40 + $0x18] sm:$0xff]  ;;  %v2554_v27 = vld [vmem:[#allocation40 + $0x20] sm:$0xff] }
0x11a1   : > { %v5843_v35 = vpop.f32.mrb[38].mxu0  ;;  %v5884_v37 = vsel %vm3694_vm9, %v5881_v13, %v5883_v33  ;;  %v5909_v29 = vsel %vm3726_vm8, %v5906_v14, %v5908_v34  ;;  %v2550_v14 = vld [vmem:[#allocation40] sm:$0xff]  ;;  %v10154_v31 = vpack.c.bf16 %v2555_v30, %v2554_v27 }
0x11a2   : > { %v5864_v38 = vsel %vm3671_vm6, %v5861_v10, %v5863_v26  ;;  %v5844_v36 = vadd.f32 %v5843_v35, %v14794_v52  ;;  %v5845_v39 = vpop.f32.mrb[39].mxu0  ;;  %v5900_v40 = vmax.f32 %v5860_v8, %v5884_v37  ;;  %v2551_v10 = vld [vmem:[#allocation40 + $0x8] sm:$0xff] }
0x11a3   : > { %v5885_v41 = vrot.slane %v5864_v38, 1  ;;  %v5910_v47 = vrot.slane %v5864_v38, 2  ;;  %v10148_v23 = vpack.c.bf16 %v2551_v10, %v2550_v14  ;;  %v2559_v35 = vld [vmem:[#allocation40 + $0x48] sm:$0xff]  ;;  %v2562_v39 = vld [vmem:[#allocation40 + $0x60] sm:$0xff] }
0x11a4   : > { %v5865_v43 = vrot.slane %v5844_v36, 7  ;;  %v5925_v42 = vmax.f32 %v5900_v40, %v5909_v29  ;;  %v2560_v29 = vld [vmem:[#allocation40 + $0x50] sm:$0xff]  ;;  %v2563_v40 = vld [vmem:[#allocation40 + $0x68] sm:$0xff] }
0x11a5   : > { %v5848_v18 = vpop.f32.mrb[40].mxu0  ;;  %v5886_v44 = vsel %vm3694_vm9, %v5883_v33, %v5885_v41  ;;  %v5911_v49 = vsel %vm3726_vm8, %v5908_v34, %v5910_v47  ;;  %10149 = vmatpush1.bf16.msra.mxu1 %v10148_v23  ;;  %v2556_v33 = vld [vmem:[#allocation40 + $0x30] sm:$0xff]  ;;  %v2557_v34 = vld [vmem:[#allocation40 + $0x38] sm:$0xff] }
0x11a6   : > { %v5866_v45 = vsel %vm3671_vm6, %v5863_v26, %v5865_v43  ;;  %v5849_v46 = vadd.f32 %v5848_v18, %v14800_v56  ;;  %v5850_v51 = vpop.f32.mrb[41].mxu0  ;;  %v10135_v17 = vpack.c.bf16 %v5925_v42, %v5924_v32  ;;  %v5901_v53 = vmax.f32 %v5862_v20, %v5886_v44  ;;  %10150 = vmatprep.subr.bf16.mxu1 %v13150_v19  ;;  %v2558_v32 = vld [vmem:[#allocation40 + $0x40] sm:$0xff]  ;;  %v2567_v44 = vld [vmem:[#allocation40 + $0x88] sm:$0xff] }
0x11a7   : > { %v5887_v50 = vrot.slane %v5866_v45, 1  ;;  %v5912_v52 = vrot.slane %v5866_v45, 2  ;;  %v5932_v56 = vadd.s32 8, %v14899_v0  ;;  %v10151_v20 = vpack.c.bf16 %v2553_v24, %v2552_v16  ;;  %v2566_v18 = vld [vmem:[#allocation40 + $0x80] sm:$0xff] }
0x11a8   : > { %v5867_v25 = vrot.slane %v5849_v46, 7  ;;  %10136 = vmatprep.subr.bf16.mxu0 %v10135_v17  ;;  %v5926_v54 = vmax.f32 %v5901_v53, %v5911_v49  ;;  %v10157_v26 = vpack.c.bf16 %v2557_v34, %v2556_v33  ;;  %v10160_v37 = vpack.c.bf16 %v2559_v35, %v2558_v32  ;;  %v2569_v46 = vld [vmem:[#allocation40 + $0x98] sm:$0xff]  ;;  %v2571_v53 = vld [vmem:[#allocation40 + $0xa8] sm:$0xff] }
0x11a9   : > { %10138 = vmatpush3.bf16.msra.mxu0 %v10135_v17  ;;  %v5888_v55 = vsel %vm3694_vm9, %v5885_v41, %v5887_v50  ;;  %v5913_v5 = vsel %vm3726_vm8, %v5910_v47, %v5912_v52  ;;  %v5936_v15 = vmul.u32 3, %v5932_v56  ;;  %10152 = vmatpush1.bf16.msra.mxu1 %v10151_v20  ;;  %v10166_v41 = vpack.c.bf16 %v2563_v40, %v2562_v39  ;;  %v2564_v47 = vld [vmem:[#allocation40 + $0x70] sm:$0xff]  ;;  %v2570_v17 = vld [vmem:[#allocation40 + $0xa0] sm:$0xff]  ;;  %v2575_v40 = vld [vmem:[#allocation41 + $0x8] sm:$0xff] }
0x11aa   : > { %v5868_v57 = vsel %vm3671_vm6, %v5865_v43, %v5867_v25  ;;  %v5877_v48 = vsel %vm3671_vm6, %v5867_v25, -1e+30  ;;  %v5902_v21 = vmax.f32 %v5864_v38, %v5888_v55  ;;  %10153 = vmatprep.subr.bf16.mxu1 %v13150_v19  ;;  %v2561_v38 = vld [vmem:[#allocation40 + $0x58] sm:$0xff]  ;;  %v10172_v49 = vpack.c.bf16 %v2567_v44, %v2566_v18  ;;  %v9145_v55 = vld [vmem:[#allocation32] ss:$0 sm:$0xff] }
0x11ab   : > { %v5889_v59 = vrot.slane %v5868_v57, 1  ;;  %v5891_v62 = vrot.slane %v5877_v48, 1  ;;  %v5914_v2 = vrot.slane %v5868_v57, 2  ;;  %v5916_v28 = vrot.slane %v5877_v48, 2  ;;  %v2565_v43 = vld [vmem:[#allocation40 + $0x78] sm:$0xff] }
0x11ac   : > { %v5927_v63 = vmax.f32 %v5902_v21, %v5913_v5  ;;  %vm5938_vm5 = vcmp.eq.s32.totalorder %v14901_v58, %v5936_v15  ;;  %v10163_v36 = vpack.c.bf16 %v2561_v38, %v2560_v29  ;;  %v10169_v42 = vpack.c.bf16 %v2565_v43, %v2564_v47  ;;  %v2573_v25 = vld [vmem:[#allocation40 + $0xb8] sm:$0xff]  ;;  %v9146_v5 = vld [vmem:[#allocation31] ss:$0 sm:$0xff]  ;;  %v2590_v29 = vld [vmem:[#allocation41 + $0x80] sm:$0xff] }
0x11ad   : > { %v5892_v1 = vsel %vm3694_vm9, %v5889_v59, %v5891_v62  ;;  %v5890_v3 = vsel %vm3694_vm9, %v5887_v50, %v5889_v59  ;;  %v5915_v4 = vsel %vm3726_vm8, %v5912_v52, %v5914_v2  ;;  %v5917_v6 = vsel %vm3726_vm8, %v5914_v2, %v5916_v28  ;;  %10155 = vmatpush1.bf16.msra.mxu1 %v10154_v31  ;;  %v2572_v52 = vld [vmem:[#allocation40 + $0xb0] sm:$0xff]  ;;  %v2591_v38 = vld [vmem:[#allocation41 + $0x88] sm:$0xff] }
0x11ae   : > { %v5904_v22 = vmax.f32 %v5868_v57, %v5892_v1  ;;  %v10139_v7 = vpack.c.bf16 %v5927_v63, %v5926_v54  ;;  %v5903_v8 = vmax.f32 %v5866_v45, %v5890_v3  ;;  %v9142_v13 = vsel %vm5938_vm5, 1.0, %v13151_v60  ;;  %10156 = vmatprep.subr.bf16.mxu1 %v13150_v19  ;;  %v2568_v45 = vld [vmem:[#allocation40 + $0x90] sm:$0xff] }
0x11af   : > { %v10175_v51 = vpack.c.bf16 %v2569_v46, %v2568_v45  ;;  %v10178_v50 = vpack.c.bf16 %v2571_v53, %v2570_v17  ;;  %v10181_v54 = vpack.c.bf16 %v2573_v25, %v2572_v52  ;;  %v10201_v39 = vpack.c.bf16 %v2591_v38, %v2590_v29  ;;  %v2622_v46 = vld [vmem:[#allocation43] sm:$0xff]  ;;  %v2625_v53 = vld [vmem:[#allocation43 + $0x18] sm:$0xff]  ;;  %v2627_v25 = vld [vmem:[#allocation43 + $0x28] sm:$0xff] }
0x11b0   : > { %10140 = vmatprep.subr.bf16.mxu0 %v10139_v7  ;;  %v5928_v9 = vmax.f32 %v5903_v8, %v5915_v4  ;;  %v5929_v11 = vmax.f32 %v5904_v22, %v5917_v6  ;;  %v6162_v43 = vmul.u32 2, %v14899_v0  ;;  %v2626_v52 = vld [vmem:[#allocation43 + $0x20] sm:$0xff]  ;;  %v2604_v38 = vld [vmem:[#allocation41 + $0xf0] sm:$0xff] }
0x11b1   : > { %10142 = vmatpush3.bf16.msra.mxu0 %v10139_v7  ;;  %10158 = vmatpush1.bf16.msra.mxu1 %v10157_v26 }
0x11b2   : > { %v10143_v12 = vpack.c.bf16 %v5929_v11, %v5928_v9  ;;  %10159 = vmatprep.subr.bf16.mxu1 %v13150_v19  ;;  %vm6163_vm10 = vcmp.eq.s32.totalorder %v14901_v58, %v6162_v43  ;;  %v2624_v58 = vld [vmem:[#allocation43 + $0x10] sm:$0xff]  ;;  %v9153_v43 = vld [vmem:[#allocation35] ss:$0 sm:$0xff] }
0x11b3   : > { %v14969_v45 = vsel %vm6163_vm10, 1.0, %v13151_v60 }
0x11b4   : > { %10144 = vmatprep.subr.bf16.mxu0 %v10143_v12 }
0x11b5   : > { %10146 = vmatpush3.bf16.msra.mxu0 %v10143_v12  ;;  %10161 = vmatpush1.bf16.msra.mxu1 %v10160_v37 }
0x11b6   : > { %10183 = vmatprep.subr.bf16.mxu0 %v13150_v19  ;;  %10162 = vmatprep.subr.bf16.mxu1 %v13150_v19 }
0x11b8   : > { %9739 = vmatmul.mubr.msk.f32.vlgmr.msra.gmra.mrb[42].mxu0 %vm5943_vm3, %v9142_v13  ;;  %vm6939_vm3 = vcmask 64512  }
0x11b9   : > { %10164 = vmatpush1.bf16.msra.mxu1 %v10163_v36  ;;  %9745 = vmatprep.mubr.msk.f32.mxu0 %vm13152_vm15, %v13151_v60  ;;  %v2574_v36 = vld [vmem:[#allocation41] sm:$0xff] }
0x11ba   : > { %10165 = vmatprep.subr.bf16.mxu1 %v13150_v19 }
0x11bd   : > { %10167 = vmatpush1.bf16.msra.mxu1 %v10166_v41  ;;  %v10203_v41 = vpack.c.bf16 %v2575_v40, %v2574_v36  ;;  %v2605_v36 = vld [vmem:[#allocation41 + $0xf8] sm:$0xff]  ;;  %v2588_v40 = vld [vmem:[#allocation41 + $0x70] sm:$0xff] }
0x11be   : > { %10168 = vmatprep.subr.bf16.mxu1 %v13150_v19 }
0x11c1   : > { %10170 = vmatpush1.bf16.msra.mxu1 %v10169_v42 }
0x11c2   : > { %10171 = vmatprep.subr.bf16.mxu1 %v13150_v19 }
0x11c5   : > { %10173 = vmatpush1.bf16.msra.mxu1 %v10172_v49 }
0x11c6   : > { %10174 = vmatprep.subr.bf16.mxu1 %v13150_v19 }
0x11c9   : > { %10176 = vmatpush1.bf16.msra.mxu1 %v10175_v51  ;;  %v2623_v51 = vld [vmem:[#allocation43 + $0x8] sm:$0xff] }
0x11ca   : > { %10177 = vmatprep.subr.bf16.mxu1 %v13150_v19  ;;  %v10190_v17 = vpack.c.bf16 %v2623_v51, %v2622_v46 }
0x11cd   : > { %10179 = vmatpush1.bf16.msra.mxu1 %v10178_v50  ;;  %v10193_v50 = vpack.c.bf16 %v2625_v53, %v2624_v58  ;;  %v2608_v53 = vld [vmem:[#allocation41 + $0x110] sm:$0xff] }
0x11ce   : > { %10180 = vmatprep.subr.bf16.mxu1 %v13150_v19 }
0x11d1   : > { %10182 = vmatpush1.bf16.msra.mxu1 %v10181_v54  ;;  %v10196_v54 = vpack.c.bf16 %v2627_v25, %v2626_v52 }
0x11d2   : > { %10202 = vmatprep.subr.bf16.mxu1 %v10201_v39  ;;  %v10229_v39 = vpack.c.bf16 %v2605_v36, %v2604_v38  ;;  %v2635_v38 = vld [vmem:[#allocation50 + $0x8] sm:$0xff] }
0x128b   : > { %v9740_v57 = vpop.f32.mrb[42].mxu0 }
0x128c   : > { %v6032_v48 = vmul.f32 %v9740_v57, %v9145_v55  ;;  %v6016_v21 = vpop.f32.mrb[43].mxu0 }
0x128d   : > { %v6031_v56 = vmul.f32 %v9145_v55, %v6016_v21  ;;  %v2628_v55 = vld [vmem:[#allocation43 + $0x30] sm:$0xff]  ;;  %v2593_v21 = vld [vmem:[#allocation41 + $0x98] sm:$0xff] }
0x128e   : > { %v6040_v59 = vadd.f32 %v9146_v5, %v6032_v48  ;;  %v2592_v48 = vld [vmem:[#allocation41 + $0x90] sm:$0xff] }
0x128f   : > { %v6039_v62 = vadd.f32 %v9146_v5, %v6031_v56  ;;  %v2629_v5 = vld [vmem:[#allocation43 + $0x38] sm:$0xff]  ;;  %v10205_v56 = vpack.c.bf16 %v2593_v21, %v2592_v48  ;;  %v2611_v48 = vld [vmem:[#allocation41 + $0x128] sm:$0xff] }
0x1290   : > { %v6044_v2 = vmin.f32 %v6040_v59, 0.0  ;;  %vm6042_vm7 = vcmp.gt.f32.partialorder %v6040_v59, 0.0  ;;  %v10199_v57 = vpack.c.bf16 %v2629_v5, %v2628_v55 }
0x1291   : > { %v6043_v28 = vmin.f32 %v6039_v62, 0.0  ;;  %vm6041_vm13 = vcmp.gt.f32.partialorder %v6039_v62, 0.0 }
0x1292   : > { %v6047_v63 = vmul.f32 1.442695, %v6044_v2 }
0x1293   : > { %v6045_v1 = vmul.f32 1.442695, %v6043_v28  ;;  %v2594_v28 = vld [vmem:[#allocation41 + $0xa0] sm:$0xff] }
0x1294   : > { %11652 = vpow2.f32 %v6047_v63  ;;  %v2595_v63 = vld [vmem:[#allocation41 + $0xa8] sm:$0xff] }
0x1295   : > { %11654 = vpow2.f32 %v6045_v1  ;;  %v10209_v1 = vpack.c.bf16 %v2595_v63, %v2594_v28  ;;  %v2615_v28 = vld [vmem:[#allocation41 + $0x148] sm:$0xff] }
0x129e   : > { %v11653_v3 = vpop.eup %11652 }
0x129f   : > { %v11655_v4 = vpop.eup %11654  ;;  %v9148_v6 = vadd.f32 -1.0, %v11653_v3  ;;  %v2578_v3 = vld [vmem:[#allocation41 + $0x20] sm:$0xff] }
0x12a0   : > { %v9147_v22 = vadd.f32 -1.0, %v11655_v4  ;;  %v2579_v4 = vld [vmem:[#allocation41 + $0x28] sm:$0xff] }
0x12a1   : > { %v6052_v7 = vsel %vm6042_vm7, %v6040_v59, %v9148_v6  ;;  %v2576_v59 = vld [vmem:[#allocation41 + $0x10] sm:$0xff]  ;;  %v10211_v6 = vpack.c.bf16 %v2579_v4, %v2578_v3  ;;  %v2617_v4 = vld [vmem:[#allocation41 + $0x158] sm:$0xff] }
0x12a2   : > { %v6056_v8 = vrot.slane %v6052_v7, 7  ;;  %v6051_v15 = vsel %vm6041_vm13, %v6039_v62, %v9147_v22  ;;  %v2577_v62 = vld [vmem:[#allocation41 + $0x18] sm:$0xff]  ;;  %v2596_v22 = vld [vmem:[#allocation41 + $0xb0] sm:$0xff] }
0x12a3   : > { %v6055_v9 = vrot.slane %v6051_v15, 7  ;;  %v10187_v11 = vpack.c.bf16 %v6052_v7, %v6051_v15  ;;  %v10207_v2 = vpack.c.bf16 %v2577_v62, %v2576_v59  ;;  %v2597_v7 = vld [vmem:[#allocation41 + $0xb8] sm:$0xff]  ;;  %v2580_v15 = vld [vmem:[#allocation41 + $0x30] sm:$0xff] }
0x12a4   : > { %v6062_v12 = vsel %vm3671_vm6, %v6056_v8, 0.0  ;;  %v2613_v59 = vld [vmem:[#allocation41 + $0x138] sm:$0xff]  ;;  %v2616_v3 = vld [vmem:[#allocation41 + $0x150] sm:$0xff] }
0x12a5   : > { %v6061_v13 = vsel %vm3671_vm6, 0.0, %v6055_v9  ;;  %v6057_v14 = vsel %vm3671_vm6, %v6055_v9, %v6056_v8  ;;  %v6068_v10 = vrot.slane %v6062_v12, 1  ;;  %v6079_v16 = vrot.slane %v6062_v12, 2  ;;  %v2581_v9 = vld [vmem:[#allocation41 + $0x38] sm:$0xff]  ;;  %v2598_v12 = vld [vmem:[#allocation41 + $0xc0] sm:$0xff] }
0x12a6   : > { %v6076_v23 = vrot.slane %v6061_v13, 2  ;;  %v6077_v24 = vrot.slane %v6057_v14, 2  ;;  %v6066_v20 = vrot.slane %v6057_v14, 1  ;;  %v6065_v27 = vrot.slane %v6061_v13, 1 }
0x12a7   : > { %v10213_v8 = vpack.c.bf16 %v2597_v7, %v2596_v22  ;;  %v10249_v7 = vpack.c.bf16 %v2617_v4, %v2616_v3  ;;  %v2674_v3 = vld [vmem:[#allocation50 + $0x140] sm:$0xff] }
0x12a8   : > { %v6078_v30 = vsel %vm3726_vm8, %v6076_v23, %v6077_v24  ;;  %v6069_v31 = vsel %vm3694_vm9, %v6066_v20, %v6068_v10  ;;  %v6067_v33 = vsel %vm3694_vm9, %v6065_v27, %v6066_v20  ;;  %v6080_v34 = vsel %vm3726_vm8, %v6077_v24, %v6079_v16  ;;  %v2582_v10 = vld [vmem:[#allocation41 + $0x40] sm:$0xff]  ;;  %v2583_v16 = vld [vmem:[#allocation41 + $0x48] sm:$0xff]  ;;  %v2600_v24 = vld [vmem:[#allocation41 + $0xd0] sm:$0xff] }
0x12a9   : > { %9149 = vmatprep.mubr.msk.f32.mxu1 %vm3765_vm14, %v6078_v30  ;;  %6072 = vrot.lane.b32.xlu1 %v6069_v31, %s13148_s12  ;;  %v10219_v23 = vpack.c.bf16 %v2583_v16, %v2582_v10  ;;  %v2601_v20 = vld [vmem:[#allocation41 + $0xd8] sm:$0xff]  ;;  %v2584_v30 = vld [vmem:[#allocation41 + $0x50] sm:$0xff] }
0x12aa   : > { %6070 = vrot.lane.b32.xlu0 %v6067_v33, %s13148_s12  ;;  %v10221_v27 = vpack.c.bf16 %v2601_v20, %v2600_v24  ;;  %v2585_v31 = vld [vmem:[#allocation41 + $0x58] sm:$0xff]  ;;  %s16016_s12 = sld [smem:[#allocation139_spill]] }
0x12ab   : > { %v10223_v33 = vpack.c.bf16 %v2585_v31, %v2584_v30  ;;  %v2621_v24 = vld [vmem:[#allocation41 + $0x178] sm:$0xff] }
0x131b   : > { %v6073_v35 = vpop.permute.xlu1 %6072 }
0x131c   : > { %v6071_v26 = vpop.permute.xlu0 %6070  ;;  %v6082_v37 = vsel %vm3765_vm14, %v6057_v14, %v6073_v35  ;;  %v2586_v35 = vld [vmem:[#allocation41 + $0x60] sm:$0xff] }
0x131d   : > { %v6081_v32 = vsel %vm3765_vm14, %v6061_v13, %v6071_v26  ;;  %v2599_v13 = vld [vmem:[#allocation41 + $0xc8] sm:$0xff] }
0x131e   : > { %6152 = vmatmul.mubr.f32.vlgmr.msra.gmra.mrb[36].mxu1 %v6081_v32  ;;  %v10217_v14 = vpack.c.bf16 %v2599_v13, %v2598_v12  ;;  %v2603_v26 = vld [vmem:[#allocation41 + $0xe8] sm:$0xff] }
0x131f   : > { %9150 = vmatprep.mubr.msk.f32.mxu1 %vm3765_vm14, %v6080_v34  ;;  %10204 = vmatpush3.bf16.msra.mxu1 %v10203_v41  ;;  %v2602_v34 = vld [vmem:[#allocation41 + $0xe0] sm:$0xff]  ;;  %v2589_v41 = vld [vmem:[#allocation41 + $0x78] sm:$0xff] }
0x1320   : > { %10206 = vmatprep.subr.bf16.mxu1 %v10205_v56  ;;  %v10225_v32 = vpack.c.bf16 %v2603_v26, %v2602_v34  ;;  %v2612_v56 = vld [vmem:[#allocation41 + $0x130] sm:$0xff]  ;;  %v2650_v34 = vld [vmem:[#allocation50 + $0x80] sm:$0xff] }
0x1321   : > { %v10243_v62 = vpack.c.bf16 %v2613_v59, %v2612_v56  ;;  %v2651_v26 = vld [vmem:[#allocation50 + $0x88] sm:$0xff]  ;;  %v2673_v56 = vld [vmem:[#allocation50 + $0x138] sm:$0xff]  ;;  %v2640_v59 = vld [vmem:[#allocation50 + $0x30] sm:$0xff] }
0x1322   : > { %6157 = vmatmul.mubr.f32.gmra.mrb[38].mxu1 %v6082_v37  ;;  %v2587_v37 = vld [vmem:[#allocation41 + $0x68] sm:$0xff] }
0x1323   : > { %10208 = vmatpush3.bf16.msra.mxu1 %v10207_v2  ;;  %v10227_v29 = vpack.c.bf16 %v2587_v37, %v2586_v35  ;;  %v2614_v2 = vld [vmem:[#allocation41 + $0x140] sm:$0xff]  ;;  %v10257_v35 = vpack.c.bf16 %v2651_v26, %v2650_v34  ;;  %v2667_v37 = vld [vmem:[#allocation50 + $0x108] sm:$0xff]  ;;  %v2646_v26 = vld [vmem:[#allocation50 + $0x60] sm:$0xff] }
0x1324   : > { %10210 = vmatprep.subr.bf16.mxu1 %v10209_v1  ;;  %v10246_v63 = vpack.c.bf16 %v2615_v28, %v2614_v2  ;;  %v2679_v34 = vld [vmem:[#allocation50 + $0x168] sm:$0xff] }
0x1327   : > { %10212 = vmatpush3.bf16.msra.mxu1 %v10211_v6 }
0x1328   : > { %10214 = vmatprep.subr.bf16.mxu1 %v10213_v8 }
0x13f1   : > { %v6153_v47 = vpop.f32.mrb[36].mxu1 }
0x13f2   : > { %v6155_v42 = vpop.f32.mrb[37].mxu1 }
0x13f3   : > { %v2606_v42 = vld [vmem:[#allocation41 + $0x100] sm:$0xff] }
0x13f5   : > { %v6158_v18 = vpop.f32.mrb[38].mxu1 }
0x13f6   : > { %v10184_v44 = vpack.c.bf16 %v6158_v18, %v6153_v47  ;;  %v6160_v49 = vpop.f32.mrb[39].mxu1  ;;  %v10231_v47 = vpack.c.bf16 %v2589_v41, %v2588_v40  ;;  %v2607_v18 = vld [vmem:[#allocation41 + $0x108] sm:$0xff]  ;;  %v2652_v40 = vld [vmem:[#allocation50 + $0x90] sm:$0xff]  ;;  %v2653_v41 = vld [vmem:[#allocation50 + $0x98] sm:$0xff] }
0x13f8   : > { %10185 = vmatpush3.bf16.msra.mxu0 %v10184_v44  ;;  %v9154_v44 = vld [vmem:[#allocation34] ss:$0 sm:$0xff] }
0x13f9   : > { %10186 = vmatprep.subr.bf16.mxu0 %v13150_v19 }
0x13fb   : > { %9746 = vmatmul.mubr.msk.f32.vlgmr.msra.gmra.mrb[44].mxu0 %vm6166_vm11, %v14969_v45 }
0x13fc   : > { %10188 = vmatpush3.bf16.msra.mxu0 %v10187_v11  ;;  %9752 = vmatprep.mubr.msk.f32.mxu0 %vm13152_vm15, %v13151_v60  ;;  %v10215_v11 = vpack.c.bf16 %v2581_v9, %v2580_v15  ;;  %v2618_v15 = vld [vmem:[#allocation41 + $0x160] sm:$0xff]  ;;  %v2619_v9 = vld [vmem:[#allocation41 + $0x168] sm:$0xff] }
0x13fd   : > { %10189 = vmatprep.subr.bf16.mxu0 %v13150_v19  ;;  %v10252_v10 = vpack.c.bf16 %v2619_v9, %v2618_v15  ;;  %v2660_v9 = vld [vmem:[#allocation50 + $0xd0] sm:$0xff] }
0x13fe   : > { %10216 = vmatpush3.bf16.msra.mxu1 %v10215_v11 }
0x13ff   : > { %9753 = vmatmul.mubr.msk.f32.vlgmr.msra.gmra.mrb[46].mxu0 %vm6166_vm11, %v14969_v45  ;;  %10218 = vmatprep.subr.bf16.mxu1 %v10217_v14 }
0x1400   : > { %10191 = vmatpush3.bf16.msra.mxu0 %v10190_v17  ;;  %9771 = vmatprep.mubr.msk.f32.mxu0 %vm13152_vm15, %v13151_v60  ;;  %v10234_v17 = vpack.c.bf16 %v2607_v18, %v2606_v42  ;;  %v2669_v42 = vld [vmem:[#allocation50 + $0x118] sm:$0xff]  ;;  %v2636_v18 = vld [vmem:[#allocation50 + $0x10] sm:$0xff] }
0x1401   : > { %10192 = vmatprep.subr.bf16.mxu0 %v13150_v19 }
0x1402   : > { %10220 = vmatpush3.bf16.msra.mxu1 %v10219_v23  ;;  %v2620_v23 = vld [vmem:[#allocation41 + $0x170] sm:$0xff] }
0x1403   : > { %10222 = vmatprep.subr.bf16.mxu1 %v10221_v27  ;;  %v10255_v27 = vpack.c.bf16 %v2621_v24, %v2620_v23  ;;  %v2645_v23 = vld [vmem:[#allocation50 + $0x58] sm:$0xff] }
0x1404   : > { %10194 = vmatpush3.bf16.msra.mxu0 %v10193_v50  ;;  %v2609_v50 = vld [vmem:[#allocation41 + $0x118] sm:$0xff] }
0x1405   : > { %10195 = vmatprep.subr.bf16.mxu0 %v13150_v19  ;;  %v10237_v55 = vpack.c.bf16 %v2609_v50, %v2608_v53  ;;  %v2671_v50 = vld [vmem:[#allocation50 + $0x128] sm:$0xff] }
0x1406   : > { %10224 = vmatpush3.bf16.msra.mxu1 %v10223_v33 }
0x1407   : > { %10226 = vmatprep.subr.bf16.mxu1 %v10225_v32  ;;  %v2666_v32 = vld [vmem:[#allocation50 + $0x100] sm:$0xff] }
0x1408   : > { %10197 = vmatpush3.bf16.msra.mxu0 %v10196_v54  ;;  %v10290_v36 = vpack.c.bf16 %v2667_v37, %v2666_v32  ;;  %v2647_v32 = vld [vmem:[#allocation50 + $0x68] sm:$0xff] }
0x1409   : > { %10198 = vmatprep.subr.bf16.mxu0 %v13150_v19  ;;  %v10283_v37 = vpack.c.bf16 %v2647_v32, %v2646_v26  ;;  %v2684_v26 = vld [vmem:[#allocation52 + $0x10] sm:$0xff]  ;;  %v2685_v32 = vld [vmem:[#allocation52 + $0x18] sm:$0xff] }
0x140a   : > { %10228 = vmatpush3.bf16.msra.mxu1 %v10227_v29  ;;  %v2634_v29 = vld [vmem:[#allocation50] sm:$0xff] }
0x140b   : > { %10230 = vmatprep.subr.bf16.mxu1 %v10229_v39  ;;  %v10259_v39 = vpack.c.bf16 %v2635_v38, %v2634_v29  ;;  %v2664_v29 = vld [vmem:[#allocation50 + $0xf0] sm:$0xff]  ;;  %v2665_v38 = vld [vmem:[#allocation50 + $0xf8] sm:$0xff] }
0x140c   : > { %10200 = vmatpush3.bf16.msra.mxu0 %v10199_v57  ;;  %v2610_v57 = vld [vmem:[#allocation41 + $0x120] sm:$0xff] }
0x140d   : > { %10233 = vmatprep.subr.bf16.mxu0 %v13150_v19  ;;  %v10240_v21 = vpack.c.bf16 %v2611_v48, %v2610_v57  ;;  %v2657_v57 = vld [vmem:[#allocation50 + $0xb8] sm:$0xff]  ;;  %v2672_v48 = vld [vmem:[#allocation50 + $0x130] sm:$0xff] }
0x140e   : > { %10232 = vmatpush3.bf16.msra.mxu1 %v10231_v47  ;;  %v2668_v47 = vld [vmem:[#allocation50 + $0x110] sm:$0xff]  ;;  %v10299_v2 = vpack.c.bf16 %v2673_v56, %v2672_v48 }
0x140f   : > { %10258 = vmatprep.subr.bf16.mxu1 %v10257_v35 }
0x14ce   : > { %v6236_v49 = vpop.f32.mrb[44].mxu0 }
0x14cf   : > { %v6246_v46 = vmul.f32 %v9153_v43, %v6236_v49  ;;  %v9747_v51 = vpop.f32.mrb[45].mxu0  ;;  %v10261_v43 = vpack.c.bf16 %v2653_v41, %v2652_v40  ;;  %v10293_v49 = vpack.c.bf16 %v2669_v42, %v2668_v47  ;;  %v2681_v40 = vld [vmem:[#allocation50 + $0x178] sm:$0xff]  ;;  %v2648_v41 = vld [vmem:[#allocation50 + $0x70] sm:$0xff] }
0x14d0   : > { %v2654_v51 = vld [vmem:[#allocation50 + $0xa0] sm:$0xff]  ;;  %v2649_v47 = vld [vmem:[#allocation50 + $0x78] sm:$0xff] }
0x14d1   : > { %v6253_v58 = vadd.f32 %v9154_v44, %v6246_v46  ;;  %v2637_v44 = vld [vmem:[#allocation50 + $0x18] sm:$0xff]  ;;  %v10287_v42 = vpack.c.bf16 %v2649_v47, %v2648_v41  ;;  %v2686_v41 = vld [vmem:[#allocation52 + $0x20] sm:$0xff]  ;;  %v2687_v47 = vld [vmem:[#allocation52 + $0x28] sm:$0xff] }
0x14d2   : > { %v6341_v52 = vpop.f32.mrb[46].mxu0  ;;  %v10263_v46 = vpack.c.bf16 %v2637_v44, %v2636_v18 }
0x14d3   : > { %v6255_v25 = vmin.f32 %v6253_v58, 0.0  ;;  %9772 = vmatmul.mubr.msk.f32.vlgmr.msra.gmra.mrb[48].mxu0 %vm3765_vm14, %v6341_v52  ;;  %v9754_v54 = vpop.f32.mrb[47].mxu0  ;;  %vm6254_vm14 = vcmp.gt.f32.partialorder %v6253_v58, 0.0  ;;  %v2638_v52 = vld [vmem:[#allocation50 + $0x20] sm:$0xff] }
0x14d4   : > { %10235 = vmatpush3.bf16.msra.mxu0 %v10234_v17  ;;  %9806 = vmatprep.mubr.msk.f32.mxu0 %vm13152_vm15, %v13151_v60  ;;  %v2655_v17 = vld [vmem:[#allocation50 + $0xa8] sm:$0xff] }
0x14d5   : > { %v6256_v5 = vmul.f32 1.442695, %v6255_v25  ;;  %10236 = vmatprep.subr.bf16.mxu0 %v13150_v19  ;;  %v10265_v53 = vpack.c.bf16 %v2655_v17, %v2654_v51  ;;  %v2639_v25 = vld [vmem:[#allocation50 + $0x28] sm:$0xff]  ;;  %v9159_v51 = vld [vmem:[#allocation37] ss:$0 sm:$0xff] }
0x14d7   : > { %11656 = vpow2.f32 %v6256_v5  ;;  %v2656_v5 = vld [vmem:[#allocation50 + $0xb0] sm:$0xff] }
0x14d8   : > { %10238 = vmatpush3.bf16.msra.mxu0 %v10237_v55  ;;  %v10267_v55 = vpack.c.bf16 %v2639_v25, %v2638_v52  ;;  %v9162_v25 = vld [vmem:[#allocation46] ss:$0 sm:$0xff] }
0x14d9   : > { %10239 = vmatprep.subr.bf16.mxu0 %v13150_v19 }
0x14dc   : > { %10241 = vmatpush3.bf16.msra.mxu0 %v10240_v21  ;;  %v10269_v21 = vpack.c.bf16 %v2657_v57, %v2656_v5  ;;  %v9163_v57 = vld [vmem:[#allocation44] ss:$0 sm:$0xff] }
0x14dd   : > { %10242 = vmatprep.subr.bf16.mxu0 %v13150_v19 }
0x14e0   : > { %10244 = vmatpush3.bf16.msra.mxu0 %v10243_v62  ;;  %v2641_v62 = vld [vmem:[#allocation50 + $0x38] sm:$0xff] }
0x14e1   : > { %v11657_v1 = vpop.eup %11656  ;;  %10245 = vmatprep.subr.bf16.mxu0 %v13150_v19  ;;  %v10271_v28 = vpack.c.bf16 %v2641_v62, %v2640_v59 }
0x14e2   : > { %v9155_v6 = vadd.f32 -1.0, %v11657_v1  ;;  %v2659_v1 = vld [vmem:[#allocation50 + $0xc8] sm:$0xff] }
0x14e4   : > { %v6259_v22 = vsel %vm6254_vm14, %v6253_v58, %v9155_v6  ;;  %10247 = vmatpush3.bf16.msra.mxu0 %v10246_v63  ;;  %v2670_v58 = vld [vmem:[#allocation50 + $0x120] sm:$0xff]  ;;  %v2675_v6 = vld [vmem:[#allocation50 + $0x148] sm:$0xff] }
0x14e5   : > { %v6261_v8 = vrot.slane %v6259_v22, 7  ;;  %10248 = vmatprep.subr.bf16.mxu0 %v13150_v19  ;;  %v10296_v54 = vpack.c.bf16 %v2671_v50, %v2670_v58  ;;  %v2658_v63 = vld [vmem:[#allocation50 + $0xc0] sm:$0xff] }
0x14e6   : > { %v10273_v4 = vpack.c.bf16 %v2659_v1, %v2658_v63  ;;  %v2642_v22 = vld [vmem:[#allocation50 + $0x40] sm:$0xff] }
0x14e7   : > { %v6263_v11 = vsel %vm3671_vm6, 0.0, %v6261_v8  ;;  %v6264_v12 = vsel %vm3671_vm6, %v6261_v8, 0.0 }
0x14e8   : > { %10250 = vmatpush3.bf16.msra.mxu0 %v10249_v7  ;;  %v6267_v13 = vrot.slane %v6263_v11, 1  ;;  %v6268_v14 = vrot.slane %v6264_v12, 1  ;;  %v6271_v30 = vrot.slane %v6263_v11, 2  ;;  %v6272_v31 = vrot.slane %v6264_v12, 2  ;;  %v2643_v7 = vld [vmem:[#allocation50 + $0x48] sm:$0xff]  ;;  %v2661_v11 = vld [vmem:[#allocation50 + $0xd8] sm:$0xff] }
0x14e9   : > { %10251 = vmatprep.subr.bf16.mxu0 %v13150_v19  ;;  %v10275_v15 = vpack.c.bf16 %v2643_v7, %v2642_v22  ;;  %v2676_v12 = vld [vmem:[#allocation50 + $0x150] sm:$0xff] }
0x14ea   : > { %v6269_v20 = vsel %vm3694_vm9, %v6267_v13, %v6268_v14  ;;  %v6273_v33 = vsel %vm3726_vm8, %v6271_v30, %v6272_v31  ;;  %v10277_v13 = vpack.c.bf16 %v2661_v11, %v2660_v9  ;;  %v2677_v14 = vld [vmem:[#allocation50 + $0x158] sm:$0xff]  ;;  %v2663_v30 = vld [vmem:[#allocation50 + $0xe8] sm:$0xff]  ;;  %v2678_v31 = vld [vmem:[#allocation50 + $0x160] sm:$0xff] }
0x14eb   : > { %6496 = vmatprep.mubr.f32.mxu1 %v6269_v20  ;;  %v10305_v24 = vpack.c.bf16 %v2677_v14, %v2676_v12  ;;  %v10308_v35 = vpack.c.bf16 %v2679_v34, %v2678_v31  ;;  %v2698_v9 = vld [vmem:[#allocation52 + $0x80] sm:$0xff]  ;;  %v2699_v11 = vld [vmem:[#allocation52 + $0x88] sm:$0xff]  ;;  %v2716_v31 = vld [vmem:[#allocation52 + $0x110] sm:$0xff] }
0x14ec   : > { %10253 = vmatpush3.bf16.msra.mxu0 %v10252_v10  ;;  %9161 = vmatmul.mubr.msk.f32.vlgmr.msra.gmra.mrb[40].mxu1 %vm14995_vm12, %v6261_v8  ;;  %v10302_v8 = vpack.c.bf16 %v2675_v6, %v2674_v3  ;;  %v2644_v10 = vld [vmem:[#allocation50 + $0x50] sm:$0xff]  ;;  %v2714_v12 = vld [vmem:[#allocation52 + $0x100] sm:$0xff]  ;;  %v10313_v14 = vpack.c.bf16 %v2699_v11, %v2698_v9  ;;  %v2717_v34 = vld [vmem:[#allocation52 + $0x118] sm:$0xff] }
0x14ed   : > { %10254 = vmatprep.subr.bf16.mxu0 %v13150_v19  ;;  %10260 = vmatpush3.bf16.msra.mxu1 %v10259_v39  ;;  %v10279_v20 = vpack.c.bf16 %v2645_v23, %v2644_v10  ;;  %v10285_v39 = vpack.c.bf16 %v2665_v38, %v2664_v29  ;;  %v2682_v23 = vld [vmem:[#allocation52] sm:$0xff]  ;;  %v2703_v38 = vld [vmem:[#allocation52 + $0xa8] sm:$0xff] }
0x14ee   : > { %10262 = vmatprep.subr.bf16.mxu1 %v10261_v43  ;;  %v2702_v29 = vld [vmem:[#allocation52 + $0xa0] sm:$0xff]  ;;  %v2727_v11 = vld [vmem:[#allocation52 + $0x168] sm:$0xff] }
0x14f0   : > { %10256 = vmatpush3.bf16.msra.mxu0 %v10255_v27  ;;  %v2662_v27 = vld [vmem:[#allocation50 + $0xe0] sm:$0xff] }
0x14f1   : > { %10289 = vmatprep.subr.bf16.mxu0 %v13150_v19  ;;  %10264 = vmatpush3.bf16.msra.mxu1 %v10263_v46 }
0x14f2   : > { %10266 = vmatprep.subr.bf16.mxu1 %v10265_v53 }
0x14f3   : > { %9807 = vmatmul.mubr.f32.vlgmr.msra.gmra.mrb[50].mxu0 %v6273_v33  ;;  %v10281_v33 = vpack.c.bf16 %v2663_v30, %v2662_v27  ;;  %v2700_v27 = vld [vmem:[#allocation52 + $0x90] sm:$0xff]  ;;  %v2701_v30 = vld [vmem:[#allocation52 + $0x98] sm:$0xff] }
0x14f4   : > { %9841 = vmatprep.mubr.msk.f32.mxu0 %vm13152_vm15, %v13151_v60  ;;  %10291 = vmatpush3.bf16.msra.mxu0 %v10290_v36  ;;  %v2680_v36 = vld [vmem:[#allocation50 + $0x170] sm:$0xff] }
0x14f5   : > { %10292 = vmatprep.subr.bf16.mxu0 %v13150_v19  ;;  %10268 = vmatpush3.bf16.msra.mxu1 %v10267_v55  ;;  %v10311_v43 = vpack.c.bf16 %v2681_v40, %v2680_v36  ;;  %v2718_v36 = vld [vmem:[#allocation52 + $0x120] sm:$0xff]  ;;  %v2719_v40 = vld [vmem:[#allocation52 + $0x128] sm:$0xff] }
0x14f6   : > { %10270 = vmatprep.subr.bf16.mxu1 %v10269_v21 }
0x14f8   : > { %10294 = vmatpush3.bf16.msra.mxu0 %v10293_v49  ;;  %v9158_v49 = vld [vmem:[#allocation38] ss:$0 sm:$0xff] }
0x14f9   : > { %10295 = vmatprep.subr.bf16.mxu0 %v13150_v19  ;;  %10272 = vmatpush3.bf16.msra.mxu1 %v10271_v28 }
0x14fa   : > { %10274 = vmatprep.subr.bf16.mxu1 %v10273_v4 }
0x14fc   : > { %10297 = vmatpush3.bf16.msra.mxu0 %v10296_v54 }
0x14fd   : > { %10298 = vmatprep.subr.bf16.mxu0 %v13150_v19  ;;  %10276 = vmatpush3.bf16.msra.mxu1 %v10275_v15 }
0x14fe   : > { %10278 = vmatprep.subr.bf16.mxu1 %v10277_v13  ;;  %v2715_v13 = vld [vmem:[#allocation52 + $0x108] sm:$0xff] }
0x14ff   : > { %v10346_v10 = vpack.c.bf16 %v2715_v13, %v2714_v12  ;;  %v2694_v12 = vld [vmem:[#allocation52 + $0x60] sm:$0xff]  ;;  %v2695_v13 = vld [vmem:[#allocation52 + $0x68] sm:$0xff] }
0x1500   : > { %10300 = vmatpush3.bf16.msra.mxu0 %v10299_v2 }
0x1501   : > { %10301 = vmatprep.subr.bf16.mxu0 %v13150_v19  ;;  %10280 = vmatpush3.bf16.msra.mxu1 %v10279_v20 }
0x1502   : > { %10282 = vmatprep.subr.bf16.mxu1 %v10281_v33  ;;  %v10317_v33 = vpack.c.bf16 %v2701_v30, %v2700_v27  ;;  %v2729_v30 = vld [vmem:[#allocation52 + $0x178] sm:$0xff] }
0x1504   : > { %10303 = vmatpush3.bf16.msra.mxu0 %v10302_v8 }
0x1505   : > { %10304 = vmatprep.subr.bf16.mxu0 %v13150_v19  ;;  %10284 = vmatpush3.bf16.msra.mxu1 %v10283_v37  ;;  %v10319_v37 = vpack.c.bf16 %v2685_v32, %v2684_v26 }
0x1506   : > { %10286 = vmatprep.subr.bf16.mxu1 %v10285_v39  ;;  %v10321_v39 = vpack.c.bf16 %v2703_v38, %v2702_v29 }
0x1508   : > { %10306 = vmatpush3.bf16.msra.mxu0 %v10305_v24  ;;  %v2683_v24 = vld [vmem:[#allocation52 + $0x8] sm:$0xff] }
0x1509   : > { %10307 = vmatprep.subr.bf16.mxu0 %v13150_v19  ;;  %10288 = vmatpush3.bf16.msra.mxu1 %v10287_v42  ;;  %v10315_v20 = vpack.c.bf16 %v2683_v24, %v2682_v23  ;;  %v10323_v42 = vpack.c.bf16 %v2687_v47, %v2686_v41  ;;  %v2712_v23 = vld [vmem:[#allocation52 + $0xf0] sm:$0xff]  ;;  %v2713_v24 = vld [vmem:[#allocation52 + $0xf8] sm:$0xff] }
0x150a   : > { %10314 = vmatprep.subr.bf16.mxu1 %v10313_v14  ;;  %v10341_v27 = vpack.c.bf16 %v2713_v24, %v2712_v23  ;;  %v2740_v23 = vld [vmem:[#allocation61 + $0x20] sm:$0xff]  ;;  %v2742_v24 = vld [vmem:[#allocation61 + $0x30] sm:$0xff] }
0x150c   : > { %10309 = vmatpush3.bf16.msra.mxu0 %v10308_v35  ;;  %v10349_v35 = vpack.c.bf16 %v2717_v34, %v2716_v31  ;;  %v2696_v31 = vld [vmem:[#allocation52 + $0x70] sm:$0xff] }
0x150d   : > { %10310 = vmatprep.subr.bf16.mxu0 %v13150_v19 }
0x1510   : > { %10312 = vmatpush3.bf16.msra.mxu0 %v10311_v43  ;;  %v10352_v43 = vpack.c.bf16 %v2719_v40, %v2718_v36  ;;  %v9167_v36 = vld [vmem:[#allocation49] ss:$0 sm:$0xff]  ;;  %v9168_v40 = vld [vmem:[#allocation47] ss:$0 sm:$0xff] }
0x1511   : > { %10345 = vmatprep.subr.bf16.mxu0 %v13150_v19 }
0x15a6   : > { %v6414_v18 = vpop.f32.mrb[48].mxu0 }
0x15a7   : > { %v9773_v44 = vpop.f32.mrb[49].mxu0  ;;  %v6424_v46 = vmul.f32 %v9158_v49, %v6414_v18  ;;  %v2704_v18 = vld [vmem:[#allocation52 + $0xb0] sm:$0xff] }
0x15a8   : > { %v2705_v44 = vld [vmem:[#allocation52 + $0xb8] sm:$0xff]  ;;  %v2720_v49 = vld [vmem:[#allocation52 + $0x130] sm:$0xff] }
0x15a9   : > { %v6431_v53 = vadd.f32 %v9159_v51, %v6424_v46  ;;  %v10325_v46 = vpack.c.bf16 %v2705_v44, %v2704_v18  ;;  %v2721_v51 = vld [vmem:[#allocation52 + $0x138] sm:$0xff] }
0x15bf   : > { %v9364_v17 = vpop.f32.mrb[40].mxu1 }
0x15c0   : > { %v9365_v58 = vpop.f32.mrb[41].mxu1 }
0x15c1   : > { %v9366_v50 = vadd.f32 %v9365_v58, %v9364_v17  ;;  %v2688_v17 = vld [vmem:[#allocation52 + $0x30] sm:$0xff]  ;;  %v2689_v58 = vld [vmem:[#allocation52 + $0x38] sm:$0xff] }
0x15c3   : > { %v6499_v52 = vadd.f32 %v9366_v50, %v6431_v53  ;;  %v10355_v53 = vpack.c.bf16 %v2721_v51, %v2720_v49  ;;  %v10327_v50 = vpack.c.bf16 %v2689_v58, %v2688_v17 }
0x15c6   : > { %v6568_v54 = vpop.f32.mrb[50].mxu0 }
0x15c7   : > { %v6569_v55 = vadd.f32 %v6568_v54, %v6499_v52  ;;  %v9808_v5 = vpop.f32.mrb[51].mxu0  ;;  %v2706_v52 = vld [vmem:[#allocation52 + $0xc0] sm:$0xff] }
0x15c8   : > { %v2722_v54 = vld [vmem:[#allocation52 + $0x140] sm:$0xff]  ;;  %v2723_v5 = vld [vmem:[#allocation52 + $0x148] sm:$0xff] }
0x15c9   : > { %v6578_v48 = vmul.f32 %v9162_v25, %v6569_v55  ;;  %v2707_v25 = vld [vmem:[#allocation52 + $0xc8] sm:$0xff] }
0x15ca   : > { %v10329_v55 = vpack.c.bf16 %v2707_v25, %v2706_v52 }
0x15cb   : > { %v6585_v21 = vadd.f32 %v9163_v57, %v6578_v48  ;;  %v2690_v57 = vld [vmem:[#allocation52 + $0x40] sm:$0xff]  ;;  %v2691_v48 = vld [vmem:[#allocation52 + $0x48] sm:$0xff] }
0x15cd   : > { %v6587_v56 = vmin.f32 %v6585_v21, 0.0  ;;  %vm6586_vm1 = vcmp.gt.f32.partialorder %v6585_v21, 0.0 }
0x15cf   : > { %v6588_v59 = vmul.f32 1.442695, %v6587_v56  ;;  %v10331_v56 = vpack.c.bf16 %v2691_v48, %v2690_v57 }
0x15d1   : > { %11658 = vpow2.f32 %v6588_v59  ;;  %v2708_v59 = vld [vmem:[#allocation52 + $0xd0] sm:$0xff] }
0x15db   : > { %v11659_v62 = vpop.eup %11658 }
0x15dc   : > { %v9164_v2 = vadd.f32 -1.0, %v11659_v62  ;;  %v2709_v62 = vld [vmem:[#allocation52 + $0xd8] sm:$0xff] }
0x15de   : > { %v15015_v28 = vsel %vm6586_vm1, %v6585_v21, %v9164_v2  ;;  %v10358_v21 = vpack.c.bf16 %v2723_v5, %v2722_v54  ;;  %v2724_v2 = vld [vmem:[#allocation52 + $0x150] sm:$0xff] }
0x15df   : > { %v6593_v63 = vrot.slane %v15015_v28, 7 }
0x15e1   : > { %v6595_v1 = vsel %vm3671_vm6, 0.0, %v6593_v63  ;;  %v6596_v3 = vsel %vm3671_vm6, %v6593_v63, 0.0 }
0x15e2   : > { %v6599_v4 = vrot.slane %v6595_v1, 1  ;;  %v6600_v6 = vrot.slane %v6596_v3, 1  ;;  %v6603_v22 = vrot.slane %v6595_v1, 2  ;;  %v6604_v7 = vrot.slane %v6596_v3, 2  ;;  %v2725_v1 = vld [vmem:[#allocation52 + $0x158] sm:$0xff]  ;;  %v2692_v3 = vld [vmem:[#allocation52 + $0x50] sm:$0xff] }
0x15e4   : > { %v6601_v8 = vsel %vm3694_vm9, %v6599_v4, %v6600_v6  ;;  %v6605_v15 = vsel %vm3726_vm8, %v6603_v22, %v6604_v7  ;;  %v2693_v4 = vld [vmem:[#allocation52 + $0x58] sm:$0xff]  ;;  %v10361_v6 = vpack.c.bf16 %v2725_v1, %v2724_v2  ;;  %v2710_v7 = vld [vmem:[#allocation52 + $0xe0] sm:$0xff] }
0x15e5   : > { %6671 = vmatprep.mubr.f32.mxu1 %v6601_v8  ;;  %9842 = vmatmul.mubr.f32.vlgmr.msra.gmra.mrb[52].mxu0 %v6605_v15  ;;  %v10335_v22 = vpack.c.bf16 %v2693_v4, %v2692_v3  ;;  %v2711_v8 = vld [vmem:[#allocation52 + $0xe8] sm:$0xff]  ;;  %v2726_v15 = vld [vmem:[#allocation52 + $0x160] sm:$0xff]  ;;  %v2737_v4 = vld [vmem:[#allocation61 + $0x8] sm:$0xff] }
0x15e6   : > { %9166 = vmatmul.mubr.msk.f32.vlgmr.msra.gmra.mrb[42].mxu1 %vm14995_vm12, %v6593_v63  ;;  %9876 = vmatprep.mubr.msk.f32.mxu0 %vm13152_vm15, %v13151_v60  ;;  %v10333_v63 = vpack.c.bf16 %v2709_v62, %v2708_v59  ;;  %v10337_v9 = vpack.c.bf16 %v2711_v8, %v2710_v7  ;;  %v10364_v14 = vpack.c.bf16 %v2727_v11, %v2726_v15  ;;  %v2736_v7 = vld [vmem:[#allocation61] sm:$0xff]  ;;  %v2738_v8 = vld [vmem:[#allocation61 + $0x10] sm:$0xff]  ;;  %v2743_v11 = vld [vmem:[#allocation61 + $0x38] sm:$0xff] }
0x15e7   : > { %10347 = vmatpush3.bf16.msra.mxu0 %v10346_v10  ;;  %10316 = vmatpush3.bf16.msra.mxu1 %v10315_v20  ;;  %v10339_v10 = vpack.c.bf16 %v2695_v13, %v2694_v12  ;;  %v2728_v20 = vld [vmem:[#allocation52 + $0x170] sm:$0xff] }
0x15e8   : > { %10348 = vmatprep.subr.bf16.mxu0 %v13150_v19  ;;  %10318 = vmatprep.subr.bf16.mxu1 %v10317_v33  ;;  %v2697_v33 = vld [vmem:[#allocation52 + $0x78] sm:$0xff]  ;;  %v10367_v34 = vpack.c.bf16 %v2729_v30, %v2728_v20  ;;  %v10375_v30 = vpack.c.bf16 %v2742_v24, %v2740_v23 }
0x15e9   : > { %v10343_v26 = vpack.c.bf16 %v2697_v33, %v2696_v31  ;;  %v2745_v20 = vld [vmem:[#allocation61 + $0x48] sm:$0xff]  ;;  %v2744_v33 = vld [vmem:[#allocation61 + $0x40] sm:$0xff]  ;;  %v2782_v23 = vld [vmem:[#allocation61 + $0x170] sm:$0xff] }
0x15eb   : > { %10350 = vmatpush3.bf16.msra.mxu0 %v10349_v35  ;;  %10320 = vmatpush3.bf16.msra.mxu1 %v10319_v37 }
0x15ec   : > { %10351 = vmatprep.subr.bf16.mxu0 %v13150_v19  ;;  %10322 = vmatprep.subr.bf16.mxu1 %v10321_v39 }
0x15ef   : > { %10353 = vmatpush3.bf16.msra.mxu0 %v10352_v43  ;;  %10324 = vmatpush3.bf16.msra.mxu1 %v10323_v42 }
0x15f0   : > { %10354 = vmatprep.subr.bf16.mxu0 %v13150_v19  ;;  %10326 = vmatprep.subr.bf16.mxu1 %v10325_v46 }
0x15f3   : > { %10356 = vmatpush3.bf16.msra.mxu0 %v10355_v53  ;;  %10328 = vmatpush3.bf16.msra.mxu1 %v10327_v50 }
0x15f4   : > { %10357 = vmatprep.subr.bf16.mxu0 %v13150_v19  ;;  %10330 = vmatprep.subr.bf16.mxu1 %v10329_v55 }
0x15f7   : > { %10359 = vmatpush3.bf16.msra.mxu0 %v10358_v21  ;;  %10332 = vmatpush3.bf16.msra.mxu1 %v10331_v56 }
0x15f8   : > { %10360 = vmatprep.subr.bf16.mxu0 %v13150_v19  ;;  %10334 = vmatprep.subr.bf16.mxu1 %v10333_v63 }
0x15fb   : > { %10362 = vmatpush3.bf16.msra.mxu0 %v10361_v6  ;;  %10336 = vmatpush3.bf16.msra.mxu1 %v10335_v22  ;;  %v2739_v6 = vld [vmem:[#allocation61 + $0x18] sm:$0xff] }
0x15fc   : > { %10363 = vmatprep.subr.bf16.mxu0 %v13150_v19  ;;  %10338 = vmatprep.subr.bf16.mxu1 %v10337_v9  ;;  %v2741_v9 = vld [vmem:[#allocation61 + $0x28] sm:$0xff]  ;;  %v10369_v12 = vpack.c.bf16 %v2739_v6, %v2737_v4  ;;  %v2772_v4 = vld [vmem:[#allocation61 + $0x120] sm:$0xff]  ;;  %v2774_v6 = vld [vmem:[#allocation61 + $0x130] sm:$0xff] }
0x15ff   : > { %10365 = vmatpush3.bf16.msra.mxu0 %v10364_v14  ;;  %10340 = vmatpush3.bf16.msra.mxu1 %v10339_v10  ;;  %v10371_v14 = vpack.c.bf16 %v2738_v8, %v2736_v7  ;;  %v10373_v10 = vpack.c.bf16 %v2743_v11, %v2741_v9  ;;  %v2777_v7 = vld [vmem:[#allocation61 + $0x148] sm:$0xff]  ;;  %v2779_v8 = vld [vmem:[#allocation61 + $0x158] sm:$0xff]  ;;  %v2776_v9 = vld [vmem:[#allocation61 + $0x140] sm:$0xff] }
0x1600   : > { %10366 = vmatprep.subr.bf16.mxu0 %v13150_v19  ;;  %10342 = vmatprep.subr.bf16.mxu1 %v10341_v27  ;;  %v2747_v27 = vld [vmem:[#allocation61 + $0x58] sm:$0xff]  ;;  %v2778_v11 = vld [vmem:[#allocation61 + $0x150] sm:$0xff] }
0x1601   : > { %v10377_v31 = vpack.c.bf16 %v2747_v27, %v2745_v20  ;;  %v2785_v20 = vld [vmem:[#allocation61 + $0x188] sm:$0xff]  ;;  %v2787_v27 = vld [vmem:[#allocation61 + $0x198] sm:$0xff] }
0x1603   : > { %10368 = vmatpush3.bf16.msra.mxu0 %v10367_v34  ;;  %10344 = vmatpush3.bf16.msra.mxu1 %v10343_v26  ;;  %v2746_v34 = vld [vmem:[#allocation61 + $0x50] sm:$0xff]  ;;  %v2749_v26 = vld [vmem:[#allocation61 + $0x68] sm:$0xff] }
0x1604   : > { %9879 = vmatprep.subr.mxu1 %v13151_v60 }
0x16b8   : > { %v6743_v32 = vpop.f32.mrb[52].mxu0 }
0x16b9   : > { %v9416_v35 = vpop.f32.mrb[42].mxu1  ;;  %v9843_v37 = vpop.f32.mrb[53].mxu0 }
0x16ba   : > { %v9417_v29 = vpop.f32.mrb[43].mxu1 }
0x16bb   : > { %v9418_v38 = vadd.f32 %v9417_v29, %v9416_v35  ;;  %v10379_v35 = vpack.c.bf16 %v2746_v34, %v2744_v33  ;;  %v2748_v29 = vld [vmem:[#allocation61 + $0x60] sm:$0xff]  ;;  %v2786_v33 = vld [vmem:[#allocation61 + $0x190] sm:$0xff] }
0x16bd   : > { %v6744_v39 = vadd.f32 %v9418_v38, %v6743_v32  ;;  %v2751_v32 = vld [vmem:[#allocation61 + $0x78] sm:$0xff]  ;;  %v2750_v38 = vld [vmem:[#allocation61 + $0x70] sm:$0xff] }
0x16be   : > { %v10381_v37 = vpack.c.bf16 %v2751_v32, %v2749_v26  ;;  %v2789_v26 = vld [vmem:[#allocation61 + $0x1a8] sm:$0xff]  ;;  %v2791_v32 = vld [vmem:[#allocation61 + $0x1b8] sm:$0xff] }
0x16bf   : > { %v6753_v19 = vmul.f32 %v9167_v36, %v6744_v39  ;;  %v2753_v36 = vld [vmem:[#allocation61 + $0x88] sm:$0xff]  ;;  %v2755_v39 = vld [vmem:[#allocation61 + $0x98] sm:$0xff] }
0x16c1   : > { %v6760_v41 = vadd.f32 %v9168_v40, %v6753_v19  ;;  %v10383_v40 = vpack.c.bf16 %v2750_v38, %v2748_v29  ;;  %v2752_v19 = vld [vmem:[#allocation61 + $0x80] sm:$0xff]  ;;  %v2790_v29 = vld [vmem:[#allocation61 + $0x1b0] sm:$0xff] }
0x16c3   : > { %v6762_v47 = vmin.f32 %v6760_v41, 0.0  ;;  %vm6761_vm2 = vcmp.gt.f32.partialorder %v6760_v41, 0.0 }
0x16c5   : > { %v6763_v43 = vmul.f32 1.442695, %v6762_v47  ;;  %v2757_v47 = vld [vmem:[#allocation61 + $0xa8] sm:$0xff] }
0x16c7   : > { %11660 = vpow2.f32 %v6763_v43  ;;  %v2759_v43 = vld [vmem:[#allocation61 + $0xb8] sm:$0xff] }
0x16d1   : > { %v11661_v42 = vpop.eup %11660 }
0x16d2   : > { %v9169_v18 = vadd.f32 -1.0, %v11661_v42 }
0x16d4   : > { %v6766_v44 = vsel %vm6761_vm2, %v6760_v41, %v9169_v18  ;;  %v2754_v41 = vld [vmem:[#allocation61 + $0x90] sm:$0xff]  ;;  %v10389_v18 = vpack.c.bf16 %v2759_v43, %v2757_v47  ;;  %v2797_v47 = vld [vmem:[#allocation61 + $0x1e8] sm:$0xff]  ;;  %v2799_v43 = vld [vmem:[#allocation61 + $0x1f8] sm:$0xff] }
0x16d5   : > { %v6768_v49 = vrot.slane %v6766_v44, 7  ;;  %v10387_v42 = vpack.c.bf16 %v2754_v41, %v2752_v19  ;;  %v2756_v44 = vld [vmem:[#allocation61 + $0xa0] sm:$0xff]  ;;  %v2794_v19 = vld [vmem:[#allocation61 + $0x1d0] sm:$0xff] }
0x16d7   : > { %v6770_v46 = vsel %vm3671_vm6, 0.0, %v6768_v49  ;;  %v6771_v51 = vsel %vm3671_vm6, %v6768_v49, 0.0 }
0x16d8   : > { %v6774_v17 = vrot.slane %v6770_v46, 1  ;;  %v6775_v58 = vrot.slane %v6771_v51, 1  ;;  %v6778_v53 = vrot.slane %v6770_v46, 2  ;;  %v6779_v50 = vrot.slane %v6771_v51, 2  ;;  %v2761_v46 = vld [vmem:[#allocation61 + $0xc8] sm:$0xff]  ;;  %v2763_v51 = vld [vmem:[#allocation61 + $0xd8] sm:$0xff] }
0x16da   : > { %v6776_v52 = vsel %vm3694_vm9, %v6774_v17, %v6775_v58  ;;  %v6780_v25 = vsel %vm3726_vm8, %v6778_v53, %v6779_v50  ;;  %v10393_v58 = vpack.c.bf16 %v2763_v51, %v2761_v46  ;;  %v2760_v53 = vld [vmem:[#allocation61 + $0xc0] sm:$0xff]  ;;  %v2762_v50 = vld [vmem:[#allocation61 + $0xd0] sm:$0xff]  ;;  %v2801_v46 = vld [vmem:[#allocation61 + $0x208] sm:$0xff] }
0x16db   : > { %6846 = vmatprep.mubr.f32.mxu1 %v6776_v52  ;;  %9877 = vmatmul.mubr.f32.vlgmr.msra.gmra.mrb[54].mxu0 %v6780_v25  ;;  %v2765_v52 = vld [vmem:[#allocation61 + $0xe8] sm:$0xff]  ;;  %v2767_v25 = vld [vmem:[#allocation61 + $0xf8] sm:$0xff] }
0x16dc   : > { %9171 = vmatmul.mubr.msk.f32.vlgmr.msra.gmra.mrb[44].mxu1 %vm14995_vm12, %v6768_v49  ;;  %7258 = vmatprep.mubr.f32.mxu0 %v13151_v60  ;;  %v2758_v49 = vld [vmem:[#allocation61 + $0xb0] sm:$0xff]  ;;  %v2803_v51 = vld [vmem:[#allocation61 + $0x218] sm:$0xff]  ;;  %vm8346_vm12 = vcmask 24576  }
0x16dd   : > { %9881 = vmatprep.mubr.msk.f32.mxu1 %vm13152_vm15, %v13151_v60  ;;  %v10391_v17 = vpack.c.bf16 %v2758_v49, %v2756_v44  ;;  %v2798_v44 = vld [vmem:[#allocation61 + $0x1f0] sm:$0xff] }
0x17ae   : > { %v6918_v54 = vpop.f32.mrb[54].mxu0 }
0x17af   : > { %v9468_v55 = vpop.f32.mrb[44].mxu1  ;;  %v9878_v5 = vpop.f32.mrb[55].mxu0 }
0x17b0   : > { %v9469_v57 = vpop.f32.mrb[45].mxu1  ;;  %v2764_v5 = vld [vmem:[#allocation61 + $0xe0] sm:$0xff] }
0x17b1   : > { %v9470_v48 = vadd.f32 %v9469_v57, %v9468_v55  ;;  %v10397_v55 = vpack.c.bf16 %v2767_v25, %v2765_v52  ;;  %v2766_v57 = vld [vmem:[#allocation61 + $0xf0] sm:$0xff] }
0x17b3   : > { %v6849_v21 = vadd.f32 %v9470_v48, %v15015_v28  ;;  %v2769_v48 = vld [vmem:[#allocation61 + $0x108] sm:$0xff] }
0x17b5   : > { %v6919_v56 = vadd.f32 %v6918_v54, %v6849_v21  ;;  %v10395_v54 = vpack.c.bf16 %v2762_v50, %v2760_v53  ;;  %v2771_v21 = vld [vmem:[#allocation61 + $0x118] sm:$0xff]  ;;  %v9174_v53 = vld [vmem:[#allocation53] ss:$0 sm:$0xff] }
0x17b7   : > { %v6923_v59 = vrot.slane %v6919_v56, 7  ;;  %v10399_v56 = vpack.c.bf16 %v2766_v57, %v2764_v5 }
0x17b9   : > { %v6925_v62 = vsel %vm3671_vm6, -1e+30, %v6923_v59  ;;  %v6926_v2 = vsel %vm3671_vm6, %v6923_v59, -1e+30  ;;  %v10401_v59 = vpack.c.bf16 %v2771_v21, %v2769_v48 }
0x17ba   : > { %v6929_v16 = vrot.slane %v6925_v62, 1  ;;  %v6930_v63 = vrot.slane %v6926_v2, 1  ;;  %v6934_v1 = vrot.slane %v6925_v62, 2  ;;  %v6935_v3 = vrot.slane %v6926_v2, 2  ;;  %v2770_v2 = vld [vmem:[#allocation61 + $0x110] sm:$0xff] }
0x17bc   : > { %v6931_v22 = vsel %vm3694_vm9, %v6929_v16, %v6930_v63  ;;  %v6936_v28 = vsel %vm3726_vm8, %v6934_v1, %v6935_v3  ;;  %v2773_v63 = vld [vmem:[#allocation61 + $0x128] sm:$0xff]  ;;  %v2775_v1 = vld [vmem:[#allocation61 + $0x138] sm:$0xff]  ;;  %vm7184_vm9 = vcmask 23552  }
0x17bd   : > { %v6933_v15 = vmax.f32 %v6925_v62, %v6931_v22  ;;  %v2768_v62 = vld [vmem:[#allocation61 + $0x100] sm:$0xff]  ;;  %v10405_v3 = vpack.c.bf16 %v2775_v1, %v2773_v63  ;;  %v10407_v22 = vpack.c.bf16 %v2774_v6, %v2772_v4  ;;  %v2807_v63 = vld [vmem:[#allocation61 + $0x238] sm:$0xff] }
0x17be   : > { %v10403_v16 = vpack.c.bf16 %v2770_v2, %v2768_v62  ;;  %v2802_v62 = vld [vmem:[#allocation61 + $0x210] sm:$0xff] }
0x17bf   : > { %v6938_v13 = vmax.f32 %v6933_v15, %v6936_v28  ;;  %v10409_v15 = vpack.c.bf16 %v2779_v8, %v2777_v7  ;;  %v10411_v28 = vpack.c.bf16 %v2778_v11, %v2776_v9  ;;  %v2806_v7 = vld [vmem:[#allocation61 + $0x230] sm:$0xff]  ;;  %v2809_v8 = vld [vmem:[#allocation61 + $0x248] sm:$0xff] }
0x17c1   : > { %9880 = vmatpush3.msra.mxu1 %v6938_v13  ;;  %v2783_v13 = vld [vmem:[#allocation61 + $0x178] sm:$0xff] }
0x17c2   : > { %9882 = vmatmul.mubr.msk.f32.vlgmr.msra.gmra.mrb[46].mxu1 %vm6939_vm3, %v14906_v61  ;;  %10370 = vmatprep.subr.bf16.mxu1 %v10369_v12  ;;  %v10385_v61 = vpack.c.bf16 %v2755_v39, %v2753_v36  ;;  %v2781_v12 = vld [vmem:[#allocation61 + $0x168] sm:$0xff]  ;;  %v2795_v39 = vld [vmem:[#allocation61 + $0x1d8] sm:$0xff] }
0x17c3   : > { %10372 = vmatpush1.bf16.msra.mxu1 %v10371_v14  ;;  %v10413_v14 = vpack.c.bf16 %v2783_v13, %v2781_v12  ;;  %v2793_v36 = vld [vmem:[#allocation61 + $0x1c8] sm:$0xff]  ;;  %v2810_v12 = vld [vmem:[#allocation61 + $0x250] sm:$0xff] }
0x17c4   : > { %10374 = vmatprep.subr.bf16.mxu1 %v10373_v10  ;;  %v2780_v10 = vld [vmem:[#allocation61 + $0x160] sm:$0xff]  ;;  %v2813_v13 = vld [vmem:[#allocation61 + $0x268] sm:$0xff] }
0x17c5   : > { %v10415_v24 = vpack.c.bf16 %v2782_v23, %v2780_v10 }
0x17c7   : > { %10376 = vmatpush1.bf16.msra.mxu1 %v10375_v30  ;;  %v10417_v30 = vpack.c.bf16 %v2787_v27, %v2785_v20  ;;  %v2814_v20 = vld [vmem:[#allocation61 + $0x270] sm:$0xff]  ;;  %v2817_v27 = vld [vmem:[#allocation61 + $0x288] sm:$0xff] }
0x17c8   : > { %10378 = vmatprep.subr.bf16.mxu1 %v10377_v31  ;;  %v2784_v31 = vld [vmem:[#allocation61 + $0x180] sm:$0xff] }
0x17c9   : > { %v10419_v34 = vpack.c.bf16 %v2786_v33, %v2784_v31 }
0x17cb   : > { %10380 = vmatpush1.bf16.msra.mxu1 %v10379_v35  ;;  %v10421_v35 = vpack.c.bf16 %v2791_v32, %v2789_v26  ;;  %v2818_v26 = vld [vmem:[#allocation61 + $0x290] sm:$0xff]  ;;  %v2821_v32 = vld [vmem:[#allocation61 + $0x2a8] sm:$0xff] }
0x17cc   : > { %10382 = vmatprep.subr.bf16.mxu1 %v10381_v37  ;;  %v2788_v37 = vld [vmem:[#allocation61 + $0x1a0] sm:$0xff] }
0x17cd   : > { %v10423_v38 = vpack.c.bf16 %v2790_v29, %v2788_v37 }
0x17cf   : > { %10384 = vmatpush1.bf16.msra.mxu1 %v10383_v40  ;;  %v10425_v40 = vpack.c.bf16 %v2795_v39, %v2793_v36  ;;  %v2822_v36 = vld [vmem:[#allocation61 + $0x2b0] sm:$0xff]  ;;  %v2825_v39 = vld [vmem:[#allocation61 + $0x2c8] sm:$0xff] }
0x17d0   : > { %10386 = vmatprep.subr.bf16.mxu1 %v10385_v61  ;;  %v2792_v61 = vld [vmem:[#allocation61 + $0x1c0] sm:$0xff] }
0x17d1   : > { %v10427_v41 = vpack.c.bf16 %v2794_v19, %v2792_v61 }
0x17d3   : > { %10388 = vmatpush1.bf16.msra.mxu1 %v10387_v42  ;;  %v2796_v42 = vld [vmem:[#allocation61 + $0x1e0] sm:$0xff] }
0x17d4   : > { %10390 = vmatprep.subr.bf16.mxu1 %v10389_v18  ;;  %v10429_v18 = vpack.c.bf16 %v2799_v43, %v2797_v47  ;;  %v10431_v49 = vpack.c.bf16 %v2798_v44, %v2796_v42  ;;  %v2826_v47 = vld [vmem:[#allocation61 + $0x2d0] sm:$0xff]  ;;  %v2829_v43 = vld [vmem:[#allocation61 + $0x2e8] sm:$0xff]  ;;  %v2831_v42 = vld [vmem:[#allocation61 + $0x2f8] sm:$0xff] }
0x17d5   : > { %v10461_v44 = vpack.c.bf16 %v2831_v42, %v2829_v43  ;;  %v2866_v43 = vld [vmem:[%s16015_s1 + $0x110] sm:$0xff] }
0x17d7   : > { %10392 = vmatpush1.bf16.msra.mxu1 %v10391_v17  ;;  %v10433_v17 = vpack.c.bf16 %v2803_v51, %v2801_v46  ;;  %v2830_v46 = vld [vmem:[#allocation61 + $0x2f0] sm:$0xff] }
0x17d8   : > { %10394 = vmatprep.subr.bf16.mxu1 %v10393_v58  ;;  %v9173_v58 = vld [vmem:[#allocation55] ss:$0 sm:$0xff] }
0x17db   : > { %10396 = vmatpush1.bf16.msra.mxu1 %v10395_v54 }
0x17dc   : > { %10398 = vmatprep.subr.bf16.mxu1 %v10397_v55 }
0x17df   : > { %10400 = vmatpush1.bf16.msra.mxu1 %v10399_v56 }
0x17e0   : > { %10402 = vmatprep.subr.bf16.mxu1 %v10401_v59  ;;  %v2800_v59 = vld [vmem:[#allocation61 + $0x200] sm:$0xff] }
0x17e1   : > { %v10435_v4 = vpack.c.bf16 %v2802_v62, %v2800_v59  ;;  %v2841_v59 = vld [vmem:[%s16015_s1 + $0x48] sm:$0xff]  ;;  %v2843_v62 = vld [vmem:[%s16015_s1 + $0x58] sm:$0xff] }
0x17e3   : > { %10404 = vmatpush1.bf16.msra.mxu1 %v10403_v16  ;;  %v2805_v16 = vld [vmem:[#allocation61 + $0x228] sm:$0xff] }
0x17e4   : > { %10406 = vmatprep.subr.bf16.mxu1 %v10405_v3  ;;  %v10437_v6 = vpack.c.bf16 %v2807_v63, %v2805_v16  ;;  %v10505_v16 = vpack.c.bf16 %v2843_v62, %v2841_v59  ;;  %v2840_v63 = vld [vmem:[%s16015_s1 + $0x40] sm:$0xff]  ;;  %v3034_v59 = vld [vmem:[#allocation62 + $0x50] sm:$0xff]  ;;  %v3037_v62 = vld [vmem:[#allocation62 + $0x68] sm:$0xff] }
0x17e7   : > { %10408 = vmatpush1.bf16.msra.mxu1 %v10407_v22  ;;  %v2804_v22 = vld [vmem:[#allocation61 + $0x220] sm:$0xff] }
0x17e8   : > { %10410 = vmatprep.subr.bf16.mxu1 %v10409_v15  ;;  %v2811_v15 = vld [vmem:[#allocation61 + $0x258] sm:$0xff]  ;;  %v10439_v9 = vpack.c.bf16 %v2806_v7, %v2804_v22  ;;  %v2844_v7 = vld [vmem:[%s16015_s1 + $0x60] sm:$0xff] }
0x17e9   : > { %v10441_v11 = vpack.c.bf16 %v2811_v15, %v2809_v8  ;;  %v2846_v8 = vld [vmem:[%s16015_s1 + $0x70] sm:$0xff]  ;;  %v2849_v15 = vld [vmem:[%s16015_s1 + $0x88] sm:$0xff] }
0x17eb   : > { %10412 = vmatpush1.bf16.msra.mxu1 %v10411_v28  ;;  %v2808_v28 = vld [vmem:[#allocation61 + $0x240] sm:$0xff] }
0x17ec   : > { %10414 = vmatprep.subr.bf16.mxu1 %v10413_v14  ;;  %v2815_v14 = vld [vmem:[#allocation61 + $0x278] sm:$0xff]  ;;  %v10443_v10 = vpack.c.bf16 %v2810_v12, %v2808_v28  ;;  %v2848_v12 = vld [vmem:[%s16015_s1 + $0x80] sm:$0xff] }
0x17ed   : > { %v10445_v23 = vpack.c.bf16 %v2815_v14, %v2813_v13  ;;  %v2850_v13 = vld [vmem:[%s16015_s1 + $0x90] sm:$0xff]  ;;  %v2853_v14 = vld [vmem:[%s16015_s1 + $0xa8] sm:$0xff] }
0x17ef   : > { %10416 = vmatpush1.bf16.msra.mxu1 %v10415_v24  ;;  %v2812_v24 = vld [vmem:[#allocation61 + $0x260] sm:$0xff] }
0x17f0   : > { %10418 = vmatprep.subr.bf16.mxu1 %v10417_v30  ;;  %v2819_v30 = vld [vmem:[#allocation61 + $0x298] sm:$0xff]  ;;  %v10447_v31 = vpack.c.bf16 %v2814_v20, %v2812_v24  ;;  %v2852_v20 = vld [vmem:[%s16015_s1 + $0xa0] sm:$0xff] }
0x17f1   : > { %v10449_v33 = vpack.c.bf16 %v2819_v30, %v2817_v27  ;;  %v2854_v27 = vld [vmem:[%s16015_s1 + $0xb0] sm:$0xff]  ;;  %v2857_v30 = vld [vmem:[%s16015_s1 + $0xc8] sm:$0xff] }
0x17f3   : > { %10420 = vmatpush1.bf16.msra.mxu1 %v10419_v34  ;;  %v2816_v34 = vld [vmem:[#allocation61 + $0x280] sm:$0xff] }
0x17f4   : > { %10422 = vmatprep.subr.bf16.mxu1 %v10421_v35  ;;  %v2823_v35 = vld [vmem:[#allocation61 + $0x2b8] sm:$0xff]  ;;  %v10451_v37 = vpack.c.bf16 %v2818_v26, %v2816_v34  ;;  %v2856_v26 = vld [vmem:[%s16015_s1 + $0xc0] sm:$0xff] }
0x17f5   : > { %v10453_v29 = vpack.c.bf16 %v2823_v35, %v2821_v32  ;;  %v2858_v32 = vld [vmem:[%s16015_s1 + $0xd0] sm:$0xff]  ;;  %v2861_v35 = vld [vmem:[%s16015_s1 + $0xe8] sm:$0xff] }
0x17f7   : > { %10424 = vmatpush1.bf16.msra.mxu1 %v10423_v38  ;;  %v2820_v38 = vld [vmem:[#allocation61 + $0x2a0] sm:$0xff] }
0x17f8   : > { %10426 = vmatprep.subr.bf16.mxu1 %v10425_v40  ;;  %v2827_v40 = vld [vmem:[#allocation61 + $0x2d8] sm:$0xff]  ;;  %v10455_v61 = vpack.c.bf16 %v2822_v36, %v2820_v38  ;;  %v2860_v36 = vld [vmem:[%s16015_s1 + $0xe0] sm:$0xff] }
0x17f9   : > { %v10457_v19 = vpack.c.bf16 %v2827_v40, %v2825_v39  ;;  %v2862_v39 = vld [vmem:[%s16015_s1 + $0xf0] sm:$0xff]  ;;  %v2865_v40 = vld [vmem:[%s16015_s1 + $0x108] sm:$0xff] }
0x17fb   : > { %10428 = vmatpush1.bf16.msra.mxu1 %v10427_v41  ;;  %v2824_v41 = vld [vmem:[#allocation61 + $0x2c0] sm:$0xff] }
0x17fc   : > { %10430 = vmatprep.subr.bf16.mxu1 %v10429_v18  ;;  %v10459_v18 = vpack.c.bf16 %v2826_v47, %v2824_v41  ;;  %v2864_v47 = vld [vmem:[%s16015_s1 + $0x100] sm:$0xff] }
0x17fd   : > { %v10531_v42 = vpack.c.bf16 %v2866_v43, %v2864_v47  ;;  %v2899_v47 = vld [vmem:[%s16015_s1 + $0x218] sm:$0xff]  ;;  %v2872_v43 = vld [vmem:[%s16015_s1 + $0x140] sm:$0xff] }
0x17ff   : > { %10432 = vmatpush1.bf16.msra.mxu1 %v10431_v49  ;;  %v2828_v49 = vld [vmem:[#allocation61 + $0x2e0] sm:$0xff] }
0x1800   : > { %10434 = vmatprep.subr.bf16.mxu1 %v10433_v17  ;;  %v10463_v51 = vpack.c.bf16 %v2830_v46, %v2828_v49 }
0x1895   : > { %v7008_v50 = vpop.f32.mrb[46].mxu1 }
0x1896   : > { %v7018_v52 = vmul.f32 %v9173_v58, %v7008_v50  ;;  %v9883_v25 = vpop.f32.mrb[47].mxu1  ;;  %v2833_v58 = vld [vmem:[%s16015_s1 + $0x8] sm:$0xff]  ;;  %v2832_v50 = vld [vmem:[%s16015_s1] sm:$0xff] }
0x1897   : > { %v2834_v25 = vld [vmem:[%s16015_s1 + $0x10] sm:$0xff] }
0x1898   : > { %v7025_v54 = vadd.f32 %v9174_v53, %v7018_v52  ;;  %v2835_v53 = vld [vmem:[%s16015_s1 + $0x18] sm:$0xff] }
0x1899   : > { %v10497_v52 = vpack.c.bf16 %v2835_v53, %v2833_v58  ;;  %v3026_v58 = vld [vmem:[#allocation62 + $0x10] sm:$0xff]  ;;  %v3029_v53 = vld [vmem:[#allocation62 + $0x28] sm:$0xff] }
0x189a   : > { %v7027_v55 = vmin.f32 %v7025_v54, 0.0  ;;  %vm7026_vm8 = vcmp.gt.f32.partialorder %v7025_v54, 0.0 }
0x189c   : > { %v7028_v5 = vmul.f32 1.442695, %v7027_v55  ;;  %v2839_v55 = vld [vmem:[%s16015_s1 + $0x38] sm:$0xff] }
0x189e   : > { %11662 = vpow2.f32 %v7028_v5  ;;  %v10499_v5 = vpack.c.bf16 %v2834_v25, %v2832_v50  ;;  %v3031_v50 = vld [vmem:[#allocation62 + $0x38] sm:$0xff] }
0x189f   : > { %v10469_v25 = vpack.c.bf16 %v3031_v50, %v3029_v53  ;;  %v2881_v50 = vld [vmem:[%s16015_s1 + $0x188] sm:$0xff] }
0x18a8   : > { %v11663_v57 = vpop.eup %11662 }
0x18a9   : > { %v9175_v48 = vadd.f32 -1.0, %v11663_v57 }
0x18ab   : > { %v15049_v21 = vsel %vm7026_vm8, %v7025_v54, %v9175_v48  ;;  %v2837_v54 = vld [vmem:[%s16015_s1 + $0x28] sm:$0xff]  ;;  %v2836_v48 = vld [vmem:[%s16015_s1 + $0x20] sm:$0xff] }
0x18ac   : > { %v7033_v56 = vrot.slane %v15049_v21, 7  ;;  %v10501_v57 = vpack.c.bf16 %v2839_v55, %v2837_v54  ;;  %v3028_v54 = vld [vmem:[#allocation62 + $0x20] sm:$0xff]  ;;  %v3030_v55 = vld [vmem:[#allocation62 + $0x30] sm:$0xff] }
0x18ae   : > { %v7035_v2 = vsel %vm3671_vm6, 0.0, %v7033_v56  ;;  %v2838_v56 = vld [vmem:[%s16015_s1 + $0x30] sm:$0xff] }
0x18af   : > { %v7036_v1 = vsel %vm3506_vm0, %v7035_v2, 0.0 }
0x18b0   : > { %v7038_v3 = vrot.slane %v7036_v1, 1  ;;  %v7040_v17 = vrot.slane %v7036_v1, 2  ;;  %v2842_v1 = vld [vmem:[%s16015_s1 + $0x50] sm:$0xff] }
0x18b2   : > { %7106 = vmatprep.mubr.f32.mxu1 %v7038_v3  ;;  %v2845_v3 = vld [vmem:[%s16015_s1 + $0x68] sm:$0xff] }
0x18b3   : > { %9176 = vmatmul.mubr.msk.f32.vlgmr.msra.gmra.mrb[48].mxu1 %vm3506_vm0, %v7035_v2  ;;  %v10503_v2 = vpack.c.bf16 %v2838_v56, %v2836_v48  ;;  %vm7187_vm0 = vcmask 1042432   ;;  %v10471_v48 = vpack.c.bf16 %v3030_v55, %v3028_v54  ;;  %v2880_v54 = vld [vmem:[%s16015_s1 + $0x180] sm:$0xff]  ;;  %v2882_v55 = vld [vmem:[%s16015_s1 + $0x190] sm:$0xff] }
0x18b4   : > { %10436 = vmatpush1.bf16.msra.mxu1 %v10435_v4  ;;  %7177 = vmatprep.mubr.f32.mxu1 %v13151_v60  ;;  %v2847_v4 = vld [vmem:[%s16015_s1 + $0x78] sm:$0xff] }
0x18b5   : > { %10438 = vmatprep.subr.bf16.mxu1 %v10437_v6  ;;  %v10507_v6 = vpack.c.bf16 %v2842_v1, %v2840_v63  ;;  %v10509_v22 = vpack.c.bf16 %v2847_v4, %v2845_v3  ;;  %v3036_v1 = vld [vmem:[#allocation62 + $0x60] sm:$0xff]  ;;  %v3038_v3 = vld [vmem:[#allocation62 + $0x70] sm:$0xff]  ;;  %v3041_v4 = vld [vmem:[#allocation62 + $0x88] sm:$0xff] }
0x18b8   : > { %10440 = vmatpush1.bf16.msra.mxu1 %v10439_v9  ;;  %v2851_v9 = vld [vmem:[%s16015_s1 + $0x98] sm:$0xff] }
0x18b9   : > { %10442 = vmatprep.subr.bf16.mxu1 %v10441_v11  ;;  %v10511_v11 = vpack.c.bf16 %v2846_v8, %v2844_v7  ;;  %v10513_v28 = vpack.c.bf16 %v2851_v9, %v2849_v15  ;;  %v3040_v7 = vld [vmem:[#allocation62 + $0x80] sm:$0xff]  ;;  %v3045_v8 = vld [vmem:[#allocation62 + $0xa8] sm:$0xff]  ;;  %v3047_v15 = vld [vmem:[#allocation62 + $0xb8] sm:$0xff] }
0x18bc   : > { %10444 = vmatpush1.bf16.msra.mxu1 %v10443_v10  ;;  %v2855_v10 = vld [vmem:[%s16015_s1 + $0xb8] sm:$0xff] }
0x18bd   : > { %10446 = vmatprep.subr.bf16.mxu1 %v10445_v23  ;;  %v10515_v23 = vpack.c.bf16 %v2850_v13, %v2848_v12  ;;  %v10517_v24 = vpack.c.bf16 %v2855_v10, %v2853_v14  ;;  %v3046_v12 = vld [vmem:[#allocation62 + $0xb0] sm:$0xff]  ;;  %v3049_v13 = vld [vmem:[#allocation62 + $0xc8] sm:$0xff]  ;;  %v3051_v14 = vld [vmem:[#allocation62 + $0xd8] sm:$0xff] }
0x18c0   : > { %10448 = vmatpush1.bf16.msra.mxu1 %v10447_v31  ;;  %v2859_v31 = vld [vmem:[%s16015_s1 + $0xd8] sm:$0xff] }
0x18c1   : > { %10450 = vmatprep.subr.bf16.mxu1 %v10449_v33  ;;  %v10519_v33 = vpack.c.bf16 %v2854_v27, %v2852_v20  ;;  %v10521_v34 = vpack.c.bf16 %v2859_v31, %v2857_v30  ;;  %v3050_v20 = vld [vmem:[#allocation62 + $0xd0] sm:$0xff]  ;;  %v3053_v30 = vld [vmem:[#allocation62 + $0xe8] sm:$0xff]  ;;  %v3055_v31 = vld [vmem:[#allocation62 + $0xf8] sm:$0xff] }
0x18c4   : > { %10452 = vmatpush1.bf16.msra.mxu1 %v10451_v37  ;;  %v2863_v37 = vld [vmem:[%s16015_s1 + $0xf8] sm:$0xff] }
0x18c5   : > { %10454 = vmatprep.subr.bf16.mxu1 %v10453_v29  ;;  %v10523_v29 = vpack.c.bf16 %v2858_v32, %v2856_v26  ;;  %v10525_v38 = vpack.c.bf16 %v2863_v37, %v2861_v35  ;;  %v2871_v26 = vld [vmem:[%s16015_s1 + $0x138] sm:$0xff]  ;;  %v3052_v32 = vld [vmem:[#allocation62 + $0xe0] sm:$0xff]  ;;  %v3054_v35 = vld [vmem:[#allocation62 + $0xf0] sm:$0xff] }
0x18c8   : > { %10456 = vmatpush1.bf16.msra.mxu1 %v10455_v61  ;;  %v2867_v61 = vld [vmem:[%s16015_s1 + $0x118] sm:$0xff] }
0x18c9   : > { %10458 = vmatprep.subr.bf16.mxu1 %v10457_v19  ;;  %v10527_v19 = vpack.c.bf16 %v2862_v39, %v2860_v36  ;;  %v10529_v41 = vpack.c.bf16 %v2867_v61, %v2865_v40  ;;  %v2870_v36 = vld [vmem:[%s16015_s1 + $0x130] sm:$0xff]  ;;  %v2873_v40 = vld [vmem:[%s16015_s1 + $0x148] sm:$0xff]  ;;  %v2875_v61 = vld [vmem:[%s16015_s1 + $0x158] sm:$0xff] }
0x18cc   : > { %10460 = vmatpush1.bf16.msra.mxu1 %v10459_v18  ;;  %v3025_v18 = vld [vmem:[#allocation62 + $0x8] sm:$0xff] }
0x18cd   : > { %10462 = vmatprep.subr.bf16.mxu1 %v10461_v44  ;;  %v3027_v44 = vld [vmem:[#allocation62 + $0x18] sm:$0xff] }
0x18d0   : > { %10464 = vmatpush1.bf16.msra.mxu1 %v10463_v51  ;;  %v10465_v51 = vpack.c.bf16 %v3027_v44, %v3025_v18 }
0x18d1   : > { %10498 = vmatprep.subr.bf16.mxu1 %v10497_v52 }
0x18d3   : > { %7178 = vmatmul.mubr.f32.vlgmr.msra.gmra.mrb[48].mxu1 %v7040_v17  ;;  %v3024_v17 = vld [vmem:[#allocation62] sm:$0xff] }
0x18d4   : > { %10500 = vmatpush1.bf16.msra.mxu1 %v10499_v5  ;;  %v10467_v52 = vpack.c.bf16 %v3026_v58, %v3024_v17  ;;  %v3033_v5 = vld [vmem:[#allocation62 + $0x48] sm:$0xff]  ;;  %v2876_v17 = vld [vmem:[%s16015_s1 + $0x160] sm:$0xff]  ;;  %v2878_v58 = vld [vmem:[%s16015_s1 + $0x170] sm:$0xff] }
0x18d5   : > { %10502 = vmatprep.subr.bf16.mxu1 %v10501_v57  ;;  %v3035_v57 = vld [vmem:[#allocation62 + $0x58] sm:$0xff]  ;;  %v10543_v53 = vpack.c.bf16 %v2878_v58, %v2876_v17  ;;  %v2908_v58 = vld [vmem:[%s16015_s1 + $0x260] sm:$0xff] }
0x18d6   : > { %v10473_v56 = vpack.c.bf16 %v3035_v57, %v3033_v5  ;;  %v10547_v5 = vpack.c.bf16 %v2882_v55, %v2880_v54  ;;  %v2885_v57 = vld [vmem:[%s16015_s1 + $0x1a8] sm:$0xff]  ;;  %v2912_v55 = vld [vmem:[%s16015_s1 + $0x280] sm:$0xff] }
0x18d8   : > { %10504 = vmatpush1.bf16.msra.mxu1 %v10503_v2  ;;  %v3039_v2 = vld [vmem:[#allocation62 + $0x78] sm:$0xff] }
0x18d9   : > { %10506 = vmatprep.subr.bf16.mxu1 %v10505_v16  ;;  %v10477_v63 = vpack.c.bf16 %v3039_v2, %v3037_v62  ;;  %v2889_v2 = vld [vmem:[%s16015_s1 + $0x1c8] sm:$0xff] }
0x18dc   : > { %10508 = vmatpush1.bf16.msra.mxu1 %v10507_v6  ;;  %v3043_v6 = vld [vmem:[#allocation62 + $0x98] sm:$0xff] }
0x18dd   : > { %10510 = vmatprep.subr.bf16.mxu1 %v10509_v22  ;;  %v10481_v22 = vpack.c.bf16 %v3043_v6, %v3041_v4  ;;  %v2893_v6 = vld [vmem:[%s16015_s1 + $0x1e8] sm:$0xff] }
0x18e0   : > { %10512 = vmatpush1.bf16.msra.mxu1 %v10511_v11  ;;  %v10485_v11 = vpack.c.bf16 %v3047_v15, %v3045_v8  ;;  %v15135_v15 = vsub.s32 0, %v14899_v0 }
0x18e1   : > { %10514 = vmatprep.subr.bf16.mxu1 %v10513_v28  ;;  %v3044_v28 = vld [vmem:[#allocation62 + $0xa0] sm:$0xff] }
0x18e2   : > { %v10487_v10 = vpack.c.bf16 %v3046_v12, %v3044_v28  ;;  %v2732_v28 = vld [vmem:[%s16016_s12] sm:$0x3]  ;;  %s16018_s12 = smov %s16017_s10 }
0x18e4   : > { %10516 = vmatpush1.bf16.msra.mxu1 %v10515_v23  ;;  %v10489_v23 = vpack.c.bf16 %v3051_v14, %v3049_v13  ;;  %v7282_v14 = vrot.slane %v2732_v28, %v15135_v15 }
0x18e5   : > { %10518 = vmatprep.subr.bf16.mxu1 %v10517_v24  ;;  %v3048_v24 = vld [vmem:[#allocation62 + $0xc0] sm:$0xff] }
0x18e6   : > { %v10491_v27 = vpack.c.bf16 %v3050_v20, %v3048_v24 }
0x18e8   : > { %10520 = vmatpush1.bf16.msra.mxu1 %v10519_v33  ;;  %v2869_v33 = vld [vmem:[%s16015_s1 + $0x128] sm:$0xff] }
0x18e9   : > { %10522 = vmatprep.subr.bf16.mxu1 %v10521_v34  ;;  %v10493_v34 = vpack.c.bf16 %v3055_v31, %v3053_v30  ;;  %v10533_v37 = vpack.c.bf16 %v2871_v26, %v2869_v33 }
0x18ec   : > { %10524 = vmatpush1.bf16.msra.mxu1 %v10523_v29  ;;  %v10495_v29 = vpack.c.bf16 %v3054_v35, %v3052_v32  ;;  %v2900_v35 = vld [vmem:[%s16015_s1 + $0x220] sm:$0xff] }
0x18ed   : > { %10526 = vmatprep.subr.bf16.mxu1 %v10525_v38  ;;  %v2868_v38 = vld [vmem:[%s16015_s1 + $0x120] sm:$0xff] }
0x18ee   : > { %v10535_v39 = vpack.c.bf16 %v2870_v36, %v2868_v38  ;;  %v2905_v36 = vld [vmem:[%s16015_s1 + $0x248] sm:$0xff] }
0x18f0   : > { %10528 = vmatpush1.bf16.msra.mxu1 %v10527_v19  ;;  %v2897_v19 = vld [vmem:[%s16015_s1 + $0x208] sm:$0xff] }
0x18f1   : > { %10530 = vmatprep.subr.bf16.mxu1 %v10529_v41  ;;  %v10537_v41 = vpack.c.bf16 %v2875_v61, %v2873_v40  ;;  %v10561_v18 = vpack.c.bf16 %v2899_v47, %v2897_v19 }
0x18f4   : > { %10532 = vmatpush1.bf16.msra.mxu1 %v10531_v42  ;;  %v2874_v42 = vld [vmem:[%s16015_s1 + $0x150] sm:$0xff] }
0x18f5   : > { %10534 = vmatprep.subr.bf16.mxu1 %v10533_v37  ;;  %v10539_v44 = vpack.c.bf16 %v2874_v42, %v2872_v43  ;;  %v2902_v37 = vld [vmem:[%s16015_s1 + $0x230] sm:$0xff]  ;;  %v2904_v42 = vld [vmem:[%s16015_s1 + $0x240] sm:$0xff] }
0x18f8   : > { %10536 = vmatpush1.bf16.msra.mxu1 %v10535_v39  ;;  %v2907_v39 = vld [vmem:[%s16015_s1 + $0x258] sm:$0xff] }
0x18f9   : > { %10538 = vmatprep.subr.bf16.mxu1 %v10537_v41  ;;  %v10567_v41 = vpack.c.bf16 %v2902_v37, %v2900_v35  ;;  %v10569_v43 = vpack.c.bf16 %v2907_v39, %v2905_v36  ;;  %v2930_v35 = vld [vmem:[%s16015_s1 + $0x310] sm:$0xff]  ;;  %v2933_v37 = vld [vmem:[%s16015_s1 + $0x328] sm:$0xff]  ;;  %v2932_v39 = vld [vmem:[%s16015_s1 + $0x320] sm:$0xff] }
0x18fc   : > { %10540 = vmatpush1.bf16.msra.mxu1 %v10539_v44 }
0x19a6   : > { %v7179_v49 = vpop.f32.mrb[48].mxu1 }
0x19a7   : > { %v7181_v46 = vpop.f32.mrb[49].mxu1 }
0x19a8   : > { %9177 = vmatprep.subr.msk.mxu0 %vm7187_vm0, %v7181_v46  ;;  %v2879_v46 = vld [vmem:[%s16015_s1 + $0x178] sm:$0xff] }
0x19a9   : > { %9178 = vmatpush1.msk.msra.mxu0 %vm7187_vm0, %v7179_v49  ;;  %v2877_v49 = vld [vmem:[%s16015_s1 + $0x168] sm:$0xff] }
0x19aa   : > { %9179 = vmatmul.mubr.msk.f32.vlgmr.msra.gmra.mrb[56].mxu0 %vm7184_vm9, %v14969_v45  ;;  %9884 = vmatprep.subr.mxu0 %v13151_v60 }
0x19ab   : > { %9885 = vmatpush3.msk.msra.mxu0 %vm7187_vm0, %v15049_v21  ;;  %9886 = vmatprep.mubr.msk.f32.mxu0 %vm13152_vm15, %v13151_v60  ;;  %v3032_v21 = vld [vmem:[#allocation62 + $0x40] sm:$0xff] }
0x19ac   : > { %10466 = vmatprep.subr.bf16.mxu0 %v10465_v51  ;;  %v10475_v16 = vpack.c.bf16 %v3034_v59, %v3032_v21  ;;  %v10541_v51 = vpack.c.bf16 %v2879_v46, %v2877_v49  ;;  %v2884_v21 = vld [vmem:[%s16015_s1 + $0x1a0] sm:$0xff]  ;;  %v2886_v59 = vld [vmem:[%s16015_s1 + $0x1b0] sm:$0xff]  ;;  %v2909_v49 = vld [vmem:[%s16015_s1 + $0x268] sm:$0xff] }
0x19ad   : > { %v10551_v62 = vpack.c.bf16 %v2886_v59, %v2884_v21  ;;  %v2911_v46 = vld [vmem:[%s16015_s1 + $0x278] sm:$0xff] }
0x19ae   : > { %9887 = vmatmul.mubr.msk.f32.vlgmr.msra.gmra.mrb[58].mxu0 %vm7184_vm9, %v14969_v45  ;;  %v10479_v45 = vpack.c.bf16 %v3038_v3, %v3036_v1  ;;  %10542 = vmatprep.subr.bf16.mxu1 %v10541_v51  ;;  %v2888_v1 = vld [vmem:[%s16015_s1 + $0x1c0] sm:$0xff]  ;;  %v2890_v3 = vld [vmem:[%s16015_s1 + $0x1d0] sm:$0xff]  ;;  %v10573_v17 = vpack.c.bf16 %v2911_v46, %v2909_v49 }
0x19af   : > { %10468 = vmatpush1.bf16.msra.mxu0 %v10467_v52  ;;  %7459 = vmatprep.mubr.f32.mxu0 %v13151_v60  ;;  %v3042_v60 = vld [vmem:[#allocation62 + $0x90] sm:$0xff]  ;;  %v2883_v52 = vld [vmem:[%s16015_s1 + $0x198] sm:$0xff]  ;;  %v10555_v4 = vpack.c.bf16 %v2890_v3, %v2888_v1  ;;  %v2921_v1 = vld [vmem:[%s16015_s1 + $0x2c8] sm:$0xff] }
0x19b0   : > { %10470 = vmatprep.subr.bf16.mxu0 %v10469_v25  ;;  %v10483_v9 = vpack.c.bf16 %v3042_v60, %v3040_v7  ;;  %10544 = vmatpush1.bf16.msra.mxu1 %v10543_v53  ;;  %v10545_v25 = vpack.c.bf16 %v2883_v52, %v2881_v50  ;;  %v2892_v7 = vld [vmem:[%s16015_s1 + $0x1e0] sm:$0xff]  ;;  %v2894_v60 = vld [vmem:[%s16015_s1 + $0x1f0] sm:$0xff]  ;;  %v2913_v50 = vld [vmem:[%s16015_s1 + $0x288] sm:$0xff] }
0x19b1   : > { %v10559_v8 = vpack.c.bf16 %v2894_v60, %v2892_v7  ;;  %v2910_v53 = vld [vmem:[%s16015_s1 + $0x270] sm:$0xff]  ;;  %v2915_v52 = vld [vmem:[%s16015_s1 + $0x298] sm:$0xff] }
0x19b2   : > { %10546 = vmatprep.subr.bf16.mxu1 %v10545_v25  ;;  %v10575_v25 = vpack.c.bf16 %v2910_v53, %v2908_v58  ;;  %v10577_v54 = vpack.c.bf16 %v2915_v52, %v2913_v50  ;;  %v2923_v3 = vld [vmem:[%s16015_s1 + $0x2d8] sm:$0xff]  ;;  %v2945_v58 = vld [vmem:[%s16015_s1 + $0x388] sm:$0xff] }
0x19b3   : > { %10472 = vmatpush1.bf16.msra.mxu0 %v10471_v48  ;;  %v2887_v48 = vld [vmem:[%s16015_s1 + $0x1b8] sm:$0xff]  ;;  %v10585_v60 = vpack.c.bf16 %v2923_v3, %v2921_v1  ;;  %v2954_v1 = vld [vmem:[%s16015_s1 + $0x3d0] sm:$0xff]  ;;  %v2957_v3 = vld [vmem:[%s16015_s1 + $0x3e8] sm:$0xff] }
0x19b4   : > { %10474 = vmatprep.subr.bf16.mxu0 %v10473_v56  ;;  %10548 = vmatpush1.bf16.msra.mxu1 %v10547_v5  ;;  %v10549_v56 = vpack.c.bf16 %v2887_v48, %v2885_v57  ;;  %v2914_v5 = vld [vmem:[%s16015_s1 + $0x290] sm:$0xff]  ;;  %v2917_v57 = vld [vmem:[%s16015_s1 + $0x2a8] sm:$0xff]  ;;  %v2919_v48 = vld [vmem:[%s16015_s1 + $0x2b8] sm:$0xff] }
0x19b5   : > { %v10581_v59 = vpack.c.bf16 %v2919_v48, %v2917_v57  ;;  %v2947_v53 = vld [vmem:[%s16015_s1 + $0x398] sm:$0xff] }
0x19b6   : > { %10550 = vmatprep.subr.bf16.mxu1 %v10549_v56  ;;  %v10579_v56 = vpack.c.bf16 %v2914_v5, %v2912_v55  ;;  %v10609_v52 = vpack.c.bf16 %v2947_v53, %v2945_v58  ;;  %v2949_v55 = vld [vmem:[%s16015_s1 + $0x3a8] sm:$0xff]  ;;  %v2951_v5 = vld [vmem:[%s16015_s1 + $0x3b8] sm:$0xff]  ;;  %v2982_v58 = vld [vmem:[%s16015_s1 + $0x4b0] sm:$0xff] }
0x19b7   : > { %10476 = vmatpush1.bf16.msra.mxu0 %v10475_v16  ;;  %v2891_v16 = vld [vmem:[%s16015_s1 + $0x1d8] sm:$0xff]  ;;  %v10613_v48 = vpack.c.bf16 %v2951_v5, %v2949_v55  ;;  %v2985_v53 = vld [vmem:[%s16015_s1 + $0x4c8] sm:$0xff]  ;;  %v2986_v55 = vld [vmem:[%s16015_s1 + $0x4d0] sm:$0xff] }
0x19b8   : > { %10478 = vmatprep.subr.bf16.mxu0 %v10477_v63  ;;  %10552 = vmatpush1.bf16.msra.mxu1 %v10551_v62  ;;  %v10553_v63 = vpack.c.bf16 %v2891_v16, %v2889_v2  ;;  %v2916_v62 = vld [vmem:[%s16015_s1 + $0x2a0] sm:$0xff]  ;;  %v2918_v2 = vld [vmem:[%s16015_s1 + $0x2b0] sm:$0xff]  ;;  %v2989_v5 = vld [vmem:[%s16015_s1 + $0x4e8] sm:$0xff] }
0x19ba   : > { %10554 = vmatprep.subr.bf16.mxu1 %v10553_v63 }
0x19bb   : > { %10480 = vmatpush1.bf16.msra.mxu0 %v10479_v45  ;;  %v2895_v45 = vld [vmem:[%s16015_s1 + $0x1f8] sm:$0xff] }
0x19bc   : > { %10482 = vmatprep.subr.bf16.mxu0 %v10481_v22  ;;  %10556 = vmatpush1.bf16.msra.mxu1 %v10555_v4  ;;  %v10557_v22 = vpack.c.bf16 %v2895_v45, %v2893_v6  ;;  %v10583_v45 = vpack.c.bf16 %v2918_v2, %v2916_v62  ;;  %v2955_v62 = vld [vmem:[%s16015_s1 + $0x3d8] sm:$0xff] }
0x19be   : > { %10558 = vmatprep.subr.bf16.mxu1 %v10557_v22 }
0x19bf   : > { %10484 = vmatpush1.bf16.msra.mxu0 %v10483_v9  ;;  %v15138_v9 = vsub.s32 1, %v14899_v0  ;;  %v2903_v0 = vld [vmem:[%s16015_s1 + $0x238] sm:$0xff] }
0x19c0   : > { %10486 = vmatprep.subr.bf16.mxu0 %v10485_v11  ;;  %10560 = vmatpush1.bf16.msra.mxu1 %v10559_v8  ;;  %v2733_v11 = vld [vmem:[#allocation56] sm:$0x3]  ;;  %v2920_v8 = vld [vmem:[%s16015_s1 + $0x2c0] sm:$0xff] }
0x19c1   : > { %v7269_v12 = vrot.slane %v2733_v11, %v15135_v15  ;;  %v7273_v13 = vrot.slane %v2733_v11, %v15138_v9  ;;  %v7286_v20 = vrot.slane %v2732_v28, %v15138_v9  ;;  %v2922_v11 = vld [vmem:[%s16015_s1 + $0x2d0] sm:$0xff] }
0x19c3   : > { %10488 = vmatpush1.bf16.msra.mxu0 %v10487_v10  ;;  %v2896_v10 = vld [vmem:[%s16015_s1 + $0x200] sm:$0xff] }
0x19c4   : > { %10490 = vmatprep.subr.bf16.mxu0 %v10489_v23  ;;  %v2898_v23 = vld [vmem:[%s16015_s1 + $0x210] sm:$0xff] }
0x19c7   : > { %10492 = vmatpush1.bf16.msra.mxu0 %v10491_v27  ;;  %v2901_v27 = vld [vmem:[%s16015_s1 + $0x228] sm:$0xff] }
0x19c8   : > { %10494 = vmatprep.subr.bf16.mxu0 %v10493_v34  ;;  %v10563_v34 = vpack.c.bf16 %v2898_v23, %v2896_v10  ;;  %v10565_v32 = vpack.c.bf16 %v2903_v0, %v2901_v27  ;;  %v10587_v10 = vpack.c.bf16 %v2922_v11, %v2920_v8  ;;  %v2924_v27 = vld [vmem:[%s16015_s1 + $0x2e0] sm:$0xff]  ;;  %v2926_v0 = vld [vmem:[%s16015_s1 + $0x2f0] sm:$0xff]  ;;  %v2963_v8 = vld [vmem:[%s16015_s1 + $0x418] sm:$0xff] }
0x19cb   : > { %10496 = vmatpush1.bf16.msra.mxu0 %v10495_v29 }
0x19cc   : > { %10562 = vmatprep.subr.bf16.mxu0 %v10561_v18  ;;  %v2906_v18 = vld [vmem:[%s16015_s1 + $0x250] sm:$0xff] }
0x19cd   : > { %v10571_v51 = vpack.c.bf16 %v2906_v18, %v2904_v42  ;;  %v2938_v42 = vld [vmem:[%s16015_s1 + $0x350] sm:$0xff]  ;;  %v2941_v18 = vld [vmem:[%s16015_s1 + $0x368] sm:$0xff] }
0x1a7d   : > { %v7260_v24 = vpop.f32.mrb[56].mxu0 }
0x1a7e   : > { %v7276_v30 = vmul.f32 %v7269_v12, %v7260_v24  ;;  %v7262_v31 = vpop.f32.mrb[57].mxu0  ;;  %v2925_v12 = vld [vmem:[%s16015_s1 + $0x2e8] sm:$0xff] }
0x1a7f   : > { %v7277_v33 = vmul.f32 %v7273_v13, %v7262_v31  ;;  %v2927_v13 = vld [vmem:[%s16015_s1 + $0x2f8] sm:$0xff]  ;;  %v2929_v31 = vld [vmem:[%s16015_s1 + $0x308] sm:$0xff] }
0x1a80   : > { %v7289_v26 = vadd.f32 %v7282_v14, %v7276_v30 }
0x1a81   : > { %v7290_v29 = vadd.f32 %v7286_v20, %v7277_v33  ;;  %v7391_v38 = vpop.f32.mrb[58].mxu0  ;;  %v10589_v20 = vpack.c.bf16 %v2927_v13, %v2925_v12  ;;  %v2931_v33 = vld [vmem:[%s16015_s1 + $0x318] sm:$0xff]  ;;  %v2960_v12 = vld [vmem:[%s16015_s1 + $0x400] sm:$0xff]  ;;  %v2962_v13 = vld [vmem:[%s16015_s1 + $0x410] sm:$0xff] }
0x1a82   : > { %v7293_v40 = vmin.f32 %v7289_v26, 0.0  ;;  %7460 = vmatmul.mubr.f32.vlgmr.msra.gmra.mrb[60].mxu0 %v7391_v38  ;;  %v9888_v61 = vpop.f32.mrb[59].mxu0  ;;  %vm7291_vm4 = vcmp.gt.f32.partialorder %v7289_v26, 0.0 }
0x1a83   : > { %v7294_v19 = vmin.f32 %v7290_v29, 0.0  ;;  %10564 = vmatpush1.bf16.msra.mxu0 %v10563_v34  ;;  %vm7292_vm5 = vcmp.gt.f32.partialorder %v7290_v29, 0.0  ;;  %v10591_v34 = vpack.c.bf16 %v2926_v0, %v2924_v27  ;;  %v2937_v61 = vld [vmem:[%s16015_s1 + $0x348] sm:$0xff]  ;;  %v10627_v27 = vpack.c.bf16 %v2962_v13, %v2960_v12  ;;  %v3000_v13 = vld [vmem:[%s16015_s1 + $0x540] sm:$0xff] }
0x1a84   : > { %v7295_v47 = vmul.f32 1.442695, %v7293_v40  ;;  %10566 = vmatprep.subr.bf16.mxu0 %v10565_v32  ;;  %v2928_v32 = vld [vmem:[%s16015_s1 + $0x300] sm:$0xff]  ;;  %v2934_v40 = vld [vmem:[%s16015_s1 + $0x330] sm:$0xff] }
0x1a85   : > { %v7297_v44 = vmul.f32 1.442695, %v7294_v19  ;;  %v10595_v38 = vpack.c.bf16 %v2930_v35, %v2928_v32  ;;  %v2939_v19 = vld [vmem:[%s16015_s1 + $0x358] sm:$0xff] }
0x1a86   : > { %11664 = vpow2.f32 %v7295_v47  ;;  %v10601_v47 = vpack.c.bf16 %v2939_v19, %v2937_v61  ;;  %v2974_v61 = vld [vmem:[%s16015_s1 + $0x470] sm:$0xff]  ;;  %v2977_v19 = vld [vmem:[%s16015_s1 + $0x488] sm:$0xff] }
0x1a87   : > { %11666 = vpow2.f32 %v7297_v44  ;;  %10568 = vmatpush1.bf16.msra.mxu0 %v10567_v41  ;;  %v10599_v41 = vpack.c.bf16 %v2934_v40, %v2932_v39  ;;  %v2943_v44 = vld [vmem:[%s16015_s1 + $0x378] sm:$0xff]  ;;  %v2972_v40 = vld [vmem:[%s16015_s1 + $0x460] sm:$0xff] }
0x1a88   : > { %10570 = vmatprep.subr.bf16.mxu0 %v10569_v43  ;;  %v2936_v43 = vld [vmem:[%s16015_s1 + $0x340] sm:$0xff]  ;;  %v10605_v46 = vpack.c.bf16 %v2943_v44, %v2941_v18  ;;  %v2978_v18 = vld [vmem:[%s16015_s1 + $0x490] sm:$0xff]  ;;  %v2981_v44 = vld [vmem:[%s16015_s1 + $0x4a8] sm:$0xff] }
0x1a89   : > { %v10603_v49 = vpack.c.bf16 %v2938_v42, %v2936_v43  ;;  %v2976_v42 = vld [vmem:[%s16015_s1 + $0x480] sm:$0xff] }
0x1a8b   : > { %10572 = vmatpush1.bf16.msra.mxu0 %v10571_v51  ;;  %v2940_v51 = vld [vmem:[%s16015_s1 + $0x360] sm:$0xff] }
0x1a8c   : > { %10574 = vmatprep.subr.bf16.mxu0 %v10573_v17  ;;  %v2942_v17 = vld [vmem:[%s16015_s1 + $0x370] sm:$0xff] }
0x1a8d   : > { %v10607_v50 = vpack.c.bf16 %v2942_v17, %v2940_v51  ;;  %v2980_v17 = vld [vmem:[%s16015_s1 + $0x4a0] sm:$0xff] }
0x1a8f   : > { %10576 = vmatpush1.bf16.msra.mxu0 %v10575_v25  ;;  %v2944_v25 = vld [vmem:[%s16015_s1 + $0x380] sm:$0xff] }
0x1a90   : > { %v11665_v21 = vpop.eup %11664  ;;  %10578 = vmatprep.subr.bf16.mxu0 %v10577_v54  ;;  %v2946_v54 = vld [vmem:[%s16015_s1 + $0x390] sm:$0xff] }
0x1a91   : > { %v11667_v16 = vpop.eup %11666  ;;  %v9180_v63 = vadd.f32 -1.0, %v11665_v21  ;;  %v10611_v57 = vpack.c.bf16 %v2946_v54, %v2944_v25  ;;  %v2950_v21 = vld [vmem:[%s16015_s1 + $0x3b0] sm:$0xff]  ;;  %v2984_v54 = vld [vmem:[%s16015_s1 + $0x4c0] sm:$0xff] }
0x1a92   : > { %v9181_v4 = vadd.f32 -1.0, %v11667_v16 }
0x1a93   : > { %v7301_v6 = vsel %vm7291_vm4, %v7289_v26, %v9180_v63  ;;  %10580 = vmatpush1.bf16.msra.mxu0 %v10579_v56  ;;  %v10593_v26 = vpack.c.bf16 %v2931_v33, %v2929_v31  ;;  %v2948_v56 = vld [vmem:[%s16015_s1 + $0x3a0] sm:$0xff]  ;;  %v2966_v33 = vld [vmem:[%s16015_s1 + $0x430] sm:$0xff] }
0x1a94   : > { %v7305_v22 = vrot.slane %v7301_v6, 7  ;;  %10582 = vmatprep.subr.bf16.mxu0 %v10581_v59  ;;  %v7302_v7 = vsel %vm7292_vm5, %v7290_v29, %v9181_v4  ;;  %v2935_v29 = vld [vmem:[%s16015_s1 + $0x338] sm:$0xff]  ;;  %v2953_v59 = vld [vmem:[%s16015_s1 + $0x3c8] sm:$0xff]  ;;  %v10615_v2 = vpack.c.bf16 %v2950_v21, %v2948_v56  ;;  %v2952_v63 = vld [vmem:[%s16015_s1 + $0x3c0] sm:$0xff] }
0x1a95   : > { %v7306_v28 = vrot.slane %v7302_v7, 7  ;;  %v10597_v36 = vpack.c.bf16 %v2935_v29, %v2933_v37  ;;  %v10617_v16 = vpack.c.bf16 %v2955_v62, %v2953_v59  ;;  %v2959_v4 = vld [vmem:[%s16015_s1 + $0x3f8] sm:$0xff]  ;;  %v10619_v6 = vpack.c.bf16 %v2954_v1, %v2952_v63  ;;  %v2958_v7 = vld [vmem:[%s16015_s1 + $0x3f0] sm:$0xff]  ;;  %v2964_v31 = vld [vmem:[%s16015_s1 + $0x420] sm:$0xff] }
0x1a96   : > { %v15179_v24 = vsel %vm3671_vm6, 0.0, %v7305_v22  ;;  %v2956_v22 = vld [vmem:[%s16015_s1 + $0x3e0] sm:$0xff]  ;;  %v10631_v32 = vpack.c.bf16 %v2966_v33, %v2964_v31  ;;  %v2970_v29 = vld [vmem:[%s16015_s1 + $0x450] sm:$0xff]  ;;  %v2993_v62 = vld [vmem:[%s16015_s1 + $0x508] sm:$0xff] }
0x1a97   : > { %10584 = vmatpush1.bf16.msra.mxu0 %v10583_v45  ;;  %v7310_v14 = vsel %vm3671_vm6, 0.0, %v7306_v28  ;;  %v10621_v45 = vpack.c.bf16 %v2959_v4, %v2957_v3  ;;  %v10623_v11 = vpack.c.bf16 %v2958_v7, %v2956_v22  ;;  %v2968_v37 = vld [vmem:[%s16015_s1 + $0x440] sm:$0xff]  ;;  %v2990_v59 = vld [vmem:[%s16015_s1 + $0x4f0] sm:$0xff]  ;;  %v2997_v4 = vld [vmem:[%s16015_s1 + $0x528] sm:$0xff] }
0x1a98   : > { %v15175_v23 = vsel %vm7187_vm0, %v7310_v14, 0.0  ;;  %9184 = vmatprep.mubr.msk.f32.mxu1 %vm7187_vm0, %v7310_v14  ;;  %10586 = vmatprep.subr.bf16.mxu0 %v10585_v60  ;;  %v2961_v60 = vld [vmem:[%s16015_s1 + $0x408] sm:$0xff]  ;;  %v15224_v14 = vsel %vm7187_vm0, %v15179_v24, 0.0  ;;  %v2988_v21 = vld [vmem:[%s16015_s1 + $0x4e0] sm:$0xff]  ;;  %v2994_v3 = vld [vmem:[%s16015_s1 + $0x510] sm:$0xff] }
0x1a99   : > { %9185 = vmatmul.mubr.msk.f32.vlgmr.msra.gmra.mrb[50].mxu1 %vm7187_vm0, %v15179_v24  ;;  %v7316_v30 = vrot.slane %v15175_v23, 1  ;;  %v10625_v28 = vpack.c.bf16 %v2963_v8, %v2961_v60  ;;  %v7315_v0 = vrot.slane %v15224_v14, 1  ;;  %v2971_v24 = vld [vmem:[%s16015_s1 + $0x458] sm:$0xff]  ;;  %v2992_v1 = vld [vmem:[%s16015_s1 + $0x500] sm:$0xff]  ;;  %v2998_v60 = vld [vmem:[%s16015_s1 + $0x530] sm:$0xff] }
0x1a9a   : > { %v2996_v7 = vld [vmem:[%s16015_s1 + $0x520] sm:$0xff]  ;;  %v3001_v8 = vld [vmem:[%s16015_s1 + $0x548] sm:$0xff]  ;;  %v3006_v33 = vld [vmem:[%s16015_s1 + $0x570] sm:$0xff] }
0x1a9b   : > { %10588 = vmatpush1.bf16.msra.mxu0 %v10587_v10  ;;  %7627 = vmatprep.mubr.f32.mxu0 %v7316_v30  ;;  %v2965_v10 = vld [vmem:[%s16015_s1 + $0x428] sm:$0xff]  ;;  %v3004_v31 = vld [vmem:[%s16015_s1 + $0x560] sm:$0xff] }
0x1a9c   : > { %10590 = vmatprep.subr.bf16.mxu0 %v10589_v20  ;;  %v2967_v20 = vld [vmem:[%s16015_s1 + $0x438] sm:$0xff] }
0x1a9d   : > { %v10629_v30 = vpack.c.bf16 %v2967_v20, %v2965_v10  ;;  %v3002_v10 = vld [vmem:[%s16015_s1 + $0x550] sm:$0xff]  ;;  %v3005_v20 = vld [vmem:[%s16015_s1 + $0x568] sm:$0xff] }
0x1a9f   : > { %10592 = vmatpush1.bf16.msra.mxu0 %v10591_v34  ;;  %v7320_v34 = vrot.slane %v15175_v23, 2  ;;  %v10635_v23 = vpack.c.bf16 %v2970_v29, %v2968_v37  ;;  %v3010_v37 = vld [vmem:[%s16015_s1 + $0x590] sm:$0xff]  ;;  %v3013_v29 = vld [vmem:[%s16015_s1 + $0x5a8] sm:$0xff] }
0x1aa0   : > { %10594 = vmatprep.subr.bf16.mxu0 %v10593_v26  ;;  %v2969_v26 = vld [vmem:[%s16015_s1 + $0x448] sm:$0xff] }
0x1aa1   : > { %v10633_v35 = vpack.c.bf16 %v2971_v24, %v2969_v26  ;;  %v3011_v26 = vld [vmem:[%s16015_s1 + $0x598] sm:$0xff]  ;;  %v10671_v24 = vpack.c.bf16 %v3006_v33, %v3004_v31  ;;  %v3082_v31 = vld [vmem:[%s16018_s12 + $0xb0] sm:$0xff]  ;;  %v7319_v33 = vrot.slane %v15224_v14, 2 }
0x1aa3   : > { %10596 = vmatpush1.bf16.msra.mxu0 %v10595_v38  ;;  %v2973_v38 = vld [vmem:[%s16015_s1 + $0x468] sm:$0xff] }
0x1aa4   : > { %10598 = vmatprep.subr.bf16.mxu0 %v10597_v36  ;;  %v2975_v36 = vld [vmem:[%s16015_s1 + $0x478] sm:$0xff] }
0x1aa5   : > { %v10637_v39 = vpack.c.bf16 %v2975_v36, %v2973_v38  ;;  %v3015_v38 = vld [vmem:[%s16015_s1 + $0x5b8] sm:$0xff]  ;;  %v3012_v36 = vld [vmem:[%s16015_s1 + $0x5a0] sm:$0xff] }
0x1aa7   : > { %10600 = vmatpush1.bf16.msra.mxu0 %v10599_v41  ;;  %v2979_v41 = vld [vmem:[%s16015_s1 + $0x498] sm:$0xff] }
0x1aa8   : > { %10602 = vmatprep.subr.bf16.mxu0 %v10601_v47  ;;  %v10639_v47 = vpack.c.bf16 %v2974_v61, %v2972_v40  ;;  %v10641_v43 = vpack.c.bf16 %v2979_v41, %v2977_v19  ;;  %v3063_v40 = vld [vmem:[%s16018_s12 + $0x18] sm:$0xff]  ;;  %v3060_v61 = vld [vmem:[%s16018_s12] sm:$0xff] }
0x1aab   : > { %10604 = vmatpush1.bf16.msra.mxu0 %v10603_v49  ;;  %v2983_v49 = vld [vmem:[%s16015_s1 + $0x4b8] sm:$0xff] }
0x1aac   : > { %10606 = vmatprep.subr.bf16.mxu0 %v10605_v46  ;;  %v10643_v46 = vpack.c.bf16 %v2978_v18, %v2976_v42  ;;  %v10645_v51 = vpack.c.bf16 %v2983_v49, %v2981_v44  ;;  %v3067_v42 = vld [vmem:[%s16018_s12 + $0x38] sm:$0xff]  ;;  %v10677_v18 = vpack.c.bf16 %v3015_v38, %v3013_v29  ;;  %v3089_v29 = vld [vmem:[%s16018_s12 + $0xe8] sm:$0xff] }
0x1aad   : > { %v3091_v38 = vld [vmem:[%s16018_s12 + $0xf8] sm:$0xff] }
0x1aae   : > { %v10717_v14 = vpack.c.bf16 %v3091_v38, %v3089_v29  ;;  %v3120_v29 = vld [vmem:[%s16018_s12 + $0x1e0] sm:$0xff] }
0x1aaf   : > { %10608 = vmatpush1.bf16.msra.mxu0 %v10607_v50  ;;  %v2987_v50 = vld [vmem:[%s16015_s1 + $0x4d8] sm:$0xff] }
0x1ab0   : > { %10610 = vmatprep.subr.bf16.mxu0 %v10609_v52  ;;  %v10647_v52 = vpack.c.bf16 %v2982_v58, %v2980_v17  ;;  %v10649_v25 = vpack.c.bf16 %v2987_v50, %v2985_v53  ;;  %v3069_v17 = vld [vmem:[%s16018_s12 + $0x48] sm:$0xff]  ;;  %v3019_v53 = vld [vmem:[%s16015_s1 + $0x5d8] sm:$0xff] }
0x1ab1   : > { %v3017_v58 = vld [vmem:[%s16015_s1 + $0x5c8] sm:$0xff]  ;;  %v3071_v50 = vld [vmem:[%s16018_s12 + $0x58] sm:$0xff] }
0x1ab3   : > { %10612 = vmatpush1.bf16.msra.mxu0 %v10611_v57  ;;  %v2991_v57 = vld [vmem:[%s16015_s1 + $0x4f8] sm:$0xff] }
0x1ab4   : > { %10614 = vmatprep.subr.bf16.mxu0 %v10613_v48  ;;  %v10651_v48 = vpack.c.bf16 %v2986_v55, %v2984_v54  ;;  %v10653_v56 = vpack.c.bf16 %v2991_v57, %v2989_v5  ;;  %v3016_v54 = vld [vmem:[%s16015_s1 + $0x5c0] sm:$0xff]  ;;  %v10697_v55 = vpack.c.bf16 %v3071_v50, %v3069_v17  ;;  %v3070_v57 = vld [vmem:[%s16018_s12 + $0x50] sm:$0xff]  ;;  %v3101_v50 = vld [vmem:[%s16018_s12 + $0x148] sm:$0xff] }
0x1ab5   : > { %v3068_v5 = vld [vmem:[%s16018_s12 + $0x40] sm:$0xff] }
0x1ab7   : > { %10616 = vmatpush1.bf16.msra.mxu0 %v10615_v2  ;;  %v2995_v2 = vld [vmem:[%s16015_s1 + $0x518] sm:$0xff] }
0x1ab8   : > { %10618 = vmatprep.subr.bf16.mxu0 %v10617_v16  ;;  %v10655_v16 = vpack.c.bf16 %v2990_v59, %v2988_v21  ;;  %v10657_v63 = vpack.c.bf16 %v2995_v2, %v2993_v62  ;;  %v3073_v21 = vld [vmem:[%s16018_s12 + $0x68] sm:$0xff]  ;;  %v3075_v59 = vld [vmem:[%s16018_s12 + $0x78] sm:$0xff] }
0x1ab9   : > { %v3021_v62 = vld [vmem:[%s16015_s1 + $0x5e8] sm:$0xff]  ;;  %v3023_v2 = vld [vmem:[%s16015_s1 + $0x5f8] sm:$0xff] }
0x1abb   : > { %10620 = vmatpush1.bf16.msra.mxu0 %v10619_v6  ;;  %v2999_v6 = vld [vmem:[%s16015_s1 + $0x538] sm:$0xff] }
0x1abc   : > { %10622 = vmatprep.subr.bf16.mxu0 %v10621_v45  ;;  %v10659_v45 = vpack.c.bf16 %v2994_v3, %v2992_v1  ;;  %v10661_v22 = vpack.c.bf16 %v2999_v6, %v2997_v4  ;;  %v3020_v1 = vld [vmem:[%s16015_s1 + $0x5e0] sm:$0xff]  ;;  %v10701_v3 = vpack.c.bf16 %v3075_v59, %v3073_v21  ;;  %v3074_v6 = vld [vmem:[%s16018_s12 + $0x70] sm:$0xff] }
0x1abd   : > { %v3072_v4 = vld [vmem:[%s16018_s12 + $0x60] sm:$0xff]  ;;  %v3106_v59 = vld [vmem:[%s16018_s12 + $0x170] sm:$0xff] }
0x1abe   : > { %v3104_v21 = vld [vmem:[%s16018_s12 + $0x160] sm:$0xff] }
0x1abf   : > { %10624 = vmatpush1.bf16.msra.mxu0 %v10623_v11  ;;  %v3003_v11 = vld [vmem:[%s16015_s1 + $0x558] sm:$0xff] }
0x1ac0   : > { %10626 = vmatprep.subr.bf16.mxu0 %v10625_v28  ;;  %v10663_v28 = vpack.c.bf16 %v2998_v60, %v2996_v7  ;;  %v10665_v12 = vpack.c.bf16 %v3003_v11, %v3001_v8  ;;  %v3077_v7 = vld [vmem:[%s16018_s12 + $0x88] sm:$0xff]  ;;  %v3079_v60 = vld [vmem:[%s16018_s12 + $0x98] sm:$0xff]  ;;  %v10703_v8 = vpack.c.bf16 %v3074_v6, %v3072_v4  ;;  %v3110_v4 = vld [vmem:[%s16018_s12 + $0x190] sm:$0xff] }
0x1ac2   : > { %7628 = vmatmul.mubr.f32.vlgmr.msra.gmra.mrb[62].mxu0 %v7315_v0  ;;  %v10667_v0 = vpack.c.bf16 %v3002_v10, %v3000_v13  ;;  %v3078_v13 = vld [vmem:[%s16018_s12 + $0x90] sm:$0xff]  ;;  %v3081_v10 = vld [vmem:[%s16018_s12 + $0xa8] sm:$0xff] }
0x1ac3   : > { %10628 = vmatpush1.bf16.msra.mxu0 %v10627_v27  ;;  %7698 = vmatprep.mubr.f32.mxu0 %v7320_v34  ;;  %v3007_v27 = vld [vmem:[%s16015_s1 + $0x578] sm:$0xff]  ;;  %v3009_v34 = vld [vmem:[%s16015_s1 + $0x588] sm:$0xff] }
0x1ac4   : > { %10630 = vmatprep.subr.bf16.mxu0 %v10629_v30  ;;  %v10669_v30 = vpack.c.bf16 %v3007_v27, %v3005_v20  ;;  %v3083_v20 = vld [vmem:[%s16018_s12 + $0xb8] sm:$0xff] }
0x1ac7   : > { %10632 = vmatpush1.bf16.msra.mxu0 %v10631_v32  ;;  %v10673_v32 = vpack.c.bf16 %v3011_v26, %v3009_v34  ;;  %v3085_v34 = vld [vmem:[%s16018_s12 + $0xc8] sm:$0xff]  ;;  %v3087_v26 = vld [vmem:[%s16018_s12 + $0xd8] sm:$0xff] }
0x1ac8   : > { %10634 = vmatprep.subr.bf16.mxu0 %v10633_v35  ;;  %v3008_v35 = vld [vmem:[%s16015_s1 + $0x580] sm:$0xff] }
0x1ac9   : > { %v10675_v19 = vpack.c.bf16 %v3010_v37, %v3008_v35  ;;  %v3084_v35 = vld [vmem:[%s16018_s12 + $0xc0] sm:$0xff]  ;;  %v3086_v37 = vld [vmem:[%s16018_s12 + $0xd0] sm:$0xff] }
0x1acb   : > { %10636 = vmatpush1.bf16.msra.mxu0 %v10635_v23  ;;  %v3014_v23 = vld [vmem:[%s16015_s1 + $0x5b0] sm:$0xff] }
0x1acc   : > { %10638 = vmatprep.subr.bf16.mxu0 %v10637_v39  ;;  %v3061_v39 = vld [vmem:[%s16017_s10 + $0x8] sm:$0xff]  ;;  %s16019_s10 = sld [smem:[#allocation151_spill]] }
0x1acd   : > { %v10689_v41 = vpack.c.bf16 %v3063_v40, %v3061_v39  ;;  %v3090_v39 = vld [vmem:[%s16018_s12 + $0xf0] sm:$0xff]  ;;  %v3093_v40 = vld [vmem:[%s16018_s12 + $0x108] sm:$0xff] }
0x1acf   : > { %10640 = vmatpush1.bf16.msra.mxu0 %v10639_v47  ;;  %v3062_v47 = vld [vmem:[%s16018_s12 + $0x10] sm:$0xff]  ;;  %10690 = vmatprep.subr.bf16.mxu1 %v10689_v41 }
0x1ad0   : > { %10642 = vmatprep.subr.bf16.mxu0 %v10641_v43  ;;  %v3065_v43 = vld [vmem:[%s16018_s12 + $0x28] sm:$0xff]  ;;  %v10691_v44 = vpack.c.bf16 %v3062_v47, %v3060_v61  ;;  %v3095_v61 = vld [vmem:[%s16018_s12 + $0x118] sm:$0xff]  ;;  %v3092_v47 = vld [vmem:[%s16018_s12 + $0x100] sm:$0xff] }
0x1ad1   : > { %v10693_v49 = vpack.c.bf16 %v3067_v42, %v3065_v43  ;;  %v10721_v41 = vpack.c.bf16 %v3095_v61, %v3093_v40  ;;  %v3094_v43 = vld [vmem:[%s16018_s12 + $0x110] sm:$0xff] }
0x1ad2   : > { %10692 = vmatpush1.bf16.msra.mxu1 %v10691_v44  ;;  %v10723_v42 = vpack.c.bf16 %v3094_v43, %v3092_v47  ;;  %v3099_v44 = vld [vmem:[%s16018_s12 + $0x138] sm:$0xff] }
0x1ad3   : > { %10644 = vmatpush1.bf16.msra.mxu0 %v10643_v46  ;;  %v3064_v46 = vld [vmem:[%s16018_s12 + $0x20] sm:$0xff]  ;;  %10694 = vmatprep.subr.bf16.mxu1 %v10693_v49  ;;  %v3127_v47 = vld [vmem:[%s16018_s12 + $0x218] sm:$0xff] }
0x1ad4   : > { %10646 = vmatprep.subr.bf16.mxu0 %v10645_v51  ;;  %v3066_v51 = vld [vmem:[%s16018_s12 + $0x30] sm:$0xff] }
0x1ad7   : > { %10648 = vmatpush1.bf16.msra.mxu0 %v10647_v52  ;;  %v10695_v52 = vpack.c.bf16 %v3066_v51, %v3064_v46  ;;  %v3096_v46 = vld [vmem:[%s16018_s12 + $0x120] sm:$0xff]  ;;  %v3098_v51 = vld [vmem:[%s16018_s12 + $0x130] sm:$0xff] }
0x1ad8   : > { %10650 = vmatprep.subr.bf16.mxu0 %v10649_v25  ;;  %v10679_v25 = vpack.c.bf16 %v3014_v23, %v3012_v36  ;;  %v10715_v36 = vpack.c.bf16 %v3086_v37, %v3084_v35  ;;  %v3088_v23 = vld [vmem:[%s16018_s12 + $0xe0] sm:$0xff]  ;;  %v3121_v35 = vld [vmem:[%s16018_s12 + $0x1e8] sm:$0xff]  ;;  %v3123_v37 = vld [vmem:[%s16018_s12 + $0x1f8] sm:$0xff] }
0x1ad9   : > { %10696 = vmatpush1.bf16.msra.mxu1 %v10695_v52  ;;  %v3103_v52 = vld [vmem:[%s16018_s12 + $0x158] sm:$0xff] }
0x1ada   : > { %10698 = vmatprep.subr.bf16.mxu1 %v10697_v55  ;;  %v3102_v55 = vld [vmem:[%s16018_s12 + $0x150] sm:$0xff] }
0x1adb   : > { %10652 = vmatpush1.bf16.msra.mxu0 %v10651_v48  ;;  %v10681_v48 = vpack.c.bf16 %v3019_v53, %v3017_v58  ;;  %v10727_v58 = vpack.c.bf16 %v3098_v51, %v3096_v46 }
0x1adc   : > { %10654 = vmatprep.subr.bf16.mxu0 %v10653_v56  ;;  %v3018_v56 = vld [vmem:[%s16015_s1 + $0x5d0] sm:$0xff] }
0x1adf   : > { %10656 = vmatpush1.bf16.msra.mxu0 %v10655_v16  ;;  %v10699_v16 = vpack.c.bf16 %v3070_v57, %v3068_v5  ;;  %v3105_v57 = vld [vmem:[%s16018_s12 + $0x168] sm:$0xff] }
0x1ae0   : > { %10658 = vmatprep.subr.bf16.mxu0 %v10657_v63  ;;  %v10683_v63 = vpack.c.bf16 %v3018_v56, %v3016_v54  ;;  %v3100_v54 = vld [vmem:[%s16018_s12 + $0x140] sm:$0xff] }
0x1ae1   : > { %10700 = vmatpush1.bf16.msra.mxu1 %v10699_v16  ;;  %v10731_v5 = vpack.c.bf16 %v3102_v55, %v3100_v54  ;;  %v3111_v16 = vld [vmem:[%s16018_s12 + $0x198] sm:$0xff] }
0x1ae2   : > { %10702 = vmatprep.subr.bf16.mxu1 %v10701_v3  ;;  %v3108_v3 = vld [vmem:[%s16018_s12 + $0x180] sm:$0xff] }
0x1ae3   : > { %10660 = vmatpush1.bf16.msra.mxu0 %v10659_v45  ;;  %v10685_v45 = vpack.c.bf16 %v3023_v2, %v3021_v62  ;;  %v10735_v62 = vpack.c.bf16 %v3106_v59, %v3104_v21  ;;  %v3109_v2 = vld [vmem:[%s16018_s12 + $0x188] sm:$0xff]  ;;  %v10739_v6 = vpack.c.bf16 %v3110_v4, %v3108_v3 }
0x1ae4   : > { %10662 = vmatprep.subr.bf16.mxu0 %v10661_v22  ;;  %v3022_v22 = vld [vmem:[%s16015_s1 + $0x5f0] sm:$0xff]  ;;  %s16020_s1 = smov %s16019_s10 }
0x1ae5   : > { %v10687_v11 = vpack.c.bf16 %v3022_v22, %v3020_v1  ;;  %10704 = vmatpush1.bf16.msra.mxu1 %v10703_v8  ;;  %v10737_v1 = vpack.c.bf16 %v3111_v16, %v3109_v2  ;;  %v3113_v22 = vld [vmem:[%s16018_s12 + $0x1a8] sm:$0xff]  ;;  %v2734_v8 = vld [vmem:[#allocation58] sm:$0x3] }
0x1ae7   : > { %10664 = vmatpush1.bf16.msra.mxu0 %v10663_v28  ;;  %v10705_v28 = vpack.c.bf16 %v3079_v60, %v3077_v7  ;;  %v3115_v7 = vld [vmem:[%s16018_s12 + $0x1b8] sm:$0xff] }
0x1ae8   : > { %10666 = vmatprep.subr.bf16.mxu0 %v10665_v12  ;;  %v3076_v12 = vld [vmem:[%s16018_s12 + $0x80] sm:$0xff] }
0x1ae9   : > { %v10707_v27 = vpack.c.bf16 %v3078_v13, %v3076_v12  ;;  %10706 = vmatprep.subr.bf16.mxu1 %v10705_v28  ;;  %v3112_v28 = vld [vmem:[%s16018_s12 + $0x1a0] sm:$0xff]  ;;  %v3114_v12 = vld [vmem:[%s16018_s12 + $0x1b0] sm:$0xff] }
0x1aea   : > { %v10743_v13 = vpack.c.bf16 %v3114_v12, %v3112_v28  ;;  %v3130_v28 = vld [vmem:[%s16018_s12 + $0x230] sm:$0xff] }
0x1aeb   : > { %10668 = vmatpush1.bf16.msra.mxu0 %v10667_v0  ;;  %v10709_v0 = vpack.c.bf16 %v3083_v20, %v3081_v10  ;;  %10708 = vmatpush1.bf16.msra.mxu1 %v10707_v27  ;;  %v7483_v20 = vrot.slane %v2734_v8, %v15135_v15  ;;  %v3117_v27 = vld [vmem:[%s16018_s12 + $0x1c8] sm:$0xff] }
0x1aec   : > { %10670 = vmatprep.subr.bf16.mxu0 %v10669_v30  ;;  %v3080_v30 = vld [vmem:[%s16018_s12 + $0xa0] sm:$0xff] }
0x1aed   : > { %10710 = vmatprep.subr.bf16.mxu1 %v10709_v0  ;;  %v3119_v0 = vld [vmem:[%s16018_s12 + $0x1d8] sm:$0xff] }
0x1aef   : > { %10672 = vmatpush1.bf16.msra.mxu0 %v10671_v24  ;;  %v10711_v24 = vpack.c.bf16 %v3082_v31, %v3080_v30  ;;  %v7487_v31 = vrot.slane %v2734_v8, %v15138_v9 }
0x1af0   : > { %10674 = vmatprep.subr.bf16.mxu0 %v10673_v32  ;;  %v10713_v32 = vpack.c.bf16 %v3087_v26, %v3085_v34  ;;  %v3116_v34 = vld [vmem:[%s16018_s12 + $0x1c0] sm:$0xff]  ;;  %v3118_v26 = vld [vmem:[%s16018_s12 + $0x1d0] sm:$0xff] }
0x1af1   : > { %10712 = vmatpush1.bf16.msra.mxu1 %v10711_v24  ;;  %v10747_v24 = vpack.c.bf16 %v3118_v26, %v3116_v34  ;;  %v3252_v34 = vld [vmem:[%s16020_s1] sm:$0xff] }
0x1af2   : > { %10714 = vmatprep.subr.bf16.mxu1 %v10713_v32 }
0x1af3   : > { %10676 = vmatpush1.bf16.msra.mxu0 %v10675_v19  ;;  %v10719_v19 = vpack.c.bf16 %v3090_v39, %v3088_v23  ;;  %v3122_v23 = vld [vmem:[%s16018_s12 + $0x1f0] sm:$0xff] }
0x1af4   : > { %10678 = vmatprep.subr.bf16.mxu0 %v10677_v18  ;;  %v3097_v18 = vld [vmem:[%s16018_s12 + $0x128] sm:$0xff]  ;;  %v10751_v61 = vpack.c.bf16 %v3122_v23, %v3120_v29  ;;  %v3258_v23 = vld [vmem:[%s16020_s1 + $0x30] sm:$0xff] }
0x1af5   : > { %10716 = vmatpush1.bf16.msra.mxu1 %v10715_v36  ;;  %v10725_v49 = vpack.c.bf16 %v3099_v44, %v3097_v18  ;;  %v3056_v18 = vld [vmem:[#allocation64] sm:$0x3] }
0x1af6   : > { %10718 = vmatprep.subr.bf16.mxu1 %v10717_v14  ;;  %v10749_v14 = vpack.c.bf16 %v3123_v37, %v3121_v35  ;;  %v3257_v35 = vld [vmem:[%s16020_s1 + $0x28] sm:$0xff]  ;;  %v3259_v37 = vld [vmem:[%s16020_s1 + $0x38] sm:$0xff] }
0x1af7   : > { %10680 = vmatpush1.bf16.msra.mxu0 %v10679_v25  ;;  %v10729_v25 = vpack.c.bf16 %v3103_v52, %v3101_v50  ;;  %v7726_v50 = vrot.slane %v3056_v18, %v15138_v9 }
0x1af8   : > { %10682 = vmatprep.subr.bf16.mxu0 %v10681_v48  ;;  %v3107_v48 = vld [vmem:[%s16018_s12 + $0x178] sm:$0xff] }
0x1af9   : > { %10720 = vmatpush1.bf16.msra.mxu1 %v10719_v19  ;;  %v10733_v56 = vpack.c.bf16 %v3107_v48, %v3105_v57 }
0x1afa   : > { %10722 = vmatprep.subr.bf16.mxu1 %v10721_v41  ;;  %v3125_v41 = vld [vmem:[%s16018_s12 + $0x208] sm:$0xff] }
0x1afb   : > { %10684 = vmatpush1.bf16.msra.mxu0 %v10683_v63  ;;  %v2735_v63 = vld [vmem:[#allocation59] sm:$0x3]  ;;  %v10753_v43 = vpack.c.bf16 %v3127_v47, %v3125_v41 }
0x1afc   : > { %10686 = vmatprep.subr.bf16.mxu0 %v10685_v45  ;;  %v7470_v45 = vrot.slane %v2735_v63, %v15135_v15  ;;  %v7474_v60 = vrot.slane %v2735_v63, %v15138_v9  ;;  %v3124_v63 = vld [vmem:[%s16018_s12 + $0x200] sm:$0xff] }
0x1afd   : > { %10724 = vmatpush1.bf16.msra.mxu1 %v10723_v42  ;;  %v3057_v42 = vld [vmem:[#allocation65] sm:$0x3] }
0x1afe   : > { %10726 = vmatprep.subr.bf16.mxu1 %v10725_v49  ;;  %v7709_v44 = vrot.slane %v3057_v42, %v15135_v15  ;;  %v7713_v46 = vrot.slane %v3057_v42, %v15138_v9 }
0x1aff   : > { %10688 = vmatpush1.bf16.msra.mxu0 %v10687_v11  ;;  %v10741_v11 = vpack.c.bf16 %v3115_v7, %v3113_v22 }
0x1b01   : > { %10728 = vmatpush1.bf16.msra.mxu1 %v10727_v58 }
0x1b02   : > { %7699 = vmatmul.mubr.f32.vlgmr.msra.gmra.mrb[62].mxu0 %v7319_v33  ;;  %10730 = vmatprep.subr.bf16.mxu1 %v10729_v25  ;;  %v10745_v33 = vpack.c.bf16 %v3119_v0, %v3117_v27  ;;  %v3132_v0 = vld [vmem:[%s16018_s12 + $0x240] sm:$0xff] }
0x1b05   : > { %10732 = vmatpush1.bf16.msra.mxu1 %v10731_v5 }
0x1b06   : > { %10734 = vmatprep.subr.bf16.mxu1 %v10733_v56 }
0x1b09   : > { %10736 = vmatpush1.bf16.msra.mxu1 %v10735_v62 }
0x1b0a   : > { %10738 = vmatprep.subr.bf16.mxu1 %v10737_v1  ;;  %v3126_v1 = vld [vmem:[%s16018_s12 + $0x210] sm:$0xff] }
0x1b0b   : > { %v10755_v7 = vpack.c.bf16 %v3126_v1, %v3124_v63  ;;  %v3144_v1 = vld [vmem:[%s16018_s12 + $0x2a0] sm:$0xff] }
0x1b0d   : > { %10740 = vmatpush1.bf16.msra.mxu1 %v10739_v6  ;;  %v3129_v6 = vld [vmem:[%s16018_s12 + $0x228] sm:$0xff] }
0x1b0e   : > { %10742 = vmatprep.subr.bf16.mxu1 %v10741_v11  ;;  %v3128_v11 = vld [vmem:[%s16018_s12 + $0x220] sm:$0xff] }
0x1b0f   : > { %v10759_v26 = vpack.c.bf16 %v3130_v28, %v3128_v11  ;;  %v3149_v11 = vld [vmem:[%s16018_s12 + $0x2c8] sm:$0xff]  ;;  %v3151_v28 = vld [vmem:[%s16018_s12 + $0x2d8] sm:$0xff] }
0x1b11   : > { %10744 = vmatpush1.bf16.msra.mxu1 %v10743_v13 }
0x1b12   : > { %10746 = vmatprep.subr.bf16.mxu1 %v10745_v33  ;;  %v3255_v33 = vld [vmem:[%s16020_s1 + $0x18] sm:$0xff] }
0x1b15   : > { %10748 = vmatpush1.bf16.msra.mxu1 %v10747_v24 }
0x1b16   : > { %10750 = vmatprep.subr.bf16.mxu1 %v10749_v14  ;;  %v3256_v14 = vld [vmem:[%s16020_s1 + $0x20] sm:$0xff] }
0x1b17   : > { %v10887_v41 = vpack.c.bf16 %v3258_v23, %v3256_v14  ;;  %v3276_v14 = vld [vmem:[%s16020_s1 + $0xc0] sm:$0xff]  ;;  %v3278_v23 = vld [vmem:[%s16020_s1 + $0xd0] sm:$0xff] }
0x1b19   : > { %10752 = vmatpush1.bf16.msra.mxu1 %v10751_v61  ;;  %v3139_v61 = vld [vmem:[%s16018_s12 + $0x278] sm:$0xff] }
0x1b1a   : > { %10754 = vmatprep.subr.bf16.mxu1 %v10753_v43  ;;  %v3136_v43 = vld [vmem:[%s16018_s12 + $0x260] sm:$0xff] }
0x1b55   : > { %v7461_v17 = vpop.f32.mrb[60].mxu0 }
0x1b56   : > { %v7463_v53 = vpop.f32.mrb[61].mxu0  ;;  %v7477_v10 = vmul.f32 %v7470_v45, %v7461_v17  ;;  %v7722_v17 = vrot.slane %v3056_v18, %v15135_v15  ;;  %v3131_v45 = vld [vmem:[%s16018_s12 + $0x238] sm:$0xff]  ;;  %v3260_v18 = vld [vmem:[%s16020_s1 + $0x40] sm:$0xff] }
0x1b57   : > { %v7478_v30 = vmul.f32 %v7474_v60, %v7463_v53  ;;  %v10757_v8 = vpack.c.bf16 %v3131_v45, %v3129_v6  ;;  %v3268_v6 = vld [vmem:[%s16020_s1 + $0x80] sm:$0xff]  ;;  %v3270_v45 = vld [vmem:[%s16020_s1 + $0x90] sm:$0xff] }
0x1b58   : > { %v7490_v32 = vadd.f32 %v7483_v20, %v7477_v10  ;;  %v3133_v10 = vld [vmem:[%s16018_s12 + $0x248] sm:$0xff]  ;;  %v3135_v20 = vld [vmem:[%s16018_s12 + $0x258] sm:$0xff] }
0x1b59   : > { %v7491_v36 = vadd.f32 %v7487_v31, %v7478_v30  ;;  %v3134_v30 = vld [vmem:[%s16018_s12 + $0x250] sm:$0xff]  ;;  %v3253_v31 = vld [vmem:[%s16019_s10 + $0x8] sm:$0xff]  ;;  %v10761_v29 = vpack.c.bf16 %v3135_v20, %v3133_v10  ;;  %v10899_v10 = vpack.c.bf16 %v3270_v45, %v3268_v6  ;;  %s2383_s10 = sand.u32 1, %s13026_s7  }
0x1b5a   : > { %v10881_v24 = vpack.c.bf16 %v3255_v33, %v3253_v31  ;;  %v10763_v47 = vpack.c.bf16 %v3134_v30, %v3132_v0  ;;  %v3272_v30 = vld [vmem:[%s16020_s1 + $0xa0] sm:$0xff]  ;;  %v3274_v31 = vld [vmem:[%s16020_s1 + $0xb0] sm:$0xff]  ;;  %v10777_v33 = vpack.c.bf16 %v3151_v28, %v3149_v11  ;;  %s2384_s2 = scalar_lea.vmem [#allocation73], %s2383_s10  ;;  %s8349_s5 = scalar_lea.sflag [#allocation4], %s2383_s10 }
0x1b5b   : > { %s8361_s3 = sshll.u32 %s2384_s2, 4  ;;  %s15766_s3 = int_to_ptr.vmem [resolvable:$true] %s8361_s3 }
0x1b5c   : > { %10882 = vmatprep.subr.bf16.mxu0 %v10881_v24  ;;  %v3279_v24 = vld [vmem:[%s16020_s1 + $0xd8] sm:$0xff]  ;;  %s12876_s6 = scalar_lea.vmem %s15766_s3, 16 }
0x1b5d   : > { %p12877_p10 = scmp.ne.s32.totalorder %s15766_s3, %s12876_s6 }
0x1b5f   : > { %p12878_p13 = pnand %p12877_p10, %p16021_p12 }
0x1b61   : > { %p12879_p0 = pneg %p12878_p13 }
0x1b6c   : > { %v7558_v38 = vpop.f32.mrb[50].mxu1 }
0x1b6d   : > { %v7559_v39 = vadd.f32 %v7558_v38, %v7490_v32  ;;  %v7560_v40 = vpop.f32.mrb[51].mxu1  ;;  %v3254_v32 = vld [vmem:[%s16020_s1 + $0x10] sm:$0xff] }
0x1b6e   : > { %v7561_v19 = vadd.f32 %v7560_v40, %v7491_v36  ;;  %v10883_v38 = vpack.c.bf16 %v3254_v32, %v3252_v34  ;;  %v10885_v36 = vpack.c.bf16 %v3259_v37, %v3257_v35  ;;  %v3137_v40 = vld [vmem:[%s16018_s12 + $0x268] sm:$0xff]  ;;  %v3150_v34 = vld [vmem:[%s16018_s12 + $0x2d0] sm:$0xff]  ;;  %v3155_v35 = vld [vmem:[%s16018_s12 + $0x2f8] sm:$0xff]  ;;  %v10903_v37 = vpack.c.bf16 %v3274_v31, %v3272_v30 }
0x1b6f   : > { %v3153_v32 = vld [vmem:[%s16018_s12 + $0x2e8] sm:$0xff] }
0x1b70   : > { %10884 = vmatpush1.bf16.msra.mxu0 %v10883_v38  ;;  %v3152_v38 = vld [vmem:[%s16018_s12 + $0x2e0] sm:$0xff] }
0x1b71   : > { %10886 = vmatprep.subr.bf16.mxu0 %v10885_v36 }
0x1b74   : > { %10888 = vmatpush1.bf16.msra.mxu0 %v10887_v41  ;;  %v3157_v41 = vld [vmem:[%s16018_s12 + $0x308] sm:$0xff] }
0x1bd5   : > { %v7700_v49 = vpop.f32.mrb[62].mxu0 }
0x1bd6   : > { %v11106_v51 = vadd.f32 %v7700_v49, %v7559_v39  ;;  %v7702_v58 = vpop.f32.mrb[63].mxu0  ;;  %v3261_v39 = vld [vmem:[%s16020_s1 + $0x48] sm:$0xff]  ;;  %v10765_v49 = vpack.c.bf16 %v3139_v61, %v3137_v40  ;;  %v3154_v40 = vld [vmem:[%s16018_s12 + $0x2f0] sm:$0xff] }
0x1bd7   : > { %v11108_v53 = vadd.f32 %v7702_v58, %v7561_v19  ;;  %v3263_v19 = vld [vmem:[%s16020_s1 + $0x58] sm:$0xff]  ;;  %v3141_v58 = vld [vmem:[%s16018_s12 + $0x288] sm:$0xff] }
0x1bd8   : > { %v7716_v52 = vmul.f32 %v11106_v51, %v7709_v44  ;;  %v10889_v42 = vpack.c.bf16 %v3263_v19, %v3261_v39  ;;  %v3262_v44 = vld [vmem:[%s16020_s1 + $0x50] sm:$0xff]  ;;  %v3265_v51 = vld [vmem:[%s16020_s1 + $0x68] sm:$0xff]  ;;  %v10781_v39 = vpack.c.bf16 %v3155_v35, %v3153_v32  ;;  %v3283_v19 = vld [vmem:[%s16020_s1 + $0xf8] sm:$0xff] }
0x1bd9   : > { %v7717_v25 = vmul.f32 %v11108_v53, %v7713_v46  ;;  %v3138_v46 = vld [vmem:[%s16018_s12 + $0x270] sm:$0xff]  ;;  %v3143_v53 = vld [vmem:[%s16018_s12 + $0x298] sm:$0xff]  ;;  %v3281_v61 = vld [vmem:[%s16020_s1 + $0xe8] sm:$0xff] }
0x1bda   : > { %v7729_v54 = vadd.f32 %v7722_v17, %v7716_v52  ;;  %v3267_v17 = vld [vmem:[%s16020_s1 + $0x78] sm:$0xff]  ;;  %v10767_v52 = vpack.c.bf16 %v3138_v46, %v3136_v43  ;;  %10890 = vmatprep.subr.bf16.mxu0 %v10889_v42  ;;  %v10907_v43 = vpack.c.bf16 %v3278_v23, %v3276_v14  ;;  %v10783_v42 = vpack.c.bf16 %v3154_v40, %v3152_v38  ;;  %v3282_v46 = vld [vmem:[%s16020_s1 + $0xf0] sm:$0xff]  ;;  %v3181_v38 = vld [vmem:[%s16018_s12 + $0x3c8] sm:$0xff] }
0x1bdb   : > { %v7730_v55 = vadd.f32 %v7726_v50, %v7717_v25  ;;  %v10891_v50 = vpack.c.bf16 %v3262_v44, %v3260_v18  ;;  %v3140_v25 = vld [vmem:[%s16018_s12 + $0x280] sm:$0xff]  ;;  %v10909_v44 = vpack.c.bf16 %v3283_v19, %v3281_v61  ;;  %v3182_v40 = vld [vmem:[%s16018_s12 + $0x3d0] sm:$0xff]  ;;  %v3185_v61 = vld [vmem:[%s16018_s12 + $0x3e8] sm:$0xff] }
0x1bdc   : > { %v7733_v5 = vmin.f32 %v7729_v54, 0.0  ;;  %vm7731_vm7 = vcmp.gt.f32.partialorder %v7729_v54, 0.0  ;;  %v3156_v18 = vld [vmem:[%s16018_s12 + $0x300] sm:$0xff]  ;;  %v3187_v19 = vld [vmem:[%s16018_s12 + $0x3f8] sm:$0xff] }
0x1bdd   : > { %v7734_v57 = vmin.f32 %v7730_v55, 0.0  ;;  %vm7732_vm13 = vcmp.gt.f32.partialorder %v7730_v55, 0.0  ;;  %10892 = vmatpush1.bf16.msra.mxu0 %v10891_v50  ;;  %v3161_v50 = vld [vmem:[%s16018_s12 + $0x328] sm:$0xff] }
0x1bde   : > { %v7735_v48 = vmul.f32 1.442695, %v7733_v5  ;;  %v3266_v5 = vld [vmem:[%s16020_s1 + $0x70] sm:$0xff] }
0x1bdf   : > { %v7737_v56 = vmul.f32 1.442695, %v7734_v57  ;;  %v10769_v57 = vpack.c.bf16 %v3143_v53, %v3141_v58  ;;  %v3285_v58 = vld [vmem:[%s16020_s1 + $0x108] sm:$0xff]  ;;  %v3287_v53 = vld [vmem:[%s16020_s1 + $0x118] sm:$0xff] }
0x1be0   : > { %11668 = vpow2.f32 %v7735_v48  ;;  %v3142_v48 = vld [vmem:[%s16018_s12 + $0x290] sm:$0xff] }
0x1be1   : > { %11670 = vpow2.f32 %v7737_v56  ;;  %v3269_v56 = vld [vmem:[%s16020_s1 + $0x88] sm:$0xff]  ;;  %v10771_v63 = vpack.c.bf16 %v3142_v48, %v3140_v25  ;;  %v3286_v48 = vld [vmem:[%s16020_s1 + $0x110] sm:$0xff] }
0x1bea   : > { %v11669_v21 = vpop.eup %11668 }
0x1beb   : > { %v11671_v59 = vpop.eup %11670  ;;  %v9186_v62 = vadd.f32 -1.0, %v11669_v21  ;;  %v3271_v21 = vld [vmem:[%s16020_s1 + $0x98] sm:$0xff] }
0x1bec   : > { %v9187_v2 = vadd.f32 -1.0, %v11671_v59  ;;  %v3145_v59 = vld [vmem:[%s16018_s12 + $0x2a8] sm:$0xff] }
0x1bed   : > { %v15363_v16 = vsel %vm7731_vm7, %v7729_v54, %v9186_v62  ;;  %v10893_v54 = vpack.c.bf16 %v3267_v17, %v3265_v51  ;;  %v3147_v62 = vld [vmem:[%s16018_s12 + $0x2b8] sm:$0xff]  ;;  %v3158_v17 = vld [vmem:[%s16018_s12 + $0x310] sm:$0xff] }
0x1bee   : > { %v15367_v3 = vsel %vm7732_vm13, %v7730_v55, %v9187_v2  ;;  %v7745_v4 = vrot.slane %v15363_v16, 7  ;;  %v3264_v55 = vld [vmem:[%s16020_s1 + $0x60] sm:$0xff] }
0x1bef   : > { %v7746_v22 = vrot.slane %v15367_v3, 7  ;;  %v10895_v2 = vpack.c.bf16 %v3266_v5, %v3264_v55  ;;  %10894 = vmatprep.subr.bf16.mxu0 %v10893_v54  ;;  %v10787_v54 = vpack.c.bf16 %v3158_v17, %v3156_v18  ;;  %v3160_v55 = vld [vmem:[%s16018_s12 + $0x320] sm:$0xff]  ;;  %v10913_v5 = vpack.c.bf16 %v3287_v53, %v3285_v58  ;;  %v3189_v18 = vld [vmem:[%s16018_s12 + $0x408] sm:$0xff]  ;;  %v3190_v17 = vld [vmem:[%s16018_s12 + $0x410] sm:$0xff] }
0x1bf0   : > { %v15381_v13 = vsel %vm3671_vm6, 0.0, %v7745_v4  ;;  %v10897_v4 = vpack.c.bf16 %v3271_v21, %v3269_v56  ;;  %v3162_v21 = vld [vmem:[%s16018_s12 + $0x330] sm:$0xff]  ;;  %v3193_v53 = vld [vmem:[%s16018_s12 + $0x428] sm:$0xff] }
0x1bf1   : > { %v7750_v60 = vsel %vm3671_vm6, 0.0, %v7746_v22  ;;  %v10773_v22 = vpack.c.bf16 %v3147_v62, %v3145_v59  ;;  %10896 = vmatpush1.bf16.msra.mxu0 %v10895_v2  ;;  %v3289_v59 = vld [vmem:[%s16020_s1 + $0x128] sm:$0xff]  ;;  %v3291_v62 = vld [vmem:[%s16020_s1 + $0x138] sm:$0xff]  ;;  %v15486_v58 = vsel %vm7187_vm0, %v15381_v13, 0.0 }
0x1bf2   : > { %v15377_v12 = vsel %vm7187_vm0, %v7750_v60, 0.0  ;;  %9188 = vmatprep.mubr.msk.f32.mxu1 %vm7187_vm0, %v7750_v60  ;;  %v3273_v60 = vld [vmem:[%s16020_s1 + $0xa8] sm:$0xff]  ;;  %10898 = vmatprep.subr.bf16.mxu0 %v10897_v4  ;;  %v10791_v4 = vpack.c.bf16 %v3162_v21, %v3160_v55  ;;  %v10917_v6 = vpack.c.bf16 %v3291_v62, %v3289_v59  ;;  %v3192_v55 = vld [vmem:[%s16018_s12 + $0x420] sm:$0xff]  ;;  %v3198_v62 = vld [vmem:[%s16018_s12 + $0x450] sm:$0xff] }
0x1bf3   : > { %9189 = vmatmul.mubr.msk.f32.vlgmr.msra.gmra.mrb[52].mxu1 %vm7187_vm0, %v15381_v13  ;;  %v7756_v27 = vrot.slane %v15377_v12, 1  ;;  %v3165_v2 = vld [vmem:[%s16018_s12 + $0x348] sm:$0xff]  ;;  %v3199_v13 = vld [vmem:[%s16018_s12 + $0x458] sm:$0xff]  ;;  %v3196_v59 = vld [vmem:[%s16018_s12 + $0x440] sm:$0xff] }
0x1bf4   : > { %10756 = vmatpush1.bf16.msra.mxu1 %v10755_v7  ;;  %v3146_v7 = vld [vmem:[%s16018_s12 + $0x2b0] sm:$0xff] }
0x1bf5   : > { %7898 = vmatprep.mubr.f32.mxu1 %v7756_v27  ;;  %10758 = vmatprep.subr.bf16.mxu1 %v10757_v8  ;;  %v3275_v8 = vld [vmem:[%s16020_s1 + $0xb8] sm:$0xff]  ;;  %v10775_v20 = vpack.c.bf16 %v3146_v7, %v3144_v1  ;;  %v3148_v27 = vld [vmem:[%s16018_s12 + $0x2c0] sm:$0xff]  ;;  %v3166_v7 = vld [vmem:[%s16018_s12 + $0x350] sm:$0xff] }
0x1bf6   : > { %v10901_v0 = vpack.c.bf16 %v3275_v8, %v3273_v60  ;;  %10900 = vmatpush1.bf16.msra.mxu0 %v10899_v10  ;;  %v3169_v60 = vld [vmem:[%s16018_s12 + $0x368] sm:$0xff]  ;;  %v3171_v8 = vld [vmem:[%s16018_s12 + $0x378] sm:$0xff]  ;;  %v3168_v10 = vld [vmem:[%s16018_s12 + $0x360] sm:$0xff] }
0x1bf7   : > { %v10797_v28 = vpack.c.bf16 %v3171_v8, %v3169_v60  ;;  %v3204_v8 = vld [vmem:[%s16018_s12 + $0x480] sm:$0xff] }
0x1bf8   : > { %10760 = vmatpush1.bf16.msra.mxu1 %v10759_v26  ;;  %v3277_v26 = vld [vmem:[%s16020_s1 + $0xc8] sm:$0xff]  ;;  %10902 = vmatprep.subr.bf16.mxu0 %v10901_v0  ;;  %v3175_v0 = vld [vmem:[%s16018_s12 + $0x398] sm:$0xff] }
0x1bf9   : > { %10762 = vmatprep.subr.bf16.mxu1 %v10761_v29  ;;  %v10779_v29 = vpack.c.bf16 %v3150_v34, %v3148_v27  ;;  %v10905_v36 = vpack.c.bf16 %v3279_v24, %v3277_v26  ;;  %v3173_v27 = vld [vmem:[%s16018_s12 + $0x388] sm:$0xff]  ;;  %v3174_v34 = vld [vmem:[%s16018_s12 + $0x390] sm:$0xff]  ;;  %v3179_v24 = vld [vmem:[%s16018_s12 + $0x3b8] sm:$0xff] }
0x1bfa   : > { %10904 = vmatpush1.bf16.msra.mxu0 %v10903_v37  ;;  %v10801_v31 = vpack.c.bf16 %v3175_v0, %v3173_v27  ;;  %v3177_v26 = vld [vmem:[%s16018_s12 + $0x3a8] sm:$0xff]  ;;  %v3176_v37 = vld [vmem:[%s16018_s12 + $0x3a0] sm:$0xff] }
0x1bfb   : > { %10906 = vmatprep.subr.bf16.mxu0 %v10905_v36  ;;  %v10805_v35 = vpack.c.bf16 %v3179_v24, %v3177_v26  ;;  %v3183_v36 = vld [vmem:[%s16018_s12 + $0x3d8] sm:$0xff]  ;;  %v3208_v0 = vld [vmem:[%s16018_s12 + $0x4a0] sm:$0xff] }
0x1bfc   : > { %10764 = vmatpush1.bf16.msra.mxu1 %v10763_v47  ;;  %v3159_v47 = vld [vmem:[%s16018_s12 + $0x318] sm:$0xff]  ;;  %v10809_v23 = vpack.c.bf16 %v3183_v36, %v3181_v38  ;;  %v3212_v24 = vld [vmem:[%s16018_s12 + $0x4c0] sm:$0xff] }
0x1bfd   : > { %10766 = vmatprep.subr.bf16.mxu1 %v10765_v49  ;;  %v3280_v49 = vld [vmem:[%s16020_s1 + $0xe0] sm:$0xff]  ;;  %v10785_v51 = vpack.c.bf16 %v3159_v47, %v3157_v41  ;;  %v10813_v47 = vpack.c.bf16 %v3187_v19, %v3185_v61 }
0x1bfe   : > { %10908 = vmatpush1.bf16.msra.mxu0 %v10907_v43  ;;  %v10911_v25 = vpack.c.bf16 %v3282_v46, %v3280_v49  ;;  %v3184_v43 = vld [vmem:[%s16018_s12 + $0x3e0] sm:$0xff] }
0x1bff   : > { %10910 = vmatprep.subr.bf16.mxu0 %v10909_v44  ;;  %v3191_v44 = vld [vmem:[%s16018_s12 + $0x418] sm:$0xff]  ;;  %v3216_v36 = vld [vmem:[%s16018_s12 + $0x4e0] sm:$0xff] }
0x1c00   : > { %10768 = vmatpush1.bf16.msra.mxu1 %v10767_v52  ;;  %v3163_v52 = vld [vmem:[%s16018_s12 + $0x338] sm:$0xff]  ;;  %v10817_v46 = vpack.c.bf16 %v3191_v44, %v3189_v18  ;;  %v3220_v19 = vld [vmem:[%s16018_s12 + $0x500] sm:$0xff] }
0x1c01   : > { %10770 = vmatprep.subr.bf16.mxu1 %v10769_v57  ;;  %v3284_v57 = vld [vmem:[%s16020_s1 + $0x100] sm:$0xff]  ;;  %v10789_v56 = vpack.c.bf16 %v3163_v52, %v3161_v50  ;;  %v3195_v50 = vld [vmem:[%s16018_s12 + $0x438] sm:$0xff] }
0x1c02   : > { %10912 = vmatpush1.bf16.msra.mxu0 %v10911_v25  ;;  %v10915_v1 = vpack.c.bf16 %v3286_v48, %v3284_v57  ;;  %v7755_v25 = vrot.slane %v15486_v58, 1  ;;  %v7760_v57 = vrot.slane %v15377_v12, 2  ;;  %v3197_v48 = vld [vmem:[%s16018_s12 + $0x448] sm:$0xff]  ;;  %v10827_v12 = vpack.c.bf16 %v3198_v62, %v3196_v59  ;;  %v3224_v44 = vld [vmem:[%s16018_s12 + $0x520] sm:$0xff] }
0x1c03   : > { %10914 = vmatprep.subr.bf16.mxu0 %v10913_v5  ;;  %v3194_v5 = vld [vmem:[%s16018_s12 + $0x430] sm:$0xff]  ;;  %v10825_v21 = vpack.c.bf16 %v3199_v13, %v3197_v48  ;;  %v3237_v13 = vld [vmem:[%s16018_s12 + $0x588] sm:$0xff]  ;;  %v3236_v62 = vld [vmem:[%s16018_s12 + $0x580] sm:$0xff] }
0x1c04   : > { %10772 = vmatpush1.bf16.msra.mxu1 %v10771_v63  ;;  %v3167_v63 = vld [vmem:[%s16018_s12 + $0x358] sm:$0xff]  ;;  %v3234_v48 = vld [vmem:[%s16018_s12 + $0x570] sm:$0xff] }
0x1c05   : > { %10774 = vmatprep.subr.bf16.mxu1 %v10773_v22  ;;  %v10793_v45 = vpack.c.bf16 %v3167_v63, %v3165_v2  ;;  %v3164_v22 = vld [vmem:[%s16018_s12 + $0x340] sm:$0xff]  ;;  %v3201_v2 = vld [vmem:[%s16018_s12 + $0x468] sm:$0xff]  ;;  %v3203_v63 = vld [vmem:[%s16018_s12 + $0x478] sm:$0xff] }
0x1c06   : > { %10916 = vmatpush1.bf16.msra.mxu0 %v10915_v1  ;;  %v10795_v11 = vpack.c.bf16 %v3166_v7, %v3164_v22  ;;  %v10829_v1 = vpack.c.bf16 %v3203_v63, %v3201_v2  ;;  %v3207_v22 = vld [vmem:[%s16018_s12 + $0x498] sm:$0xff]  ;;  %v3238_v2 = vld [vmem:[%s16018_s12 + $0x590] sm:$0xff]  ;;  %v3241_v63 = vld [vmem:[%s16018_s12 + $0x5a8] sm:$0xff] }
0x1c07   : > { %10918 = vmatprep.subr.bf16.mxu0 %v10917_v6  ;;  %v3202_v6 = vld [vmem:[%s16018_s12 + $0x470] sm:$0xff] }
0x1c08   : > { %10776 = vmatpush1.bf16.msra.mxu1 %v10775_v20  ;;  %v3170_v20 = vld [vmem:[%s16018_s12 + $0x370] sm:$0xff] }
0x1c09   : > { %10778 = vmatprep.subr.bf16.mxu1 %v10777_v33  ;;  %v10799_v30 = vpack.c.bf16 %v3170_v20, %v3168_v10  ;;  %v3172_v33 = vld [vmem:[%s16018_s12 + $0x380] sm:$0xff]  ;;  %v3211_v10 = vld [vmem:[%s16018_s12 + $0x4b8] sm:$0xff] }
0x1c0a   : > { %v10803_v32 = vpack.c.bf16 %v3174_v34, %v3172_v33  ;;  %v3215_v33 = vld [vmem:[%s16018_s12 + $0x4d8] sm:$0xff] }
0x1c0c   : > { %10780 = vmatpush1.bf16.msra.mxu1 %v10779_v29  ;;  %v3178_v29 = vld [vmem:[%s16018_s12 + $0x3b0] sm:$0xff] }
0x1c0d   : > { %10782 = vmatprep.subr.bf16.mxu1 %v10781_v39  ;;  %v10807_v14 = vpack.c.bf16 %v3178_v29, %v3176_v37  ;;  %v3180_v39 = vld [vmem:[%s16018_s12 + $0x3c0] sm:$0xff]  ;;  %v3219_v37 = vld [vmem:[%s16018_s12 + $0x4f8] sm:$0xff] }
0x1c0e   : > { %v10811_v41 = vpack.c.bf16 %v3182_v40, %v3180_v39  ;;  %v3223_v39 = vld [vmem:[%s16018_s12 + $0x518] sm:$0xff] }
0x1c10   : > { %10784 = vmatpush1.bf16.msra.mxu1 %v10783_v42  ;;  %v3186_v42 = vld [vmem:[%s16018_s12 + $0x3f0] sm:$0xff] }
0x1c11   : > { %10786 = vmatprep.subr.bf16.mxu1 %v10785_v51  ;;  %v10815_v49 = vpack.c.bf16 %v3186_v42, %v3184_v43  ;;  %v3188_v51 = vld [vmem:[%s16018_s12 + $0x400] sm:$0xff]  ;;  %v3227_v43 = vld [vmem:[%s16018_s12 + $0x538] sm:$0xff] }
0x1c12   : > { %v10819_v52 = vpack.c.bf16 %v3190_v17, %v3188_v51  ;;  %v3231_v51 = vld [vmem:[%s16018_s12 + $0x558] sm:$0xff] }
0x1c14   : > { %10788 = vmatpush1.bf16.msra.mxu1 %v10787_v54  ;;  %v10821_v54 = vpack.c.bf16 %v3195_v50, %v3193_v53  ;;  %v3228_v50 = vld [vmem:[%s16018_s12 + $0x540] sm:$0xff] }
0x1c15   : > { %10790 = vmatprep.subr.bf16.mxu1 %v10789_v56  ;;  %v10823_v56 = vpack.c.bf16 %v3194_v5, %v3192_v55 }
0x1c18   : > { %10792 = vmatpush1.bf16.msra.mxu1 %v10791_v4  ;;  %v3200_v4 = vld [vmem:[%s16018_s12 + $0x460] sm:$0xff] }
0x1c19   : > { %10794 = vmatprep.subr.bf16.mxu1 %v10793_v45  ;;  %v3205_v45 = vld [vmem:[%s16018_s12 + $0x488] sm:$0xff]  ;;  %v10831_v7 = vpack.c.bf16 %v3202_v6, %v3200_v4  ;;  %v3240_v6 = vld [vmem:[%s16018_s12 + $0x5a0] sm:$0xff] }
0x1c1a   : > { %v10833_v60 = vpack.c.bf16 %v3207_v22, %v3205_v45  ;;  %v3242_v45 = vld [vmem:[%s16018_s12 + $0x5b0] sm:$0xff]  ;;  %v3245_v22 = vld [vmem:[%s16018_s12 + $0x5c8] sm:$0xff] }
0x1c1c   : > { %10796 = vmatpush1.bf16.msra.mxu1 %v10795_v11  ;;  %v3206_v11 = vld [vmem:[%s16018_s12 + $0x490] sm:$0xff] }
0x1c1d   : > { %10798 = vmatprep.subr.bf16.mxu1 %v10797_v28  ;;  %v3209_v28 = vld [vmem:[%s16018_s12 + $0x4a8] sm:$0xff]  ;;  %v10835_v20 = vpack.c.bf16 %v3206_v11, %v3204_v8  ;;  %v3244_v11 = vld [vmem:[%s16018_s12 + $0x5c0] sm:$0xff] }
0x1c1e   : > { %v10837_v27 = vpack.c.bf16 %v3211_v10, %v3209_v28  ;;  %v3246_v28 = vld [vmem:[%s16018_s12 + $0x5d0] sm:$0xff]  ;;  %v3249_v10 = vld [vmem:[%s16018_s12 + $0x5e8] sm:$0xff] }
0x1c20   : > { %10800 = vmatpush1.bf16.msra.mxu1 %v10799_v30  ;;  %v3210_v30 = vld [vmem:[%s16018_s12 + $0x4b0] sm:$0xff] }
0x1c21   : > { %10802 = vmatprep.subr.bf16.mxu1 %v10801_v31  ;;  %v3213_v31 = vld [vmem:[%s16018_s12 + $0x4c8] sm:$0xff]  ;;  %v10839_v34 = vpack.c.bf16 %v3210_v30, %v3208_v0  ;;  %v3248_v30 = vld [vmem:[%s16018_s12 + $0x5e0] sm:$0xff] }
0x1c22   : > { %v10841_v26 = vpack.c.bf16 %v3215_v33, %v3213_v31  ;;  %v3250_v31 = vld [vmem:[%s16018_s12 + $0x5f0] sm:$0xff] }
0x1c23   : > { %v10879_v33 = vpack.c.bf16 %v3250_v31, %v3248_v30 }
0x1c24   : > { %10804 = vmatpush1.bf16.msra.mxu1 %v10803_v32  ;;  %v3214_v32 = vld [vmem:[%s16018_s12 + $0x4d0] sm:$0xff] }
0x1c25   : > { %10806 = vmatprep.subr.bf16.mxu1 %v10805_v35  ;;  %v3217_v35 = vld [vmem:[%s16018_s12 + $0x4e8] sm:$0xff]  ;;  %v10843_v29 = vpack.c.bf16 %v3214_v32, %v3212_v24  ;;  %v3290_v24 = vld [vmem:[%s16020_s1 + $0x130] sm:$0xff] }
0x1c26   : > { %v10845_v38 = vpack.c.bf16 %v3219_v37, %v3217_v35  ;;  %v3293_v35 = vld [vmem:[%s16020_s1 + $0x148] sm:$0xff]  ;;  %v3295_v37 = vld [vmem:[%s16020_s1 + $0x158] sm:$0xff] }
0x1c28   : > { %10808 = vmatpush1.bf16.msra.mxu1 %v10807_v14  ;;  %v3218_v14 = vld [vmem:[%s16018_s12 + $0x4f0] sm:$0xff] }
0x1c29   : > { %10810 = vmatprep.subr.bf16.mxu1 %v10809_v23  ;;  %v3221_v23 = vld [vmem:[%s16018_s12 + $0x508] sm:$0xff]  ;;  %v10847_v40 = vpack.c.bf16 %v3218_v14, %v3216_v36  ;;  %v3294_v36 = vld [vmem:[%s16020_s1 + $0x150] sm:$0xff] }
0x1c2a   : > { %v10849_v61 = vpack.c.bf16 %v3223_v39, %v3221_v23  ;;  %v3299_v23 = vld [vmem:[%s16020_s1 + $0x178] sm:$0xff] }
0x1c2c   : > { %10812 = vmatpush1.bf16.msra.mxu1 %v10811_v41  ;;  %v3222_v41 = vld [vmem:[%s16018_s12 + $0x510] sm:$0xff] }
0x1c2d   : > { %10814 = vmatprep.subr.bf16.mxu1 %v10813_v47  ;;  %v3225_v47 = vld [vmem:[%s16018_s12 + $0x528] sm:$0xff]  ;;  %v10851_v42 = vpack.c.bf16 %v3222_v41, %v3220_v19 }
0x1c2e   : > { %v10853_v18 = vpack.c.bf16 %v3227_v43, %v3225_v47  ;;  %v3301_v41 = vld [vmem:[%s16020_s1 + $0x188] sm:$0xff]  ;;  %v3303_v47 = vld [vmem:[%s16020_s1 + $0x198] sm:$0xff] }
0x1c2f   : > { %v10929_v43 = vpack.c.bf16 %v3303_v47, %v3301_v41  ;;  %v3325_v41 = vld [vmem:[%s16020_s1 + $0x248] sm:$0xff]  ;;  %v3327_v47 = vld [vmem:[%s16020_s1 + $0x258] sm:$0xff] }
0x1c30   : > { %10816 = vmatpush1.bf16.msra.mxu1 %v10815_v49  ;;  %v3226_v49 = vld [vmem:[%s16018_s12 + $0x530] sm:$0xff] }
0x1c31   : > { %10818 = vmatprep.subr.bf16.mxu1 %v10817_v46  ;;  %v3229_v46 = vld [vmem:[%s16018_s12 + $0x548] sm:$0xff]  ;;  %v10855_v17 = vpack.c.bf16 %v3226_v49, %v3224_v44 }
0x1c32   : > { %v10857_v53 = vpack.c.bf16 %v3231_v51, %v3229_v46  ;;  %v3305_v49 = vld [vmem:[%s16020_s1 + $0x1a8] sm:$0xff]  ;;  %v3307_v46 = vld [vmem:[%s16020_s1 + $0x1b8] sm:$0xff] }
0x1c33   : > { %7899 = vmatmul.mubr.f32.vlgmr.msra.gmra.mrb[52].mxu1 %v7755_v25  ;;  %v3233_v25 = vld [vmem:[%s16018_s12 + $0x568] sm:$0xff]  ;;  %v10933_v51 = vpack.c.bf16 %v3307_v46, %v3305_v49  ;;  %v3326_v49 = vld [vmem:[%s16020_s1 + $0x250] sm:$0xff] }
0x1c34   : > { %10820 = vmatpush1.bf16.msra.mxu1 %v10819_v52  ;;  %7969 = vmatprep.mubr.f32.mxu1 %v7760_v57  ;;  %v3230_v52 = vld [vmem:[%s16018_s12 + $0x550] sm:$0xff]  ;;  %v3232_v57 = vld [vmem:[%s16018_s12 + $0x560] sm:$0xff]  ;;  %v3329_v46 = vld [vmem:[%s16020_s1 + $0x268] sm:$0xff] }
0x1c35   : > { %10822 = vmatprep.subr.bf16.mxu1 %v10821_v54  ;;  %v3235_v54 = vld [vmem:[%s16018_s12 + $0x578] sm:$0xff]  ;;  %v10859_v55 = vpack.c.bf16 %v3230_v52, %v3228_v50  ;;  %v3309_v52 = vld [vmem:[%s16020_s1 + $0x1c8] sm:$0xff] }
0x1c36   : > { %v10861_v5 = vpack.c.bf16 %v3235_v54, %v3233_v25  ;;  %v3311_v25 = vld [vmem:[%s16020_s1 + $0x1d8] sm:$0xff] }
0x1c37   : > { %v10937_v54 = vpack.c.bf16 %v3311_v25, %v3309_v52  ;;  %v3330_v52 = vld [vmem:[%s16020_s1 + $0x270] sm:$0xff]  ;;  %v3333_v25 = vld [vmem:[%s16020_s1 + $0x288] sm:$0xff] }
0x1c38   : > { %10824 = vmatpush1.bf16.msra.mxu1 %v10823_v56  ;;  %v3239_v56 = vld [vmem:[%s16018_s12 + $0x598] sm:$0xff] }
0x1c39   : > { %10826 = vmatprep.subr.bf16.mxu1 %v10825_v21  ;;  %v10863_v21 = vpack.c.bf16 %v3234_v48, %v3232_v57  ;;  %v10865_v59 = vpack.c.bf16 %v3239_v56, %v3237_v13  ;;  %v3313_v48 = vld [vmem:[%s16020_s1 + $0x1e8] sm:$0xff]  ;;  %v3315_v13 = vld [vmem:[%s16020_s1 + $0x1f8] sm:$0xff] }
0x1c3a   : > { %v10941_v56 = vpack.c.bf16 %v3315_v13, %v3313_v48  ;;  %v3334_v48 = vld [vmem:[%s16020_s1 + $0x290] sm:$0xff]  ;;  %v3337_v13 = vld [vmem:[%s16020_s1 + $0x2a8] sm:$0xff] }
0x1c3c   : > { %10828 = vmatpush1.bf16.msra.mxu1 %v10827_v12  ;;  %v3243_v12 = vld [vmem:[%s16018_s12 + $0x5b8] sm:$0xff] }
0x1c3d   : > { %10830 = vmatprep.subr.bf16.mxu1 %v10829_v1  ;;  %v10867_v1 = vpack.c.bf16 %v3238_v2, %v3236_v62  ;;  %v10869_v4 = vpack.c.bf16 %v3243_v12, %v3241_v63  ;;  %v3317_v2 = vld [vmem:[%s16020_s1 + $0x208] sm:$0xff]  ;;  %v3319_v63 = vld [vmem:[%s16020_s1 + $0x218] sm:$0xff] }
0x1c3e   : > { %v10945_v12 = vpack.c.bf16 %v3319_v63, %v3317_v2  ;;  %v3338_v2 = vld [vmem:[%s16020_s1 + $0x2b0] sm:$0xff]  ;;  %v3341_v63 = vld [vmem:[%s16020_s1 + $0x2c8] sm:$0xff] }
0x1c40   : > { %10832 = vmatpush1.bf16.msra.mxu1 %v10831_v7  ;;  %v3247_v7 = vld [vmem:[%s16018_s12 + $0x5d8] sm:$0xff] }
0x1c41   : > { %10834 = vmatprep.subr.bf16.mxu1 %v10833_v60  ;;  %v10871_v60 = vpack.c.bf16 %v3242_v45, %v3240_v6  ;;  %v10873_v8 = vpack.c.bf16 %v3247_v7, %v3245_v22 }
0x1c44   : > { %10836 = vmatpush1.bf16.msra.mxu1 %v10835_v20  ;;  %v3251_v20 = vld [vmem:[%s16018_s12 + $0x5f8] sm:$0xff] }
0x1c45   : > { %10838 = vmatprep.subr.bf16.mxu1 %v10837_v27  ;;  %v10875_v27 = vpack.c.bf16 %v3246_v28, %v3244_v11  ;;  %v10877_v0 = vpack.c.bf16 %v3251_v20, %v3249_v10 }
0x1c48   : > { %10840 = vmatpush1.bf16.msra.mxu1 %v10839_v34  ;;  %v7759_v34 = vrot.slane %v15486_v58, 2  ;;  %v3297_v58 = vld [vmem:[%s16020_s1 + $0x168] sm:$0xff] }
0x1c49   : > { %10842 = vmatprep.subr.bf16.mxu1 %v10841_v26  ;;  %v3288_v26 = vld [vmem:[%s16020_s1 + $0x120] sm:$0xff]  ;;  %v10925_v39 = vpack.c.bf16 %v3299_v23, %v3297_v58 }
0x1c4a   : > { %v10919_v32 = vpack.c.bf16 %v3290_v24, %v3288_v26  ;;  %v3316_v24 = vld [vmem:[%s16020_s1 + $0x200] sm:$0xff] }
0x1c4c   : > { %10844 = vmatpush1.bf16.msra.mxu1 %v10843_v29  ;;  %10920 = vmatpush1.bf16.msra.mxu0 %v10919_v32  ;;  %v10921_v29 = vpack.c.bf16 %v3295_v37, %v3293_v35  ;;  %v3318_v32 = vld [vmem:[%s16020_s1 + $0x210] sm:$0xff] }
0x1c4d   : > { %10846 = vmatprep.subr.bf16.mxu1 %v10845_v38  ;;  %v3292_v38 = vld [vmem:[%s16020_s1 + $0x140] sm:$0xff] }
0x1c4e   : > { %v10923_v14 = vpack.c.bf16 %v3294_v36, %v3292_v38  ;;  %10922 = vmatprep.subr.bf16.mxu0 %v10921_v29  ;;  %v3321_v29 = vld [vmem:[%s16020_s1 + $0x228] sm:$0xff]  ;;  %v3323_v38 = vld [vmem:[%s16020_s1 + $0x238] sm:$0xff] }
0x1c4f   : > { %v10949_v23 = vpack.c.bf16 %v3323_v38, %v3321_v29  ;;  %v3356_v38 = vld [vmem:[%s16020_s1 + $0x340] sm:$0xff] }
0x1c50   : > { %10848 = vmatpush1.bf16.msra.mxu1 %v10847_v40  ;;  %10924 = vmatpush1.bf16.msra.mxu0 %v10923_v14  ;;  %v3296_v40 = vld [vmem:[%s16020_s1 + $0x160] sm:$0xff]  ;;  %v10947_v14 = vpack.c.bf16 %v3318_v32, %v3316_v24  ;;  %v3354_v24 = vld [vmem:[%s16020_s1 + $0x330] sm:$0xff]  ;;  %v3357_v32 = vld [vmem:[%s16020_s1 + $0x348] sm:$0xff] }
0x1c51   : > { %10850 = vmatprep.subr.bf16.mxu1 %v10849_v61  ;;  %v3298_v61 = vld [vmem:[%s16020_s1 + $0x170] sm:$0xff]  ;;  %10926 = vmatprep.subr.bf16.mxu0 %v10925_v39  ;;  %v3320_v39 = vld [vmem:[%s16020_s1 + $0x220] sm:$0xff] }
0x1c52   : > { %v10927_v19 = vpack.c.bf16 %v3298_v61, %v3296_v40  ;;  %v3322_v40 = vld [vmem:[%s16020_s1 + $0x230] sm:$0xff] }
0x1c54   : > { %10852 = vmatpush1.bf16.msra.mxu1 %v10851_v42  ;;  %10928 = vmatpush1.bf16.msra.mxu0 %v10927_v19  ;;  %v3300_v42 = vld [vmem:[%s16020_s1 + $0x180] sm:$0xff] }
0x1c55   : > { %10854 = vmatprep.subr.bf16.mxu1 %v10853_v18  ;;  %v3302_v18 = vld [vmem:[%s16020_s1 + $0x190] sm:$0xff]  ;;  %10930 = vmatprep.subr.bf16.mxu0 %v10929_v43 }
0x1c56   : > { %v10931_v44 = vpack.c.bf16 %v3302_v18, %v3300_v42  ;;  %v10951_v42 = vpack.c.bf16 %v3322_v40, %v3320_v39  ;;  %v10953_v18 = vpack.c.bf16 %v3327_v47, %v3325_v41  ;;  %v3360_v40 = vld [vmem:[%s16020_s1 + $0x360] sm:$0xff]  ;;  %v3362_v41 = vld [vmem:[%s16020_s1 + $0x370] sm:$0xff]  ;;  %v3365_v47 = vld [vmem:[%s16020_s1 + $0x388] sm:$0xff] }
0x1c58   : > { %10856 = vmatpush1.bf16.msra.mxu1 %v10855_v17  ;;  %10932 = vmatpush1.bf16.msra.mxu0 %v10931_v44  ;;  %v3304_v17 = vld [vmem:[%s16020_s1 + $0x1a0] sm:$0xff] }
0x1c59   : > { %10858 = vmatprep.subr.bf16.mxu1 %v10857_v53  ;;  %v3306_v53 = vld [vmem:[%s16020_s1 + $0x1b0] sm:$0xff]  ;;  %10934 = vmatprep.subr.bf16.mxu0 %v10933_v51  ;;  %v3324_v44 = vld [vmem:[%s16020_s1 + $0x240] sm:$0xff]  ;;  %v3331_v51 = vld [vmem:[%s16020_s1 + $0x278] sm:$0xff] }
0x1c5a   : > { %v10935_v50 = vpack.c.bf16 %v3306_v53, %v3304_v17  ;;  %v10955_v17 = vpack.c.bf16 %v3326_v49, %v3324_v44  ;;  %v10957_v53 = vpack.c.bf16 %v3331_v51, %v3329_v46  ;;  %v3364_v44 = vld [vmem:[%s16020_s1 + $0x380] sm:$0xff]  ;;  %v3366_v49 = vld [vmem:[%s16020_s1 + $0x390] sm:$0xff]  ;;  %v3369_v46 = vld [vmem:[%s16020_s1 + $0x3a8] sm:$0xff] }
0x1c5b   : > { %v3371_v51 = vld [vmem:[%s16020_s1 + $0x3b8] sm:$0xff] }
0x1c5c   : > { %10860 = vmatpush1.bf16.msra.mxu1 %v10859_v55  ;;  %10936 = vmatpush1.bf16.msra.mxu0 %v10935_v50  ;;  %v3308_v55 = vld [vmem:[%s16020_s1 + $0x1c0] sm:$0xff] }
0x1c5d   : > { %10862 = vmatprep.subr.bf16.mxu1 %v10861_v5  ;;  %v3310_v5 = vld [vmem:[%s16020_s1 + $0x1d0] sm:$0xff]  ;;  %10938 = vmatprep.subr.bf16.mxu0 %v10937_v54  ;;  %v3328_v50 = vld [vmem:[%s16020_s1 + $0x260] sm:$0xff]  ;;  %v3335_v54 = vld [vmem:[%s16020_s1 + $0x298] sm:$0xff] }
0x1c5e   : > { %v10939_v57 = vpack.c.bf16 %v3310_v5, %v3308_v55  ;;  %v10959_v55 = vpack.c.bf16 %v3330_v52, %v3328_v50  ;;  %v10961_v5 = vpack.c.bf16 %v3335_v54, %v3333_v25  ;;  %v3368_v50 = vld [vmem:[%s16020_s1 + $0x3a0] sm:$0xff]  ;;  %v3370_v52 = vld [vmem:[%s16020_s1 + $0x3b0] sm:$0xff]  ;;  %v3373_v25 = vld [vmem:[%s16020_s1 + $0x3c8] sm:$0xff] }
0x1c5f   : > { %v3375_v54 = vld [vmem:[%s16020_s1 + $0x3d8] sm:$0xff] }
0x1c60   : > { %10864 = vmatpush1.bf16.msra.mxu1 %v10863_v21  ;;  %10940 = vmatpush1.bf16.msra.mxu0 %v10939_v57  ;;  %v3312_v21 = vld [vmem:[%s16020_s1 + $0x1e0] sm:$0xff] }
0x1c61   : > { %10866 = vmatprep.subr.bf16.mxu1 %v10865_v59  ;;  %v3314_v59 = vld [vmem:[%s16020_s1 + $0x1f0] sm:$0xff]  ;;  %10942 = vmatprep.subr.bf16.mxu0 %v10941_v56  ;;  %v3332_v57 = vld [vmem:[%s16020_s1 + $0x280] sm:$0xff]  ;;  %v3339_v56 = vld [vmem:[%s16020_s1 + $0x2b8] sm:$0xff] }
0x1c62   : > { %v10943_v62 = vpack.c.bf16 %v3314_v59, %v3312_v21  ;;  %v10963_v21 = vpack.c.bf16 %v3334_v48, %v3332_v57  ;;  %v10965_v59 = vpack.c.bf16 %v3339_v56, %v3337_v13  ;;  %v3372_v57 = vld [vmem:[%s16020_s1 + $0x3c0] sm:$0xff]  ;;  %v3374_v48 = vld [vmem:[%s16020_s1 + $0x3d0] sm:$0xff]  ;;  %v3377_v13 = vld [vmem:[%s16020_s1 + $0x3e8] sm:$0xff] }
0x1c63   : > { %v3379_v56 = vld [vmem:[%s16020_s1 + $0x3f8] sm:$0xff] }
0x1c64   : > { %10868 = vmatpush1.bf16.msra.mxu1 %v10867_v1  ;;  %10944 = vmatpush1.bf16.msra.mxu0 %v10943_v62  ;;  %v3059_v1 = vld [vmem:[#allocation68] sm:$0x3] }
0x1c65   : > { %10870 = vmatprep.subr.bf16.mxu1 %v10869_v4  ;;  %10946 = vmatprep.subr.bf16.mxu0 %v10945_v12  ;;  %v3058_v4 = vld [vmem:[#allocation67] sm:$0x3]  ;;  %v7980_v6 = vrot.slane %v3059_v1, %v15135_v15  ;;  %v7984_v45 = vrot.slane %v3059_v1, %v15138_v9  ;;  %v3343_v12 = vld [vmem:[%s16020_s1 + $0x2d8] sm:$0xff] }
0x1c66   : > { %v7993_v22 = vrot.slane %v3058_v4, %v15135_v15  ;;  %v3336_v62 = vld [vmem:[%s16020_s1 + $0x2a0] sm:$0xff] }
0x1c67   : > { %v10967_v1 = vpack.c.bf16 %v3338_v2, %v3336_v62  ;;  %v3376_v62 = vld [vmem:[%s16020_s1 + $0x3e0] sm:$0xff]  ;;  %v3378_v2 = vld [vmem:[%s16020_s1 + $0x3f0] sm:$0xff] }
0x1c68   : > { %10872 = vmatpush1.bf16.msra.mxu1 %v10871_v60  ;;  %v7997_v60 = vrot.slane %v3058_v4, %v15138_v9  ;;  %v10969_v4 = vpack.c.bf16 %v3343_v12, %v3341_v63  ;;  %v3381_v63 = vld [vmem:[%s16020_s1 + $0x408] sm:$0xff]  ;;  %v3383_v12 = vld [vmem:[%s16020_s1 + $0x418] sm:$0xff] }
0x1c69   : > { %10874 = vmatprep.subr.bf16.mxu1 %v10873_v8 }
0x1c6c   : > { %10876 = vmatpush1.bf16.msra.mxu1 %v10875_v27 }
0x1c6d   : > { %10878 = vmatprep.subr.bf16.mxu1 %v10877_v0 }
0x1c70   : > { %10880 = vmatpush1.bf16.msra.mxu1 %v10879_v33 }
0x1c73   : > { %7970 = vmatmul.mubr.f32.vlgmr.msra.gmra.mrb[52].mxu1 %v7759_v34 }
0x1d46   : > { %v7971_v7 = vpop.f32.mrb[52].mxu1 }
0x1d47   : > { %v7987_v8 = vmul.f32 %v7980_v6, %v7971_v7  ;;  %v7973_v11 = vpop.f32.mrb[53].mxu1  ;;  %v3340_v6 = vld [vmem:[%s16020_s1 + $0x2c0] sm:$0xff]  ;;  %v3347_v7 = vld [vmem:[%s16020_s1 + $0x2f8] sm:$0xff] }
0x1d48   : > { %v7988_v28 = vmul.f32 %v7984_v45, %v7973_v11  ;;  %v3342_v45 = vld [vmem:[%s16020_s1 + $0x2d0] sm:$0xff]  ;;  %v3344_v11 = vld [vmem:[%s16020_s1 + $0x2e0] sm:$0xff] }
0x1d49   : > { %v8000_v10 = vadd.f32 %v7993_v22, %v7987_v8  ;;  %v3345_v22 = vld [vmem:[%s16020_s1 + $0x2e8] sm:$0xff] }
0x1d4a   : > { %v8001_v20 = vadd.f32 %v7997_v60, %v7988_v28  ;;  %v10971_v60 = vpack.c.bf16 %v3342_v45, %v3340_v6  ;;  %v10973_v8 = vpack.c.bf16 %v3347_v7, %v3345_v22  ;;  %v3346_v28 = vld [vmem:[%s16020_s1 + $0x2f0] sm:$0xff]  ;;  %v3380_v6 = vld [vmem:[%s16020_s1 + $0x400] sm:$0xff]  ;;  %v3385_v7 = vld [vmem:[%s16020_s1 + $0x428] sm:$0xff] }
0x1d4b   : > { %v8004_v27 = vmin.f32 %v8000_v10, 0.0  ;;  %vm8002_vm15 = vcmp.gt.f32.partialorder %v8000_v10, 0.0  ;;  %v3382_v45 = vld [vmem:[%s16020_s1 + $0x410] sm:$0xff] }
0x1d4c   : > { %v8005_v0 = vmin.f32 %v8001_v20, 0.0  ;;  %vm8003_vm10 = vcmp.gt.f32.partialorder %v8001_v20, 0.0 }
0x1d4d   : > { %v8006_v30 = vmul.f32 1.442695, %v8004_v27  ;;  %v10975_v27 = vpack.c.bf16 %v3346_v28, %v3344_v11 }
0x1d4e   : > { %v8008_v31 = vmul.f32 1.442695, %v8005_v0 }
0x1d4f   : > { %11672 = vpow2.f32 %v8006_v30  ;;  %v3348_v30 = vld [vmem:[%s16020_s1 + $0x300] sm:$0xff] }
0x1d50   : > { %11674 = vpow2.f32 %v8008_v31  ;;  %v3350_v31 = vld [vmem:[%s16020_s1 + $0x310] sm:$0xff] }
0x1d59   : > { %v11673_v33 = vpop.eup %11672 }
0x1d5a   : > { %v11675_v15 = vpop.eup %11674  ;;  %v9190_v34 = vadd.f32 -1.0, %v11673_v33  ;;  %v3353_v33 = vld [vmem:[%s16020_s1 + $0x328] sm:$0xff] }
0x1d5b   : > { %v9191_v9 = vadd.f32 -1.0, %v11675_v15  ;;  %v3355_v15 = vld [vmem:[%s16020_s1 + $0x338] sm:$0xff] }
0x1d5c   : > { %v8012_v26 = vsel %vm8002_vm15, %v8000_v10, %v9190_v34  ;;  %v3349_v10 = vld [vmem:[%s16020_s1 + $0x308] sm:$0xff]  ;;  %v10979_v34 = vpack.c.bf16 %v3350_v31, %v3348_v30 }
0x1d5d   : > { %v8016_v35 = vrot.slane %v8012_v26, 7  ;;  %v8013_v37 = vsel %vm8003_vm10, %v8001_v20, %v9191_v9  ;;  %v3351_v20 = vld [vmem:[%s16020_s1 + $0x318] sm:$0xff]  ;;  %v10981_v9 = vpack.c.bf16 %v3355_v15, %v3353_v33  ;;  %v3352_v26 = vld [vmem:[%s16020_s1 + $0x320] sm:$0xff]  ;;  %v3390_v15 = vld [vmem:[%s16020_s1 + $0x450] sm:$0xff] }
0x1d5e   : > { %v8017_v36 = vrot.slane %v8013_v37, 7  ;;  %v10977_v0 = vpack.c.bf16 %v3351_v20, %v3349_v10  ;;  %v10983_v37 = vpack.c.bf16 %v3354_v24, %v3352_v26  ;;  %v3384_v10 = vld [vmem:[%s16020_s1 + $0x420] sm:$0xff]  ;;  %v3386_v20 = vld [vmem:[%s16020_s1 + $0x430] sm:$0xff] }
0x1d5f   : > { %v15595_v19 = vsel %vm3671_vm6, 0.0, %v8016_v35  ;;  %v3359_v35 = vld [vmem:[%s16020_s1 + $0x358] sm:$0xff]  ;;  %v11015_v30 = vpack.c.bf16 %v3386_v20, %v3384_v10  ;;  %v3388_v33 = vld [vmem:[%s16020_s1 + $0x440] sm:$0xff]  ;;  %v3426_v20 = vld [vmem:[%s16020_s1 + $0x570] sm:$0xff] }
0x1d60   : > { %v8021_v58 = vsel %vm3671_vm6, 0.0, %v8017_v36  ;;  %v10985_v29 = vpack.c.bf16 %v3359_v35, %v3357_v32  ;;  %v3358_v36 = vld [vmem:[%s16020_s1 + $0x350] sm:$0xff]  ;;  %v15662_v22 = vsel %vm7187_vm0, %v15595_v19, 0.0  ;;  %v3392_v24 = vld [vmem:[%s16020_s1 + $0x460] sm:$0xff]  ;;  %v3397_v35 = vld [vmem:[%s16020_s1 + $0x488] sm:$0xff]  ;;  %vm8259_vm6 = vcmask 1041408  }
0x1d61   : > { %v15591_v61 = vsel %vm7187_vm0, %v8021_v58, 0.0  ;;  %9192 = vmatprep.mubr.msk.f32.mxu0 %vm7187_vm0, %v8021_v58  ;;  %v3363_v58 = vld [vmem:[%s16020_s1 + $0x378] sm:$0xff]  ;;  %v8026_v11 = vrot.slane %v15662_v22, 1  ;;  %v3394_v32 = vld [vmem:[%s16020_s1 + $0x470] sm:$0xff]  ;;  %v3424_v10 = vld [vmem:[%s16020_s1 + $0x560] sm:$0xff] }
0x1d62   : > { %9193 = vmatmul.mubr.msk.f32.vlgmr.msra.gmra.mrb[64].mxu0 %vm7187_vm0, %v15595_v19  ;;  %v8027_v43 = vrot.slane %v15591_v61, 1  ;;  %v3391_v19 = vld [vmem:[%s16020_s1 + $0x458] sm:$0xff] }
0x1d63   : > { %10948 = vmatpush1.bf16.msra.mxu0 %v10947_v14  ;;  %v3361_v14 = vld [vmem:[%s16020_s1 + $0x368] sm:$0xff] }
0x1d64   : > { %8169 = vmatprep.mubr.f32.mxu0 %v8027_v43  ;;  %10950 = vmatprep.subr.bf16.mxu0 %v10949_v23  ;;  %v10987_v23 = vpack.c.bf16 %v3358_v36, %v3356_v38  ;;  %v10989_v39 = vpack.c.bf16 %v3363_v58, %v3361_v14  ;;  %v3367_v43 = vld [vmem:[%s16020_s1 + $0x398] sm:$0xff]  ;;  %v3396_v36 = vld [vmem:[%s16020_s1 + $0x480] sm:$0xff]  ;;  %v3398_v14 = vld [vmem:[%s16020_s1 + $0x490] sm:$0xff] }
0x1d65   : > { %v3401_v58 = vld [vmem:[%s16020_s1 + $0x4a8] sm:$0xff] }
0x1d67   : > { %10952 = vmatpush1.bf16.msra.mxu0 %v10951_v42  ;;  %v10991_v42 = vpack.c.bf16 %v3362_v41, %v3360_v40  ;;  %v3400_v41 = vld [vmem:[%s16020_s1 + $0x4a0] sm:$0xff] }
0x1d68   : > { %10954 = vmatprep.subr.bf16.mxu0 %v10953_v18  ;;  %v10993_v18 = vpack.c.bf16 %v3367_v43, %v3365_v47  ;;  %v3402_v47 = vld [vmem:[%s16020_s1 + $0x4b0] sm:$0xff]  ;;  %v3405_v43 = vld [vmem:[%s16020_s1 + $0x4c8] sm:$0xff] }
0x1d6b   : > { %10956 = vmatpush1.bf16.msra.mxu0 %v10955_v17  ;;  %v10995_v17 = vpack.c.bf16 %v3366_v49, %v3364_v44  ;;  %v3404_v49 = vld [vmem:[%s16020_s1 + $0x4c0] sm:$0xff] }
0x1d6c   : > { %10958 = vmatprep.subr.bf16.mxu0 %v10957_v53  ;;  %v10997_v53 = vpack.c.bf16 %v3371_v51, %v3369_v46  ;;  %v3406_v46 = vld [vmem:[%s16020_s1 + $0x4d0] sm:$0xff]  ;;  %v3409_v51 = vld [vmem:[%s16020_s1 + $0x4e8] sm:$0xff] }
0x1d6f   : > { %10960 = vmatpush1.bf16.msra.mxu0 %v10959_v55  ;;  %v10999_v55 = vpack.c.bf16 %v3370_v52, %v3368_v50  ;;  %v3408_v52 = vld [vmem:[%s16020_s1 + $0x4e0] sm:$0xff] }
0x1d70   : > { %10962 = vmatprep.subr.bf16.mxu0 %v10961_v5  ;;  %v11001_v5 = vpack.c.bf16 %v3375_v54, %v3373_v25  ;;  %v3410_v25 = vld [vmem:[%s16020_s1 + $0x4f0] sm:$0xff]  ;;  %v3413_v54 = vld [vmem:[%s16020_s1 + $0x508] sm:$0xff] }
0x1d73   : > { %10964 = vmatpush1.bf16.msra.mxu0 %v10963_v21  ;;  %v11003_v21 = vpack.c.bf16 %v3374_v48, %v3372_v57  ;;  %v3412_v48 = vld [vmem:[%s16020_s1 + $0x500] sm:$0xff] }
0x1d74   : > { %10966 = vmatprep.subr.bf16.mxu0 %v10965_v59  ;;  %v11005_v59 = vpack.c.bf16 %v3379_v56, %v3377_v13  ;;  %v3414_v13 = vld [vmem:[%s16020_s1 + $0x510] sm:$0xff]  ;;  %v3417_v56 = vld [vmem:[%s16020_s1 + $0x528] sm:$0xff] }
0x1d77   : > { %10968 = vmatpush1.bf16.msra.mxu0 %v10967_v1  ;;  %v11007_v1 = vpack.c.bf16 %v3378_v2, %v3376_v62  ;;  %v3416_v2 = vld [vmem:[%s16020_s1 + $0x520] sm:$0xff] }
0x1d78   : > { %10970 = vmatprep.subr.bf16.mxu0 %v10969_v4  ;;  %v11009_v4 = vpack.c.bf16 %v3383_v12, %v3381_v63  ;;  %v3418_v63 = vld [vmem:[%s16020_s1 + $0x530] sm:$0xff]  ;;  %v3421_v12 = vld [vmem:[%s16020_s1 + $0x548] sm:$0xff] }
0x1d7b   : > { %10972 = vmatpush1.bf16.msra.mxu0 %v10971_v60  ;;  %v3387_v60 = vld [vmem:[%s16020_s1 + $0x438] sm:$0xff] }
0x1d7c   : > { %10974 = vmatprep.subr.bf16.mxu0 %v10973_v8  ;;  %v11011_v8 = vpack.c.bf16 %v3382_v45, %v3380_v6  ;;  %v11013_v28 = vpack.c.bf16 %v3387_v60, %v3385_v7  ;;  %v3420_v45 = vld [vmem:[%s16020_s1 + $0x540] sm:$0xff]  ;;  %v3422_v7 = vld [vmem:[%s16020_s1 + $0x550] sm:$0xff]  ;;  %v3425_v60 = vld [vmem:[%s16020_s1 + $0x568] sm:$0xff] }
0x1d7f   : > { %10976 = vmatpush1.bf16.msra.mxu0 %v10975_v27  ;;  %v8031_v27 = vrot.slane %v15591_v61, 2  ;;  %v11019_v61 = vpack.c.bf16 %v3390_v15, %v3388_v33  ;;  %v3430_v33 = vld [vmem:[%s16020_s1 + $0x590] sm:$0xff]  ;;  %v3433_v15 = vld [vmem:[%s16020_s1 + $0x5a8] sm:$0xff] }
0x1d80   : > { %10978 = vmatprep.subr.bf16.mxu0 %v10977_v0  ;;  %v3389_v0 = vld [vmem:[%s16020_s1 + $0x448] sm:$0xff] }
0x1d81   : > { %v11017_v31 = vpack.c.bf16 %v3391_v19, %v3389_v0  ;;  %v3431_v0 = vld [vmem:[%s16020_s1 + $0x598] sm:$0xff]  ;;  %v11055_v19 = vpack.c.bf16 %v3426_v20, %v3424_v10 }
0x1d82   : > { %v3456_v10 = vld [vmem:[%s13457_s21 + $0x58] sm:$0xff] }
0x1d83   : > { %10980 = vmatpush1.bf16.msra.mxu0 %v10979_v34  ;;  %v3393_v34 = vld [vmem:[%s16020_s1 + $0x468] sm:$0xff] }
0x1d84   : > { %10982 = vmatprep.subr.bf16.mxu0 %v10981_v9  ;;  %v3395_v9 = vld [vmem:[%s16020_s1 + $0x478] sm:$0xff] }
0x1d85   : > { %v11021_v26 = vpack.c.bf16 %v3395_v9, %v3393_v34  ;;  %v3435_v34 = vld [vmem:[%s16020_s1 + $0x5b8] sm:$0xff] }
0x1d87   : > { %10984 = vmatpush1.bf16.msra.mxu0 %v10983_v37  ;;  %v3399_v37 = vld [vmem:[%s16020_s1 + $0x498] sm:$0xff] }
0x1d88   : > { %10986 = vmatprep.subr.bf16.mxu0 %v10985_v29  ;;  %v11023_v29 = vpack.c.bf16 %v3394_v32, %v3392_v24  ;;  %v11025_v38 = vpack.c.bf16 %v3399_v37, %v3397_v35  ;;  %v3434_v24 = vld [vmem:[%s16020_s1 + $0x5b0] sm:$0xff]  ;;  %v3437_v32 = vld [vmem:[%s16020_s1 + $0x5c8] sm:$0xff]  ;;  %v3439_v35 = vld [vmem:[%s16020_s1 + $0x5d8] sm:$0xff] }
0x1d8b   : > { %10988 = vmatpush1.bf16.msra.mxu0 %v10987_v23  ;;  %v3403_v23 = vld [vmem:[%s16020_s1 + $0x4b8] sm:$0xff] }
0x1d8c   : > { %10990 = vmatprep.subr.bf16.mxu0 %v10989_v39  ;;  %v11027_v39 = vpack.c.bf16 %v3398_v14, %v3396_v36  ;;  %v11029_v40 = vpack.c.bf16 %v3403_v23, %v3401_v58  ;;  %v3438_v36 = vld [vmem:[%s16020_s1 + $0x5d0] sm:$0xff]  ;;  %v3441_v14 = vld [vmem:[%s16020_s1 + $0x5e8] sm:$0xff]  ;;  %v3443_v58 = vld [vmem:[%s16020_s1 + $0x5f8] sm:$0xff] }
0x1d8f   : > { %10992 = vmatpush1.bf16.msra.mxu0 %v10991_v42  ;;  %v3407_v42 = vld [vmem:[%s16020_s1 + $0x4d8] sm:$0xff] }
0x1d90   : > { %10994 = vmatprep.subr.bf16.mxu0 %v10993_v18  ;;  %v11031_v18 = vpack.c.bf16 %v3402_v47, %v3400_v41  ;;  %v11033_v44 = vpack.c.bf16 %v3407_v42, %v3405_v43  ;;  %v3442_v41 = vld [vmem:[%s16020_s1 + $0x5f0] sm:$0xff]  ;;  %v8030_v43 = vrot.slane %v15662_v22, 2  ;;  %v3461_v42 = vld [vmem:[%s13457_s21 + $0x80] sm:$0xff]  ;;  %v3448_v22 = vld [vmem:[%s13457_s21 + $0x18] sm:$0xff] }
0x1d93   : > { %10996 = vmatpush1.bf16.msra.mxu0 %v10995_v17  ;;  %v3411_v17 = vld [vmem:[%s16020_s1 + $0x4f8] sm:$0xff] }
0x1d94   : > { %10998 = vmatprep.subr.bf16.mxu0 %v10997_v53  ;;  %v11035_v53 = vpack.c.bf16 %v3406_v46, %v3404_v49  ;;  %v11037_v50 = vpack.c.bf16 %v3411_v17, %v3409_v51  ;;  %v3445_v49 = vld [vmem:[%s13457_s21] sm:$0xff]  ;;  %v3446_v46 = vld [vmem:[%s13457_s21 + $0x8] sm:$0xff]  ;;  %v3463_v17 = vld [vmem:[%s13457_s21 + $0x90] sm:$0xff] }
0x1d95   : > { %v11075_v51 = vpack.c.bf16 %v3446_v46, %v3445_v49 }
0x1d97   : > { %11000 = vmatpush1.bf16.msra.mxu0 %v10999_v55  ;;  %v3415_v55 = vld [vmem:[%s16020_s1 + $0x518] sm:$0xff] }
0x1d98   : > { %11002 = vmatprep.subr.bf16.mxu0 %v11001_v5  ;;  %v11039_v5 = vpack.c.bf16 %v3410_v25, %v3408_v52  ;;  %v11041_v57 = vpack.c.bf16 %v3415_v55, %v3413_v54  ;;  %v3447_v52 = vld [vmem:[%s13457_s21 + $0x10] sm:$0xff]  ;;  %v3465_v54 = vld [vmem:[%s13457_s21 + $0xa0] sm:$0xff]  ;;  %v3466_v55 = vld [vmem:[%s13457_s21 + $0xa8] sm:$0xff] }
0x1d99   : > { %v11079_v25 = vpack.c.bf16 %v3448_v22, %v3447_v52 }
0x1d9b   : > { %11004 = vmatpush1.bf16.msra.mxu0 %v11003_v21  ;;  %v3419_v21 = vld [vmem:[%s16020_s1 + $0x538] sm:$0xff] }
0x1d9c   : > { %11006 = vmatprep.subr.bf16.mxu0 %v11005_v59  ;;  %v11043_v59 = vpack.c.bf16 %v3414_v13, %v3412_v48  ;;  %v11045_v62 = vpack.c.bf16 %v3419_v21, %v3417_v56  ;;  %v3450_v48 = vld [vmem:[%s13457_s21 + $0x28] sm:$0xff]  ;;  %v3467_v56 = vld [vmem:[%s13457_s21 + $0xb0] sm:$0xff]  ;;  %v3468_v21 = vld [vmem:[%s13457_s21 + $0xb8] sm:$0xff] }
0x1d9f   : > { %11008 = vmatpush1.bf16.msra.mxu0 %v11007_v1  ;;  %v3423_v1 = vld [vmem:[%s16020_s1 + $0x558] sm:$0xff] }
0x1da0   : > { %11010 = vmatprep.subr.bf16.mxu0 %v11009_v4  ;;  %v11047_v4 = vpack.c.bf16 %v3418_v63, %v3416_v2  ;;  %v11049_v6 = vpack.c.bf16 %v3423_v1, %v3421_v12  ;;  %v3452_v2 = vld [vmem:[%s13457_s21 + $0x38] sm:$0xff]  ;;  %v3469_v12 = vld [vmem:[%s13457_s21 + $0xc0] sm:$0xff]  ;;  %v3470_v1 = vld [vmem:[%s13457_s21 + $0xc8] sm:$0xff] }
0x1da2   : > { %8170 = vmatmul.mubr.f32.vlgmr.msra.gmra.mrb[64].mxu0 %v8026_v11  ;;  %v11051_v11 = vpack.c.bf16 %v3422_v7, %v3420_v45  ;;  %v3454_v45 = vld [vmem:[%s13457_s21 + $0x48] sm:$0xff] }
0x1da3   : > { %11012 = vmatpush1.bf16.msra.mxu0 %v11011_v8  ;;  %8240 = vmatprep.mubr.f32.mxu0 %v8031_v27  ;;  %v3427_v8 = vld [vmem:[%s16020_s1 + $0x578] sm:$0xff]  ;;  %v3429_v27 = vld [vmem:[%s16020_s1 + $0x588] sm:$0xff] }
0x1da4   : > { %11014 = vmatprep.subr.bf16.mxu0 %v11013_v28  ;;  %v11053_v28 = vpack.c.bf16 %v3427_v8, %v3425_v60  ;;  %v3471_v60 = vld [vmem:[%s13457_s21 + $0xd0] sm:$0xff]  ;;  %v3472_v8 = vld [vmem:[%s13457_s21 + $0xd8] sm:$0xff] }
0x1da7   : > { %11016 = vmatpush1.bf16.msra.mxu0 %v11015_v30  ;;  %v11057_v30 = vpack.c.bf16 %v3431_v0, %v3429_v27  ;;  %v3473_v27 = vld [vmem:[%s13457_s21 + $0xe0] sm:$0xff]  ;;  %v3474_v0 = vld [vmem:[%s13457_s21 + $0xe8] sm:$0xff] }
0x1da8   : > { %11018 = vmatprep.subr.bf16.mxu0 %v11017_v31  ;;  %v3428_v31 = vld [vmem:[%s16020_s1 + $0x580] sm:$0xff] }
0x1da9   : > { %v11059_v9 = vpack.c.bf16 %v3430_v33, %v3428_v31  ;;  %v3458_v31 = vld [vmem:[%s13457_s21 + $0x68] sm:$0xff]  ;;  %v3475_v33 = vld [vmem:[%s13457_s21 + $0xf0] sm:$0xff] }
0x1dab   : > { %11020 = vmatpush1.bf16.msra.mxu0 %v11019_v61  ;;  %v11061_v61 = vpack.c.bf16 %v3435_v34, %v3433_v15  ;;  %v3476_v34 = vld [vmem:[%s13457_s21 + $0xf8] sm:$0xff] }
0x1dac   : > { %11022 = vmatprep.subr.bf16.mxu0 %v11021_v26  ;;  %v3432_v26 = vld [vmem:[%s16020_s1 + $0x5a0] sm:$0xff] }
0x1dad   : > { %v11063_v37 = vpack.c.bf16 %v3434_v24, %v3432_v26  ;;  %v11101_v26 = vpack.c.bf16 %v3476_v34, %v3475_v33 }
0x1daf   : > { %11024 = vmatpush1.bf16.msra.mxu0 %v11023_v29  ;;  %v11065_v29 = vpack.c.bf16 %v3439_v35, %v3437_v32 }
0x1db0   : > { %11026 = vmatprep.subr.bf16.mxu0 %v11025_v38  ;;  %v3436_v38 = vld [vmem:[%s16020_s1 + $0x5c0] sm:$0xff] }
0x1db1   : > { %v11067_v23 = vpack.c.bf16 %v3438_v36, %v3436_v38 }
0x1db3   : > { %11028 = vmatpush1.bf16.msra.mxu0 %v11027_v39  ;;  %v11069_v39 = vpack.c.bf16 %v3443_v58, %v3441_v14 }
0x1db4   : > { %11030 = vmatprep.subr.bf16.mxu0 %v11029_v40  ;;  %v3440_v40 = vld [vmem:[%s16020_s1 + $0x5e0] sm:$0xff]  ;;  %s9196_s1 = sshll.u32 %s13490_s15, 4  ;;  %s13153_s15 = smov [#allocation73]  }
0x1db5   : > { %v11071_v47 = vpack.c.bf16 %v3442_v41, %v3440_v40  ;;  %s15764_s4 = scalar_lea.hbm %s13467_s13, %s9196_s1  ;;  %s12880_s8 = sshll.u32 %s13153_s15, 4  ;;  %s12881_s8 = int_to_ptr.vmem [resolvable:$false] %s12880_s8 }
0x1db6   : > { %s12882_s9 = scalar_lea.vmem %s12881_s8, 32  ;;  %p12883_p1 = scmp.lt.s32.totalorder %s15766_s3, %s12881_s8 }
0x1db7   : > { %11032 = vmatpush1.bf16.msra.mxu0 %v11031_v18  ;;  %v3462_v18 = vld [vmem:[%s13457_s21 + $0x88] sm:$0xff]  ;;  %p12884_p5 = scmp.lt.s32.totalorder %s12882_s9, %s12876_s6 }
0x1db8   : > { %11034 = vmatprep.subr.bf16.mxu0 %v11033_v44  ;;  %v11073_v44 = vpack.c.bf16 %v3462_v18, %v3461_v42 }
0x1db9   : > { %p12885_p6 = por %p12884_p5, %p12883_p1 }
0x1dba   : > { %11074 = vmatprep.subr.bf16.mxu1 %v11073_v44 }
0x1dbb   : > { %11036 = vmatpush1.bf16.msra.mxu0 %v11035_v53  ;;  %11076 = vmatpush3.bf16.msra.mxu1 %v11075_v51  ;;  %v3464_v53 = vld [vmem:[%s13457_s21 + $0x98] sm:$0xff]  ;;  %p12886_p2 = pnand %p12885_p6, %p12879_p0 }
0x1dbc   : > { %11038 = vmatprep.subr.bf16.mxu0 %v11037_v50  ;;  %v11077_v50 = vpack.c.bf16 %v3464_v53, %v3463_v17 }
0x1dbe   : > { %11078 = vmatprep.subr.bf16.mxu1 %v11077_v50 }
0x1dbf   : > { %11040 = vmatpush1.bf16.msra.mxu0 %v11039_v5  ;;  %11080 = vmatpush3.bf16.msra.mxu1 %v11079_v25  ;;  %v11081_v5 = vpack.c.bf16 %v3466_v55, %v3465_v54 }
0x1dc0   : > { %11042 = vmatprep.subr.bf16.mxu0 %v11041_v57  ;;  %v3449_v57 = vld [vmem:[%s13457_s21 + $0x20] sm:$0xff] }
0x1dc1   : > { %v11083_v13 = vpack.c.bf16 %v3450_v48, %v3449_v57  ;;  %11082 = vmatprep.subr.bf16.mxu1 %v11081_v5  ;;  %v3444_v57 = vld [vmem:[#allocation70] sm:$0x1] }
0x1dc3   : > { %11044 = vmatpush1.bf16.msra.mxu0 %v11043_v59  ;;  %11084 = vmatpush3.bf16.msra.mxu1 %v11083_v13  ;;  %v11085_v59 = vpack.c.bf16 %v3468_v21, %v3467_v56 }
0x1dc4   : > { %11046 = vmatprep.subr.bf16.mxu0 %v11045_v62  ;;  %v3451_v62 = vld [vmem:[%s13457_s21 + $0x30] sm:$0xff] }
0x1dc5   : > { %v11087_v63 = vpack.c.bf16 %v3452_v2, %v3451_v62  ;;  %11086 = vmatprep.subr.bf16.mxu1 %v11085_v59 }
0x1dc7   : > { %11048 = vmatpush1.bf16.msra.mxu0 %v11047_v4  ;;  %11088 = vmatpush3.bf16.msra.mxu1 %v11087_v63  ;;  %v11089_v4 = vpack.c.bf16 %v3470_v1, %v3469_v12 }
0x1dc8   : > { %11050 = vmatprep.subr.bf16.mxu0 %v11049_v6  ;;  %v3453_v6 = vld [vmem:[%s13457_s21 + $0x40] sm:$0xff] }
0x1dc9   : > { %v11091_v7 = vpack.c.bf16 %v3454_v45, %v3453_v6  ;;  %11090 = vmatprep.subr.bf16.mxu1 %v11089_v4 }
0x1dcb   : > { %11052 = vmatpush1.bf16.msra.mxu0 %v11051_v11  ;;  %11092 = vmatpush3.bf16.msra.mxu1 %v11091_v7  ;;  %v11093_v11 = vpack.c.bf16 %v3472_v8, %v3471_v60 }
0x1dcc   : > { %11054 = vmatprep.subr.bf16.mxu0 %v11053_v28  ;;  %v3455_v28 = vld [vmem:[%s13457_s21 + $0x50] sm:$0xff] }
0x1dcd   : > { %v11095_v20 = vpack.c.bf16 %v3456_v10, %v3455_v28  ;;  %11094 = vmatprep.subr.bf16.mxu1 %v11093_v11 }
0x1dcf   : > { %11056 = vmatpush1.bf16.msra.mxu0 %v11055_v19  ;;  %11096 = vmatpush3.bf16.msra.mxu1 %v11095_v20  ;;  %v11097_v19 = vpack.c.bf16 %v3474_v0, %v3473_v27 }
0x1dd0   : > { %11058 = vmatprep.subr.bf16.mxu0 %v11057_v30  ;;  %v3457_v30 = vld [vmem:[%s13457_s21 + $0x60] sm:$0xff] }
0x1dd1   : > { %v11099_v15 = vpack.c.bf16 %v3458_v31, %v3457_v30  ;;  %11098 = vmatprep.subr.bf16.mxu1 %v11097_v19 }
0x1dd3   : > { %11060 = vmatpush1.bf16.msra.mxu0 %v11059_v9  ;;  %v3459_v9 = vld [vmem:[%s13457_s21 + $0x70] sm:$0xff]  ;;  %11100 = vmatpush3.bf16.msra.mxu1 %v11099_v15 }
0x1dd4   : > { %11062 = vmatprep.subr.bf16.mxu0 %v11061_v61  ;;  %v3460_v61 = vld [vmem:[%s13457_s21 + $0x78] sm:$0xff]  ;;  %11102 = vmatprep.subr.bf16.mxu1 %v11101_v26 }
0x1dd5   : > { %v11103_v24 = vpack.c.bf16 %v3460_v61, %v3459_v9 }
0x1dd7   : > { %11064 = vmatpush1.bf16.msra.mxu0 %v11063_v37  ;;  %11104 = vmatpush3.bf16.msra.mxu1 %v11103_v24 }
0x1dd8   : > { %11066 = vmatprep.subr.bf16.mxu0 %v11065_v29 }
0x1ddb   : > { %11068 = vmatpush1.bf16.msra.mxu0 %v11067_v23 }
0x1ddc   : > { %11070 = vmatprep.subr.bf16.mxu0 %v11069_v39 }
0x1ddf   : > { %11072 = vmatpush1.bf16.msra.mxu0 %v11071_v47 }
0x1de2   : > { %8241 = vmatmul.mubr.f32.vlgmr.msra.gmra.mrb[64].mxu0 %v8030_v43 }
0x1eb5   : > { %v8242_v32 = vpop.f32.mrb[64].mxu0 }
0x1eb6   : > { %v11109_v35 = vadd.f32 %v8242_v32, %v15363_v16  ;;  %v8244_v37 = vpop.f32.mrb[65].mxu0 }
0x1eb7   : > { %v11110_v29 = vadd.f32 %v8244_v37, %v15367_v3 }
0x1eb8   : > { %v8249_v38 = vmin.f32 %v11109_v35, 0.0  ;;  %vm8247_vm11 = vcmp.gt.f32.partialorder %v11109_v35, 0.0 }
0x1eb9   : > { %v8250_v36 = vmin.f32 %v11110_v29, 0.0  ;;  %vm8248_vm14 = vcmp.gt.f32.partialorder %v11110_v29, 0.0 }
0x1eba   : > { %v8251_v14 = vmul.f32 1.442695, %v8249_v38 }
0x1ebb   : > { %v8253_v58 = vmul.f32 1.442695, %v8250_v36 }
0x1ebc   : > { %11676 = vpow2.f32 %v8251_v14 }
0x1ebd   : > { %11678 = vpow2.f32 %v8253_v58 }
0x1ec6   : > { %v11677_v23 = vpop.eup %11676 }
0x1ec7   : > { %v11679_v39 = vpop.eup %11678  ;;  %v9194_v40 = vadd.f32 -1.0, %v11677_v23 }
0x1ec8   : > { %v9195_v41 = vadd.f32 -1.0, %v11679_v39 }
0x1ec9   : > { %v8257_v47 = vsel %vm8247_vm11, %v11109_v35, %v9194_v40 }
0x1eca   : > { %v8260_v43 = vsel %vm8259_vm6, %v8257_v47, 0.0  ;;  %v8258_v42 = vsel %vm8248_vm14, %v11110_v29, %v9195_v41 }
0x1ecb   : > { %v8261_v16 = vrot.slane %v8260_v43, 4  ;;  %v8267_v18 = vsel %vm8259_vm6, %v8258_v42, 0.0 }
0x1ecc   : > { %v8268_v3 = vrot.slane %v8267_v18, 4 }
0x1ecd   : > { %v8262_v44 = vadd.f32 %v8261_v16, %v8260_v43 }
0x1ece   : > { %v8269_v49 = vadd.f32 %v8268_v3, %v8267_v18 }
0x1ecf   : > { %v8263_v46 = vrot.slane %v8262_v44, 2 }
0x1ed0   : > { %v8270_v51 = vrot.slane %v8269_v49, 2 }
0x1ed1   : > { %v8264_v17 = vadd.f32 %v8263_v46, %v8262_v44 }
0x1ed2   : > { %v8271_v53 = vadd.f32 %v8270_v51, %v8269_v49 }
0x1ed3   : > { %v8265_v50 = vrot.slane %v8264_v17, 1 }
0x1ed4   : > { %v8272_v52 = vrot.slane %v8271_v53, 1 }
0x1ed5   : > { %v8266_v22 = vadd.f32 %v8265_v50, %v8264_v17 }
0x1ed6   : > { %v8273_v25 = vadd.f32 %v8272_v52, %v8271_v53 }
0x1ed7   : > { %v8274_v55 = vmul.f32 0.5, %v8266_v22 }
0x1ed8   : > { %v8275_v54 = vmul.f32 0.5, %v8273_v25 }
0x1eda   : > { %8340 = vmatprep.mubr.f32.mxu1 %v8275_v54 }
0x1edb   : > { %8341 = vmatmul.mubr.f32.vlgmr.msra.gmra.mrb[54].mxu1 %v8274_v55 }
0x1fae   : > { %v9524_v5 = vpop.f32.mrb[54].mxu1 }
0x1faf   : > { %v9525_v48 = vpop.f32.mrb[55].mxu1 }
0x1fb0   : > { %v9526_v13 = vadd.f32 %v9525_v48, %v9524_v5 }
0x1fb2   : > { %v8343_v56 = vadd.f32 %v9526_v13, %v3444_v57 }
0x1fb4   : > { %8347 = vst.msk [vmem:[%s2384_s2] sm:$0x1] %vm8346_vm12, %v8343_v56 }
0x1fb5   : > { %12889 = shalt.err (!%p12886_p2)
}
0x1fb6   : > { %s12890_s2 = scalar_lea.hbm %s15764_s4, 16  ;;  %s12894_s1 = scalar_lea.hbm %s13467_s13, 32 }
0x1fb7   : > { %p12891_p3 = scmp.ne.s32.totalorder %s15764_s4, %s12890_s2  ;;  %p12895_p8 = scmp.lt.u32.totalorder %s15764_s4, %s13467_s13 }
0x1fb8   : > { %p12896_p11 = scmp.lt.u32.totalorder %s12894_s1, %s12890_s2  ;;  %p12898_p10 = scmp.lt.u32.totalorder %s12890_s2, %s15764_s4 }
0x1fb9   : > { %p12892_p4 = pnand %p12891_p3, %p16021_p12 }
0x1fba   : > { %p12897_p9 = por %p12896_p11, %p12895_p8 }
0x1fbb   : > { %p12893_p7 = pneg %p12892_p4 }
0x1fbc   : > { %p12899_p13 = por %p12898_p10, %p12897_p9 }
0x1fbe   : > { %p12900_p0 = pnand %p12899_p13, %p12893_p7 }
0x1fc0   : > { %12903 = shalt.err (!%p12900_p0)
}
0x1fc1   : > { %11308 = dma.vmem_to_hbm [thread:$0]  (%p16021_p12), %s15766_s3, 16, %s15764_s4, %s8349_s5  }
0x1fc2 PF: > { %s16022_s8 = sld [smem:[#allocation155_spill]]  ;;  %p11406_p1 = scmp.ge.s32.totalorder %s13034_s11, 2 }
0x1fc3   : > { %s8373_s9 = sand.u32 1, %s13022_s0  }
0x1fc4   : > { %s8374_s6 = scalar_lea.sflag [#allocation4], %s8373_s9 }
0x1fc8   : > { %p16023_p5 = scmp.ne.s32.totalorder %s16022_s8, 0 }
0x1fca   : > { %p11311_p6 = pnand %p11406_p1, %p16023_p5 }
0x1fcc   : > { %13017 = dma.done.wait (!%p11311_p6), %s8374_s6, 16  }
0x1fcd   : > { %13019 = vsyncadd (!%p11311_p6), %s8374_s6, 4294967280  ;;  %s16024_s11 = sld [smem:[#allocation153_spill]]  ;;  %s16025_s10 = sld [smem:[#allocation152_spill]] }
0x1fce   : > { %s16026_s15 = sld [smem:[#allocation154_spill]]  ;;  %s16027_s0 = smov %s13026_s7 }
0x1fd3   : > { %p157_p2 = scmp.ge.s32.totalorder %s16024_s11, 4   ;;  %s16028_s7 = smov %s16025_s10 }
0x1fd4   : > { %s16029_s10 = smov %s16026_s15 }
0x1fd5   :  { %159 = sbr.rel (!%p157_p2) target bundleno = 143 (0x8f), region = 545 }
0x1fdc   :  { %8378 = vsyncpa [#allocation3], 1 }
0x1fdd   :  { %8380 = vsyncpa [#allocation3 + $0x1], 1 }
0x1fde   :  { %8381 = vsyncpa [#allocation6], 1 }
0x1fdf   :  { %8382 = vsyncpa [#allocation9], 1 }
0x1fe0   :  { %8383 = vsyncpa [#allocation12], 1 }
0x1fe1   :  { %8384 = vsyncpa [#allocation15], 1 }
0x1fe2   :  { %8385 = vsyncpa [#allocation18], 1 }
0x1fe3   :  { %8386 = vsyncpa [#allocation21], 1 }
0x1fe4   :  { %8387 = vsyncpa [#allocation24], 1 }
0x1fe5   :  { %8388 = vsyncpa [#allocation27], 1 }
0x1fe6   :  { %8389 = vsyncpa [#allocation30], 1 }
0x1fe7   :  { %8390 = vsyncpa [#allocation33], 1 }
0x1fe8   :  { %8391 = vsyncpa [#allocation36], 1 }
0x1fe9   :  { %8392 = vsyncpa [#allocation39], 1 }
0x1fea   :  { %8393 = vsyncpa [#allocation42], 1 }
0x1feb   :  { %8394 = vsyncpa [#allocation45], 1 }
0x1fec   :  { %8395 = vsyncpa [#allocation48], 1 }
0x1fed   :  { %8396 = vsyncpa [#allocation51], 1 }
0x1fee   :  { %8397 = vsyncpa [#allocation54], 1 }
0x1fef   :  { %8398 = vsyncpa [#allocation57], 1 }
0x1ff0   :  { %8399 = vsyncpa [#allocation60], 1 }
0x1ff1   :  { %8400 = vsyncpa [#allocation63], 1 }
0x1ff2   :  { %8401 = vsyncpa [#allocation66], 1 }
0x1ff3   :  { %8402 = vsyncpa [#allocation69], 1 }
0x1ff4   :  { %8403 = vsyncpa [#allocation72], 1 }
0x1ff5   :  { %8404 = vsyncpa [#allocation4], 1 }
0x1ff6   :  { %8406 = vsyncpa [#allocation4 + $0x1], 1 }

</bundles_post_ra>
